<compile_context>
chip_gen: v7x
topology: tpu7x:2x2x1
jax: 0.10.0
libtpu: 0.0.40
codegen_flags: <defaults>
</compile_context>

<pallas_src>
import math

import jax
import jax.numpy as jnp
from jax.experimental import pallas as pl
from jax.experimental.pallas import tpu as pltpu

# ------------------------- model hyper-parameters ---------------------------
B = 2          # graphs in the batch
N = 8          # nodes per graph (fully connected)
C_IN = 8       # fiber_in  {0: 8}
C_EDGE = 4     # fiber_edge {0: 4}
C_HID = 16     # fiber_hidden {0: 16}
C_OUT = 8      # fiber_out {0: 8}
N_HEAD = 2
N_LAYER = 2
R_HID = 16     # radial-MLP hidden width
N_RNET = N_LAYER + 1          # radial nets: one per layer + output conv
EPS = 1e-5


# --------------------- weight-slab layout (static, Python) ------------------
def _slab_layout():
    sizes = [
        ("rw1e", C_EDGE, N_RNET * R_HID),
        ("rw1d", 1, N_RNET * R_HID),
        ("rb1", 1, N_RNET * R_HID),
        ("rg", 1, N_RNET * R_HID),
        ("rbt", 1, N_RNET * R_HID),
        ("rw2_0", R_HID, 2 * C_HID),
        ("rb2_0", 1, 2 * C_HID),
        ("rw2_1", R_HID, 2 * C_HID),
        ("rb2_1", 1, 2 * C_HID),
        ("rw2_o", R_HID, C_OUT),
        ("rb2_o", 1, C_OUT),
        ("wqkv0", C_IN, 3 * C_HID),
        ("wp1_0", C_HID, C_HID),
        ("wp2_0", C_IN, C_HID),
        ("bp0", 1, C_HID),
        ("ng0", 1, C_HID),
        ("nb0", 1, C_HID),
        ("wqkv1", C_HID, 3 * C_HID),
        ("wp1_1", C_HID, C_HID),
        ("wp2_1", C_HID, C_HID),
        ("bp1", 1, C_HID),
        ("ng1", 1, C_HID),
        ("nb1", 1, C_HID),
        ("wself", C_HID, C_OUT),
        ("wnbr", C_HID, C_OUT),
    ]
    layout, off = {}, 0
    for name, r, c in sizes:
        layout[name] = (off, r, c)
        off += ((r + 7) // 8) * 8      # keep every weight sublane-aligned
    return layout, off


LAYOUT, SLAB_ROWS = _slab_layout()
SLAB_COLS = 128                        # one lane tile wide


# ------------------------------ fused kernel --------------------------------
def fused_forward_kernel(nf_ref, ef_ref, co_ref, w_ref, o_ref):
    n = N
    m = n * n
    bm = B * m
    bn = B * n
    dh = C_HID // N_HEAD
    scale = 1.0 / math.sqrt(dh)

    def w(name):
        off, r, c = LAYOUT[name]
        return w_ref[off:off + r, :c]          # static slice of the VMEM slab

    # ---- edge featurisation: ||r_ij|| per graph ----------------------------
    c = co_ref[...]                                        # (B, n, 3)
    rel = c[:, :, None, :] - c[:, None, :, :]              # (B, n, n, 3)
    dist = jnp.sqrt(jnp.sum(rel * rel, axis=-1, keepdims=True) + 1e-8)
    df = dist.reshape(bm, 1)                               # (B*m, 1)

    # ---- all radial MLPs, one batched first layer over all B*m edges -------
    ef = ef_ref[...]                                       # (B*m, C_EDGE)
    h = (jnp.dot(ef, w("rw1e"), preferred_element_type=jnp.float32)
         + df * w("rw1d") + w("rb1"))                      # (B*m, N_RNET*R_HID)

    # per-net LayerNorm / ReLU / second layer via static lane slices (VPU/XLU)
    rg_all, rbt_all = w("rg"), w("rbt")
    nets = (("rw2_0", "rb2_0"), ("rw2_1", "rb2_1"), ("rw2_o", "rb2_o"))
    r_outs = []
    for t, (w2n, b2n) in enumerate(nets):
        lo = t * R_HID
        ht = h[:, lo:lo + R_HID]                           # (B*m, R_HID)
        mu = jnp.mean(ht, axis=-1, keepdims=True)
        hc = ht - mu
        var = jnp.mean(hc * hc, axis=-1, keepdims=True)
        hn = (hc * jax.lax.rsqrt(var + EPS)
              * rg_all[:, lo:lo + R_HID] + rbt_all[:, lo:lo + R_HID])
        hr = jnp.maximum(hn, 0.0)
        r_outs.append(jnp.dot(hr, w(w2n),
                              preferred_element_type=jnp.float32) + w(b2n))
    rkv = (r_outs[0], r_outs[1])                           # (B*m, 2*C_HID) each
    r_out = r_outs[2]                                      # (B*m, C_OUT)

    # ---- attention layers ---------------------------------------------------
    x = nf_ref[...]                                        # (B*n, d_in)
    for l in range(N_LAYER):
        rl = rkv[l]
        rk = rl[:, :C_HID].reshape(B, n, n, C_HID)
        rv = rl[:, C_HID:].reshape(B, n, n, C_HID)

        # fused Q/K/V projection: one wide matmul over all B*n nodes
        qkv = jnp.dot(x, w(f"wqkv{l}"), preferred_element_type=jnp.float32)
        q = qkv[:, :C_HID].reshape(B, n, C_HID)
        kb = qkv[:, C_HID:2 * C_HID].reshape(B, n, C_HID)
        vb = qkv[:, 2 * C_HID:].reshape(B, n, C_HID)

        k = rk * kb[:, None, :, :]             # k_bij = R^K_bij * (W_k x_bj)
        v = rv * vb[:, None, :, :]             # v_bij = R^V_bij * (W_v x_bj)
        pe = q[:, :, None, :] * k              # (B, n, n, C_HID)

        # per-head logits / softmax / aggregation via static lane segments
        parts = []
        for hidx in range(N_HEAD):
            lo = hidx * dh
            lg = jnp.sum(pe[..., lo:lo + dh], axis=-1) * scale   # (B, n, n)
            mx = jnp.max(lg, axis=-1, keepdims=True)
            e = jnp.exp(lg - mx)
            a = e / jnp.sum(e, axis=-1, keepdims=True)           # softmax over j
            parts.append(jnp.sum(a[..., None] * v[..., lo:lo + dh], axis=2))
        attn = jnp.concatenate(parts, axis=-1).reshape(bn, C_HID)

        # skip connection + output projection (no lane concat)
        y = (jnp.dot(attn, w(f"wp1_{l}"), preferred_element_type=jnp.float32)
             + jnp.dot(x, w(f"wp2_{l}"), preferred_element_type=jnp.float32)
             + w(f"bp{l}"))

        # NormSE3 (degree 0): sign(y) * ReLU(LayerNorm(|y|))
        na = jnp.abs(y)
        mu_n = jnp.mean(na, axis=-1, keepdims=True)
        var_n = jnp.mean((na - mu_n) ** 2, axis=-1, keepdims=True)
        t = jnp.maximum((na - mu_n) * jax.lax.rsqrt(var_n + EPS)
                        * w(f"ng{l}") + w(f"nb{l}"), 0.0)
        phase = jnp.where(y > 0.0, 1.0, jnp.where(y < 0.0, -1.0, 0.0))
        x = phase * t                                          # (B*n, C_HID)

    # ---- final ConvSE3 (degree 0): self-interaction + radial-weighted sum --
    r_o = r_out.reshape(B, n, n, C_OUT)
    msg = jnp.dot(x, w("wnbr"),
                  preferred_element_type=jnp.float32).reshape(B, n, C_OUT)
    agg = jnp.sum(r_o * msg[:, None, :, :], axis=2)            # sum over j
    o_ref[...] = (jnp.dot(x, w("wself"), preferred_element_type=jnp.float32)
                  + agg.reshape(bn, C_OUT))


# ------------------------------- wrapper -------------------------------------
def fused_forward(slab, node_feats, edge_feats, coords):
    b, n, _ = node_feats.shape
    assert (b, n) == (B, N)
    nf2 = node_feats.reshape(b * n, C_IN)              # wrapper-side reshapes
    ef2 = edge_feats.reshape(b * n * n, C_EDGE)
    out = pl.pallas_call(
        fused_forward_kernel,
        out_shape=jax.ShapeDtypeStruct((b * n, C_OUT), jnp.float32),
        grid=(1,),                                     # batch folded into rows
        in_specs=[
            pl.BlockSpec((b * n, C_IN), lambda i: (0, 0)),
            pl.BlockSpec((b * n * n, C_EDGE), lambda i: (0, 0)),
            pl.BlockSpec((b, n, 3), lambda i: (0, 0, 0)),
            pl.BlockSpec((SLAB_ROWS, SLAB_COLS), lambda i: (0, 0)),
        ],
        out_specs=pl.BlockSpec((b * n, C_OUT), lambda i: (0, 0)),
        compiler_params=pltpu.CompilerParams(dimension_semantics=("arbitrary",)),
    )(nf2, ef2, coords, slab)
    return out.reshape(b, n, C_OUT)


# --------------------------- parameter initialisation -----------------------
def _dense(key, shape, scale=0.1):
    return scale * jax.random.normal(key, shape, dtype=jnp.float32)


def init_params(key):
    params = {"layers": []}
    d_in = C_IN
    for _ in range(N_LAYER):
        key, *ks = jax.random.split(key, 12)
        layer = {
            "radial": {
                "w1": _dense(ks[0], (C_EDGE + 1, R_HID)),
                "b1": jnp.zeros((1, R_HID), jnp.float32),
                "g": jnp.ones((1, R_HID), jnp.float32),
                "bt": jnp.zeros((1, R_HID), jnp.float32),
                "w2": _dense(ks[1], (R_HID, 2 * C_HID)),
                "b2": jnp.zeros((1, 2 * C_HID), jnp.float32),
            },
            "attn": {
                "wq": _dense(ks[2], (d_in, C_HID)),
                "wk": _dense(ks[3], (d_in, C_HID)),
                "wv": _dense(ks[4], (d_in, C_HID)),
                "wp1": _dense(ks[5], (C_HID, C_HID)),
                "wp2": _dense(ks[6], (d_in, C_HID)),
                "bp": jnp.zeros((1, C_HID), jnp.float32),
            },
            "norm": {
                "ng": jnp.ones((1, C_HID), jnp.float32),
                "nb": jnp.zeros((1, C_HID), jnp.float32),
            },
        }
        params["layers"].append(layer)
        d_in = C_HID
    key, *ks = jax.random.split(key, 6)
    params["out"] = {
        "radial": {
            "w1": _dense(ks[0], (C_EDGE + 1, R_HID)),
            "b1": jnp.zeros((1, R_HID), jnp.float32),
            "g": jnp.ones((1, R_HID), jnp.float32),
            "bt": jnp.zeros((1, R_HID), jnp.float32),
            "w2": _dense(ks[1], (R_HID, C_OUT)),
            "b2": jnp.zeros((1, C_OUT), jnp.float32),
        },
        "conv": {
            "wself": _dense(ks[2], (C_HID, C_OUT)),
            "wnbr": _dense(ks[3], (C_HID, C_OUT)),
        },
    }
    return params


def pack_params(p):
    """Pack every weight/bias into ONE (SLAB_ROWS, 128) f32 VMEM slab."""
    rnets = [p["layers"][0]["radial"], p["layers"][1]["radial"],
             p["out"]["radial"]]
    vals = {
        "rw1e": jnp.concatenate([r["w1"][:C_EDGE] for r in rnets], axis=1),
        "rw1d": jnp.concatenate([r["w1"][C_EDGE:] for r in rnets], axis=1),
        "rb1": jnp.concatenate([r["b1"] for r in rnets], axis=1),
        "rg": jnp.concatenate([r["g"] for r in rnets], axis=1),
        "rbt": jnp.concatenate([r["bt"] for r in rnets], axis=1),
        "rw2_0": rnets[0]["w2"], "rb2_0": rnets[0]["b2"],
        "rw2_1": rnets[1]["w2"], "rb2_1": rnets[1]["b2"],
        "rw2_o": rnets[2]["w2"], "rb2_o": rnets[2]["b2"],
        "wself": p["out"]["conv"]["wself"],
        "wnbr": p["out"]["conv"]["wnbr"],
    }
    for l, layer in enumerate(p["layers"]):
        a = layer["attn"]
        vals[f"wqkv{l}"] = jnp.concatenate([a["wq"], a["wk"], a["wv"]], axis=1)
        vals[f"wp1_{l}"] = a["wp1"]
        vals[f"wp2_{l}"] = a["wp2"]
        vals[f"bp{l}"] = a["bp"]
        vals[f"ng{l}"] = layer["norm"]["ng"]
        vals[f"nb{l}"] = layer["norm"]["nb"]

    slab = jnp.zeros((SLAB_ROWS, SLAB_COLS), jnp.float32)
    for name, (off, r, c) in LAYOUT.items():
        v = vals[name]
        assert v.shape == (r, c), (name, v.shape, (r, c))
        slab = slab.at[off:off + r, :c].set(v)
    return slab


# -------------------------------- forward -----------------------------------
def interaction_forward(slab, node_feats, edge_feats, coords):
    # Entire forward = one fused pallas_call (single grid step, batch folded).
    return fused_forward(slab, node_feats, edge_feats, coords)


# --------------------------------- driver -----------------------------------
if __name__ == "__main__":
    key = jax.random.PRNGKey(0)
    k_p, k_x, k_e, k_c = jax.random.split(key, 4)

    params = init_params(k_p)
    slab = pack_params(params)
    node_feats = jax.random.normal(k_x, (B, N, C_IN), dtype=jnp.float32)
    edge_feats = jax.random.normal(k_e, (B, N, N, C_EDGE), dtype=jnp.float32)
    coords = jax.random.normal(k_c, (B, N, 3), dtype=jnp.float32)

    out = jax.jit(interaction_forward)(slab, node_feats, edge_feats, coords)
    out = jax.block_until_ready(out)

    assert out.shape == (B, N, C_OUT), out.shape
    assert bool(jnp.all(jnp.isfinite(out)))
    print("KERNEL_OK")
</pallas_src>

<mosaic_0001>
module attributes {stable_mosaic.version = 11 : i64} {
  func.func @fused_forward_kernel(%arg0: i32, %arg1: memref<16x8xf32, #tpu.memory_space<vmem>>, %arg2: memref<128x4xf32, #tpu.memory_space<vmem>>, %arg3: memref<2x8x3xf32, #tpu.memory_space<vmem>>, %arg4: memref<272x128xf32, #tpu.memory_space<vmem>>, %arg5: memref<16x8xf32, #tpu.memory_space<vmem>>) attributes {dimension_semantics = [#tpu.dimension_semantics<arbitrary>], iteration_bounds = array<i64: 1>, scalar_prefetch = 0 : i64, scratch_operands = 0 : i64, tpu.core_type = #tpu.core_type<tc>, window_params = [{pipeline_mode = #tpu.pipeline_mode<synchronous>, transform_indices = @transform_0, window_bounds = array<i64: 16, 8>}, {pipeline_mode = #tpu.pipeline_mode<synchronous>, transform_indices = @transform_1, window_bounds = array<i64: 128, 4>}, {pipeline_mode = #tpu.pipeline_mode<synchronous>, transform_indices = @transform_2, window_bounds = array<i64: 2, 8, 3>}, {pipeline_mode = #tpu.pipeline_mode<synchronous>, transform_indices = @transform_3, window_bounds = array<i64: 272, 128>}, {pipeline_mode = #tpu.pipeline_mode<synchronous>, transform_indices = @transform_4, window_bounds = array<i64: 16, 8>}]} {
    %c0 = arith.constant 0 : index
    %c0_0 = arith.constant 0 : index
    %c0_1 = arith.constant 0 : index
    %0 = vector.load %arg3[%c0, %c0_0, %c0_1] : memref<2x8x3xf32, #tpu.memory_space<vmem>>, vector<2x8x3xf32>
    %1 = vector.shape_cast %0 : vector<2x8x3xf32> to vector<2x8x1x3xf32>
    %2 = vector.shape_cast %0 : vector<2x8x3xf32> to vector<2x1x8x3xf32>
    %3 = vector.broadcast %1 : vector<2x8x1x3xf32> to vector<2x8x8x3xf32>
    %4 = vector.broadcast %2 : vector<2x1x8x3xf32> to vector<2x8x8x3xf32>
    %5 = arith.subf %3, %4 : vector<2x8x8x3xf32>
    %6 = arith.mulf %5, %5 : vector<2x8x8x3xf32>
    %cst = arith.constant dense<0.000000e+00> : vector<2x8x8xf32>
    %7 = vector.multi_reduction <add>, %6, %cst [3] : vector<2x8x8x3xf32> to vector<2x8x8xf32>
    %8 = vector.shape_cast %7 : vector<2x8x8xf32> to vector<2x8x8x1xf32>
    %cst_2 = arith.constant 9.99999993E-9 : f32
    %9 = vector.broadcast %cst_2 : f32 to vector<2x8x8x1xf32>
    %10 = arith.addf %8, %9 : vector<2x8x8x1xf32>
    %11 = math.sqrt %10 : vector<2x8x8x1xf32>
    %12 = vector.shape_cast %11 : vector<2x8x8x1xf32> to vector<128x1xf32>
    %c0_3 = arith.constant 0 : index
    %c0_4 = arith.constant 0 : index
    %13 = vector.load %arg2[%c0_3, %c0_4] : memref<128x4xf32, #tpu.memory_space<vmem>>, vector<128x4xf32>
    %c0_5 = arith.constant 0 : index
    %c0_6 = arith.constant 0 : index
    %14 = vector.load %arg4[%c0_5, %c0_6] : memref<272x128xf32, #tpu.memory_space<vmem>>, vector<4x48xf32>
    %cst_7 = arith.constant dense<0.000000e+00> : vector<128x48xf32>
    %15 = tpu.matmul %13, %14, %cst_7 {dimension_numbers = #tpu.dot_dimension_numbers<[1], [0], [0], [1], [0, 0, 1, 1], [], []>} : vector<128x4xf32>, vector<4x48xf32>, vector<128x48xf32> -> vector<128x48xf32>
    %c8 = arith.constant 8 : index
    %c0_8 = arith.constant 0 : index
    %16 = vector.load %arg4[%c8, %c0_8] : memref<272x128xf32, #tpu.memory_space<vmem>>, vector<1x48xf32>
    %17 = vector.broadcast %12 : vector<128x1xf32> to vector<128x48xf32>
    %18 = vector.broadcast %16 : vector<1x48xf32> to vector<128x48xf32>
    %19 = arith.mulf %17, %18 : vector<128x48xf32>
    %20 = arith.addf %15, %19 : vector<128x48xf32>
    %c16 = arith.constant 16 : index
    %c0_9 = arith.constant 0 : index
    %21 = vector.load %arg4[%c16, %c0_9] : memref<272x128xf32, #tpu.memory_space<vmem>>, vector<1x48xf32>
    %22 = vector.broadcast %21 : vector<1x48xf32> to vector<128x48xf32>
    %23 = arith.addf %20, %22 : vector<128x48xf32>
    %c24 = arith.constant 24 : index
    %c0_10 = arith.constant 0 : index
    %24 = vector.load %arg4[%c24, %c0_10] : memref<272x128xf32, #tpu.memory_space<vmem>>, vector<1x48xf32>
    %c32 = arith.constant 32 : index
    %c0_11 = arith.constant 0 : index
    %25 = vector.load %arg4[%c32, %c0_11] : memref<272x128xf32, #tpu.memory_space<vmem>>, vector<1x48xf32>
    %26 = vector.extract_strided_slice %23 {offsets = [0, 0], sizes = [128, 16], strides = [1, 1]} : vector<128x48xf32> to vector<128x16xf32>
    %cst_12 = arith.constant dense<0.000000e+00> : vector<128xf32>
    %27 = vector.multi_reduction <add>, %26, %cst_12 [1] : vector<128x16xf32> to vector<128xf32>
    %28 = vector.shape_cast %27 : vector<128xf32> to vector<128x1xf32>
    %cst_13 = arith.constant 1.600000e+01 : f32
    %29 = vector.broadcast %cst_13 : f32 to vector<128x1xf32>
    %30 = arith.divf %28, %29 : vector<128x1xf32>
    %31 = vector.broadcast %30 : vector<128x1xf32> to vector<128x16xf32>
    %32 = arith.subf %26, %31 : vector<128x16xf32>
    %33 = arith.mulf %32, %32 : vector<128x16xf32>
    %cst_14 = arith.constant dense<0.000000e+00> : vector<128xf32>
    %34 = vector.multi_reduction <add>, %33, %cst_14 [1] : vector<128x16xf32> to vector<128xf32>
    %35 = vector.shape_cast %34 : vector<128xf32> to vector<128x1xf32>
    %cst_15 = arith.constant 1.600000e+01 : f32
    %36 = vector.broadcast %cst_15 : f32 to vector<128x1xf32>
    %37 = arith.divf %35, %36 : vector<128x1xf32>
    %cst_16 = arith.constant 9.99999974E-6 : f32
    %38 = vector.broadcast %cst_16 : f32 to vector<128x1xf32>
    %39 = arith.addf %37, %38 : vector<128x1xf32>
    %40 = math.rsqrt %39 : vector<128x1xf32>
    %41 = vector.broadcast %40 : vector<128x1xf32> to vector<128x16xf32>
    %42 = arith.mulf %32, %41 : vector<128x16xf32>
    %43 = vector.extract_strided_slice %24 {offsets = [0, 0], sizes = [1, 16], strides = [1, 1]} : vector<1x48xf32> to vector<1x16xf32>
    %44 = vector.broadcast %43 : vector<1x16xf32> to vector<128x16xf32>
    %45 = arith.mulf %42, %44 : vector<128x16xf32>
    %46 = vector.extract_strided_slice %25 {offsets = [0, 0], sizes = [1, 16], strides = [1, 1]} : vector<1x48xf32> to vector<1x16xf32>
    %47 = vector.broadcast %46 : vector<1x16xf32> to vector<128x16xf32>
    %48 = arith.addf %45, %47 : vector<128x16xf32>
    %cst_17 = arith.constant 0.000000e+00 : f32
    %49 = vector.broadcast %cst_17 : f32 to vector<128x16xf32>
    %50 = arith.maximumf %48, %49 : vector<128x16xf32>
    %c40 = arith.constant 40 : index
    %c0_18 = arith.constant 0 : index
    %51 = vector.load %arg4[%c40, %c0_18] : memref<272x128xf32, #tpu.memory_space<vmem>>, vector<16x32xf32>
    %cst_19 = arith.constant dense<0.000000e+00> : vector<128x32xf32>
    %52 = tpu.matmul %50, %51, %cst_19 {dimension_numbers = #tpu.dot_dimension_numbers<[1], [0], [0], [1], [0, 0, 1, 1], [], []>} : vector<128x16xf32>, vector<16x32xf32>, vector<128x32xf32> -> vector<128x32xf32>
    %c56 = arith.constant 56 : index
    %c0_20 = arith.constant 0 : index
    %53 = vector.load %arg4[%c56, %c0_20] : memref<272x128xf32, #tpu.memory_space<vmem>>, vector<1x32xf32>
    %54 = vector.broadcast %53 : vector<1x32xf32> to vector<128x32xf32>
    %55 = arith.addf %52, %54 : vector<128x32xf32>
    %56 = vector.extract_strided_slice %23 {offsets = [0, 16], sizes = [128, 16], strides = [1, 1]} : vector<128x48xf32> to vector<128x16xf32>
    %cst_21 = arith.constant dense<0.000000e+00> : vector<128xf32>
    %57 = vector.multi_reduction <add>, %56, %cst_21 [1] : vector<128x16xf32> to vector<128xf32>
    %58 = vector.shape_cast %57 : vector<128xf32> to vector<128x1xf32>
    %cst_22 = arith.constant 1.600000e+01 : f32
    %59 = vector.broadcast %cst_22 : f32 to vector<128x1xf32>
    %60 = arith.divf %58, %59 : vector<128x1xf32>
    %61 = vector.broadcast %60 : vector<128x1xf32> to vector<128x16xf32>
    %62 = arith.subf %56, %61 : vector<128x16xf32>
    %63 = arith.mulf %62, %62 : vector<128x16xf32>
    %cst_23 = arith.constant dense<0.000000e+00> : vector<128xf32>
    %64 = vector.multi_reduction <add>, %63, %cst_23 [1] : vector<128x16xf32> to vector<128xf32>
    %65 = vector.shape_cast %64 : vector<128xf32> to vector<128x1xf32>
    %cst_24 = arith.constant 1.600000e+01 : f32
    %66 = vector.broadcast %cst_24 : f32 to vector<128x1xf32>
    %67 = arith.divf %65, %66 : vector<128x1xf32>
    %cst_25 = arith.constant 9.99999974E-6 : f32
    %68 = vector.broadcast %cst_25 : f32 to vector<128x1xf32>
    %69 = arith.addf %67, %68 : vector<128x1xf32>
    %70 = math.rsqrt %69 : vector<128x1xf32>
    %71 = vector.broadcast %70 : vector<128x1xf32> to vector<128x16xf32>
    %72 = arith.mulf %62, %71 : vector<128x16xf32>
    %73 = vector.extract_strided_slice %24 {offsets = [0, 16], sizes = [1, 16], strides = [1, 1]} : vector<1x48xf32> to vector<1x16xf32>
    %74 = vector.broadcast %73 : vector<1x16xf32> to vector<128x16xf32>
    %75 = arith.mulf %72, %74 : vector<128x16xf32>
    %76 = vector.extract_strided_slice %25 {offsets = [0, 16], sizes = [1, 16], strides = [1, 1]} : vector<1x48xf32> to vector<1x16xf32>
    %77 = vector.broadcast %76 : vector<1x16xf32> to vector<128x16xf32>
    %78 = arith.addf %75, %77 : vector<128x16xf32>
    %cst_26 = arith.constant 0.000000e+00 : f32
    %79 = vector.broadcast %cst_26 : f32 to vector<128x16xf32>
    %80 = arith.maximumf %78, %79 : vector<128x16xf32>
    %c64 = arith.constant 64 : index
    %c0_27 = arith.constant 0 : index
    %81 = vector.load %arg4[%c64, %c0_27] : memref<272x128xf32, #tpu.memory_space<vmem>>, vector<16x32xf32>
    %cst_28 = arith.constant dense<0.000000e+00> : vector<128x32xf32>
    %82 = tpu.matmul %80, %81, %cst_28 {dimension_numbers = #tpu.dot_dimension_numbers<[1], [0], [0], [1], [0, 0, 1, 1], [], []>} : vector<128x16xf32>, vector<16x32xf32>, vector<128x32xf32> -> vector<128x32xf32>
    %c80 = arith.constant 80 : index
    %c0_29 = arith.constant 0 : index
    %83 = vector.load %arg4[%c80, %c0_29] : memref<272x128xf32, #tpu.memory_space<vmem>>, vector<1x32xf32>
    %84 = vector.broadcast %83 : vector<1x32xf32> to vector<128x32xf32>
    %85 = arith.addf %82, %84 : vector<128x32xf32>
    %86 = vector.extract_strided_slice %23 {offsets = [0, 32], sizes = [128, 16], strides = [1, 1]} : vector<128x48xf32> to vector<128x16xf32>
    %cst_30 = arith.constant dense<0.000000e+00> : vector<128xf32>
    %87 = vector.multi_reduction <add>, %86, %cst_30 [1] : vector<128x16xf32> to vector<128xf32>
    %88 = vector.shape_cast %87 : vector<128xf32> to vector<128x1xf32>
    %cst_31 = arith.constant 1.600000e+01 : f32
    %89 = vector.broadcast %cst_31 : f32 to vector<128x1xf32>
    %90 = arith.divf %88, %89 : vector<128x1xf32>
    %91 = vector.broadcast %90 : vector<128x1xf32> to vector<128x16xf32>
    %92 = arith.subf %86, %91 : vector<128x16xf32>
    %93 = arith.mulf %92, %92 : vector<128x16xf32>
    %cst_32 = arith.constant dense<0.000000e+00> : vector<128xf32>
    %94 = vector.multi_reduction <add>, %93, %cst_32 [1] : vector<128x16xf32> to vector<128xf32>
    %95 = vector.shape_cast %94 : vector<128xf32> to vector<128x1xf32>
    %cst_33 = arith.constant 1.600000e+01 : f32
    %96 = vector.broadcast %cst_33 : f32 to vector<128x1xf32>
    %97 = arith.divf %95, %96 : vector<128x1xf32>
    %cst_34 = arith.constant 9.99999974E-6 : f32
    %98 = vector.broadcast %cst_34 : f32 to vector<128x1xf32>
    %99 = arith.addf %97, %98 : vector<128x1xf32>
    %100 = math.rsqrt %99 : vector<128x1xf32>
    %101 = vector.broadcast %100 : vector<128x1xf32> to vector<128x16xf32>
    %102 = arith.mulf %92, %101 : vector<128x16xf32>
    %103 = vector.extract_strided_slice %24 {offsets = [0, 32], sizes = [1, 16], strides = [1, 1]} : vector<1x48xf32> to vector<1x16xf32>
    %104 = vector.broadcast %103 : vector<1x16xf32> to vector<128x16xf32>
    %105 = arith.mulf %102, %104 : vector<128x16xf32>
    %106 = vector.extract_strided_slice %25 {offsets = [0, 32], sizes = [1, 16], strides = [1, 1]} : vector<1x48xf32> to vector<1x16xf32>
    %107 = vector.broadcast %106 : vector<1x16xf32> to vector<128x16xf32>
    %108 = arith.addf %105, %107 : vector<128x16xf32>
    %cst_35 = arith.constant 0.000000e+00 : f32
    %109 = vector.broadcast %cst_35 : f32 to vector<128x16xf32>
    %110 = arith.maximumf %108, %109 : vector<128x16xf32>
    %c88 = arith.constant 88 : index
    %c0_36 = arith.constant 0 : index
    %111 = vector.load %arg4[%c88, %c0_36] : memref<272x128xf32, #tpu.memory_space<vmem>>, vector<16x8xf32>
    %cst_37 = arith.constant dense<0.000000e+00> : vector<128x8xf32>
    %112 = tpu.matmul %110, %111, %cst_37 {dimension_numbers = #tpu.dot_dimension_numbers<[1], [0], [0], [1], [0, 0, 1, 1], [], []>} : vector<128x16xf32>, vector<16x8xf32>, vector<128x8xf32> -> vector<128x8xf32>
    %c104 = arith.constant 104 : index
    %c0_38 = arith.constant 0 : index
    %113 = vector.load %arg4[%c104, %c0_38] : memref<272x128xf32, #tpu.memory_space<vmem>>, vector<1x8xf32>
    %114 = vector.broadcast %113 : vector<1x8xf32> to vector<128x8xf32>
    %115 = arith.addf %112, %114 : vector<128x8xf32>
    %c0_39 = arith.constant 0 : index
    %c0_40 = arith.constant 0 : index
    %116 = vector.load %arg1[%c0_39, %c0_40] : memref<16x8xf32, #tpu.memory_space<vmem>>, vector<16x8xf32>
    %117 = vector.extract_strided_slice %55 {offsets = [0, 0], sizes = [128, 16], strides = [1, 1]} : vector<128x32xf32> to vector<128x16xf32>
    %118 = vector.shape_cast %117 : vector<128x16xf32> to vector<2x8x8x16xf32>
    %119 = vector.extract_strided_slice %55 {offsets = [0, 16], sizes = [128, 16], strides = [1, 1]} : vector<128x32xf32> to vector<128x16xf32>
    %120 = vector.shape_cast %119 : vector<128x16xf32> to vector<2x8x8x16xf32>
    %c112 = arith.constant 112 : index
    %c0_41 = arith.constant 0 : index
    %121 = vector.load %arg4[%c112, %c0_41] : memref<272x128xf32, #tpu.memory_space<vmem>>, vector<8x48xf32>
    %cst_42 = arith.constant dense<0.000000e+00> : vector<16x48xf32>
    %122 = tpu.matmul %116, %121, %cst_42 {dimension_numbers = #tpu.dot_dimension_numbers<[1], [0], [0], [1], [0, 0, 1, 1], [], []>} : vector<16x8xf32>, vector<8x48xf32>, vector<16x48xf32> -> vector<16x48xf32>
    %123 = vector.extract_strided_slice %122 {offsets = [0, 0], sizes = [16, 16], strides = [1, 1]} : vector<16x48xf32> to vector<16x16xf32>
    %124 = vector.shape_cast %123 : vector<16x16xf32> to vector<2x8x16xf32>
    %125 = vector.extract_strided_slice %122 {offsets = [0, 16], sizes = [16, 16], strides = [1, 1]} : vector<16x48xf32> to vector<16x16xf32>
    %126 = vector.shape_cast %125 : vector<16x16xf32> to vector<2x8x16xf32>
    %127 = vector.extract_strided_slice %122 {offsets = [0, 32], sizes = [16, 16], strides = [1, 1]} : vector<16x48xf32> to vector<16x16xf32>
    %128 = vector.shape_cast %127 : vector<16x16xf32> to vector<2x8x16xf32>
    %129 = vector.shape_cast %126 : vector<2x8x16xf32> to vector<2x1x8x16xf32>
    %130 = vector.broadcast %129 : vector<2x1x8x16xf32> to vector<2x8x8x16xf32>
    %131 = arith.mulf %118, %130 : vector<2x8x8x16xf32>
    %132 = vector.shape_cast %128 : vector<2x8x16xf32> to vector<2x1x8x16xf32>
    %133 = vector.broadcast %132 : vector<2x1x8x16xf32> to vector<2x8x8x16xf32>
    %134 = arith.mulf %120, %133 : vector<2x8x8x16xf32>
    %135 = vector.shape_cast %124 : vector<2x8x16xf32> to vector<2x8x1x16xf32>
    %136 = vector.broadcast %135 : vector<2x8x1x16xf32> to vector<2x8x8x16xf32>
    %137 = arith.mulf %136, %131 : vector<2x8x8x16xf32>
    %138 = vector.extract_strided_slice %137 {offsets = [0, 0, 0, 0], sizes = [2, 8, 8, 8], strides = [1, 1, 1, 1]} : vector<2x8x8x16xf32> to vector<2x8x8x8xf32>
    %cst_43 = arith.constant dense<0.000000e+00> : vector<2x8x8xf32>
    %139 = vector.multi_reduction <add>, %138, %cst_43 [3] : vector<2x8x8x8xf32> to vector<2x8x8xf32>
    %cst_44 = arith.constant 0.353553385 : f32
    %140 = vector.broadcast %cst_44 : f32 to vector<2x8x8xf32>
    %141 = arith.mulf %139, %140 : vector<2x8x8xf32>
    %cst_45 = arith.constant dense<0xFF800000> : vector<2x8xf32>
    %142 = vector.multi_reduction <maximumf>, %141, %cst_45 [2] : vector<2x8x8xf32> to vector<2x8xf32>
    %143 = vector.shape_cast %142 : vector<2x8xf32> to vector<2x8x1xf32>
    %144 = vector.broadcast %143 : vector<2x8x1xf32> to vector<2x8x8xf32>
    %145 = arith.subf %141, %144 : vector<2x8x8xf32>
    %146 = math.exp %145 : vector<2x8x8xf32>
    %cst_46 = arith.constant dense<0.000000e+00> : vector<2x8xf32>
    %147 = vector.multi_reduction <add>, %146, %cst_46 [2] : vector<2x8x8xf32> to vector<2x8xf32>
    %148 = vector.shape_cast %147 : vector<2x8xf32> to vector<2x8x1xf32>
    %149 = vector.broadcast %148 : vector<2x8x1xf32> to vector<2x8x8xf32>
    %150 = arith.divf %146, %149 : vector<2x8x8xf32>
    %151 = vector.shape_cast %150 : vector<2x8x8xf32> to vector<2x8x8x1xf32>
    %152 = vector.extract_strided_slice %134 {offsets = [0, 0, 0, 0], sizes = [2, 8, 8, 8], strides = [1, 1, 1, 1]} : vector<2x8x8x16xf32> to vector<2x8x8x8xf32>
    %153 = vector.broadcast %151 : vector<2x8x8x1xf32> to vector<2x8x8x8xf32>
    %154 = arith.mulf %153, %152 : vector<2x8x8x8xf32>
    %cst_47 = arith.constant dense<0.000000e+00> : vector<2x8x8xf32>
    %155 = vector.multi_reduction <add>, %154, %cst_47 [2] : vector<2x8x8x8xf32> to vector<2x8x8xf32>
    %156 = vector.extract_strided_slice %137 {offsets = [0, 0, 0, 8], sizes = [2, 8, 8, 8], strides = [1, 1, 1, 1]} : vector<2x8x8x16xf32> to vector<2x8x8x8xf32>
    %cst_48 = arith.constant dense<0.000000e+00> : vector<2x8x8xf32>
    %157 = vector.multi_reduction <add>, %156, %cst_48 [3] : vector<2x8x8x8xf32> to vector<2x8x8xf32>
    %cst_49 = arith.constant 0.353553385 : f32
    %158 = vector.broadcast %cst_49 : f32 to vector<2x8x8xf32>
    %159 = arith.mulf %157, %158 : vector<2x8x8xf32>
    %cst_50 = arith.constant dense<0xFF800000> : vector<2x8xf32>
    %160 = vector.multi_reduction <maximumf>, %159, %cst_50 [2] : vector<2x8x8xf32> to vector<2x8xf32>
    %161 = vector.shape_cast %160 : vector<2x8xf32> to vector<2x8x1xf32>
    %162 = vector.broadcast %161 : vector<2x8x1xf32> to vector<2x8x8xf32>
    %163 = arith.subf %159, %162 : vector<2x8x8xf32>
    %164 = math.exp %163 : vector<2x8x8xf32>
    %cst_51 = arith.constant dense<0.000000e+00> : vector<2x8xf32>
    %165 = vector.multi_reduction <add>, %164, %cst_51 [2] : vector<2x8x8xf32> to vector<2x8xf32>
    %166 = vector.shape_cast %165 : vector<2x8xf32> to vector<2x8x1xf32>
    %167 = vector.broadcast %166 : vector<2x8x1xf32> to vector<2x8x8xf32>
    %168 = arith.divf %164, %167 : vector<2x8x8xf32>
    %169 = vector.shape_cast %168 : vector<2x8x8xf32> to vector<2x8x8x1xf32>
    %170 = vector.extract_strided_slice %134 {offsets = [0, 0, 0, 8], sizes = [2, 8, 8, 8], strides = [1, 1, 1, 1]} : vector<2x8x8x16xf32> to vector<2x8x8x8xf32>
    %171 = vector.broadcast %169 : vector<2x8x8x1xf32> to vector<2x8x8x8xf32>
    %172 = arith.mulf %171, %170 : vector<2x8x8x8xf32>
    %cst_52 = arith.constant dense<0.000000e+00> : vector<2x8x8xf32>
    %173 = vector.multi_reduction <add>, %172, %cst_52 [2] : vector<2x8x8x8xf32> to vector<2x8x8xf32>
    %174 = tpu.concatenate %155, %173 in 2 : vector<2x8x8xf32>, vector<2x8x8xf32> -> vector<2x8x16xf32>
    %175 = vector.shape_cast %174 : vector<2x8x16xf32> to vector<16x16xf32>
    %c120 = arith.constant 120 : index
    %c0_53 = arith.constant 0 : index
    %176 = vector.load %arg4[%c120, %c0_53] : memref<272x128xf32, #tpu.memory_space<vmem>>, vector<16x16xf32>
    %cst_54 = arith.constant dense<0.000000e+00> : vector<16x16xf32>
    %177 = tpu.matmul %175, %176, %cst_54 {dimension_numbers = #tpu.dot_dimension_numbers<[1], [0], [0], [1], [0, 0, 1, 1], [], []>} : vector<16x16xf32>, vector<16x16xf32>, vector<16x16xf32> -> vector<16x16xf32>
    %c136 = arith.constant 136 : index
    %c0_55 = arith.constant 0 : index
    %178 = vector.load %arg4[%c136, %c0_55] : memref<272x128xf32, #tpu.memory_space<vmem>>, vector<8x16xf32>
    %cst_56 = arith.constant dense<0.000000e+00> : vector<16x16xf32>
    %179 = tpu.matmul %116, %178, %cst_56 {dimension_numbers = #tpu.dot_dimension_numbers<[1], [0], [0], [1], [0, 0, 1, 1], [], []>} : vector<16x8xf32>, vector<8x16xf32>, vector<16x16xf32> -> vector<16x16xf32>
    %180 = arith.addf %177, %179 : vector<16x16xf32>
    %c144 = arith.constant 144 : index
    %c0_57 = arith.constant 0 : index
    %181 = vector.load %arg4[%c144, %c0_57] : memref<272x128xf32, #tpu.memory_space<vmem>>, vector<1x16xf32>
    %182 = vector.broadcast %181 : vector<1x16xf32> to vector<16x16xf32>
    %183 = arith.addf %180, %182 : vector<16x16xf32>
    %184 = math.absf %183 : vector<16x16xf32>
    %cst_58 = arith.constant dense<0.000000e+00> : vector<16xf32>
    %185 = vector.multi_reduction <add>, %184, %cst_58 [1] : vector<16x16xf32> to vector<16xf32>
    %186 = vector.shape_cast %185 : vector<16xf32> to vector<16x1xf32>
    %cst_59 = arith.constant 1.600000e+01 : f32
    %187 = vector.broadcast %cst_59 : f32 to vector<16x1xf32>
    %188 = arith.divf %186, %187 : vector<16x1xf32>
    %189 = vector.broadcast %188 : vector<16x1xf32> to vector<16x16xf32>
    %190 = arith.subf %184, %189 : vector<16x16xf32>
    %191 = arith.mulf %190, %190 : vector<16x16xf32>
    %cst_60 = arith.constant dense<0.000000e+00> : vector<16xf32>
    %192 = vector.multi_reduction <add>, %191, %cst_60 [1] : vector<16x16xf32> to vector<16xf32>
    %193 = vector.shape_cast %192 : vector<16xf32> to vector<16x1xf32>
    %cst_61 = arith.constant 1.600000e+01 : f32
    %194 = vector.broadcast %cst_61 : f32 to vector<16x1xf32>
    %195 = arith.divf %193, %194 : vector<16x1xf32>
    %196 = vector.broadcast %188 : vector<16x1xf32> to vector<16x16xf32>
    %197 = arith.subf %184, %196 : vector<16x16xf32>
    %cst_62 = arith.constant 9.99999974E-6 : f32
    %198 = vector.broadcast %cst_62 : f32 to vector<16x1xf32>
    %199 = arith.addf %195, %198 : vector<16x1xf32>
    %200 = math.rsqrt %199 : vector<16x1xf32>
    %201 = vector.broadcast %200 : vector<16x1xf32> to vector<16x16xf32>
    %202 = arith.mulf %197, %201 : vector<16x16xf32>
    %c152 = arith.constant 152 : index
    %c0_63 = arith.constant 0 : index
    %203 = vector.load %arg4[%c152, %c0_63] : memref<272x128xf32, #tpu.memory_space<vmem>>, vector<1x16xf32>
    %204 = vector.broadcast %203 : vector<1x16xf32> to vector<16x16xf32>
    %205 = arith.mulf %202, %204 : vector<16x16xf32>
    %c160 = arith.constant 160 : index
    %c0_64 = arith.constant 0 : index
    %206 = vector.load %arg4[%c160, %c0_64] : memref<272x128xf32, #tpu.memory_space<vmem>>, vector<1x16xf32>
    %207 = vector.broadcast %206 : vector<1x16xf32> to vector<16x16xf32>
    %208 = arith.addf %205, %207 : vector<16x16xf32>
    %cst_65 = arith.constant 0.000000e+00 : f32
    %209 = vector.broadcast %cst_65 : f32 to vector<16x16xf32>
    %210 = arith.maximumf %208, %209 : vector<16x16xf32>
    %cst_66 = arith.constant 0.000000e+00 : f32
    %211 = vector.broadcast %cst_66 : f32 to vector<16x16xf32>
    %212 = arith.cmpf ogt, %183, %211 : vector<16x16xf32>
    %cst_67 = arith.constant 0.000000e+00 : f32
    %213 = vector.broadcast %cst_67 : f32 to vector<16x16xf32>
    %214 = arith.cmpf olt, %183, %213 : vector<16x16xf32>
    %cst_68 = arith.constant -1.000000e+00 : f32
    %cst_69 = arith.constant 0.000000e+00 : f32
    %215 = vector.broadcast %cst_68 : f32 to vector<16x16xf32>
    %216 = vector.broadcast %cst_69 : f32 to vector<16x16xf32>
    %217 = arith.select %214, %215, %216 : vector<16x16xi1>, vector<16x16xf32>
    %cst_70 = arith.constant 1.000000e+00 : f32
    %218 = vector.broadcast %cst_70 : f32 to vector<16x16xf32>
    %219 = arith.select %212, %218, %217 : vector<16x16xi1>, vector<16x16xf32>
    %220 = arith.mulf %219, %210 : vector<16x16xf32>
    %221 = vector.extract_strided_slice %85 {offsets = [0, 0], sizes = [128, 16], strides = [1, 1]} : vector<128x32xf32> to vector<128x16xf32>
    %222 = vector.shape_cast %221 : vector<128x16xf32> to vector<2x8x8x16xf32>
    %223 = vector.extract_strided_slice %85 {offsets = [0, 16], sizes = [128, 16], strides = [1, 1]} : vector<128x32xf32> to vector<128x16xf32>
    %224 = vector.shape_cast %223 : vector<128x16xf32> to vector<2x8x8x16xf32>
    %c168 = arith.constant 168 : index
    %c0_71 = arith.constant 0 : index
    %225 = vector.load %arg4[%c168, %c0_71] : memref<272x128xf32, #tpu.memory_space<vmem>>, vector<16x48xf32>
    %cst_72 = arith.constant dense<0.000000e+00> : vector<16x48xf32>
    %226 = tpu.matmul %220, %225, %cst_72 {dimension_numbers = #tpu.dot_dimension_numbers<[1], [0], [0], [1], [0, 0, 1, 1], [], []>} : vector<16x16xf32>, vector<16x48xf32>, vector<16x48xf32> -> vector<16x48xf32>
    %227 = vector.extract_strided_slice %226 {offsets = [0, 0], sizes = [16, 16], strides = [1, 1]} : vector<16x48xf32> to vector<16x16xf32>
    %228 = vector.shape_cast %227 : vector<16x16xf32> to vector<2x8x16xf32>
    %229 = vector.extract_strided_slice %226 {offsets = [0, 16], sizes = [16, 16], strides = [1, 1]} : vector<16x48xf32> to vector<16x16xf32>
    %230 = vector.shape_cast %229 : vector<16x16xf32> to vector<2x8x16xf32>
    %231 = vector.extract_strided_slice %226 {offsets = [0, 32], sizes = [16, 16], strides = [1, 1]} : vector<16x48xf32> to vector<16x16xf32>
    %232 = vector.shape_cast %231 : vector<16x16xf32> to vector<2x8x16xf32>
    %233 = vector.shape_cast %230 : vector<2x8x16xf32> to vector<2x1x8x16xf32>
    %234 = vector.broadcast %233 : vector<2x1x8x16xf32> to vector<2x8x8x16xf32>
    %235 = arith.mulf %222, %234 : vector<2x8x8x16xf32>
    %236 = vector.shape_cast %232 : vector<2x8x16xf32> to vector<2x1x8x16xf32>
    %237 = vector.broadcast %236 : vector<2x1x8x16xf32> to vector<2x8x8x16xf32>
    %238 = arith.mulf %224, %237 : vector<2x8x8x16xf32>
    %239 = vector.shape_cast %228 : vector<2x8x16xf32> to vector<2x8x1x16xf32>
    %240 = vector.broadcast %239 : vector<2x8x1x16xf32> to vector<2x8x8x16xf32>
    %241 = arith.mulf %240, %235 : vector<2x8x8x16xf32>
    %242 = vector.extract_strided_slice %241 {offsets = [0, 0, 0, 0], sizes = [2, 8, 8, 8], strides = [1, 1, 1, 1]} : vector<2x8x8x16xf32> to vector<2x8x8x8xf32>
    %cst_73 = arith.constant dense<0.000000e+00> : vector<2x8x8xf32>
    %243 = vector.multi_reduction <add>, %242, %cst_73 [3] : vector<2x8x8x8xf32> to vector<2x8x8xf32>
    %cst_74 = arith.constant 0.353553385 : f32
    %244 = vector.broadcast %cst_74 : f32 to vector<2x8x8xf32>
    %245 = arith.mulf %243, %244 : vector<2x8x8xf32>
    %cst_75 = arith.constant dense<0xFF800000> : vector<2x8xf32>
    %246 = vector.multi_reduction <maximumf>, %245, %cst_75 [2] : vector<2x8x8xf32> to vector<2x8xf32>
    %247 = vector.shape_cast %246 : vector<2x8xf32> to vector<2x8x1xf32>
    %248 = vector.broadcast %247 : vector<2x8x1xf32> to vector<2x8x8xf32>
    %249 = arith.subf %245, %248 : vector<2x8x8xf32>
    %250 = math.exp %249 : vector<2x8x8xf32>
    %cst_76 = arith.constant dense<0.000000e+00> : vector<2x8xf32>
    %251 = vector.multi_reduction <add>, %250, %cst_76 [2] : vector<2x8x8xf32> to vector<2x8xf32>
    %252 = vector.shape_cast %251 : vector<2x8xf32> to vector<2x8x1xf32>
    %253 = vector.broadcast %252 : vector<2x8x1xf32> to vector<2x8x8xf32>
    %254 = arith.divf %250, %253 : vector<2x8x8xf32>
    %255 = vector.shape_cast %254 : vector<2x8x8xf32> to vector<2x8x8x1xf32>
    %256 = vector.extract_strided_slice %238 {offsets = [0, 0, 0, 0], sizes = [2, 8, 8, 8], strides = [1, 1, 1, 1]} : vector<2x8x8x16xf32> to vector<2x8x8x8xf32>
    %257 = vector.broadcast %255 : vector<2x8x8x1xf32> to vector<2x8x8x8xf32>
    %258 = arith.mulf %257, %256 : vector<2x8x8x8xf32>
    %cst_77 = arith.constant dense<0.000000e+00> : vector<2x8x8xf32>
    %259 = vector.multi_reduction <add>, %258, %cst_77 [2] : vector<2x8x8x8xf32> to vector<2x8x8xf32>
    %260 = vector.extract_strided_slice %241 {offsets = [0, 0, 0, 8], sizes = [2, 8, 8, 8], strides = [1, 1, 1, 1]} : vector<2x8x8x16xf32> to vector<2x8x8x8xf32>
    %cst_78 = arith.constant dense<0.000000e+00> : vector<2x8x8xf32>
    %261 = vector.multi_reduction <add>, %260, %cst_78 [3] : vector<2x8x8x8xf32> to vector<2x8x8xf32>
    %cst_79 = arith.constant 0.353553385 : f32
    %262 = vector.broadcast %cst_79 : f32 to vector<2x8x8xf32>
    %263 = arith.mulf %261, %262 : vector<2x8x8xf32>
    %cst_80 = arith.constant dense<0xFF800000> : vector<2x8xf32>
    %264 = vector.multi_reduction <maximumf>, %263, %cst_80 [2] : vector<2x8x8xf32> to vector<2x8xf32>
    %265 = vector.shape_cast %264 : vector<2x8xf32> to vector<2x8x1xf32>
    %266 = vector.broadcast %265 : vector<2x8x1xf32> to vector<2x8x8xf32>
    %267 = arith.subf %263, %266 : vector<2x8x8xf32>
    %268 = math.exp %267 : vector<2x8x8xf32>
    %cst_81 = arith.constant dense<0.000000e+00> : vector<2x8xf32>
    %269 = vector.multi_reduction <add>, %268, %cst_81 [2] : vector<2x8x8xf32> to vector<2x8xf32>
    %270 = vector.shape_cast %269 : vector<2x8xf32> to vector<2x8x1xf32>
    %271 = vector.broadcast %270 : vector<2x8x1xf32> to vector<2x8x8xf32>
    %272 = arith.divf %268, %271 : vector<2x8x8xf32>
    %273 = vector.shape_cast %272 : vector<2x8x8xf32> to vector<2x8x8x1xf32>
    %274 = vector.extract_strided_slice %238 {offsets = [0, 0, 0, 8], sizes = [2, 8, 8, 8], strides = [1, 1, 1, 1]} : vector<2x8x8x16xf32> to vector<2x8x8x8xf32>
    %275 = vector.broadcast %273 : vector<2x8x8x1xf32> to vector<2x8x8x8xf32>
    %276 = arith.mulf %275, %274 : vector<2x8x8x8xf32>
    %cst_82 = arith.constant dense<0.000000e+00> : vector<2x8x8xf32>
    %277 = vector.multi_reduction <add>, %276, %cst_82 [2] : vector<2x8x8x8xf32> to vector<2x8x8xf32>
    %278 = tpu.concatenate %259, %277 in 2 : vector<2x8x8xf32>, vector<2x8x8xf32> -> vector<2x8x16xf32>
    %279 = vector.shape_cast %278 : vector<2x8x16xf32> to vector<16x16xf32>
    %c184 = arith.constant 184 : index
    %c0_83 = arith.constant 0 : index
    %280 = vector.load %arg4[%c184, %c0_83] : memref<272x128xf32, #tpu.memory_space<vmem>>, vector<16x16xf32>
    %cst_84 = arith.constant dense<0.000000e+00> : vector<16x16xf32>
    %281 = tpu.matmul %279, %280, %cst_84 {dimension_numbers = #tpu.dot_dimension_numbers<[1], [0], [0], [1], [0, 0, 1, 1], [], []>} : vector<16x16xf32>, vector<16x16xf32>, vector<16x16xf32> -> vector<16x16xf32>
    %c200 = arith.constant 200 : index
    %c0_85 = arith.constant 0 : index
    %282 = vector.load %arg4[%c200, %c0_85] : memref<272x128xf32, #tpu.memory_space<vmem>>, vector<16x16xf32>
    %cst_86 = arith.constant dense<0.000000e+00> : vector<16x16xf32>
    %283 = tpu.matmul %220, %282, %cst_86 {dimension_numbers = #tpu.dot_dimension_numbers<[1], [0], [0], [1], [0, 0, 1, 1], [], []>} : vector<16x16xf32>, vector<16x16xf32>, vector<16x16xf32> -> vector<16x16xf32>
    %284 = arith.addf %281, %283 : vector<16x16xf32>
    %c216 = arith.constant 216 : index
    %c0_87 = arith.constant 0 : index
    %285 = vector.load %arg4[%c216, %c0_87] : memref<272x128xf32, #tpu.memory_space<vmem>>, vector<1x16xf32>
    %286 = vector.broadcast %285 : vector<1x16xf32> to vector<16x16xf32>
    %287 = arith.addf %284, %286 : vector<16x16xf32>
    %288 = math.absf %287 : vector<16x16xf32>
    %cst_88 = arith.constant dense<0.000000e+00> : vector<16xf32>
    %289 = vector.multi_reduction <add>, %288, %cst_88 [1] : vector<16x16xf32> to vector<16xf32>
    %290 = vector.shape_cast %289 : vector<16xf32> to vector<16x1xf32>
    %cst_89 = arith.constant 1.600000e+01 : f32
    %291 = vector.broadcast %cst_89 : f32 to vector<16x1xf32>
    %292 = arith.divf %290, %291 : vector<16x1xf32>
    %293 = vector.broadcast %292 : vector<16x1xf32> to vector<16x16xf32>
    %294 = arith.subf %288, %293 : vector<16x16xf32>
    %295 = arith.mulf %294, %294 : vector<16x16xf32>
    %cst_90 = arith.constant dense<0.000000e+00> : vector<16xf32>
    %296 = vector.multi_reduction <add>, %295, %cst_90 [1] : vector<16x16xf32> to vector<16xf32>
    %297 = vector.shape_cast %296 : vector<16xf32> to vector<16x1xf32>
    %cst_91 = arith.constant 1.600000e+01 : f32
    %298 = vector.broadcast %cst_91 : f32 to vector<16x1xf32>
    %299 = arith.divf %297, %298 : vector<16x1xf32>
    %300 = vector.broadcast %292 : vector<16x1xf32> to vector<16x16xf32>
    %301 = arith.subf %288, %300 : vector<16x16xf32>
    %cst_92 = arith.constant 9.99999974E-6 : f32
    %302 = vector.broadcast %cst_92 : f32 to vector<16x1xf32>
    %303 = arith.addf %299, %302 : vector<16x1xf32>
    %304 = math.rsqrt %303 : vector<16x1xf32>
    %305 = vector.broadcast %304 : vector<16x1xf32> to vector<16x16xf32>
    %306 = arith.mulf %301, %305 : vector<16x16xf32>
    %c224 = arith.constant 224 : index
    %c0_93 = arith.constant 0 : index
    %307 = vector.load %arg4[%c224, %c0_93] : memref<272x128xf32, #tpu.memory_space<vmem>>, vector<1x16xf32>
    %308 = vector.broadcast %307 : vector<1x16xf32> to vector<16x16xf32>
    %309 = arith.mulf %306, %308 : vector<16x16xf32>
    %c232 = arith.constant 232 : index
    %c0_94 = arith.constant 0 : index
    %310 = vector.load %arg4[%c232, %c0_94] : memref<272x128xf32, #tpu.memory_space<vmem>>, vector<1x16xf32>
    %311 = vector.broadcast %310 : vector<1x16xf32> to vector<16x16xf32>
    %312 = arith.addf %309, %311 : vector<16x16xf32>
    %cst_95 = arith.constant 0.000000e+00 : f32
    %313 = vector.broadcast %cst_95 : f32 to vector<16x16xf32>
    %314 = arith.maximumf %312, %313 : vector<16x16xf32>
    %cst_96 = arith.constant 0.000000e+00 : f32
    %315 = vector.broadcast %cst_96 : f32 to vector<16x16xf32>
    %316 = arith.cmpf ogt, %287, %315 : vector<16x16xf32>
    %cst_97 = arith.constant 0.000000e+00 : f32
    %317 = vector.broadcast %cst_97 : f32 to vector<16x16xf32>
    %318 = arith.cmpf olt, %287, %317 : vector<16x16xf32>
    %cst_98 = arith.constant -1.000000e+00 : f32
    %cst_99 = arith.constant 0.000000e+00 : f32
    %319 = vector.broadcast %cst_98 : f32 to vector<16x16xf32>
    %320 = vector.broadcast %cst_99 : f32 to vector<16x16xf32>
    %321 = arith.select %318, %319, %320 : vector<16x16xi1>, vector<16x16xf32>
    %cst_100 = arith.constant 1.000000e+00 : f32
    %322 = vector.broadcast %cst_100 : f32 to vector<16x16xf32>
    %323 = arith.select %316, %322, %321 : vector<16x16xi1>, vector<16x16xf32>
    %324 = arith.mulf %323, %314 : vector<16x16xf32>
    %325 = vector.shape_cast %115 : vector<128x8xf32> to vector<2x8x8x8xf32>
    %c256 = arith.constant 256 : index
    %c0_101 = arith.constant 0 : index
    %326 = vector.load %arg4[%c256, %c0_101] : memref<272x128xf32, #tpu.memory_space<vmem>>, vector<16x8xf32>
    %cst_102 = arith.constant dense<0.000000e+00> : vector<16x8xf32>
    %327 = tpu.matmul %324, %326, %cst_102 {dimension_numbers = #tpu.dot_dimension_numbers<[1], [0], [0], [1], [0, 0, 1, 1], [], []>} : vector<16x16xf32>, vector<16x8xf32>, vector<16x8xf32> -> vector<16x8xf32>
    %328 = vector.shape_cast %327 : vector<16x8xf32> to vector<2x8x8xf32>
    %329 = vector.shape_cast %328 : vector<2x8x8xf32> to vector<2x1x8x8xf32>
    %330 = vector.broadcast %329 : vector<2x1x8x8xf32> to vector<2x8x8x8xf32>
    %331 = arith.mulf %325, %330 : vector<2x8x8x8xf32>
    %cst_103 = arith.constant dense<0.000000e+00> : vector<2x8x8xf32>
    %332 = vector.multi_reduction <add>, %331, %cst_103 [2] : vector<2x8x8x8xf32> to vector<2x8x8xf32>
    %c240 = arith.constant 240 : index
    %c0_104 = arith.constant 0 : index
    %333 = vector.load %arg4[%c240, %c0_104] : memref<272x128xf32, #tpu.memory_space<vmem>>, vector<16x8xf32>
    %cst_105 = arith.constant dense<0.000000e+00> : vector<16x8xf32>
    %334 = tpu.matmul %324, %333, %cst_105 {dimension_numbers = #tpu.dot_dimension_numbers<[1], [0], [0], [1], [0, 0, 1, 1], [], []>} : vector<16x16xf32>, vector<16x8xf32>, vector<16x8xf32> -> vector<16x8xf32>
    %335 = vector.shape_cast %332 : vector<2x8x8xf32> to vector<16x8xf32>
    %336 = arith.addf %334, %335 : vector<16x8xf32>
    %c0_106 = arith.constant 0 : index
    %c0_107 = arith.constant 0 : index
    %337 = vector.load %arg5[%c0_106, %c0_107] : memref<16x8xf32, #tpu.memory_space<vmem>>, vector<16x8xf32>
    tpu.vector_store %arg5[%c0_106, %c0_107], %336 {strides = array<i32>} : memref<16x8xf32, #tpu.memory_space<vmem>>, vector<16x8xf32>,
    return
  }
  func.func @transform_0(%arg0: i32) -> (i32, i32) {
    %c0_i32 = arith.constant 0 : i32
    %c0_i32_0 = arith.constant 0 : i32
    %c0_i32_1 = arith.constant 0 : i32
    return %c0_i32, %c0_i32_0 : i32, i32
  }
  func.func @transform_1(%arg0: i32) -> (i32, i32) {
    %c0_i32 = arith.constant 0 : i32
    %c0_i32_0 = arith.constant 0 : i32
    %c0_i32_1 = arith.constant 0 : i32
    return %c0_i32, %c0_i32_0 : i32, i32
  }
  func.func @transform_2(%arg0: i32) -> (i32, i32, i32) {
    %c0_i32 = arith.constant 0 : i32
    %c0_i32_0 = arith.constant 0 : i32
    %c0_i32_1 = arith.constant 0 : i32
    %c0_i32_2 = arith.constant 0 : i32
    return %c0_i32, %c0_i32_0, %c0_i32_1 : i32, i32, i32
  }
  func.func @transform_3(%arg0: i32) -> (i32, i32) {
    %c0_i32 = arith.constant 0 : i32
    %c0_i32_0 = arith.constant 0 : i32
    %c0_i32_1 = arith.constant 0 : i32
    return %c0_i32, %c0_i32_0 : i32, i32
  }
  func.func @transform_4(%arg0: i32) -> (i32, i32) {
    %c0_i32 = arith.constant 0 : i32
    %c0_i32_0 = arith.constant 0 : i32
    %c0_i32_1 = arith.constant 0 : i32
    return %c0_i32, %c0_i32_0 : i32, i32
  }
}

</mosaic_0001>

<bundles_post_ra>
// kernel: interaction_forward.1
= control target key start
LH: loop header
LB: loop body
LE: loop exit
PB: predicated region body
PF: predicated region fallthrough
CT: control target
= control target key end

     0   :  { %9 = vsyncpa [#allocation3], 0  ;;  %s11296_s0 = inlined_call_operand.vmem [shape: f32[16,8], index: 0, kind: input, shape index: {}]   ;;  %s11297_s1 = inlined_call_operand.vmem [shape: f32[128,4], index: 1, kind: input, shape index: {}]   ;;  %s11298_s2 = inlined_call_operand.vmem [shape: f32[2,8,3], index: 2, kind: input, shape index: {}]   ;;  %s11299_s3 = inlined_call_operand.hbm [shape: f32[272,128], index: 3, kind: input, shape index: {}]   ;;  %s11300_s4 = inlined_call_operand.hbm [shape: f32[16,8], index: 4, kind: output, shape index: {}]  }
   0x1   :  { %10 = vsyncpa [#allocation4], 0  ;;  %s7962_s15 = smov [#allocation2]   ;;  %s7914_s19 = scalar_lea.hbm %s11299_s3, 4352 }
   0x2   :  { %s22_s16 = sshll.u32 %s7962_s15, 4  ;;  %p7915_p0 = scmp.ne.s32.totalorder %s11299_s3, %s7914_s19  ;;  %s23_s16 = int_to_ptr.vmem [resolvable:$true] %s22_s16 }
   0x3   :  { %p7918_p1 = scmp.lt.u32.totalorder %s7914_s19, %s11299_s3 }
   0x5   :  { %p7920_p2 = pnand %p7918_p1, %p7915_p0 }
   0x7   :  { %7923 = shalt.err (!%p7920_p2)
}
   0x8   :  { %s7924_s24 = scalar_lea.vmem %s23_s16, 4352  ;;  %p7929_p4 = scmp.lt.s32.totalorder %s23_s16, %s23_s16 }
   0x9   :  { %p7925_p3 = scmp.ne.s32.totalorder %s23_s16, %s7924_s24  ;;  %p7930_p5 = scmp.lt.s32.totalorder %s7924_s24, %s7924_s24 }
   0xb   :  { %p7931_p6 = por %p7930_p5, %p7929_p4 }
   0xd   :  { %p7932_p7 = pnand %p7931_p6, %p7925_p3 }
   0xf   :  { %7935 = shalt.err (!%p7932_p7)
}
  0x10   :  { %s7963_s25 = smov 128   ;;  %s7964_s26 = smov 8  }
  0x11   :  { %28 = dma.hbm_to_vmem [thread:$0]  %s11299_s3, 4352, %s23_s16, [#allocation3], %s7963_s25, %s7963_s25, %s7964_s26  }
  0x12   :  { %7958 = dma.done.wait [#allocation3], 4352  }
  0x13   :  { %7959 = vsyncadd [#allocation3], 4294962944  ;;  %v11301_v0 = vlaneseq  ;;  %v7965_v1 = vmov 1966171168   ;;  %vm510_vm0 = vcmask 1043456   ;;  %vm461_vm1 = vcmask 31744  }
  0x14   :  { %v38_v2 = vunpack.c.l.s4 %v7965_v1  ;;  %v439_v5 = vld [vmem:[#allocation2] sm:$0xf]  ;;  %v424_v7 = vld [vmem:[%s11297_s1 + $0x8] sm:$0xff]  ;;  %v425_v9 = vld [vmem:[%s11297_s1 + $0x10] sm:$0xff]  ;;  %vm246_vm2 = vcmask 23552   ;;  %s7967_s12 = smov 96  }
  0x15   :  { %v8013_v4 = vshrl.u32 %v11301_v0, 7  ;;  %v423_v6 = vld [vmem:[%s11297_s1] sm:$0xff]  ;;  %7302 = vmatprep.subr.msk.mxu0 %vm510_vm0, %v439_v5  ;;  %v426_v11 = vld [vmem:[%s11297_s1 + $0x18] sm:$0xff]  ;;  %v8046_v14 = vld [vmem:[%s11298_s2 + $0x8] sm:$0xff]  ;;  %s7968_s16 = smov 120  }
  0x16   :  { %v39_v3 = vunpack.c.0.s8 %v38_v2  ;;  %7304 = vmatprep.mubr.msk.f32.mxu0 %vm461_vm1, %v423_v6  ;;  %7303 = vmatpush3.msk.msra.mxu0 %vm510_vm0, %v439_v5  ;;  %v8032_v10 = vld [vmem:[%s11298_s2] sm:$0xff]  ;;  %v85_v23 = vcombine.high %v8046_v14, %v8046_v14  ;;  %v428_v24 = vld [vmem:[%s11297_s1 + $0x28] sm:$0xff]  ;;  %v429_v29 = vld [vmem:[%s11297_s1 + $0x30] sm:$0xff] }
  0x17   :  { %11423 = vst [vmem:[#allocation8_spill] sm:$0xff] %v8013_v4  ;;  %7305 = vmatmul.mubr.msk.f32.vlgmr.msra.gmra.mrb[0].mxu0 %vm461_vm1, %v424_v7  ;;  %v8041_v13 = vsub.s32 0, %v8013_v4  ;;  %v36_v15 = vcombine.high %v8032_v10, %v8032_v10  ;;  %v427_v16 = vld [vmem:[%s11297_s1 + $0x20] sm:$0xff]  ;;  %v430_v42 = vld [vmem:[%s11297_s1 + $0x38] sm:$0xff]  ;;  %v432_v58 = vld [vmem:[%s11297_s1 + $0x48] sm:$0xff] }
  0x18   :  { %v8022_v8 = vsub.s32 %v39_v3, %v8013_v4  ;;  %7307 = vmatprep.mubr.msk.f32.mxu0 %vm461_vm1, %v425_v9  ;;  %v431_v47 = vld [vmem:[%s11297_s1 + $0x40] sm:$0xff]  ;;  %v433_v62 = vld [vmem:[%s11297_s1 + $0x50] sm:$0xff] }
  0x19   :  { %11425 = vst [vmem:[#allocation10_spill] sm:$0xff] %v8041_v13 }
  0x1a   :  { %11424 = vst [vmem:[#allocation9_spill] sm:$0xff] %v8022_v8  ;;  %v43_v12 = vrot.slane %v8032_v10, %v8022_v8  ;;  %v92_v17 = vrot.slane %v8046_v14, %v8022_v8  ;;  %v50_v20 = vrot.slane %v36_v15, %v8022_v8  ;;  %v99_v54 = vrot.slane %v85_v23, %v8022_v8 }
  0x1b   :  { %7308 = vmatmul.mubr.msk.f32.gmra.mrb[2].mxu0 %vm461_vm1, %v426_v11 }
  0x1c   :  { %v59_v18 = vrot.slane %v43_v12, %v8022_v8  ;;  %v51_v19 = vcombine.high %v43_v12, %v43_v12  ;;  %v108_v21 = vrot.slane %v92_v17, %v8022_v8  ;;  %v100_v22 = vcombine.high %v92_v17, %v92_v17  ;;  %7310 = vmatprep.mubr.msk.f32.mxu0 %vm461_vm1, %v427_v16  ;;  %v434_v12 = vld [vmem:[%s11297_s1 + $0x58] sm:$0xff] }
  0x1d   :  { %v66_v28 = vrot.slane %v50_v20, %v8022_v8  ;;  %v52_v32 = vcombine.high %v50_v20, %v50_v20  ;;  %v101_v6 = vcombine.high %v99_v54, %v99_v54  ;;  %v435_v20 = vld [vmem:[%s11297_s1 + $0x60] sm:$0xff] }
  0x1e   :  { %v137_v25 = vrot.slane %v59_v18, %v8041_v13  ;;  %v73_v26 = vrot.slane %v51_v19, %v8022_v8  ;;  %v81_v27 = vcombine.high %v59_v18, %v59_v18  ;;  %v169_v30 = vrot.slane %v108_v21, %v8041_v13 }
  0x1f   :  { %v122_v31 = vrot.slane %v100_v22, %v8022_v8  ;;  %v130_v33 = vcombine.high %v108_v21, %v108_v21  ;;  %7311 = vmatmul.mubr.msk.f32.gmra.mrb[4].mxu0 %vm461_vm1, %v428_v24  ;;  %v153_v40 = vrot.slane %v66_v28, %v8041_v13  ;;  %v8081_v41 = vrot.slane %v52_v32, %v8022_v8 }
  0x20   :  { %v214_v34 = vsub.f32 %v137_v25, %v8032_v10  ;;  %v141_v35 = vrot.slane %v73_v26, %v8041_v13  ;;  %v145_v36 = vrot.slane %v81_v27, %v8041_v13  ;;  %v83_v37 = vcombine.high %v73_v26, %v73_v26  ;;  %7313 = vmatprep.mubr.msk.f32.mxu0 %vm461_vm1, %v429_v29  ;;  %v436_v26 = vld [vmem:[%s11297_s1 + $0x68] sm:$0xff] }
  0x21   :  { %v222_v38 = vsub.f32 %v169_v30, %v8046_v14  ;;  %v173_v39 = vrot.slane %v122_v31, %v8041_v13  ;;  %v157_v50 = vrot.slane %v8081_v41, %v8041_v13  ;;  %v218_v57 = vsub.f32 %v153_v40, %v8032_v10  ;;  %v437_v30 = vld [vmem:[%s11297_s1 + $0x70] sm:$0xff] }
  0x22   :  { %v230_v43 = vmul.f32 %v214_v34, %v214_v34  ;;  %v215_v44 = vsub.f32 %v141_v35, %v8032_v10  ;;  %v216_v45 = vsub.f32 %v145_v36, %v8032_v10  ;;  %v149_v46 = vrot.slane %v83_v37, %v8041_v13  ;;  %v438_v35 = vld [vmem:[%s11297_s1 + $0x78] sm:$0xff]  ;;  %s7966_s1 = smov 112  }
  0x23   :  { %v238_v48 = vmul.f32 %v222_v38, %v222_v38  ;;  %v223_v49 = vsub.f32 %v173_v39, %v8046_v14  ;;  %7314 = vmatmul.mubr.msk.f32.gmra.mrb[6].mxu0 %vm461_vm1, %v430_v42  ;;  %v177_v61 = vrot.slane %v130_v33, %v8041_v13  ;;  %v219_v63 = vsub.f32 %v157_v50, %v8032_v10 }
  0x24   :  { %v247_v51 = vsel %vm246_vm2, %v230_v43, 0.0  ;;  %v232_v52 = vmul.f32 %v216_v45, %v216_v45  ;;  %v217_v53 = vsub.f32 %v149_v46, %v8032_v10  ;;  %v231_v55 = vmul.f32 %v215_v44, %v215_v44  ;;  %7316 = vmatprep.mubr.msk.f32.mxu0 %vm461_vm1, %v431_v47 }
  0x25   :  { %248 = vadd.xlane.f32.xlu0 %v247_v51  ;;  %v239_v56 = vmul.f32 %v223_v49, %v223_v49  ;;  %v271_v59 = vsel %vm246_vm2, %v238_v48, 0.0  ;;  %v82_v1 = vcombine.high %v66_v28, %v66_v28  ;;  %v132_v5 = vcombine.high %v122_v31, %v122_v31 }
  0x26   :  { %v253_v60 = vsel %vm246_vm2, %v232_v52, 0.0  ;;  %v233_v3 = vmul.f32 %v217_v53, %v217_v53  ;;  %v250_v7 = vsel %vm246_vm2, %v231_v55, 0.0  ;;  %v234_v9 = vmul.f32 %v218_v57, %v218_v57 }
  0x27   :  { %254 = vadd.xlane.f32.xlu1 %v253_v60  ;;  %v274_v2 = vsel %vm246_vm2, %v239_v56, 0.0  ;;  %7317 = vmatmul.mubr.msk.f32.gmra.mrb[8].mxu0 %vm461_vm1, %v432_v58  ;;  %v224_v11 = vsub.f32 %v177_v61, %v8046_v14  ;;  %v161_v15 = vrot.slane %v82_v1, %v8041_v13  ;;  %v181_v16 = vrot.slane %v132_v5, %v8041_v13 }
  0x28   :  { %7319 = vmatprep.mubr.msk.f32.mxu0 %vm461_vm1, %v433_v62  ;;  %v129_v17 = vrot.slane %v101_v6, %v8022_v8  ;;  %v115_v18 = vrot.slane %v99_v54, %v8022_v8  ;;  %v235_v19 = vmul.f32 %v219_v63, %v219_v63  ;;  %v256_v21 = vsel %vm246_vm2, %v233_v3, 0.0 }
  0x29   :  { %272 = vadd.xlane.f32.xlu0 %v271_v59  ;;  %v225_v22 = vsub.f32 %v181_v16, %v8046_v14  ;;  %v84_v24 = vcombine.high %v8081_v41, %v8081_v41  ;;  %v259_v25 = vsel %vm246_vm2, %v234_v9, 0.0  ;;  %v240_v27 = vmul.f32 %v224_v11, %v224_v11 }
  0x2a   :  { %v189_v23 = vrot.slane %v129_v17, %v8041_v13  ;;  %v220_v28 = vsub.f32 %v161_v15, %v8032_v10  ;;  %v185_v29 = vrot.slane %v115_v18, %v8041_v13  ;;  %v262_v31 = vsel %vm246_vm2, %v235_v19, 0.0 }
  0x2b   :  { %275 = vadd.xlane.f32.xlu1 %v274_v2  ;;  %7320 = vmatmul.mubr.msk.f32.gmra.mrb[10].mxu0 %vm461_vm1, %v434_v12  ;;  %v241_v32 = vmul.f32 %v225_v22, %v225_v22  ;;  %v165_v34 = vrot.slane %v84_v24, %v8041_v13  ;;  %v277_v36 = vsel %vm246_vm2, %v240_v27, 0.0  ;;  %v131_v42 = vcombine.high %v115_v18, %v115_v18 }
  0x2c   :  { %7322 = vmatprep.mubr.msk.f32.mxu0 %vm461_vm1, %v435_v20  ;;  %v227_v33 = vsub.f32 %v189_v23, %v8046_v14  ;;  %v236_v37 = vmul.f32 %v220_v28, %v220_v28  ;;  %v226_v38 = vsub.f32 %v185_v29, %v8046_v14  ;;  %v133_v43 = vcombine.high %v129_v17, %v129_v17 }
  0x2d   :  { %251 = vadd.xlane.f32.xlu0 %v250_v7  ;;  %v280_v39 = vsel %vm246_vm2, %v241_v32, 0.0  ;;  %v221_v41 = vsub.f32 %v165_v34, %v8032_v10  ;;  %v193_v46 = vrot.slane %v131_v42, %v8041_v13 }
  0x2e   :  { %v243_v40 = vmul.f32 %v227_v33, %v227_v33  ;;  %v265_v44 = vsel %vm246_vm2, %v236_v37, 0.0  ;;  %v242_v45 = vmul.f32 %v226_v38, %v226_v38  ;;  %v197_v47 = vrot.slane %v133_v43, %v8041_v13  ;;  %v8198_v37 = vld [vmem:[#allocation2 + $0x8] ss:$0 sm:$0xff] }
  0x2f   :  { %257 = vadd.xlane.f32.xlu1 %v256_v21  ;;  %7323 = vmatmul.mubr.msk.f32.gmra.mrb[12].mxu0 %vm461_vm1, %v436_v26  ;;  %v237_v49 = vmul.f32 %v221_v41, %v221_v41  ;;  %v228_v50 = vsub.f32 %v193_v46, %v8046_v14 }
  0x30   :  { %7325 = vmatprep.mubr.msk.f32.mxu0 %vm461_vm1, %v437_v30  ;;  %v286_v48 = vsel %vm246_vm2, %v243_v40, 0.0  ;;  %v229_v10 = vsub.f32 %v197_v47, %v8046_v14  ;;  %v283_v51 = vsel %vm246_vm2, %v242_v45, 0.0 }
  0x31   :  { %260 = vadd.xlane.f32.xlu0 %v259_v25  ;;  %v244_v52 = vmul.f32 %v228_v50, %v228_v50  ;;  %v268_v53 = vsel %vm246_vm2, %v237_v49, 0.0 }
  0x32   :  { %v245_v54 = vmul.f32 %v229_v10, %v229_v10  ;;  %v8217_v10 = vld [vmem:[#allocation2 + $0x10] ss:$0 sm:$0xff] }
  0x33   :  { %263 = vadd.xlane.f32.xlu1 %v262_v31  ;;  %7326 = vmatmul.mubr.msk.f32.gmra.mrb[14].mxu0 %vm461_vm1, %v438_v35  ;;  %v289_v55 = vsel %vm246_vm2, %v244_v52, 0.0 }
  0x34   :  { %v292_v56 = vsel %vm246_vm2, %v245_v54, 0.0 }
  0x35   :  { %278 = vadd.xlane.f32.xlu0 %v277_v36 }
  0x37   :  { %281 = vadd.xlane.f32.xlu1 %v280_v39 }
  0x39   :  { %266 = vadd.xlane.f32.xlu0 %v265_v44 }
  0x3b   :  { %287 = vadd.xlane.f32.xlu1 %v286_v48 }
  0x3d   :  { %284 = vadd.xlane.f32.xlu0 %v283_v51 }
  0x3f   :  { %269 = vadd.xlane.f32.xlu1 %v268_v53 }
  0x41   :  { %290 = vadd.xlane.f32.xlu0 %v289_v55 }
  0x43   :  { %293 = vadd.xlane.f32.xlu1 %v292_v56 }
  0xb2   :  { %v249_v59 = vpop.xlane.xlu0 %248 }
  0xb3   :  { %v295_v3 = vadd.f32 1e-08, %v249_v59 }
  0xb4   :  { %v255_v57 = vpop.xlane.xlu1 %254 }
  0xb5   :  { %vm313_vm5 = vcmp.eq.f32.partialorder %v295_v3, inf  ;;  %v8189_v28 = vadd.f32 1e-08, %v255_v57  ;;  %v316_v29 = vand.u32 2147483648, %v295_v3  ;;  %vm315_vm6 = vcmp.eq.f32.partialorder %v295_v3, 0.0 }
  0xb6   :  { %v273_v14 = vpop.xlane.xlu0 %272 }
  0xb7   :  { %v8172_v12 = vadd.f32 1e-08, %v273_v14 }
  0xb8   :  { %v276_v58 = vpop.xlane.xlu1 %275 }
  0xb9   :  { %v8179_v18 = vadd.f32 1e-08, %v276_v58  ;;  %vm369_vm7 = vcmp.eq.f32.partialorder %v8172_v12, inf  ;;  %vm371_vm10 = vcmp.eq.f32.partialorder %v8172_v12, 0.0  ;;  %v372_v42 = vand.u32 2147483648, %v8172_v12 }
  0xba   :  { %v252_v62 = vpop.xlane.xlu0 %251 }
  0xbb   :  { %v296_v1 = vadd.f32 1e-08, %v252_v62  ;;  %vm376_vm9 = vcmp.eq.f32.partialorder %v8179_v18, inf  ;;  %vm378_vm0 = vcmp.eq.f32.partialorder %v8179_v18, 0.0 }
  0xbc   :  { %v8166_v60 = vpop.xlane.xlu1 %257 }
  0xbd   :  { %7518 = vrsqrt.f32 %v296_v1  ;;  %vm320_vm3 = vcmp.eq.f32.partialorder %v296_v1, inf  ;;  %v323_v23 = vand.u32 2147483648, %v296_v1  ;;  %vm322_vm4 = vcmp.eq.f32.partialorder %v296_v1, 0.0 }
  0xbe   :  { %v8168_v2 = vpop.xlane.xlu0 %260  ;;  %7520 = vrsqrt.f32 %v295_v3 }
  0xc0   :  { %v264_v61 = vpop.xlane.xlu1 %263 }
  0xc1   :  { %v8170_v7 = vadd.f32 1e-08, %v264_v61 }
  0xc2   :  { %v279_v6 = vpop.xlane.xlu0 %278 }
  0xc3   :  { %7522 = vrsqrt.f32 %v8170_v7  ;;  %v8185_v21 = vadd.f32 1e-08, %v279_v6  ;;  %vm348_vm8 = vcmp.eq.f32.partialorder %v8170_v7, inf  ;;  %vm350_vm11 = vcmp.eq.f32.partialorder %v8170_v7, 0.0 }
  0xc4   :  { %v282_v63 = vpop.xlane.xlu1 %281  ;;  %7524 = vrsqrt.f32 %v8172_v12  ;;  %v351_v45 = vand.u32 2147483648, %v8170_v7  ;;  %v379_v6 = vand.u32 2147483648, %v8179_v18 }
  0xc5   :  { %v8187_v22 = vadd.f32 1e-08, %v282_v63  ;;  %vm383_vm2 = vcmp.eq.f32.partialorder %v8185_v21, inf }
  0xc6   :  { %v267_v11 = vpop.xlane.xlu0 %266 }
  0xc7   :  { %v8177_v16 = vadd.f32 1e-08, %v267_v11  ;;  %v7519_v17 = vpop.eup %7518  ;;  %vm390_vm1 = vcmp.eq.f32.partialorder %v8187_v22, inf }
  0xc8   :  { %v288_v5 = vpop.xlane.xlu1 %287  ;;  %v7521_v19 = vpop.eup %7520  ;;  %v319_v20 = vmul.f32 %v7519_v17, %v296_v1 }
  0xc9   :  { %v312_v24 = vmul.f32 %v7521_v19, %v295_v3  ;;  %v8193_v32 = vadd.f32 1e-08, %v288_v5  ;;  %vm355_vm13 = vcmp.eq.f32.partialorder %v8177_v16, inf  ;;  %v358_v57 = vand.u32 2147483648, %v8177_v16 }
  0xca   :  { %v285_v25 = vpop.xlane.xlu0 %284  ;;  %v321_v26 = vsel %vm320_vm3, %v296_v1, %v319_v20  ;;  %vm357_vm15 = vcmp.eq.f32.partialorder %v8177_v16, 0.0  ;;  %vm392_vm3 = vcmp.eq.f32.partialorder %v8187_v22, 0.0 }
  0xcb   :  { %v324_v30 = vsel %vm322_vm4, %v323_v23, %v321_v26  ;;  %v314_v31 = vsel %vm313_vm5, %v295_v3, %v312_v24  ;;  %v8196_v35 = vadd.f32 1e-08, %v285_v25  ;;  %vm385_vm4 = vcmp.eq.f32.partialorder %v8185_v21, 0.0 }
  0xcc   :  { %v270_v9 = vpop.xlane.xlu1 %269  ;;  %v446_v40 = vmul.f32 %v8198_v37, %v324_v30  ;;  %v317_v41 = vsel %vm315_vm6, %v316_v29, %v314_v31  ;;  %v393_v31 = vand.u32 2147483648, %v8187_v22  ;;  %vm327_vm5 = vcmp.eq.f32.partialorder %v8189_v28, inf }
  0xcd   :  { %v8175_v15 = vadd.f32 1e-08, %v270_v9  ;;  %v7523_v27 = vpop.eup %7522  ;;  %v445_v51 = vmul.f32 %v8198_v37, %v317_v41  ;;  %vm404_vm6 = vcmp.eq.f32.partialorder %v8193_v32, inf }
  0xce   :  { %v7525_v33 = vpop.eup %7524  ;;  %v347_v34 = vmul.f32 %v7523_v27, %v8170_v7  ;;  %v291_v38 = vpop.xlane.xlu0 %290 }
  0xcf   :  { %7526 = vrsqrt.f32 %v8175_v15  ;;  %v8215_v49 = vadd.f32 1e-08, %v291_v38  ;;  %v368_v52 = vmul.f32 %v7525_v33, %v8172_v12  ;;  %vm362_vm12 = vcmp.eq.f32.partialorder %v8175_v15, inf }
  0xd0   :  { %7528 = vrsqrt.f32 %v8177_v16  ;;  %v294_v43 = vpop.xlane.xlu1 %293  ;;  %v349_v47 = vsel %vm348_vm8, %v8170_v7, %v347_v34  ;;  %v365_v61 = vand.u32 2147483648, %v8175_v15  ;;  %vm364_vm14 = vcmp.eq.f32.partialorder %v8175_v15, 0.0 }
  0xd1   :  { %7530 = vrsqrt.f32 %v8179_v18  ;;  %v8210_v46 = vadd.f32 1e-08, %v294_v43  ;;  %v352_v14 = vsel %vm350_vm11, %v351_v45, %v349_v47  ;;  %v370_v17 = vsel %vm369_vm7, %v8172_v12, %v368_v52 }
  0xd2   :  { %7532 = vrsqrt.f32 %v8185_v21  ;;  %v450_v19 = vmul.f32 %v8198_v37, %v352_v14  ;;  %v373_v29 = vsel %vm371_vm10, %v372_v42, %v370_v17  ;;  %v386_v33 = vand.u32 2147483648, %v8185_v21 }
  0xd3   :  { %7534 = vrsqrt.f32 %v8187_v22  ;;  %v453_v47 = vmul.f32 %v8198_v37, %v373_v29  ;;  %vm397_vm7 = vcmp.eq.f32.partialorder %v8196_v35, inf  ;;  %vm406_vm8 = vcmp.eq.f32.partialorder %v8193_v32, 0.0 }
  0xd4   :  { %7536 = vrsqrt.f32 %v8189_v28  ;;  %vm418_vm10 = vcmp.eq.f32.partialorder %v8210_v46, inf  ;;  %vm411_vm11 = vcmp.eq.f32.partialorder %v8215_v49, inf  ;;  %v330_v29 = vand.u32 2147483648, %v8189_v28 }
  0xd5   :  { %7538 = vrsqrt.f32 %v8193_v32 }
  0xd6   :  { %7540 = vrsqrt.f32 %v8196_v35 }
  0xd7   :  { %7542 = vrsqrt.f32 %v8210_v46 }
  0xd8   :  { %7544 = vrsqrt.f32 %v8215_v49 }
  0xd9   :  { %v7527_v36 = vpop.eup %7526 }
  0xda   :  { %v7529_v39 = vpop.eup %7528  ;;  %v361_v48 = vmul.f32 %v7527_v36, %v8175_v15 }
  0xdb   :  { %v7531_v44 = vpop.eup %7530  ;;  %v354_v53 = vmul.f32 %v7529_v39, %v8177_v16 }
  0xdc   :  { %v375_v56 = vmul.f32 %v7531_v44, %v8179_v18  ;;  %v7533_v58 = vpop.eup %7532  ;;  %v363_v1 = vsel %vm362_vm12, %v8175_v15, %v361_v48  ;;  %vm420_vm12 = vcmp.eq.f32.partialorder %v8210_v46, 0.0 }
  0xdd   :  { %v7535_v62 = vpop.eup %7534  ;;  %v356_v7 = vsel %vm355_vm13, %v8177_v16, %v354_v53  ;;  %v366_v16 = vsel %vm364_vm14, %v365_v61, %v363_v1  ;;  %v382_v24 = vmul.f32 %v7533_v58, %v8185_v21  ;;  %vm329_vm13 = vcmp.eq.f32.partialorder %v8189_v28, 0.0 }
  0xde   :  { %v377_v11 = vsel %vm376_vm9, %v8179_v18, %v375_v56  ;;  %v7537_v20 = vpop.eup %7536  ;;  %v389_v23 = vmul.f32 %v7535_v62, %v8187_v22  ;;  %v359_v25 = vsel %vm357_vm15, %v358_v57, %v356_v7  ;;  %v452_v36 = vmul.f32 %v8198_v37, %v366_v16 }
  0xdf   :  { %v7539_v18 = vpop.eup %7538  ;;  %v380_v27 = vsel %vm378_vm0, %v379_v6, %v377_v11  ;;  %v384_v39 = vsel %vm383_vm2, %v8185_v21, %v382_v24  ;;  %v451_v12 = vmul.f32 %v8198_v37, %v359_v25  ;;  %vm399_vm9 = vcmp.eq.f32.partialorder %v8196_v35, 0.0 }
  0xe0   :  { %v7541_v30 = vpop.eup %7540  ;;  %v391_v38 = vsel %vm390_vm1, %v8187_v22, %v389_v23  ;;  %v403_v42 = vmul.f32 %v7539_v18, %v8193_v32  ;;  %v454_v45 = vmul.f32 %v8198_v37, %v380_v27  ;;  %v387_v52 = vsel %vm385_vm4, %v386_v33, %v384_v39 }
  0xe1   :  { %v7543_v43 = vpop.eup %7542  ;;  %v396_v21 = vmul.f32 %v7541_v30, %v8196_v35  ;;  %v400_v57 = vand.u32 2147483648, %v8196_v35  ;;  %v455_v11 = vmul.f32 %v8198_v37, %v387_v52  ;;  %v414_v25 = vand.u32 2147483648, %v8215_v49 }
  0xe2   :  { %v7545_v48 = vpop.eup %7544  ;;  %v405_v56 = vsel %vm404_vm6, %v8193_v32, %v403_v42  ;;  %v417_v58 = vmul.f32 %v7543_v43, %v8210_v46  ;;  %vm413_vm14 = vcmp.eq.f32.partialorder %v8215_v49, 0.0  ;;  %v298_v27 = vadd.f32 1e-08, %v8166_v60 }
  0xe3   :  { %v398_v61 = vsel %vm397_vm7, %v8196_v35, %v396_v21  ;;  %v410_v62 = vmul.f32 %v7545_v48, %v8215_v49  ;;  %vm682_vm15 = vcmask 130048   ;;  %vm2367_vm4 = vcmask 64512  }
  0xe4   :  { %v401_v23 = vsel %vm399_vm9, %v400_v57, %v398_v61  ;;  %v419_v24 = vsel %vm418_vm10, %v8210_v46, %v417_v58  ;;  %7546 = vrsqrt.f32 %v298_v27  ;;  %vm334_vm0 = vcmp.eq.f32.partialorder %v298_v27, inf }
  0xe5   :  { %vm336_vm1 = vcmp.eq.f32.partialorder %v298_v27, 0.0  ;;  %vm2815_vm6 = vcmask 1042434   ;;  %vm2817_vm7 = vcmask 1043459   ;;  %vm2821_vm9 = vcmask 1045509  }
  0xe6   :  { %vm2823_vm10 = vcmask 1046534  }
  0xea   :  { %v7306_v50 = vpop.f32.mrb[0].mxu0 }
  0xeb   :  { %v586_v54 = vadd.f32 %v7306_v50, %v446_v40  ;;  %v580_v55 = vpop.f32.mrb[1].mxu0  ;;  %v326_v40 = vmul.f32 %v7537_v20, %v8189_v28  ;;  %v421_v20 = vand.u32 2147483648, %v8210_v46 }
  0xec   :  { %v581_v59 = vadd.f32 %v580_v55, %v445_v51  ;;  %v394_v51 = vsel %vm392_vm3, %v393_v31, %v391_v38  ;;  %v407_v55 = vand.u32 2147483648, %v8193_v32 }
  0xed   :  { %v8231_v63 = vadd.f32 %v8217_v10, %v586_v54  ;;  %v456_v7 = vmul.f32 %v8198_v37, %v394_v51  ;;  %v328_v33 = vsel %vm327_vm5, %v8189_v28, %v326_v40  ;;  %v422_v38 = vsel %vm420_vm12, %v421_v20, %v419_v24 }
  0xee   :  { %v8237_v3 = vadd.f32 %v8217_v10, %v581_v59  ;;  %v8239_v5 = vpop.f32.mrb[2].mxu0  ;;  %v331_v42 = vsel %vm329_vm13, %v330_v29, %v328_v33  ;;  %vm2813_vm5 = vcmask 1041409   ;;  %vm3332_vm12 = vcmask 195712  }
  0xef   :  { %1166 = vrot.lane.b32.xlu1 %v8231_v63, %s7966_s1  ;;  %v8246_v9 = vpop.f32.mrb[3].mxu0  ;;  %v447_v48 = vmul.f32 %v8198_v37, %v331_v42  ;;  %vm4165_vm13 = vcmask 261312  }
  0xf0   :  { %1164 = vrot.lane.b32.xlu0 %v8237_v3, %s7966_s1  ;;  %v683_v58 = vsel %vm682_vm15, %v8237_v3, 0.0 }
  0xf2   :  { %v7312_v26 = vpop.f32.mrb[4].mxu0 }
  0xf3   :  { %v8267_v15 = vpop.f32.mrb[5].mxu0  ;;  %v606_v34 = vadd.f32 %v7312_v26, %v450_v19  ;;  %v408_v19 = vsel %vm406_vm8, %v407_v55, %v405_v56  ;;  %v412_v26 = vsel %vm411_vm11, %v8215_v49, %v410_v62  ;;  %v7547_v56 = vpop.eup %7546  ;;  %vm2819_vm8 = vcmask 1044484  }
  0xf4   :  { %v458_v31 = vmul.f32 %v8198_v37, %v408_v19  ;;  %v415_v60 = vsel %vm413_vm14, %v414_v25, %v412_v26  ;;  %vm2825_vm11 = vcmask 1047559  }
  0xf5   :  { %v8279_v41 = vadd.f32 %v8217_v10, %v606_v34 }
  0xf6   :  { %v7315_v44 = vpop.f32.mrb[6].mxu0 }
  0xf7   :  { %v610_v50 = vpop.f32.mrb[7].mxu0  ;;  %v616_v53 = vadd.f32 %v7315_v44, %v452_v36  ;;  %v457_v36 = vmul.f32 %v8198_v37, %v401_v23  ;;  %v460_v44 = vmul.f32 %v8198_v37, %v422_v38 }
  0xf8   :  { %v611_v54 = vadd.f32 %v610_v50, %v451_v12 }
  0xf9   :  { %v8296_v22 = vadd.f32 %v8217_v10, %v616_v53 }
  0xfa   :  { %v7318_v59 = vpop.f32.mrb[8].mxu0  ;;  %v8299_v14 = vadd.f32 %v8217_v10, %v611_v54 }
  0xfb   :  { %v626_v1 = vadd.f32 %v7318_v59, %v454_v45  ;;  %v620_v6 = vpop.f32.mrb[9].mxu0  ;;  %v299_v45 = vadd.f32 1e-08, %v8168_v2  ;;  %v591_v2 = vadd.f32 %v8246_v9, %v447_v48  ;;  %v333_v59 = vmul.f32 %v7547_v56, %v298_v27 }
  0xfc   :  { %v621_v17 = vadd.f32 %v620_v6, %v453_v47  ;;  %v459_v47 = vmul.f32 %v8198_v37, %v415_v60  ;;  %v686_v9 = vsel %vm682_vm15, %v8231_v63, 0.0 }
  0xfd   :  { %v8312_v16 = vadd.f32 %v8217_v10, %v626_v1  ;;  %7548 = vrsqrt.f32 %v299_v45  ;;  %v8359_v57 = vadd.f32 %v8217_v10, %v591_v2  ;;  %v337_v1 = vand.u32 2147483648, %v298_v27 }
  0xfe   :  { %v8320_v18 = vadd.f32 %v8217_v10, %v621_v17  ;;  %v7321_v32 = vpop.f32.mrb[10].mxu0  ;;  %v335_v6 = vsel %vm334_vm0, %v298_v27, %v333_v59  ;;  %vm341_vm2 = vcmp.eq.f32.partialorder %v299_v45, inf  ;;  %v344_v17 = vand.u32 2147483648, %v299_v45 }
  0xff   :  { %11426 = vst [vmem:[#allocation11_spill] sm:$0xff] %v8312_v16  ;;  %v636_v35 = vadd.f32 %v7321_v32, %v456_v7  ;;  %v630_v30 = vpop.f32.mrb[11].mxu0  ;;  %v689_v62 = vsel %vm682_vm15, %v8359_v57, 0.0  ;;  %vm343_vm3 = vcmp.eq.f32.partialorder %v299_v45, 0.0 }
 0x100   :  { %v631_v34 = vadd.f32 %v630_v30, %v455_v11  ;;  %v338_v11 = vsel %vm336_vm1, %v337_v1, %v335_v6  ;;  %v707_v29 = vsel %vm682_vm15, %v8320_v18, 0.0 }
 0x101   :  { %v8334_v49 = vadd.f32 %v8217_v10, %v636_v35  ;;  %v448_v20 = vmul.f32 %v8198_v37, %v338_v11  ;;  %v704_v35 = vsel %vm682_vm15, %v8296_v22, 0.0 }
 0x102   :  { %v8337_v39 = vadd.f32 %v8217_v10, %v631_v34  ;;  %v7324_v12 = vpop.f32.mrb[12].mxu0 }
 0x103   :  { %11427 = vst [vmem:[#allocation12_spill] sm:$0xff] %v8334_v49  ;;  %v646_v43 = vadd.f32 %v7324_v12, %v458_v31  ;;  %v640_v40 = vpop.f32.mrb[13].mxu0  ;;  %v596_v24 = vadd.f32 %v8239_v5, %v448_v20  ;;  %v716_v60 = vsel %vm682_vm15, %v8334_v49, 0.0 }
 0x104   :  { %11428 = vst [vmem:[#allocation13_spill] sm:$0xff] %v8337_v39  ;;  %v641_v46 = vadd.f32 %v640_v40, %v457_v36  ;;  %v713_v30 = vsel %vm682_vm15, %v8337_v39, 0.0  ;;  %v710_v36 = vsel %vm682_vm15, %v8312_v16, 0.0 }
 0x105   :  { %v8345_v21 = vadd.f32 %v8217_v10, %v646_v43  ;;  %v8371_v32 = vadd.f32 %v8217_v10, %v596_v24 }
 0x106   :  { %v8349_v50 = vadd.f32 %v8217_v10, %v641_v46  ;;  %v7327_v51 = vpop.f32.mrb[14].mxu0 }
 0x107   :  { %11429 = vst [vmem:[#allocation14_spill] sm:$0xff] %v8345_v21  ;;  %v656_v28 = vadd.f32 %v7327_v51, %v460_v44  ;;  %v650_v52 = vpop.f32.mrb[15].mxu0  ;;  %v7549_v61 = vpop.eup %7548  ;;  %v692_v5 = vsel %vm682_vm15, %v8371_v32, 0.0  ;;  %v722_v42 = vsel %vm682_vm15, %v8345_v21, 0.0 }
 0x108   :  { %11430 = vst [vmem:[#allocation15_spill] sm:$0xff] %v8349_v50  ;;  %v651_v53 = vadd.f32 %v650_v52, %v459_v47  ;;  %v340_v7 = vmul.f32 %v7549_v61, %v299_v45  ;;  %v719_v33 = vsel %vm682_vm15, %v8349_v50, 0.0 }
 0x109   :  { %v8352_v54 = vadd.f32 %v8217_v10, %v656_v28 }
 0x10a   :  { %v8356_v55 = vadd.f32 %v8217_v10, %v651_v53  ;;  %v342_v19 = vsel %vm341_vm2, %v299_v45, %v340_v7 }
 0x10b   :  { %v345_v23 = vsel %vm343_vm3, %v344_v17, %v342_v19  ;;  %v728_v44 = vsel %vm682_vm15, %v8352_v54, 0.0 }
 0x10c   :  { %v449_v25 = vmul.f32 %v8198_v37, %v345_v23  ;;  %v725_v2 = vsel %vm682_vm15, %v8356_v55, 0.0 }
 0x10e   :  { %v601_v26 = vadd.f32 %v8267_v15, %v449_v25  ;;  %v698_v15 = vsel %vm682_vm15, %v8279_v41, 0.0 }
 0x10f   :  { %684 = vadd.xlane.f32.xlu0 %v683_v58 }
 0x110   :  { %v8377_v27 = vadd.f32 %v8217_v10, %v601_v26  ;;  %v701_v10 = vsel %vm682_vm15, %v8299_v14, 0.0 }
 0x112   :  { %v695_v37 = vsel %vm682_vm15, %v8377_v27, 0.0 }
 0x113   :  { %690 = vadd.xlane.f32.xlu0 %v689_v62  ;;  %687 = vadd.xlane.f32.xlu1 %v686_v9 }
 0x124   :  { %1170 = vrot.lane.b32.xlu1 %v8371_v32, %s7966_s1 }
 0x128   :  { %1168 = vrot.lane.b32.xlu1 %v8359_v57, %s7966_s1 }
 0x129   :  { %1172 = vrot.lane.b32.xlu0 %v8377_v27, %s7966_s1 }
 0x148   :  { %696 = vadd.xlane.f32.xlu0 %v695_v37 }
 0x14c   :  { %693 = vadd.xlane.f32.xlu1 %v692_v5 }
 0x15d   :  { %1174 = vrot.lane.b32.xlu1 %v8279_v41, %s7966_s1 }
 0x15e   :  { %1176 = vrot.lane.b32.xlu0 %v8299_v14, %s7966_s1 }
 0x161   :  { %v1167_v31 = vpop.permute.xlu1 %1166 }
 0x162   :  { %v1215_v40 = vsel %vm682_vm15, %v1167_v31, 0.0  ;;  %v1165_v28 = vpop.permute.xlu0 %1164 }
 0x163   :  { %v1212_v58 = vsel %vm682_vm15, %v1165_v28, 0.0 }
 0x17d   :  { %702 = vadd.xlane.f32.xlu0 %v701_v10 }
 0x181   :  { %699 = vadd.xlane.f32.xlu1 %v698_v15 }
 0x192   :  { %1178 = vrot.lane.b32.xlu1 %v8296_v22, %s7966_s1 }
 0x193   :  { %1180 = vrot.lane.b32.xlu0 %v8320_v18, %s7966_s1 }
 0x19c   :  { %v685_v52 = vpop.xlane.xlu0 %684 }
 0x19d   :  { %v732_v15 = vmul.f32 0.0625, %v685_v52 }
 0x1a0   :  { %v8419_v34 = vpop.xlane.xlu1 %687  ;;  %v691_v53 = vpop.xlane.xlu0 %690 }
 0x1a4   :  { %v1171_v38 = vpop.permute.xlu1 %1170  ;;  %v1173_v56 = vpop.permute.xlu0 %1172 }
 0x1a5   :  { %v1221_v61 = vsel %vm682_vm15, %v1171_v38, 0.0  ;;  %v1224_v6 = vsel %vm682_vm15, %v1173_v56, 0.0 }
 0x1a8   :  { %v1169_v12 = vpop.permute.xlu1 %1168 }
 0x1a9   :  { %v1218_v9 = vsel %vm682_vm15, %v1169_v12, 0.0 }
 0x1b2   :  { %708 = vadd.xlane.f32.xlu0 %v707_v29 }
 0x1b6   :  { %705 = vadd.xlane.f32.xlu1 %v704_v35 }
 0x1c7   :  { %1182 = vrot.lane.b32.xlu1 %v8312_v16, %s7966_s1 }
 0x1c8   :  { %1184 = vrot.lane.b32.xlu0 %v8337_v39, %s7966_s1 }
 0x1cb   :  { %1186 = vrot.lane.b32.xlu1 %v8334_v49, %s7966_s1 }
 0x1cc   :  { %1188 = vrot.lane.b32.xlu0 %v8349_v50, %s7966_s1 }
 0x1cf   :  { %1190 = vrot.lane.b32.xlu1 %v8345_v21, %s7966_s1 }
 0x1d3   :  { %1194 = vrot.lane.b32.xlu1 %v8352_v54, %s7966_s1 }
 0x1d5   :  { %v697_v59 = vpop.xlane.xlu0 %696 }
 0x1d9   :  { %v694_v43 = vpop.xlane.xlu1 %693  ;;  %v1177_v62 = vpop.permute.xlu0 %1176 }
 0x1da   :  { %v1230_v7 = vsel %vm682_vm15, %v1177_v62, 0.0  ;;  %v735_v31 = vmul.f32 0.0625, %v694_v43 }
 0x1dc   :  { %v8459_v38 = vsub.f32 %v8371_v32, %v735_v31 }
 0x1dd   :  { %v1175_v45 = vpop.permute.xlu1 %1174 }
 0x1de   :  { %v1227_v46 = vsel %vm682_vm15, %v1175_v45, 0.0  ;;  %v733_v45 = vmul.f32 0.0625, %v8419_v34 }
 0x1eb   :  { %714 = vadd.xlane.f32.xlu0 %v713_v30  ;;  %v8455_v30 = vsub.f32 %v8237_v3, %v732_v15 }
 0x1ed   :  { %v764_v12 = vmul.f32 %v8455_v30, %v8455_v30 }
 0x1ef   :  { %720 = vadd.xlane.f32.xlu0 %v719_v33 }
 0x1f7   :  { %711 = vadd.xlane.f32.xlu1 %v710_v36 }
 0x1fb   :  { %717 = vadd.xlane.f32.xlu1 %v716_v60 }
 0x1ff   :  { %723 = vadd.xlane.f32.xlu1 %v722_v42  ;;  %v780_v42 = vsel %vm682_vm15, %v764_v12, 0.0 }
 0x203   :  { %1216 = vadd.xlane.f32.xlu1 %v1215_v40  ;;  %v767_v40 = vmul.f32 %v8459_v38, %v8459_v38 }
 0x205   :  { %1192 = vrot.lane.b32.xlu0 %v8356_v55, %s7966_s1  ;;  %v789_v43 = vsel %vm682_vm15, %v767_v40, 0.0 }
 0x207   :  { %729 = vadd.xlane.f32.xlu1 %v728_v44 }
 0x20a   :  { %v8441_v1 = vpop.xlane.xlu0 %702 }
 0x20b   :  { %1228 = vadd.xlane.f32.xlu1 %v1227_v46 }
 0x20e   :  { %v8433_v47 = vpop.xlane.xlu1 %699  ;;  %v1181_v11 = vpop.permute.xlu0 %1180 }
 0x20f   :  { %v1236_v17 = vsel %vm682_vm15, %v1181_v11, 0.0 }
 0x212   :  { %v1179_v48 = vpop.permute.xlu1 %1178 }
 0x213   :  { %v1233_v51 = vsel %vm682_vm15, %v1179_v48, 0.0  ;;  %v734_v48 = vmul.f32 0.0625, %v691_v53 }
 0x214   :  { %1234 = vadd.xlane.f32.xlu1 %v1233_v51  ;;  %v8474_v51 = vsub.f32 %v8231_v63, %v733_v45 }
 0x215   :  { %v8477_v52 = vsub.f32 %v8359_v57, %v734_v48 }
 0x217   :  { %v766_v62 = vmul.f32 %v8477_v52, %v8477_v52 }
 0x224   :  { %726 = vadd.xlane.f32.xlu0 %v725_v2  ;;  %v736_v2 = vmul.f32 0.0625, %v697_v59  ;;  %v786_v59 = vsel %vm682_vm15, %v766_v62, 0.0 }
 0x226   :  { %v8485_v34 = vsub.f32 %v8377_v27, %v736_v2 }
 0x228   :  { %1213 = vadd.xlane.f32.xlu0 %v1212_v58  ;;  %v765_v58 = vmul.f32 %v8474_v51, %v8474_v51 }
 0x22a   :  { %v783_v53 = vsel %vm682_vm15, %v765_v58, 0.0 }
 0x22c   :  { %1222 = vadd.xlane.f32.xlu0 %v1221_v61 }
 0x230   :  { %1219 = vadd.xlane.f32.xlu0 %v1218_v9 }
 0x234   :  { %1225 = vadd.xlane.f32.xlu0 %v1224_v6  ;;  %v768_v6 = vmul.f32 %v8485_v34, %v8485_v34 }
 0x236   :  { %v792_v11 = vsel %vm682_vm15, %v768_v6, 0.0 }
 0x238   :  { %1231 = vadd.xlane.f32.xlu0 %v1230_v7 }
 0x23c   :  { %1237 = vadd.xlane.f32.xlu0 %v1236_v17 }
 0x23f   :  { %v8446_v19 = vpop.xlane.xlu0 %708 }
 0x243   :  { %v1185_v20 = vpop.permute.xlu0 %1184  ;;  %v8448_v23 = vpop.xlane.xlu1 %705 }
 0x244   :  { %v1242_v24 = vsel %vm682_vm15, %v1185_v20, 0.0 }
 0x245   :  { %1243 = vadd.xlane.f32.xlu0 %v1242_v24 }
 0x247   :  { %v1189_v25 = vpop.permute.xlu0 %1188  ;;  %v1183_v26 = vpop.permute.xlu1 %1182 }
 0x248   :  { %v1248_v37 = vsel %vm682_vm15, %v1189_v25, 0.0  ;;  %v1239_v5 = vsel %vm682_vm15, %v1183_v26, 0.0  ;;  %v948_v26 = vld [vmem:[#allocation2 + $0x28] sm:$0xff] }
 0x249   :  { %1249 = vadd.xlane.f32.xlu0 %v1248_v37  ;;  %1240 = vadd.xlane.f32.xlu1 %v1239_v5  ;;  %v949_v37 = vld [vmem:[#allocation2 + $0x30] sm:$0xff] }
 0x24a   :  { %v7464_v5 = vpack.c.bf16 %v949_v37, %v948_v26 }
 0x24b   :  { %v1187_v10 = vpop.permute.xlu1 %1186 }
 0x24c   :  { %v1245_v29 = vsel %vm682_vm15, %v1187_v10, 0.0  ;;  %7465 = vmatprep.subr.bf16.mxu1 %v7464_v5 }
 0x24d   :  { %1246 = vadd.xlane.f32.xlu1 %v1245_v29  ;;  %7467 = vmatpush3.bf16.msra.mxu1 %v7464_v5 }
 0x24f   :  { %v1191_v35 = vpop.permute.xlu1 %1190 }
 0x250   :  { %v1251_v33 = vsel %vm682_vm15, %v1191_v35, 0.0 }
 0x251   :  { %1252 = vadd.xlane.f32.xlu1 %v1251_v33 }
 0x253   :  { %v1195_v36 = vpop.permute.xlu1 %1194 }
 0x254   :  { %v1257_v60 = vsel %vm682_vm15, %v1195_v36, 0.0 }
 0x255   :  { %1258 = vadd.xlane.f32.xlu1 %v1257_v60 }
 0x259   :  { %781 = vadd.xlane.f32.xlu1 %v780_v42 }
 0x25d   :  { %790 = vadd.xlane.f32.xlu1 %v789_v43 }
 0x278   :  { %v8468_v44 = vpop.xlane.xlu0 %714 }
 0x27c   :  { %v8471_v46 = vpop.xlane.xlu0 %720 }
 0x280   :  { %v1193_v28 = vpop.permute.xlu0 %1192 }
 0x281   :  { %v1254_v56 = vsel %vm682_vm15, %v1193_v28, 0.0 }
 0x282   :  { %1255 = vadd.xlane.f32.xlu0 %v1254_v56 }
 0x284   :  { %v8482_v61 = vpop.xlane.xlu1 %711 }
 0x286   :  { %784 = vadd.xlane.f32.xlu0 %v783_v53 }
 0x288   :  { %v8490_v9 = vpop.xlane.xlu1 %717 }
 0x28a   :  { %787 = vadd.xlane.f32.xlu0 %v786_v59 }
 0x28c   :  { %v8495_v7 = vpop.xlane.xlu1 %723 }
 0x28e   :  { %793 = vadd.xlane.f32.xlu0 %v792_v11 }
 0x290   :  { %v1217_v17 = vpop.xlane.xlu1 %1216 }
 0x291   :  { %v1261_v20 = vmul.f32 0.0625, %v1217_v17 }
 0x293   :  { %v8499_v24 = vsub.f32 %v8231_v63, %v1261_v20 }
 0x294   :  { %v8506_v15 = vpop.xlane.xlu1 %729 }
 0x295   :  { %v1293_v25 = vmul.f32 %v8499_v24, %v8499_v24 }
 0x297   :  { %1326 = vrot.lane.b32.xlu1 %v1293_v25, %s7966_s1 }
 0x298   :  { %v1229_v12 = vpop.xlane.xlu1 %1228 }
 0x299   :  { %v1265_v43 = vmul.f32 0.0625, %v1229_v12 }
 0x29b   :  { %v8524_v58 = vsub.f32 %v8279_v41, %v1265_v43 }
 0x29d   :  { %v1297_v26 = vmul.f32 %v8524_v58, %v8524_v58 }
 0x2a1   :  { %v1235_v28 = vpop.xlane.xlu1 %1234 }
 0x2a2   :  { %v1267_v53 = vmul.f32 0.0625, %v1235_v28 }
 0x2a4   :  { %v8533_v17 = vsub.f32 %v8296_v22, %v1267_v53 }
 0x2b1   :  { %v8504_v10 = vpop.xlane.xlu0 %726 }
 0x2b5   :  { %v1214_v29 = vpop.xlane.xlu0 %1213 }
 0x2b6   :  { %v1260_v35 = vmul.f32 0.0625, %v1214_v29 }
 0x2b8   :  { %v8509_v31 = vsub.f32 %v8237_v3, %v1260_v35 }
 0x2b9   :  { %v1223_v33 = vpop.xlane.xlu0 %1222 }
 0x2ba   :  { %v1263_v36 = vmul.f32 0.0625, %v1223_v33  ;;  %v1292_v60 = vmul.f32 %v8509_v31, %v8509_v31  ;;  %v1299_v33 = vmul.f32 %v8533_v17, %v8533_v17 }
 0x2bc   :  { %v8514_v42 = vsub.f32 %v8371_v32, %v1263_v36  ;;  %1324 = vrot.lane.b32.xlu0 %v1292_v60, %s7966_s1 }
 0x2bd   :  { %v1220_v40 = vpop.xlane.xlu0 %1219 }
 0x2be   :  { %v1262_v45 = vmul.f32 0.0625, %v1220_v40  ;;  %v1295_v48 = vmul.f32 %v8514_v42, %v8514_v42 }
 0x2c0   :  { %v8520_v2 = vsub.f32 %v8359_v57, %v1262_v45  ;;  %1330 = vrot.lane.b32.xlu1 %v1295_v48, %s7966_s1 }
 0x2c1   :  { %v1226_v56 = vpop.xlane.xlu0 %1225 }
 0x2c2   :  { %v1264_v62 = vmul.f32 0.0625, %v1226_v56  ;;  %v1294_v59 = vmul.f32 %v8520_v2, %v8520_v2 }
 0x2c4   :  { %v8529_v6 = vsub.f32 %v8377_v27, %v1264_v62  ;;  %1328 = vrot.lane.b32.xlu1 %v1294_v59, %s7966_s1 }
 0x2c5   :  { %v1232_v11 = vpop.xlane.xlu0 %1231 }
 0x2c6   :  { %v1266_v20 = vmul.f32 0.0625, %v1232_v11  ;;  %v1296_v25 = vmul.f32 %v8529_v6, %v8529_v6 }
 0x2c8   :  { %v8540_v37 = vsub.f32 %v8299_v14, %v1266_v20  ;;  %1332 = vrot.lane.b32.xlu0 %v1296_v25, %s7966_s1  ;;  %1334 = vrot.lane.b32.xlu1 %v1297_v26, %s7966_s1 }
 0x2c9   :  { %v1238_v5 = vpop.xlane.xlu0 %1237 }
 0x2ca   :  { %v1268_v29 = vmul.f32 0.0625, %v1238_v5  ;;  %v1298_v35 = vmul.f32 %v8540_v37, %v8540_v37 }
 0x2cc   :  { %v8549_v36 = vsub.f32 %v8320_v18, %v1268_v29  ;;  %1336 = vrot.lane.b32.xlu0 %v1298_v35, %s7966_s1  ;;  %1338 = vrot.lane.b32.xlu1 %v1299_v33, %s7966_s1 }
 0x2ce   :  { %v1300_v60 = vmul.f32 %v8549_v36, %v8549_v36 }
 0x2d0   :  { %1340 = vrot.lane.b32.xlu0 %v1300_v60, %s7966_s1 }
 0x2d2   :  { %v1244_v12 = vpop.xlane.xlu0 %1243 }
 0x2d3   :  { %v1270_v40 = vmul.f32 0.0625, %v1244_v12 }
 0x2d5   :  { %v8557_v43 = vsub.f32 %v8337_v39, %v1270_v40 }
 0x2d6   :  { %v1250_v45 = vpop.xlane.xlu0 %1249  ;;  %v1241_v48 = vpop.xlane.xlu1 %1240 }
 0x2d7   :  { %v1272_v28 = vmul.f32 0.0625, %v1250_v45  ;;  %v1269_v56 = vmul.f32 0.0625, %v1241_v48  ;;  %v1302_v53 = vmul.f32 %v8557_v43, %v8557_v43 }
 0x2d9   :  { %v8562_v62 = vsub.f32 %v8349_v50, %v1272_v28  ;;  %v8565_v59 = vsub.f32 %v8312_v16, %v1269_v56  ;;  %1344 = vrot.lane.b32.xlu0 %v1302_v53, %s7966_s1 }
 0x2da   :  { %v1247_v11 = vpop.xlane.xlu1 %1246 }
 0x2db   :  { %v1271_v20 = vmul.f32 0.0625, %v1247_v11  ;;  %v1304_v25 = vmul.f32 %v8562_v62, %v8562_v62  ;;  %v1301_v26 = vmul.f32 %v8565_v59, %v8565_v59 }
 0x2dd   :  { %v8573_v5 = vsub.f32 %v8334_v49, %v1271_v20  ;;  %1348 = vrot.lane.b32.xlu0 %v1304_v25, %s7966_s1  ;;  %1342 = vrot.lane.b32.xlu1 %v1301_v26, %s7966_s1  ;;  %v8592_v25 = vld [vmem:[#allocation2 + $0x18] ss:$0 sm:$0xff] }
 0x2de   :  { %v1253_v29 = vpop.xlane.xlu1 %1252 }
 0x2df   :  { %v1273_v35 = vmul.f32 0.0625, %v1253_v29  ;;  %v1303_v33 = vmul.f32 %v8573_v5, %v8573_v5  ;;  %v8595_v29 = vld [vmem:[#allocation2 + $0x20] ss:$0 sm:$0xff] }
 0x2e1   :  { %v8580_v60 = vsub.f32 %v8345_v21, %v1273_v35  ;;  %1346 = vrot.lane.b32.xlu1 %v1303_v33, %s7966_s1 }
 0x2e2   :  { %v1259_v12 = vpop.xlane.xlu1 %1258 }
 0x2e3   :  { %v1275_v40 = vmul.f32 0.0625, %v1259_v12  ;;  %v1305_v45 = vmul.f32 %v8580_v60, %v8580_v60 }
 0x2e5   :  { %v8586_v48 = vsub.f32 %v8352_v54, %v1275_v40  ;;  %1350 = vrot.lane.b32.xlu1 %v1305_v45, %s7966_s1 }
 0x2e6   :  { %v782_v28 = vpop.xlane.xlu1 %781 }
 0x2e7   :  { %v828_v56 = vmul.f32 0.0625, %v782_v28  ;;  %v1307_v53 = vmul.f32 %v8586_v48, %v8586_v48 }
 0x2e9   :  { %v844_v11 = vadd.f32 1e-05, %v828_v56  ;;  %1354 = vrot.lane.b32.xlu1 %v1307_v53, %s7966_s1 }
 0x2ea   :  { %v791_v40 = vpop.xlane.xlu1 %790 }
 0x2eb   :  { %7550 = vrsqrt.f32 %v844_v11  ;;  %v831_v56 = vmul.f32 0.0625, %v791_v40 }
 0x2ed   :  { %v847_v0 = vadd.f32 1e-05, %v831_v56 }
 0x2ef   :  { %7552 = vrsqrt.f32 %v847_v0 }
 0x2f5   :  { %v7551_v20 = vpop.eup %7550 }
 0x2f6   :  { %v876_v26 = vmul.f32 %v7551_v20, %v8455_v30 }
 0x2f8   :  { %v896_v35 = vmul.f32 %v8592_v25, %v876_v26 }
 0x2fa   :  { %v916_v33 = vadd.f32 %v8595_v29, %v896_v35 }
 0x2fc   :  { %v932_v12 = vmax.f32 %v916_v33, 0.0 }
 0x2fe   :  { %7332 = vmatprep.mubr.msk.f32.mxu1 %vm682_vm15, %v932_v12 }
 0x309   :  { %v1327_v45 = vpop.permute.xlu1 %1326 }
 0x30a   :  { %v1375_v28 = vsel %vm682_vm15, %v1327_v45, 0.0 }
 0x30d   :  { %1376 = vadd.xlane.f32.xlu1 %v1375_v28 }
 0x30f   :  { %v1256_v53 = vpop.xlane.xlu0 %1255 }
 0x310   :  { %v1274_v11 = vmul.f32 0.0625, %v1256_v53  ;;  %v7553_v53 = vpop.eup %7552 }
 0x312   :  { %v8602_v30 = vsub.f32 %v8356_v55, %v1274_v11 }
 0x313   :  { %v785_v20 = vpop.xlane.xlu0 %784 }
 0x314   :  { %v829_v4 = vmul.f32 0.0625, %v785_v20  ;;  %v1306_v26 = vmul.f32 %v8602_v30, %v8602_v30  ;;  %v879_v20 = vmul.f32 %v7553_v53, %v8459_v38 }
 0x316   :  { %v845_v35 = vadd.f32 1e-05, %v829_v4  ;;  %1352 = vrot.lane.b32.xlu0 %v1306_v26, %s7966_s1  ;;  %v899_v26 = vmul.f32 %v8592_v25, %v879_v20 }
 0x317   :  { %v788_v33 = vpop.xlane.xlu0 %787 }
 0x318   :  { %7554 = vrsqrt.f32 %v845_v35  ;;  %v830_v12 = vmul.f32 0.0625, %v788_v33 }
 0x31a   :  { %v846_v40 = vadd.f32 1e-05, %v830_v12 }
 0x31b   :  { %v794_v45 = vpop.xlane.xlu0 %793 }
 0x31c   :  { %7556 = vrsqrt.f32 %v846_v40  ;;  %v832_v28 = vmul.f32 0.0625, %v794_v45 }
 0x31e   :  { %v848_v56 = vadd.f32 1e-05, %v832_v28  ;;  %v919_v28 = vadd.f32 %v8595_v29, %v899_v26 }
 0x320   :  { %7558 = vrsqrt.f32 %v848_v56  ;;  %v935_v53 = vmax.f32 %v919_v28, 0.0 }
 0x322   :  { %v7555_v11 = vpop.eup %7554 }
 0x323   :  { %v877_v13 = vmul.f32 %v7555_v11, %v8474_v51 }
 0x325   :  { %v897_v0 = vmul.f32 %v8592_v25, %v877_v13 }
 0x326   :  { %v7557_v4 = vpop.eup %7556 }
 0x327   :  { %v917_v35 = vadd.f32 %v8595_v29, %v897_v0  ;;  %v878_v33 = vmul.f32 %v7557_v4, %v8477_v52 }
 0x329   :  { %v933_v12 = vmax.f32 %v917_v35, 0.0  ;;  %v898_v40 = vmul.f32 %v8592_v25, %v878_v33 }
 0x32a   :  { %v7559_v45 = vpop.eup %7558 }
 0x32b   :  { %7333 = vmatmul.mubr.msk.f32.vlgmr.msra.gmra.mrb[0].mxu1 %vm682_vm15, %v933_v12  ;;  %v918_v38 = vadd.f32 %v8595_v29, %v898_v40  ;;  %v880_v51 = vmul.f32 %v7559_v45, %v8485_v34 }
 0x32d   :  { %v934_v13 = vmax.f32 %v918_v38, 0.0  ;;  %v900_v56 = vmul.f32 %v8592_v25, %v880_v51 }
 0x32e   :  { %v1325_v11 = vpop.permute.xlu0 %1324 }
 0x32f   :  { %7335 = vmatprep.mubr.msk.f32.mxu1 %vm682_vm15, %v934_v13  ;;  %v920_v52 = vadd.f32 %v8595_v29, %v900_v56  ;;  %v1372_v4 = vsel %vm682_vm15, %v1325_v11, 0.0 }
 0x330   :  { %7336 = vmatmul.mubr.msk.f32.gmra.mrb[2].mxu1 %vm682_vm15, %v935_v53 }
 0x331   :  { %v936_v20 = vmax.f32 %v920_v52, 0.0 }
 0x332   :  { %v1331_v0 = vpop.permute.xlu1 %1330 }
 0x333   :  { %7338 = vmatprep.mubr.msk.f32.mxu1 %vm682_vm15, %v936_v20  ;;  %v1381_v34 = vsel %vm682_vm15, %v1331_v0, 0.0 }
 0x335   :  { %1373 = vadd.xlane.f32.xlu0 %v1372_v4 }
 0x336   :  { %v1329_v26 = vpop.permute.xlu1 %1328 }
 0x337   :  { %v1378_v40 = vsel %vm682_vm15, %v1329_v26, 0.0 }
 0x339   :  { %1382 = vadd.xlane.f32.xlu0 %v1381_v34 }
 0x33a   :  { %v1333_v35 = vpop.permute.xlu0 %1332  ;;  %v1335_v33 = vpop.permute.xlu1 %1334 }
 0x33b   :  { %v1387_v12 = vsel %vm682_vm15, %v1335_v33, 0.0  ;;  %v1384_v51 = vsel %vm682_vm15, %v1333_v35, 0.0 }
 0x33c   :  { %1388 = vadd.xlane.f32.xlu1 %v1387_v12 }
 0x33d   :  { %1379 = vadd.xlane.f32.xlu0 %v1378_v40 }
 0x33e   :  { %v1339_v45 = vpop.permute.xlu1 %1338  ;;  %v1337_v28 = vpop.permute.xlu0 %1336 }
 0x33f   :  { %v1393_v38 = vsel %vm682_vm15, %v1339_v45, 0.0  ;;  %v1390_v13 = vsel %vm682_vm15, %v1337_v28, 0.0 }
 0x340   :  { %1394 = vadd.xlane.f32.xlu1 %v1393_v38 }
 0x341   :  { %1385 = vadd.xlane.f32.xlu0 %v1384_v51 }
 0x342   :  { %v1341_v56 = vpop.permute.xlu0 %1340 }
 0x343   :  { %v1396_v53 = vsel %vm682_vm15, %v1341_v56, 0.0 }
 0x345   :  { %1391 = vadd.xlane.f32.xlu0 %v1390_v13 }
 0x349   :  { %1397 = vadd.xlane.f32.xlu0 %v1396_v53 }
 0x34b   :  { %v1345_v52 = vpop.permute.xlu0 %1344 }
 0x34c   :  { %v1402_v11 = vsel %vm682_vm15, %v1345_v52, 0.0 }
 0x34d   :  { %1403 = vadd.xlane.f32.xlu0 %v1402_v11 }
 0x34f   :  { %v1349_v20 = vpop.permute.xlu0 %1348  ;;  %v1343_v0 = vpop.permute.xlu1 %1342 }
 0x350   :  { %v1408_v4 = vsel %vm682_vm15, %v1349_v20, 0.0  ;;  %v1399_v26 = vsel %vm682_vm15, %v1343_v0, 0.0 }
 0x351   :  { %1409 = vadd.xlane.f32.xlu0 %v1408_v4  ;;  %1400 = vadd.xlane.f32.xlu1 %v1399_v26  ;;  %v1532_v4 = vld [vmem:[#allocation2 + $0x40] sm:$0xff]  ;;  %v1533_v26 = vld [vmem:[#allocation2 + $0x48] sm:$0xff] }
 0x353   :  { %v1347_v34 = vpop.permute.xlu1 %1346 }
 0x354   :  { %v1405_v35 = vsel %vm682_vm15, %v1347_v34, 0.0  ;;  %v7468_v34 = vpack.c.bf16 %v1533_v26, %v1532_v4 }
 0x355   :  { %1406 = vadd.xlane.f32.xlu1 %v1405_v35 }
 0x356   :  { %7469 = vmatprep.subr.bf16.mxu0 %v7468_v34 }
 0x357   :  { %v1351_v33 = vpop.permute.xlu1 %1350  ;;  %7471 = vmatpush3.bf16.msra.mxu0 %v7468_v34 }
 0x358   :  { %v1411_v12 = vsel %vm682_vm15, %v1351_v33, 0.0 }
 0x359   :  { %1412 = vadd.xlane.f32.xlu1 %v1411_v12 }
 0x35b   :  { %v1355_v40 = vpop.permute.xlu1 %1354 }
 0x35c   :  { %v1417_v45 = vsel %vm682_vm15, %v1355_v40, 0.0 }
 0x35d   :  { %1418 = vadd.xlane.f32.xlu1 %v1417_v45 }
 0x388   :  { %v1353_v28 = vpop.permute.xlu0 %1352 }
 0x389   :  { %v1414_v38 = vsel %vm682_vm15, %v1353_v28, 0.0 }
 0x38a   :  { %1415 = vadd.xlane.f32.xlu0 %v1414_v38 }
 0x39a   :  { %v1377_v51 = vpop.xlane.xlu1 %1376 }
 0x39b   :  { %v1421_v13 = vmul.f32 0.0625, %v1377_v51 }
 0x39d   :  { %v1437_v56 = vadd.f32 1e-05, %v1421_v13 }
 0x39f   :  { %7560 = vrsqrt.f32 %v1437_v56 }
 0x3a9   :  { %v7561_v53 = vpop.eup %7560 }
 0x3aa   :  { %v1469_v52 = vmul.f32 %v7561_v53, %v8499_v24 }
 0x3ac   :  { %v1485_v11 = vmul.f32 %v8592_v25, %v1469_v52 }
 0x3ae   :  { %v1501_v20 = vadd.f32 %v8595_v29, %v1485_v11 }
 0x3b0   :  { %v1517_v0 = vmax.f32 %v1501_v20, 0.0 }
 0x3b2   :  { %1557 = vrot.lane.b32.xlu1 %v1517_v0, %s7966_s1 }
 0x3c2   :  { %v1374_v35 = vpop.xlane.xlu0 %1373 }
 0x3c3   :  { %v1420_v33 = vmul.f32 0.0625, %v1374_v35 }
 0x3c5   :  { %v1436_v12 = vadd.f32 1e-05, %v1420_v33 }
 0x3c6   :  { %v1383_v40 = vpop.xlane.xlu0 %1382 }
 0x3c7   :  { %7562 = vrsqrt.f32 %v1436_v12  ;;  %v1423_v45 = vmul.f32 0.0625, %v1383_v40 }
 0x3c9   :  { %v1439_v28 = vadd.f32 1e-05, %v1423_v45 }
 0x3ca   :  { %v1380_v24 = vpop.xlane.xlu0 %1379 }
 0x3cb   :  { %7564 = vrsqrt.f32 %v1439_v28  ;;  %v1422_v38 = vmul.f32 0.0625, %v1380_v24  ;;  %v1389_v28 = vpop.xlane.xlu1 %1388  ;;  %v738_v24 = vmul.f32 0.0625, %v8441_v1 }
 0x3cd   :  { %v1438_v51 = vadd.f32 1e-05, %v1422_v38 }
 0x3cf   :  { %7566 = vrsqrt.f32 %v1438_v51 }
 0x3d1   :  { %v7563_v13 = vpop.eup %7562 }
 0x3d2   :  { %v1468_v56 = vmul.f32 %v7563_v13, %v8509_v31  ;;  %v8656_v13 = vsub.f32 %v8299_v14, %v738_v24 }
 0x3d4   :  { %v1484_v53 = vmul.f32 %v8592_v25, %v1468_v56 }
 0x3d5   :  { %v7565_v52 = vpop.eup %7564 }
 0x3d6   :  { %v1500_v11 = vadd.f32 %v8595_v29, %v1484_v53  ;;  %v1471_v20 = vmul.f32 %v7565_v52, %v8514_v42  ;;  %v1386_v42 = vpop.xlane.xlu0 %1385  ;;  %v1395_v53 = vpop.xlane.xlu1 %1394  ;;  %v1425_v52 = vmul.f32 0.0625, %v1389_v28 }
 0x3d7   :  { %v1424_v38 = vmul.f32 0.0625, %v1386_v42 }
 0x3d8   :  { %v1516_v0 = vmax.f32 %v1500_v11, 0.0  ;;  %v1487_v4 = vmul.f32 %v8592_v25, %v1471_v20 }
 0x3d9   :  { %v7567_v26 = vpop.eup %7566 }
 0x3da   :  { %1555 = vrot.lane.b32.xlu0 %v1516_v0, %s7966_s1  ;;  %v1503_v34 = vadd.f32 %v8595_v29, %v1487_v4  ;;  %v1470_v35 = vmul.f32 %v7567_v26, %v8520_v2  ;;  %v1392_v45 = vpop.xlane.xlu0 %1391  ;;  %v1440_v2 = vadd.f32 1e-05, %v1424_v38  ;;  %v770_v0 = vmul.f32 %v8656_v13, %v8656_v13 }
 0x3db   :  { %v1426_v56 = vmul.f32 0.0625, %v1392_v45 }
 0x3dc   :  { %v1519_v33 = vmax.f32 %v1503_v34, 0.0  ;;  %v1486_v31 = vmul.f32 %v8592_v25, %v1470_v35  ;;  %7568 = vrsqrt.f32 %v1440_v2  ;;  %v1441_v34 = vadd.f32 1e-05, %v1425_v52 }
 0x3dd   :  { %v1442_v11 = vadd.f32 1e-05, %v1426_v56  ;;  %v1427_v35 = vmul.f32 0.0625, %v1395_v53 }
 0x3de   :  { %1561 = vrot.lane.b32.xlu1 %v1519_v33, %s7966_s1  ;;  %v1502_v12 = vadd.f32 %v8595_v29, %v1486_v31  ;;  %v1398_v51 = vpop.xlane.xlu0 %1397  ;;  %v1401_v26 = vpop.xlane.xlu1 %1400  ;;  %v798_v31 = vsel %vm682_vm15, %v770_v0, 0.0 }
 0x3df   :  { %v1428_v20 = vmul.f32 0.0625, %v1398_v51  ;;  %7570 = vrsqrt.f32 %v1442_v11  ;;  %v1429_v28 = vmul.f32 0.0625, %v1401_v26 }
 0x3e0   :  { %v1518_v40 = vmax.f32 %v1502_v12, 0.0  ;;  %v737_v12 = vmul.f32 0.0625, %v8433_v47  ;;  %7572 = vrsqrt.f32 %v1441_v34 }
 0x3e1   :  { %v1444_v1 = vadd.f32 1e-05, %v1428_v20  ;;  %v1445_v56 = vadd.f32 1e-05, %v1429_v28 }
 0x3e2   :  { %1559 = vrot.lane.b32.xlu1 %v1518_v40, %s7966_s1  ;;  %v1404_v4 = vpop.xlane.xlu0 %1403  ;;  %v1443_v40 = vadd.f32 1e-05, %v1427_v35  ;;  %v1407_v42 = vpop.xlane.xlu1 %1406  ;;  %v8663_v24 = vsub.f32 %v8279_v41, %v737_v12 }
 0x3e3   :  { %v1430_v33 = vmul.f32 0.0625, %v1404_v4  ;;  %7574 = vrsqrt.f32 %v1444_v1  ;;  %v1431_v53 = vmul.f32 0.0625, %v1407_v42 }
 0x3e4   :  { %7576 = vrsqrt.f32 %v1443_v40  ;;  %v769_v52 = vmul.f32 %v8663_v24, %v8663_v24 }
 0x3e5   :  { %v1446_v45 = vadd.f32 1e-05, %v1430_v33  ;;  %v1447_v4 = vadd.f32 1e-05, %v1431_v53 }
 0x3e6   :  { %v7569_v38 = vpop.eup %7568  ;;  %v1413_v47 = vpop.xlane.xlu1 %1412  ;;  %v795_v1 = vsel %vm682_vm15, %v769_v52, 0.0 }
 0x3e7   :  { %7578 = vrsqrt.f32 %v1446_v45  ;;  %v1472_v11 = vmul.f32 %v7569_v38, %v8529_v6  ;;  %v1433_v26 = vmul.f32 0.0625, %v1413_v47 }
 0x3e8   :  { %7580 = vrsqrt.f32 %v1445_v56 }
 0x3e9   :  { %v7571_v20 = vpop.eup %7570  ;;  %v1488_v33 = vmul.f32 %v8592_v25, %v1472_v11  ;;  %7582 = vrsqrt.f32 %v1447_v4  ;;  %v1449_v40 = vadd.f32 1e-05, %v1433_v26 }
 0x3ea   :  { %v7573_v35 = vpop.eup %7572 }
 0x3eb   :  { %v1473_v6 = vmul.f32 %v7573_v35, %v8524_v58  ;;  %v1504_v45 = vadd.f32 %v8595_v29, %v1488_v33  ;;  %7584 = vrsqrt.f32 %v1449_v40 }
 0x3ed   :  { %v7575_v12 = vpop.eup %7574  ;;  %v1489_v53 = vmul.f32 %v8592_v25, %v1473_v6 }
 0x3ee   :  { %v7577_v42 = vpop.eup %7576  ;;  %v1476_v38 = vmul.f32 %v7575_v12, %v8549_v36 }
 0x3ef   :  { %v1475_v47 = vmul.f32 %v7577_v42, %v8533_v17  ;;  %v1505_v4 = vadd.f32 %v8595_v29, %v1489_v53 }
 0x3f0   :  { %v1492_v11 = vmul.f32 %v8592_v25, %v1476_v38 }
 0x3f1   :  { %v7579_v56 = vpop.eup %7578  ;;  %v1491_v36 = vmul.f32 %v8592_v25, %v1475_v47 }
 0x3f2   :  { %v1478_v58 = vmul.f32 %v7579_v56, %v8557_v43  ;;  %v1508_v35 = vadd.f32 %v8595_v29, %v1492_v11 }
 0x3f3   :  { %v1507_v43 = vadd.f32 %v8595_v29, %v1491_v36 }
 0x3f4   :  { %v1524_v12 = vmax.f32 %v1508_v35, 0.0 }
 0x3f9   :  { %799 = vadd.xlane.f32.xlu0 %v798_v31  ;;  %v1474_v31 = vmul.f32 %v7571_v20, %v8540_v37  ;;  %v1520_v37 = vmax.f32 %v1504_v45, 0.0  ;;  %v7581_v20 = vpop.eup %7580 }
 0x3fa   :  { %v1477_v17 = vmul.f32 %v7581_v20, %v8565_v59  ;;  %v7583_v33 = vpop.eup %7582  ;;  %v2366_v20 = vld [vmem:[#allocation2 + $0x70] sm:$0xff] }
 0x3fb   :  { %v1490_v28 = vmul.f32 %v8592_v25, %v1474_v31  ;;  %v1521_v31 = vmax.f32 %v1505_v4, 0.0  ;;  %v1479_v42 = vmul.f32 %v7583_v33, %v8573_v5  ;;  %v7585_v45 = vpop.eup %7584  ;;  %v740_v4 = vmul.f32 0.0625, %v8446_v19  ;;  %7412 = vmatprep.subr.mxu0 %v2366_v20 }
 0x3fc   :  { %v1493_v6 = vmul.f32 %v8592_v25, %v1477_v17  ;;  %v1481_v53 = vmul.f32 %v7585_v45, %v8580_v60  ;;  %v1410_v60 = vpop.xlane.xlu0 %1409  ;;  %v739_v19 = vmul.f32 0.0625, %v8448_v23  ;;  %v741_v45 = vmul.f32 0.0625, %v8482_v61 }
 0x3fd   :  { %v1506_v52 = vadd.f32 %v8595_v29, %v1490_v28  ;;  %v1523_v28 = vmax.f32 %v1507_v43, 0.0  ;;  %v1495_v56 = vmul.f32 %v8592_v25, %v1479_v42  ;;  %v1432_v36 = vmul.f32 0.0625, %v1410_v60 }
 0x3fe   :  { %v8665_v51 = vpop.f32.mrb[0].mxu1  ;;  %v1509_v38 = vadd.f32 %v8595_v29, %v1493_v6  ;;  %v8714_v35 = vsub.f32 %v8320_v18, %v740_v4 }
 0x3ff   :  { %v8667_v2 = vpop.f32.mrb[1].mxu1  ;;  %v1522_v26 = vmax.f32 %v1506_v52, 0.0  ;;  %v1511_v5 = vadd.f32 %v8595_v29, %v1495_v56  ;;  %v8726_v56 = vsub.f32 %v8312_v16, %v741_v45 }
 0x400   :  { %v1525_v47 = vmax.f32 %v1509_v38, 0.0 }
 0x401   :  { %v1527_v52 = vmax.f32 %v1511_v5, 0.0 }
 0x403   :  { %v8672_v0 = vpop.f32.mrb[2].mxu1 }
 0x404   :  { %v8674_v34 = vpop.f32.mrb[3].mxu1 }
 0x406   :  { %796 = vadd.xlane.f32.xlu1 %v795_v1  ;;  %v1494_v1 = vmul.f32 %v8592_v25, %v1478_v58 }
 0x408   :  { %v1510_v40 = vadd.f32 %v8595_v29, %v1494_v1  ;;  %v1448_v1 = vadd.f32 1e-05, %v1432_v36 }
 0x40a   :  { %v1526_v59 = vmax.f32 %v1510_v40, 0.0  ;;  %7586 = vrsqrt.f32 %v1448_v1  ;;  %v747_v1 = vmul.f32 0.0625, %v8506_v15 }
 0x40f   :  { %1563 = vrot.lane.b32.xlu0 %v1520_v37, %s7966_s1  ;;  %v1497_v37 = vmul.f32 %v8592_v25, %v1481_v53  ;;  %v743_v53 = vmul.f32 0.0625, %v8490_v9 }
 0x411   :  { %v1513_v11 = vadd.f32 %v8595_v29, %v1497_v37  ;;  %v8734_v61 = vsub.f32 %v8334_v49, %v743_v53 }
 0x413   :  { %1567 = vrot.lane.b32.xlu0 %v1522_v26, %s7966_s1  ;;  %v1529_v58 = vmax.f32 %v1513_v11, 0.0  ;;  %v1419_v26 = vpop.xlane.xlu1 %1418 }
 0x414   :  { %v1435_v17 = vmul.f32 0.0625, %v1419_v26  ;;  %v7587_v42 = vpop.eup %7586  ;;  %v775_v26 = vmul.f32 %v8734_v61, %v8734_v61 }
 0x417   :  { %1571 = vrot.lane.b32.xlu0 %v1524_v12, %s7966_s1  ;;  %1565 = vrot.lane.b32.xlu1 %v1521_v31, %s7966_s1  ;;  %v1416_v33 = vpop.xlane.xlu0 %1415  ;;  %v1451_v31 = vadd.f32 1e-05, %v1435_v17  ;;  %v772_v12 = vmul.f32 %v8714_v35, %v8714_v35 }
 0x418   :  { %v1434_v43 = vmul.f32 0.0625, %v1416_v33 }
 0x419   :  { %7588 = vrsqrt.f32 %v1451_v31  ;;  %v804_v6 = vsel %vm682_vm15, %v772_v12, 0.0  ;;  %v8757_v12 = vsub.f32 %v8352_v54, %v747_v1 }
 0x41a   :  { %v1450_v40 = vadd.f32 1e-05, %v1434_v43  ;;  %v813_v43 = vsel %vm682_vm15, %v775_v26, 0.0 }
 0x41b   :  { %1575 = vrot.lane.b32.xlu0 %v1526_v59, %s7966_s1  ;;  %1569 = vrot.lane.b32.xlu1 %v1523_v28, %s7966_s1  ;;  %v8722_v28 = vsub.f32 %v8296_v22, %v739_v19  ;;  %v1480_v59 = vmul.f32 %v7587_v42, %v8562_v62  ;;  %v773_v62 = vmul.f32 %v8726_v56, %v8726_v56 }
 0x41c   :  { %7590 = vrsqrt.f32 %v1450_v40  ;;  %v779_v45 = vmul.f32 %v8757_v12, %v8757_v12 }
 0x41d   :  { %v1496_v5 = vmul.f32 %v8592_v25, %v1480_v59 }
 0x41e   :  { %v825_v59 = vsel %vm682_vm15, %v779_v45, 0.0 }
 0x41f   :  { %1573 = vrot.lane.b32.xlu1 %v1525_v47, %s7966_s1  ;;  %v771_v47 = vmul.f32 %v8722_v28, %v8722_v28  ;;  %v1512_v9 = vadd.f32 %v8595_v29, %v1496_v5 }
 0x421   :  { %v801_v11 = vsel %vm682_vm15, %v771_v47, 0.0  ;;  %v1528_v17 = vmax.f32 %v1512_v9, 0.0  ;;  %v744_v47 = vmul.f32 0.0625, %v8471_v46 }
 0x423   :  { %1577 = vrot.lane.b32.xlu1 %v1527_v52, %s7966_s1  ;;  %v7589_v38 = vpop.eup %7588  ;;  %v745_v52 = vmul.f32 0.0625, %v8495_v7  ;;  %v807_v7 = vsel %vm682_vm15, %v773_v62, 0.0  ;;  %v8780_v5 = vsub.f32 %v8349_v50, %v744_v47 }
 0x424   :  { %v1483_v23 = vmul.f32 %v7589_v38, %v8586_v48  ;;  %v1558_v4 = vpop.permute.xlu1 %1557  ;;  %v742_v38 = vmul.f32 0.0625, %v8468_v44 }
 0x425   :  { %v8744_v36 = vsub.f32 %v8345_v21, %v745_v52  ;;  %v776_v46 = vmul.f32 %v8780_v5, %v8780_v5 }
 0x426   :  { %v7591_v37 = vpop.eup %7590  ;;  %v8774_v53 = vsub.f32 %v8337_v39, %v742_v38 }
 0x427   :  { %1581 = vrot.lane.b32.xlu1 %v1529_v58, %s7966_s1  ;;  %v1499_v58 = vmul.f32 %v8592_v25, %v1483_v23  ;;  %v1482_v60 = vmul.f32 %v7591_v37, %v8602_v30  ;;  %v777_v15 = vmul.f32 %v8744_v36, %v8744_v36  ;;  %v746_v23 = vmul.f32 0.0625, %v8504_v10 }
 0x428   :  { %v774_v44 = vmul.f32 %v8774_v53, %v8774_v53  ;;  %v816_v10 = vsel %vm682_vm15, %v776_v46, 0.0 }
 0x429   :  { %v1515_v30 = vadd.f32 %v8595_v29, %v1499_v58  ;;  %v1498_v33 = vmul.f32 %v8592_v25, %v1482_v60  ;;  %v8788_v37 = vsub.f32 %v8356_v55, %v746_v23 }
 0x42a   :  { %v810_v52 = vsel %vm682_vm15, %v774_v44, 0.0 }
 0x42b   :  { %v1531_v40 = vmax.f32 %v1515_v30, 0.0  ;;  %v778_v62 = vmul.f32 %v8788_v37, %v8788_v37 }
 0x43a   :  { %805 = vadd.xlane.f32.xlu0 %v804_v6  ;;  %v1514_v6 = vadd.f32 %v8595_v29, %v1498_v33 }
 0x43c   :  { %v1530_v42 = vmax.f32 %v1514_v6, 0.0 }
 0x44b   :  { %802 = vadd.xlane.f32.xlu1 %v801_v11  ;;  %v822_v11 = vsel %vm682_vm15, %v778_v62, 0.0 }
 0x44c   :  { %v1556_v48 = vpop.permute.xlu0 %1555 }
 0x44d   :  { %7360 = vmatprep.mubr.msk.f32.mxu0 %vm682_vm15, %v1556_v48 }
 0x44e   :  { %7361 = vmatmul.mubr.msk.f32.vlgmr.msra.gmra.mrb[16].mxu0 %vm682_vm15, %v1558_v4 }
 0x44f   :  { %808 = vadd.xlane.f32.xlu1 %v807_v7  ;;  %7413 = vmatpush3.msra.mxu0 %v2366_v20  ;;  %v819_v20 = vsel %vm682_vm15, %v777_v15, 0.0 }
 0x450   :  { %1579 = vrot.lane.b32.xlu0 %v1528_v17, %s7966_s1  ;;  %v1562_v31 = vpop.permute.xlu1 %1561 }
 0x453   :  { %814 = vadd.xlane.f32.xlu1 %v813_v43 }
 0x454   :  { %1585 = vrot.lane.b32.xlu0 %v1531_v40, %s7966_s1  ;;  %v1560_v19 = vpop.permute.xlu1 %1559 }
 0x455   :  { %7363 = vmatprep.mubr.msk.f32.mxu0 %vm682_vm15, %v1560_v19 }
 0x456   :  { %7364 = vmatmul.mubr.msk.f32.gmra.mrb[18].mxu0 %vm682_vm15, %v1562_v31 }
 0x457   :  { %820 = vadd.xlane.f32.xlu1 %v819_v20 }
 0x458   :  { %1583 = vrot.lane.b32.xlu0 %v1530_v42, %s7966_s1 }
 0x45b   :  { %826 = vadd.xlane.f32.xlu1 %v825_v59 }
 0x46c   :  { %1766 = vrot.lane.b32.xlu1 %v8231_v63, %s7967_s12 }
 0x470   :  { %1768 = vrot.lane.b32.xlu1 %v8359_v57, %s7967_s12 }
 0x474   :  { %1770 = vrot.lane.b32.xlu1 %v8371_v32, %s7967_s12 }
 0x477   :  { %811 = vadd.xlane.f32.xlu0 %v810_v52 }
 0x478   :  { %1774 = vrot.lane.b32.xlu1 %v8279_v41, %s7967_s12 }
 0x47b   :  { %817 = vadd.xlane.f32.xlu0 %v816_v10 }
 0x47c   :  { %1778 = vrot.lane.b32.xlu1 %v8296_v22, %s7967_s12 }
 0x47f   :  { %823 = vadd.xlane.f32.xlu0 %v822_v11  ;;  %v2364_v11 = vld [vmem:[%s11296_s0] sm:$0xff] }
 0x480   :  { %1782 = vrot.lane.b32.xlu1 %v8312_v16, %s7967_s12 }
 0x484   :  { %1786 = vrot.lane.b32.xlu1 %v8334_v49, %s7967_s12 }
 0x486   :  { %v800_v9 = vpop.xlane.xlu0 %799 }
 0x487   :  { %v834_v58 = vmul.f32 0.0625, %v800_v9  ;;  %v2365_v9 = vld [vmem:[%s11296_s0 + $0x8] sm:$0xff] }
 0x488   :  { %1790 = vrot.lane.b32.xlu1 %v8345_v21, %s7967_s12 }
 0x489   :  { %v850_v4 = vadd.f32 1e-05, %v834_v58 }
 0x48a   :  { %v1564_v60 = vpop.permute.xlu0 %1563 }
 0x48b   :  { %7366 = vmatprep.mubr.msk.f32.mxu0 %vm682_vm15, %v1564_v60  ;;  %7592 = vrsqrt.f32 %v850_v4 }
 0x48e   :  { %v1568_v7 = vpop.permute.xlu0 %1567 }
 0x492   :  { %v1572_v30 = vpop.permute.xlu0 %1571 }
 0x493   :  { %v797_v48 = vpop.xlane.xlu1 %796 }
 0x494   :  { %v833_v26 = vmul.f32 0.0625, %v797_v48 }
 0x495   :  { %1764 = vrot.lane.b32.xlu0 %v8237_v3, %s7967_s12  ;;  %v7593_v33 = vpop.eup %7592 }
 0x496   :  { %v849_v1 = vadd.f32 1e-05, %v833_v26  ;;  %v882_v43 = vmul.f32 %v7593_v33, %v8656_v13  ;;  %v1576_v15 = vpop.permute.xlu0 %1575 }
 0x497   :  { %v1566_v17 = vpop.permute.xlu1 %1565 }
 0x498   :  { %7594 = vrsqrt.f32 %v849_v1  ;;  %7367 = vmatmul.mubr.msk.f32.gmra.mrb[20].mxu0 %vm682_vm15, %v1566_v17  ;;  %v902_v19 = vmul.f32 %v8592_v25, %v882_v43 }
 0x499   :  { %1772 = vrot.lane.b32.xlu0 %v8377_v27, %s7967_s12  ;;  %7369 = vmatprep.mubr.msk.f32.mxu0 %vm682_vm15, %v1568_v7 }
 0x49a   :  { %v922_v45 = vadd.f32 %v8595_v29, %v902_v19 }
 0x49b   :  { %v1570_v31 = vpop.permute.xlu1 %1569 }
 0x49c   :  { %7370 = vmatmul.mubr.msk.f32.gmra.mrb[22].mxu0 %vm682_vm15, %v1570_v31  ;;  %v938_v47 = vmax.f32 %v922_v45, 0.0 }
 0x49d   :  { %1776 = vrot.lane.b32.xlu0 %v8299_v14, %s7967_s12  ;;  %7372 = vmatprep.mubr.msk.f32.mxu0 %vm682_vm15, %v1572_v30 }
 0x49f   :  { %v1574_v40 = vpop.permute.xlu1 %1573 }
 0x4a0   :  { %7373 = vmatmul.mubr.msk.f32.gmra.mrb[24].mxu0 %vm682_vm15, %v1574_v40 }
 0x4a1   :  { %1780 = vrot.lane.b32.xlu0 %v8320_v18, %s7967_s12  ;;  %7375 = vmatprep.mubr.msk.f32.mxu0 %vm682_vm15, %v1576_v15 }
 0x4a2   :  { %v7595_v6 = vpop.eup %7594 }
 0x4a3   :  { %v1578_v20 = vpop.permute.xlu1 %1577  ;;  %v881_v42 = vmul.f32 %v7595_v6, %v8663_v24 }
 0x4a4   :  { %7376 = vmatmul.mubr.msk.f32.gmra.mrb[26].mxu0 %vm682_vm15, %v1578_v20 }
 0x4a5   :  { %1784 = vrot.lane.b32.xlu0 %v8337_v39, %s7967_s12  ;;  %v901_v13 = vmul.f32 %v8592_v25, %v881_v42 }
 0x4a7   :  { %v921_v59 = vadd.f32 %v8595_v29, %v901_v13  ;;  %v1582_v44 = vpop.permute.xlu1 %1581 }
 0x4a9   :  { %1788 = vrot.lane.b32.xlu0 %v8349_v50, %s7967_s12  ;;  %v937_v38 = vmax.f32 %v921_v59, 0.0 }
 0x4ab   :  { %7339 = vmatmul.mubr.msk.f32.gmra.mrb[4].mxu1 %vm682_vm15, %v937_v38 }
 0x4ac   :  { %7341 = vmatprep.mubr.msk.f32.mxu1 %vm682_vm15, %v938_v47 }
 0x4c7   :  { %v806_v24 = vpop.xlane.xlu0 %805 }
 0x4c8   :  { %v836_v52 = vmul.f32 0.0625, %v806_v24 }
 0x4ca   :  { %v852_v10 = vadd.f32 1e-05, %v836_v52 }
 0x4cb   :  { %v1580_v23 = vpop.permute.xlu0 %1579 }
 0x4cc   :  { %7378 = vmatprep.mubr.msk.f32.mxu0 %vm682_vm15, %v1580_v23  ;;  %7596 = vrsqrt.f32 %v852_v10 }
 0x4cd   :  { %7379 = vmatmul.mubr.msk.f32.gmra.mrb[28].mxu0 %vm682_vm15, %v1582_v44 }
 0x4cf   :  { %v1586_v46 = vpop.permute.xlu0 %1585 }
 0x4d3   :  { %v1584_v62 = vpop.permute.xlu0 %1583 }
 0x4d4   :  { %7381 = vmatprep.mubr.msk.f32.mxu0 %vm682_vm15, %v1584_v62 }
 0x4d5   :  { %7382 = vmatmul.mubr.msk.f32.gmra.mrb[30].mxu0 %vm682_vm15, %v1586_v46 }
 0x4d6   :  { %7414 = vmatprep.mubr.msk.f32.mxu0 %vm2367_vm4, %v2364_v11  ;;  %v7597_v1 = vpop.eup %7596 }
 0x4d7   :  { %v884_v17 = vmul.f32 %v7597_v1, %v8714_v35 }
 0x4d8   :  { %v803_v58 = vpop.xlane.xlu1 %802 }
 0x4d9   :  { %v835_v60 = vmul.f32 0.0625, %v803_v58  ;;  %7415 = vmatmul.mubr.msk.f32.vlgmr.msra.gmra.mrb[32].mxu0 %vm2367_vm4, %v2365_v9  ;;  %v904_v33 = vmul.f32 %v8592_v25, %v884_v17 }
 0x4db   :  { %v851_v4 = vadd.f32 1e-05, %v835_v60  ;;  %v924_v15 = vadd.f32 %v8595_v29, %v904_v33 }
 0x4dc   :  { %v809_v48 = vpop.xlane.xlu1 %808 }
 0x4dd   :  { %7598 = vrsqrt.f32 %v851_v4  ;;  %v837_v7 = vmul.f32 0.0625, %v809_v48  ;;  %v940_v13 = vmax.f32 %v924_v15, 0.0 }
 0x4df   :  { %v853_v26 = vadd.f32 1e-05, %v837_v7 }
 0x4e0   :  { %v815_v45 = vpop.xlane.xlu1 %814 }
 0x4e1   :  { %7600 = vrsqrt.f32 %v853_v26  ;;  %v839_v38 = vmul.f32 0.0625, %v815_v45 }
 0x4e3   :  { %v855_v47 = vadd.f32 1e-05, %v839_v38 }
 0x4e4   :  { %v821_v59 = vpop.xlane.xlu1 %820 }
 0x4e5   :  { %v841_v24 = vmul.f32 0.0625, %v821_v59  ;;  %7602 = vrsqrt.f32 %v855_v47 }
 0x4e7   :  { %v7599_v30 = vpop.eup %7598 }
 0x4e8   :  { %v883_v31 = vmul.f32 %v7599_v30, %v8722_v28  ;;  %v827_v23 = vpop.xlane.xlu1 %826 }
 0x4e9   :  { %v843_v44 = vmul.f32 0.0625, %v827_v23 }
 0x4ea   :  { %v903_v43 = vmul.f32 %v8592_v25, %v883_v31 }
 0x4eb   :  { %v7601_v40 = vpop.eup %7600  ;;  %v859_v10 = vadd.f32 1e-05, %v843_v44 }
 0x4ec   :  { %v923_v6 = vadd.f32 %v8595_v29, %v903_v43  ;;  %v885_v19 = vmul.f32 %v7601_v40, %v8726_v56  ;;  %v857_v56 = vadd.f32 1e-05, %v841_v24 }
 0x4ee   :  { %v939_v20 = vmax.f32 %v923_v6, 0.0  ;;  %v905_v42 = vmul.f32 %v8592_v25, %v885_v19  ;;  %7604 = vrsqrt.f32 %v857_v56 }
 0x4ef   :  { %v7603_v60 = vpop.eup %7602 }
 0x4f0   :  { %7342 = vmatmul.mubr.msk.f32.gmra.mrb[6].mxu1 %vm682_vm15, %v939_v20  ;;  %v925_v35 = vadd.f32 %v8595_v29, %v905_v42  ;;  %v887_v26 = vmul.f32 %v7603_v60, %v8734_v61 }
 0x4f1   :  { %7344 = vmatprep.mubr.msk.f32.mxu1 %vm682_vm15, %v940_v13 }
 0x4f2   :  { %v941_v28 = vmax.f32 %v925_v35, 0.0  ;;  %v907_v30 = vmul.f32 %v8592_v25, %v887_v26 }
 0x4f4   :  { %7345 = vmatmul.mubr.msk.f32.gmra.mrb[8].mxu1 %vm682_vm15, %v941_v28  ;;  %v927_v6 = vadd.f32 %v8595_v29, %v907_v30 }
 0x4f6   :  { %v943_v28 = vmax.f32 %v927_v6, 0.0 }
 0x4f8   :  { %v7605_v1 = vpop.eup %7604 }
 0x4f9   :  { %v889_v33 = vmul.f32 %v7605_v1, %v8744_v36 }
 0x4fb   :  { %v909_v19 = vmul.f32 %v8592_v25, %v889_v33 }
 0x504   :  { %v812_v52 = vpop.xlane.xlu0 %811 }
 0x505   :  { %v838_v46 = vmul.f32 0.0625, %v812_v52 }
 0x507   :  { %v854_v62 = vadd.f32 1e-05, %v838_v46 }
 0x508   :  { %v818_v11 = vpop.xlane.xlu0 %817 }
 0x509   :  { %7606 = vrsqrt.f32 %v854_v62  ;;  %v840_v9 = vmul.f32 0.0625, %v818_v11 }
 0x50a   :  { %7608 = vrsqrt.f32 %v859_v10 }
 0x50b   :  { %v856_v58 = vadd.f32 1e-05, %v840_v9 }
 0x50c   :  { %v824_v4 = vpop.xlane.xlu0 %823 }
 0x50d   :  { %7610 = vrsqrt.f32 %v856_v58  ;;  %v842_v48 = vmul.f32 0.0625, %v824_v4 }
 0x50f   :  { %v858_v7 = vadd.f32 1e-05, %v842_v48 }
 0x511   :  { %7612 = vrsqrt.f32 %v858_v7 }
 0x513   :  { %v7607_v17 = vpop.eup %7606 }
 0x514   :  { %v7609_v31 = vpop.eup %7608  ;;  %v886_v43 = vmul.f32 %v7607_v17, %v8774_v53  ;;  %v929_v53 = vadd.f32 %v8595_v29, %v909_v19 }
 0x515   :  { %v891_v20 = vmul.f32 %v7609_v31, %v8757_v12 }
 0x516   :  { %v906_v40 = vmul.f32 %v8592_v25, %v886_v43  ;;  %v945_v47 = vmax.f32 %v929_v53, 0.0 }
 0x517   :  { %v7611_v15 = vpop.eup %7610  ;;  %v911_v45 = vmul.f32 %v8592_v25, %v891_v20  ;;  %v8928_v20 = vpop.permute.xlu1 %1766 }
 0x518   :  { %v926_v61 = vadd.f32 %v8595_v29, %v906_v40  ;;  %v888_v42 = vmul.f32 %v7611_v15, %v8780_v5 }
 0x519   :  { %v931_v24 = vadd.f32 %v8595_v29, %v911_v45  ;;  %v8938_v45 = vpop.permute.xlu0 %1764 }
 0x51a   :  { %v942_v13 = vmax.f32 %v926_v61, 0.0  ;;  %v908_v35 = vmul.f32 %v8592_v25, %v888_v42 }
 0x51b   :  { %v7613_v36 = vpop.eup %7612 }
 0x51c   :  { %7347 = vmatprep.mubr.msk.f32.mxu1 %vm682_vm15, %v942_v13  ;;  %v928_v59 = vadd.f32 %v8595_v29, %v908_v35  ;;  %v890_v38 = vmul.f32 %v7613_v36, %v8788_v37  ;;  %v947_v37 = vmax.f32 %v931_v24, 0.0  ;;  %v8932_v35 = vpop.permute.xlu1 %1768 }
 0x51d   :  { %7348 = vmatmul.mubr.msk.f32.gmra.mrb[10].mxu1 %vm682_vm15, %v943_v28 }
 0x51e   :  { %v944_v12 = vmax.f32 %v928_v59, 0.0  ;;  %v910_v5 = vmul.f32 %v8592_v25, %v890_v38  ;;  %v8942_v38 = vpop.permute.xlu0 %1772 }
 0x520   :  { %7350 = vmatprep.mubr.msk.f32.mxu1 %vm682_vm15, %v944_v12  ;;  %v930_v23 = vadd.f32 %v8595_v29, %v910_v5  ;;  %v8936_v53 = vpop.permute.xlu1 %1770 }
 0x521   :  { %7351 = vmatmul.mubr.msk.f32.gmra.mrb[12].mxu1 %vm682_vm15, %v945_v47  ;;  %v8881_v56 = vpop.f32.mrb[16].mxu0 }
 0x522   :  { %11431 = vst [vmem:[#allocation16_spill] sm:$0xff] %v8881_v56  ;;  %v8883_v44 = vpop.f32.mrb[17].mxu0  ;;  %v946_v52 = vmax.f32 %v930_v23, 0.0  ;;  %v8946_v5 = vpop.permute.xlu0 %1776 }
 0x523   :  { %11432 = vst [vmem:[#allocation17_spill] sm:$0xff] %v8883_v44 }
 0x524   :  { %7353 = vmatprep.mubr.msk.f32.mxu1 %vm682_vm15, %v946_v52  ;;  %v8940_v59 = vpop.permute.xlu1 %1774 }
 0x525   :  { %7354 = vmatmul.mubr.msk.f32.gmra.mrb[14].mxu1 %vm682_vm15, %v947_v37 }
 0x526   :  { %v8950_v23 = vpop.permute.xlu0 %1780 }
 0x528   :  { %v8944_v12 = vpop.permute.xlu1 %1778 }
 0x529   :  { %v8887_v25 = vpop.f32.mrb[18].mxu0 }
 0x52a   :  { %11433 = vst [vmem:[#allocation18_spill] sm:$0xff] %v8887_v25  ;;  %v8889_v46 = vpop.f32.mrb[19].mxu0  ;;  %v8956_v44 = vpop.permute.xlu0 %1784 }
 0x52b   :  { %11434 = vst [vmem:[#allocation19_spill] sm:$0xff] %v8889_v46 }
 0x52c   :  { %v8948_v47 = vpop.permute.xlu1 %1782 }
 0x56b   :  { %v8891_v10 = vpop.f32.mrb[20].mxu0 }
 0x56c   :  { %11435 = vst [vmem:[#allocation20_spill] sm:$0xff] %v8891_v10  ;;  %v8893_v62 = vpop.f32.mrb[21].mxu0 }
 0x56d   :  { %11436 = vst [vmem:[#allocation21_spill] sm:$0xff] %v8893_v62 }
 0x56f   :  { %v8895_v29 = vpop.f32.mrb[22].mxu0 }
 0x570   :  { %11437 = vst [vmem:[#allocation22_spill] sm:$0xff] %v8895_v29  ;;  %v8897_v11 = vpop.f32.mrb[23].mxu0  ;;  %v8954_v29 = vpop.permute.xlu1 %1786 }
 0x571   :  { %11438 = vst [vmem:[#allocation23_spill] sm:$0xff] %v8897_v11 }
 0x573   :  { %v8899_v9 = vpop.f32.mrb[24].mxu0 }
 0x574   :  { %11439 = vst [vmem:[#allocation24_spill] sm:$0xff] %v8899_v9  ;;  %v8901_v58 = vpop.f32.mrb[25].mxu0 }
 0x575   :  { %11440 = vst [vmem:[#allocation25_spill] sm:$0xff] %v8901_v58 }
 0x577   :  { %v8903_v60 = vpop.f32.mrb[26].mxu0 }
 0x578   :  { %11441 = vst [vmem:[#allocation26_spill] sm:$0xff] %v8903_v60  ;;  %v8905_v4 = vpop.f32.mrb[27].mxu0  ;;  %v8971_v60 = vpop.permute.xlu0 %1788 }
 0x579   :  { %11442 = vst [vmem:[#allocation27_spill] sm:$0xff] %v8905_v4 }
 0x57e   :  { %v8907_v48 = vpop.f32.mrb[4].mxu1 }
 0x57f   :  { %v8909_v7 = vpop.f32.mrb[5].mxu1 }
 0x5a0   :  { %v8911_v26 = vpop.f32.mrb[28].mxu0 }
 0x5a1   :  { %11443 = vst [vmem:[#allocation28_spill] sm:$0xff] %v8911_v26  ;;  %v8913_v1 = vpop.f32.mrb[29].mxu0 }
 0x5a2   :  { %11444 = vst [vmem:[#allocation29_spill] sm:$0xff] %v8913_v1  ;;  %v8965_v1 = vld [vmem:[#allocation2 + $0x38] ss:$0 sm:$0xff] }
 0x5a3   :  { %v1070_v49 = vadd.f32 %v8965_v1, %v8667_v2 }
 0x5a8   :  { %v8915_v17 = vpop.f32.mrb[30].mxu0 }
 0x5a9   :  { %11445 = vst [vmem:[#allocation30_spill] sm:$0xff] %v8915_v17  ;;  %v8917_v30 = vpop.f32.mrb[31].mxu0  ;;  %v11447_v17 = vld [vmem:[#allocation10_spill] sm:$0xff] }
 0x5aa   :  { %11446 = vst [vmem:[#allocation31_spill] sm:$0xff] %v8917_v30  ;;  %v8958_v30 = vpop.permute.xlu1 %1790 }
 0x5ac   :  { %v7416_v33 = vpop.f32.mrb[32].mxu0 }
 0x5ad   :  { %2453 = vrot.lane.b32.xlu1 %v7416_v33, %s7966_s1  ;;  %v8920_v31 = vpop.f32.mrb[33].mxu0  ;;  %v2522_v24 = vcombine.high %v7416_v33, %v7416_v33  ;;  %v2529_v52 = vrot.slane %v7416_v33, %v8022_v8 }
 0x5ae   :  { %2451 = vrot.lane.b32.xlu0 %v8920_v31, %s7966_s1  ;;  %v2480_v33 = vrot.slane %v8920_v31, %v8022_v8 }
 0x5af   :  { %v2536_v37 = vrot.slane %v2522_v24, %v8022_v8  ;;  %v2537_v46 = vcombine.high %v2529_v52, %v2529_v52  ;;  %v2545_v10 = vrot.slane %v2529_v52, %v8022_v8 }
 0x5b0   :  { %v2488_v16 = vcombine.high %v2480_v33, %v2480_v33 }
 0x5b1   :  { %v2538_v11 = vcombine.high %v2536_v37, %v2536_v37  ;;  %v2559_v26 = vrot.slane %v2537_v46, %v8022_v8  ;;  %v2567_v56 = vcombine.high %v2545_v10, %v2545_v10  ;;  %v2606_v4 = vrot.slane %v2545_v10, %v11447_v17 }
 0x5b3   :  { %v8963_v62 = vrot.slane %v2538_v11, %v8022_v8  ;;  %v2610_v46 = vrot.slane %v2559_v26, %v11447_v17 }
 0x5b5   :  { %v2570_v11 = vcombine.high %v8963_v62, %v8963_v62 }
 0x5b7   :  { %v2634_v2 = vrot.slane %v2570_v11, %v11447_v17  ;;  %v2510_v11 = vrot.slane %v2488_v16, %v8022_v8 }
 0x5c3   :  { %v8924_v43 = vpop.f32.mrb[6].mxu1 }
 0x5c4   :  { %v8926_v40 = vpop.f32.mrb[7].mxu1 }
 0x5c7   :  { %v7346_v15 = vpop.f32.mrb[8].mxu1 }
 0x5c8   :  { %v1109_v6 = vpop.f32.mrb[9].mxu1  ;;  %v1115_v24 = vadd.f32 %v7346_v15, %v8965_v1 }
 0x5c9   :  { %v1110_v25 = vadd.f32 %v8965_v1, %v1109_v6 }
 0x5f0   :  { %v7349_v19 = vpop.f32.mrb[10].mxu1 }
 0x5f1   :  { %v1119_v61 = vpop.f32.mrb[11].mxu1 }
 0x5f2   :  { %v1120_v58 = vadd.f32 %v8965_v1, %v1119_v61  ;;  %v2569_v61 = vcombine.high %v2559_v26, %v2559_v26 }
 0x5f4   :  { %v8930_v42 = vpop.f32.mrb[12].mxu1 }
 0x5f5   :  { %v1129_v13 = vpop.f32.mrb[13].mxu1 }
 0x5f8   :  { %v7355_v36 = vpop.f32.mrb[14].mxu1 }
 0x5f9   :  { %v8934_v28 = vpop.f32.mrb[15].mxu1  ;;  %v1145_v9 = vadd.f32 %v7355_v36, %v8965_v1  ;;  %v8996_v36 = vrot.slane %v2480_v33, %v8022_v8  ;;  %v1075_v33 = vadd.f32 %v8665_v51, %v8965_v1 }
 0x61f   :  { %v2454_v52 = vpop.permute.xlu1 %2453 }
 0x620   :  { %v8979_v21 = vmul.f32 %v2454_v52, %v1115_v24  ;;  %v8981_v15 = vmul.f32 %v2454_v52, %v1110_v25  ;;  %v8989_v10 = vmul.f32 %v2454_v52, %v1120_v58  ;;  %v8991_v39 = vmul.f32 %v2454_v52, %v1145_v9  ;;  %v8998_v25 = vpop.permute.xlu0 %2451 }
 0x621   :  { %v1125_v24 = vadd.f32 %v7349_v19, %v8965_v1  ;;  %v2614_v9 = vrot.slane %v2567_v56, %v11447_v17  ;;  %v9016_v19 = vmul.f32 %v8998_v25, %v1070_v49  ;;  %v2473_v56 = vcombine.high %v8920_v31, %v8920_v31 }
 0x622   :  { %11448 = vst [vmem:[#allocation10_spill] sm:$0xff] %v8979_v21  ;;  %11449 = vst [vmem:[#allocation32_spill] sm:$0xff] %v8981_v15  ;;  %v8984_v6 = vmul.f32 %v2610_v46, %v8979_v21  ;;  %v8987_v50 = vmul.f32 %v2606_v4, %v8981_v15  ;;  %v9011_v4 = vmul.f32 %v2634_v2, %v8991_v39 }
 0x623   :  { %11450 = vst [vmem:[#allocation33_spill] sm:$0xff] %v8989_v10  ;;  %11451 = vst [vmem:[#allocation34_spill] sm:$0xff] %v8991_v39  ;;  %v9008_v58 = vmul.f32 %v2614_v9, %v8989_v10  ;;  %v9013_v26 = vmul.f32 %v2454_v52, %v1125_v24  ;;  %v2552_v46 = vrot.slane %v2536_v37, %v8022_v8 }
 0x624   :  { %3479 = vrot.lane.b32.xlu0 %v8984_v6, %s7968_s16  ;;  %3477 = vrot.lane.b32.xlu1 %v8987_v50, %s7968_s16  ;;  %11453 = vst [vmem:[#allocation36_spill] sm:$0xff] %v9016_v19  ;;  %v2574_v9 = vrot.slane %v8996_v36, %v11447_v17  ;;  %v1130_v2 = vadd.f32 %v8965_v1, %v1129_v13 }
 0x625   :  { %11452 = vst [vmem:[#allocation35_spill] sm:$0xff] %v9013_v26  ;;  %v2618_v49 = vrot.slane %v2569_v61, %v11447_v17  ;;  %v9041_v37 = vmul.f32 %v8998_v25, %v1075_v33  ;;  %v1085_v13 = vadd.f32 %v8672_v0, %v8965_v1  ;;  %v2487_v24 = vrot.slane %v2473_v56, %v8022_v8 }
 0x626   :  { %v9036_v31 = vmul.f32 %v2574_v9, %v9016_v19  ;;  %v9038_v16 = vmul.f32 %v2454_v52, %v1130_v2  ;;  %v2520_v39 = vcombine.high %v2510_v11, %v2510_v11  ;;  %v1135_v61 = vadd.f32 %v8930_v42, %v8965_v1 }
 0x627   :  { %v9033_v51 = vmul.f32 %v2618_v49, %v9013_v26  ;;  %11455 = vst [vmem:[#allocation38_spill] sm:$0xff] %v9041_v37  ;;  %v2622_v9 = vrot.slane %v2552_v46, %v11447_v17  ;;  %v2578_v33 = vrot.slane %v2510_v11, %v11447_v17  ;;  %v9063_v42 = vmul.f32 %v8998_v25, %v1085_v13 }
 0x628   :  { %3481 = vrot.lane.b32.xlu0 %v9008_v58, %s7968_s16  ;;  %3491 = vrot.lane.b32.xlu1 %v9011_v4, %s7968_s16  ;;  %11454 = vst [vmem:[#allocation37_spill] sm:$0xff] %v9038_v16  ;;  %v9060_v56 = vmul.f32 %v2454_v52, %v1135_v61  ;;  %v1090_v49 = vadd.f32 %v8965_v1, %v8909_v7 }
 0x629   :  { %v9055_v2 = vmul.f32 %v2622_v9, %v9038_v16  ;;  %v9058_v0 = vmul.f32 %v2578_v33, %v9041_v37  ;;  %11457 = vst [vmem:[#allocation40_spill] sm:$0xff] %v9063_v42  ;;  %v2568_v19 = vcombine.high %v2552_v46, %v2552_v46  ;;  %v2489_v26 = vcombine.high %v2487_v24, %v2487_v24 }
 0x62a   :  { %11456 = vst [vmem:[#allocation39_spill] sm:$0xff] %v9060_v56  ;;  %v2503_v10 = vrot.slane %v2487_v24, %v8022_v8  ;;  %v1140_v11 = vadd.f32 %v8965_v1, %v8934_v28  ;;  %v2626_v13 = vrot.slane %v8963_v62, %v11447_v17  ;;  %v2586_v61 = vrot.slane %v2520_v39, %v11447_v17 }
 0x62b   :  { %v9082_v24 = vmul.f32 %v8998_v25, %v1090_v49  ;;  %v1080_v28 = vadd.f32 %v8965_v1, %v8674_v34  ;;  %v1095_v33 = vadd.f32 %v8907_v48, %v8965_v1  ;;  %v2518_v62 = vcombine.high %v8996_v36, %v8996_v36 }
 0x62c   :  { %3483 = vrot.lane.b32.xlu0 %v9033_v51, %s7968_s16  ;;  %3461 = vrot.lane.b32.xlu1 %v9036_v31, %s7968_s16  ;;  %v2664_v7 = vmul.f32 %v2626_v13, %v9060_v56  ;;  %v2654_v46 = vmul.f32 %v2586_v61, %v9063_v42  ;;  %v9079_v9 = vmul.f32 %v2454_v52, %v1140_v11 }
 0x62d   :  { %11459 = vst [vmem:[#allocation42_spill] sm:$0xff] %v9082_v24  ;;  %v2517_v39 = vrot.slane %v2489_v26, %v8022_v8  ;;  %v2630_v52 = vrot.slane %v2568_v19, %v11447_v17  ;;  %v2590_v49 = vrot.slane %v2503_v10, %v11447_v17  ;;  %v9098_v13 = vmul.f32 %v8998_v25, %v1080_v28 }
 0x62e   :  { %11458 = vst [vmem:[#allocation41_spill] sm:$0xff] %v9079_v9  ;;  %v9101_v48 = vmul.f32 %v8998_v25, %v1095_v33  ;;  %v2519_v36 = vcombine.high %v2503_v10, %v2503_v10  ;;  %v1100_v26 = vadd.f32 %v8965_v1, %v8926_v40  ;;  %v2582_v19 = vrot.slane %v2518_v62, %v11447_v17 }
 0x62f   :  { %v2665_v11 = vmul.f32 %v2630_v52, %v9079_v9  ;;  %v2655_v34 = vmul.f32 %v2590_v49, %v9082_v24  ;;  %11460 = vst [vmem:[#allocation43_spill] sm:$0xff] %v9098_v13  ;;  %v2594_v61 = vrot.slane %v2517_v39, %v11447_v17  ;;  %v1105_v10 = vadd.f32 %v8924_v43, %v8965_v1 }
 0x630   :  { %3485 = vrot.lane.b32.xlu0 %v9055_v2, %s7968_s16  ;;  %3463 = vrot.lane.b32.xlu1 %v9058_v0, %s7968_s16  ;;  %11461 = vst [vmem:[#allocation44_spill] sm:$0xff] %v9101_v48  ;;  %v2653_v52 = vmul.f32 %v2582_v19, %v9098_v13  ;;  %v9112_v49 = vmul.f32 %v8998_v25, %v1100_v26  ;;  %v2694_v1 = vsel %vm2367_vm4, %v8984_v6, 0.0  ;;  %v2712_v43 = vsel %vm2367_vm4, %v9011_v4, 0.0 }
 0x631   :  { %v2656_v28 = vmul.f32 %v2594_v61, %v9101_v48  ;;  %v2598_v40 = vrot.slane %v2519_v36, %v11447_v17  ;;  %v2521_v33 = vcombine.high %v2517_v39, %v2517_v39  ;;  %v9121_v8 = vmul.f32 %v8998_v25, %v1105_v10 }
 0x632   :  { %11462 = vst [vmem:[#allocation45_spill] sm:$0xff] %v9112_v49  ;;  %v2667_v25 = vsel %vm2367_vm4, %v9036_v31, 0.0  ;;  %v2673_v39 = vsel %vm2367_vm4, %v2653_v52, 0.0  ;;  %v2691_v36 = vsel %vm2367_vm4, %v8987_v50, 0.0  ;;  %v2676_v61 = vsel %vm2367_vm4, %v2654_v46, 0.0 }
 0x633   :  { %v2657_v62 = vmul.f32 %v2598_v40, %v9112_v49  ;;  %11463 = vst [vmem:[#allocation46_spill] sm:$0xff] %v9121_v8  ;;  %v2602_v26 = vrot.slane %v2521_v33, %v11447_v17  ;;  %v2697_v6 = vsel %vm2367_vm4, %v9008_v58, 0.0  ;;  %v2679_v4 = vsel %vm2367_vm4, %v2655_v34, 0.0 }
 0x634   :  { %3487 = vrot.lane.b32.xlu0 %v2664_v7, %s7968_s16  ;;  %3467 = vrot.lane.b32.xlu1 %v2654_v46, %s7968_s16  ;;  %v2700_v31 = vsel %vm2367_vm4, %v9033_v51, 0.0  ;;  %v2703_v50 = vsel %vm2367_vm4, %v9055_v2, 0.0  ;;  %v2706_v58 = vsel %vm2367_vm4, %v2664_v7, 0.0  ;;  %v2709_v10 = vsel %vm2367_vm4, %v2665_v11, 0.0 }
 0x635   :  { %v2658_v19 = vmul.f32 %v2602_v26, %v9121_v8  ;;  %v2685_v46 = vsel %vm2367_vm4, %v2657_v62, 0.0  ;;  %v2670_v51 = vsel %vm2367_vm4, %v9058_v0, 0.0 }
 0x638   :  { %3489 = vrot.lane.b32.xlu0 %v2665_v11, %s7968_s16  ;;  %3469 = vrot.lane.b32.xlu1 %v2655_v34, %s7968_s16  ;;  %v2688_v34 = vsel %vm2367_vm4, %v2658_v19, 0.0 }
 0x63c   :  { %3465 = vrot.lane.b32.xlu0 %v2653_v52, %s7968_s16  ;;  %3471 = vrot.lane.b32.xlu1 %v2656_v28, %s7968_s16  ;;  %v2682_v52 = vsel %vm2367_vm4, %v2656_v28, 0.0 }
 0x640   :  { %3473 = vrot.lane.b32.xlu1 %v2657_v62, %s7968_s16 }
 0x644   :  { %3475 = vrot.lane.b32.xlu1 %v2658_v19, %s7968_s16 }
 0x65b   :  { %2695 = vadd.xlane.f32.xlu0 %v2694_v1 }
 0x65f   :  { %2713 = vadd.xlane.f32.xlu0 %v2712_v43 }
 0x663   :  { %2668 = vadd.xlane.f32.xlu0 %v2667_v25 }
 0x667   :  { %2674 = vadd.xlane.f32.xlu0 %v2673_v39 }
 0x668   :  { %2692 = vadd.xlane.f32.xlu1 %v2691_v36 }
 0x66b   :  { %2677 = vadd.xlane.f32.xlu0 %v2676_v61 }
 0x66c   :  { %2698 = vadd.xlane.f32.xlu1 %v2697_v6 }
 0x66f   :  { %2680 = vadd.xlane.f32.xlu0 %v2679_v4 }
 0x670   :  { %2701 = vadd.xlane.f32.xlu1 %v2700_v31 }
 0x673   :  { %2683 = vadd.xlane.f32.xlu0 %v2682_v52 }
 0x674   :  { %2704 = vadd.xlane.f32.xlu1 %v2703_v50 }
 0x677   :  { %2686 = vadd.xlane.f32.xlu0 %v2685_v46 }
 0x678   :  { %2707 = vadd.xlane.f32.xlu1 %v2706_v58 }
 0x67b   :  { %2689 = vadd.xlane.f32.xlu0 %v2688_v34 }
 0x67c   :  { %2710 = vadd.xlane.f32.xlu1 %v2709_v10 }
 0x680   :  { %2671 = vadd.xlane.f32.xlu1 %v2670_v51 }
 0x696   :  { %v3480_v28 = vpop.permute.xlu0 %3479  ;;  %v3478_v40 = vpop.permute.xlu1 %3477 }
 0x697   :  { %v3533_v2 = vsel %vm2367_vm4, %v3478_v40, 0.0  ;;  %v3536_v33 = vsel %vm2367_vm4, %v3480_v28, 0.0 }
 0x698   :  { %3534 = vadd.xlane.f32.xlu0 %v3533_v2  ;;  %3537 = vadd.xlane.f32.xlu1 %v3536_v33 }
 0x69a   :  { %v3482_v7 = vpop.permute.xlu0 %3481  ;;  %v3492_v62 = vpop.permute.xlu1 %3491 }
 0x69b   :  { %v3539_v26 = vsel %vm2367_vm4, %v3482_v7, 0.0  ;;  %v3554_v51 = vsel %vm2367_vm4, %v3492_v62, 0.0  ;;  %v1815_v62 = vsel %vm682_vm15, %v8928_v20, 0.0  ;;  %v1821_v20 = vsel %vm682_vm15, %v8936_v53, 0.0 }
 0x69c   :  { %3540 = vadd.xlane.f32.xlu1 %v3539_v26  ;;  %v1848_v53 = vsel %vm682_vm15, %v8971_v60, 0.0 }
 0x69e   :  { %v3484_v19 = vpop.permute.xlu0 %3483  ;;  %v3462_v11 = vpop.permute.xlu1 %3461 }
 0x69f   :  { %v3509_v1 = vsel %vm2367_vm4, %v3462_v11, 0.0  ;;  %v3542_v0 = vsel %vm2367_vm4, %v3484_v19, 0.0  ;;  %v1812_v19 = vsel %vm682_vm15, %v8938_v45, 0.0  ;;  %v1827_v11 = vsel %vm682_vm15, %v8940_v59, 0.0 }
 0x6a0   :  { %3510 = vadd.xlane.f32.xlu0 %v3509_v1  ;;  %3543 = vadd.xlane.f32.xlu1 %v3542_v0  ;;  %v1818_v1 = vsel %vm682_vm15, %v8932_v35, 0.0  ;;  %v1833_v0 = vsel %vm682_vm15, %v8944_v12, 0.0  ;;  %v1824_v59 = vsel %vm682_vm15, %v8942_v38, 0.0  ;;  %v1845_v35 = vsel %vm682_vm15, %v8954_v29, 0.0 }
 0x6a1   :  { %v1842_v29 = vsel %vm682_vm15, %v8956_v44, 0.0 }
 0x6a2   :  { %v3486_v43 = vpop.permute.xlu0 %3485  ;;  %v3464_v25 = vpop.permute.xlu1 %3463 }
 0x6a3   :  { %v3512_v39 = vsel %vm2367_vm4, %v3464_v25, 0.0  ;;  %v3545_v36 = vsel %vm2367_vm4, %v3486_v43, 0.0  ;;  %v1839_v43 = vsel %vm682_vm15, %v8948_v47, 0.0  ;;  %v1830_v25 = vsel %vm682_vm15, %v8946_v5, 0.0 }
 0x6a4   :  { %3513 = vadd.xlane.f32.xlu0 %v3512_v39  ;;  %3546 = vadd.xlane.f32.xlu1 %v3545_v36  ;;  %v1836_v39 = vsel %vm682_vm15, %v8950_v23, 0.0  ;;  %v1851_v5 = vsel %vm682_vm15, %v8958_v30, 0.0 }
 0x6a6   :  { %v3488_v61 = vpop.permute.xlu0 %3487  ;;  %v3468_v6 = vpop.permute.xlu1 %3467 }
 0x6a7   :  { %v3518_v4 = vsel %vm2367_vm4, %v3468_v6, 0.0  ;;  %v3548_v31 = vsel %vm2367_vm4, %v3488_v61, 0.0 }
 0x6a8   :  { %3519 = vadd.xlane.f32.xlu0 %v3518_v4  ;;  %3549 = vadd.xlane.f32.xlu1 %v3548_v31 }
 0x6aa   :  { %v3490_v52 = vpop.permute.xlu0 %3489  ;;  %v3470_v50 = vpop.permute.xlu1 %3469 }
 0x6ab   :  { %v3521_v46 = vsel %vm2367_vm4, %v3470_v50, 0.0  ;;  %v3551_v58 = vsel %vm2367_vm4, %v3490_v52, 0.0 }
 0x6ac   :  { %3522 = vadd.xlane.f32.xlu0 %v3521_v46  ;;  %3552 = vadd.xlane.f32.xlu1 %v3551_v58 }
 0x6ae   :  { %v3472_v34 = vpop.permute.xlu1 %3471  ;;  %v3466_v28 = vpop.permute.xlu0 %3465 }
 0x6af   :  { %v3524_v10 = vsel %vm2367_vm4, %v3472_v34, 0.0  ;;  %v3515_v33 = vsel %vm2367_vm4, %v3466_v28, 0.0 }
 0x6b0   :  { %3525 = vadd.xlane.f32.xlu0 %v3524_v10  ;;  %3555 = vadd.xlane.f32.xlu1 %v3554_v51 }
 0x6b2   :  { %v3474_v40 = vpop.permute.xlu1 %3473 }
 0x6b3   :  { %v3527_v2 = vsel %vm2367_vm4, %v3474_v40, 0.0  ;;  %v11464_v40 = vlaneseq }
 0x6b4   :  { %3528 = vadd.xlane.f32.xlu0 %v3527_v2  ;;  %3516 = vadd.xlane.f32.xlu1 %v3515_v33 }
 0x6b5   :  { %v2748_v2 = vand.u32 127, %v11464_v40 }
 0x6b6   :  { %v3476_v7 = vpop.permute.xlu1 %3475 }
 0x6b7   :  { %v3530_v26 = vsel %vm2367_vm4, %v3476_v7, 0.0 }
 0x6b8   :  { %3531 = vadd.xlane.f32.xlu0 %v3530_v26 }
 0x6c5   :  { %1794 = vrot.lane.b32.xlu1 %v8352_v54, %s7967_s12 }
 0x6ce   :  { %1792 = vrot.lane.b32.xlu0 %v8356_v55, %s7967_s12 }
 0x6e8   :  { %v2696_v45 = vpop.xlane.xlu0 %2695 }
 0x6e9   :  { %1816 = vadd.xlane.f32.xlu1 %v1815_v62  ;;  %v11465_v62 = vld [vmem:[#allocation8_spill] sm:$0xff] }
 0x6ec   :  { %v9189_v12 = vpop.xlane.xlu0 %2713 }
 0x6ed   :  { %1813 = vadd.xlane.f32.xlu0 %v1812_v19  ;;  %1828 = vadd.xlane.f32.xlu1 %v1827_v11  ;;  %v9221_v19 = vsub.s32 %v2748_v2, %v11465_v62  ;;  %v9289_v56 = vmul.f32 0.35355338, %v9189_v12 }
 0x6ef   :  { %11466 = vst [vmem:[#allocation8_spill] sm:$0xff] %v9221_v19 }
 0x6f0   :  { %v2669_v38 = vpop.xlane.xlu0 %2668 }
 0x6f1   :  { %1819 = vadd.xlane.f32.xlu0 %v1818_v1  ;;  %1834 = vadd.xlane.f32.xlu1 %v1833_v0  ;;  %v9223_v11 = vmul.f32 0.35355338, %v2669_v38 }
 0x6f4   :  { %v2675_v61 = vpop.xlane.xlu0 %2674 }
 0x6f5   :  { %1822 = vadd.xlane.f32.xlu0 %v1821_v20  ;;  %1840 = vadd.xlane.f32.xlu1 %v1839_v43  ;;  %v2693_v47 = vpop.xlane.xlu1 %2692  ;;  %v9231_v43 = vmul.f32 0.35355338, %v2675_v61 }
 0x6f8   :  { %v2678_v60 = vpop.xlane.xlu0 %2677 }
 0x6f9   :  { %1825 = vadd.xlane.f32.xlu0 %v1824_v59  ;;  %1846 = vadd.xlane.f32.xlu1 %v1845_v35  ;;  %v2699_v36 = vpop.xlane.xlu1 %2698  ;;  %v2752_v59 = vrot.slane %v9223_v11, %v9221_v19  ;;  %v9235_v35 = vmul.f32 0.35355338, %v2693_v47 }
 0x6fc   :  { %v2681_v31 = vpop.xlane.xlu0 %2680 }
 0x6fd   :  { %1831 = vadd.xlane.f32.xlu0 %v1830_v25  ;;  %1849 = vadd.xlane.f32.xlu1 %v1848_v53  ;;  %v2702_v6 = vpop.xlane.xlu1 %2701  ;;  %v9237_v25 = vmul.f32 0.35355338, %v2699_v36  ;;  %v9239_v53 = vmul.f32 0.35355338, %v2696_v45  ;;  %v2784_v36 = vrot.slane %v9235_v35, %v9221_v19 }
 0x6fe   :  { %v9243_v38 = vmul.f32 0.35355338, %v2702_v6 }
 0x6ff   :  { %v2792_v6 = vrot.slane %v9237_v25, %v9221_v19 }
 0x700   :  { %v2684_v50 = vpop.xlane.xlu0 %2683 }
 0x701   :  { %1837 = vadd.xlane.f32.xlu0 %v1836_v39  ;;  %v2705_v4 = vpop.xlane.xlu1 %2704  ;;  %v9241_v39 = vmul.f32 0.35355338, %v2678_v60  ;;  %v9260_v60 = vmul.f32 0.35355338, %v2681_v31 }
 0x702   :  { %v9252_v47 = vmul.f32 0.35355338, %v2705_v4 }
 0x703   :  { %v2764_v4 = vrot.slane %v9241_v39, %v9221_v19  ;;  %v2768_v9 = vrot.slane %v9260_v60, %v9221_v19 }
 0x704   :  { %v2687_v23 = vpop.xlane.xlu0 %2686  ;;  %v2800_v31 = vrot.slane %v9252_v47, %v9221_v19 }
 0x705   :  { %1843 = vadd.xlane.f32.xlu0 %v1842_v29  ;;  %v2708_v52 = vpop.xlane.xlu1 %2707 }
 0x706   :  { %v9256_v45 = vmul.f32 0.35355338, %v2708_v52 }
 0x708   :  { %v9201_v34 = vpop.xlane.xlu0 %2689 }
 0x709   :  { %1852 = vadd.xlane.f32.xlu0 %v1851_v5  ;;  %v2711_v46 = vpop.xlane.xlu1 %2710 }
 0x70a   :  { %v9262_v40 = vmul.f32 0.35355338, %v2711_v46 }
 0x70c   :  { %v2808_v24 = vrot.slane %v9262_v40, %v9221_v19 }
 0x70d   :  { %v2672_v58 = vpop.xlane.xlu1 %2671 }
 0x70e   :  { %v9214_v33 = vmul.f32 0.35355338, %v2672_v58  ;;  %v2760_v58 = vrot.slane %v9231_v43, %v9221_v19 }
 0x710   :  { %v2756_v1 = vrot.slane %v9214_v33, %v9221_v19 }
 0x712   :  { %v2814_v29 = vsel %vm2813_vm5, %v2756_v1, %v2752_v59  ;;  %v2788_v1 = vrot.slane %v9239_v53, %v9221_v19  ;;  %v2796_v59 = vrot.slane %v9243_v38, %v9221_v19 }
 0x713   :  { %v2816_v2 = vsel %vm2815_vm6, %v2760_v58, %v2814_v29  ;;  %v9278_v29 = vmul.f32 0.35355338, %v2684_v50  ;;  %v2804_v58 = vrot.slane %v9256_v45, %v9221_v19 }
 0x714   :  { %v2827_v46 = vsel %vm2813_vm5, %v2788_v1, %v2784_v36  ;;  %v2818_v49 = vsel %vm2817_vm7, %v2764_v4, %v2816_v2 }
 0x715   :  { %v2828_v48 = vsel %vm2815_vm6, %v2792_v6, %v2827_v46  ;;  %v9297_v6 = vmul.f32 0.35355338, %v2687_v23  ;;  %v2820_v4 = vsel %vm2819_vm8, %v2768_v9, %v2818_v49  ;;  %v2772_v46 = vrot.slane %v9278_v29, %v9221_v19 }
 0x716   :  { %v2829_v50 = vsel %vm2817_vm7, %v2796_v59, %v2828_v48  ;;  %v2812_v48 = vrot.slane %v9289_v56, %v9221_v19  ;;  %v9307_v59 = vmul.f32 0.35355338, %v9201_v34 }
 0x717   :  { %v2830_v2 = vsel %vm2819_vm8, %v2800_v31, %v2829_v50  ;;  %v2822_v31 = vsel %vm2821_vm9, %v2772_v46, %v2820_v4  ;;  %v2776_v9 = vrot.slane %v9297_v6, %v9221_v19 }
 0x718   :  { %v2831_v16 = vsel %vm2821_vm9, %v2804_v58, %v2830_v2 }
 0x719   :  { %v2832_v12 = vsel %vm2823_vm10, %v2808_v24, %v2831_v16  ;;  %v2824_v16 = vsel %vm2823_vm10, %v2776_v9, %v2822_v31  ;;  %v2780_v24 = vrot.slane %v9307_v59, %v9221_v19 }
 0x71a   :  { %v2833_v58 = vsel %vm2825_vm11, %v2812_v48, %v2832_v12 }
 0x71b   :  { %v2839_v2 = vsel %vm2367_vm4, %v2833_v58, -inf  ;;  %v2826_v4 = vsel %vm2825_vm11, %v2780_v24, %v2824_v16 }
 0x71c   :  { %v2836_v46 = vsel %vm2367_vm4, %v2826_v4, -inf }
 0x725   :  { %v9203_v10 = vpop.xlane.xlu1 %3537  ;;  %v9205_v44 = vpop.xlane.xlu0 %3534 }
 0x729   :  { %v9207_v51 = vpop.xlane.xlu1 %3540 }
 0x72d   :  { %v9209_v28 = vpop.xlane.xlu0 %3510  ;;  %v9211_v30 = vpop.xlane.xlu1 %3543 }
 0x731   :  { %v9216_v7 = vpop.xlane.xlu0 %3513  ;;  %v9218_v26 = vpop.xlane.xlu1 %3546 }
 0x735   :  { %v9227_v0 = vpop.xlane.xlu0 %3519  ;;  %v9229_v20 = vpop.xlane.xlu1 %3549 }
 0x739   :  { %v9246_v5 = vpop.xlane.xlu0 %3522  ;;  %v9248_v61 = vpop.xlane.xlu1 %3552 }
 0x73d   :  { %v9271_v52 = vpop.xlane.xlu0 %3525  ;;  %v9273_v8 = vpop.xlane.xlu1 %3555 }
 0x741   :  { %v9292_v36 = vpop.xlane.xlu0 %3528  ;;  %v9294_v1 = vpop.xlane.xlu1 %3516 }
 0x745   :  { %v9309_v42 = vpop.xlane.xlu0 %3531  ;;  %v1795_v23 = vpop.permute.xlu1 %1794 }
 0x746   :  { %v1857_v49 = vsel %vm682_vm15, %v1795_v23, 0.0  ;;  %v7969_v23 = vmov 0  }
 0x747   :  { %1858 = vadd.xlane.f32.xlu0 %v1857_v49  ;;  %7514 = vset.pattern.permute.xlu1 %v7969_v23 }
 0x748   :  { %7515 = vset.pattern.permute.xlu0 %v7969_v23 }
 0x749   :  { %v1793_v34 = vpop.permute.xlu0 %1792 }
 0x74a   :  { %v1854_v50 = vsel %vm682_vm15, %v1793_v34, 0.0 }
 0x74b   :  { %1855 = vadd.xlane.f32.xlu1 %v1854_v50  ;;  %2840 = vmax.xlane.f32.xlu0 %v2839_v2 }
 0x74f   :  { %2837 = vmax.xlane.f32.xlu0 %v2836_v46 }
 0x776   :  { %v1817_v12 = vpop.xlane.xlu1 %1816 }
 0x777   :  { %v1861_v48 = vmul.f32 0.0625, %v1817_v12 }
 0x779   :  { %v9330_v16 = vsub.f32 %v8231_v63, %v1861_v48 }
 0x77a   :  { %v1814_v31 = vpop.xlane.xlu0 %1813  ;;  %v1829_v9 = vpop.xlane.xlu1 %1828 }
 0x77b   :  { %v1860_v49 = vmul.f32 0.0625, %v1814_v31  ;;  %v1865_v13 = vmul.f32 0.0625, %v1829_v9  ;;  %11469 = vst [vmem:[#allocation49_spill] sm:$0xff] %v9330_v16  ;;  %v1893_v63 = vmul.f32 %v9330_v16, %v9330_v16 }
 0x77d   :  { %v9324_v34 = vsub.f32 %v8237_v3, %v1860_v49  ;;  %v9327_v58 = vsub.f32 %v8279_v41, %v1865_v13 }
 0x77e   :  { %v1820_v24 = vpop.xlane.xlu0 %1819  ;;  %v1835_v50 = vpop.xlane.xlu1 %1834 }
 0x77f   :  { %11467 = vst [vmem:[#allocation47_spill] sm:$0xff] %v9324_v34  ;;  %11468 = vst [vmem:[#allocation48_spill] sm:$0xff] %v9327_v58  ;;  %v1892_v2 = vmul.f32 %v9324_v34, %v9324_v34  ;;  %v1897_v4 = vmul.f32 %v9327_v58, %v9327_v58  ;;  %v1862_v46 = vmul.f32 0.0625, %v1820_v24  ;;  %v1867_v23 = vmul.f32 0.0625, %v1835_v50 }
 0x781   :  { %v9337_v12 = vsub.f32 %v8296_v22, %v1867_v23  ;;  %1924 = vrot.lane.b32.xlu1 %v1892_v2, %s7967_s12  ;;  %1934 = vrot.lane.b32.xlu0 %v1897_v4, %s7967_s12  ;;  %v9344_v41 = vsub.f32 %v8359_v57, %v1862_v46  ;;  %v9372_v23 = vmul.f32 0.35355338, %v9216_v7 }
 0x782   :  { %v1823_v3 = vpop.xlane.xlu0 %1822 }
 0x783   :  { %11470 = vst [vmem:[#allocation50_spill] sm:$0xff] %v9337_v12  ;;  %11471 = vst [vmem:[#allocation51_spill] sm:$0xff] %v9344_v41  ;;  %v1899_v13 = vmul.f32 %v9337_v12, %v9337_v12  ;;  %v1863_v48 = vmul.f32 0.0625, %v1823_v3  ;;  %v1894_v31 = vmul.f32 %v9344_v41, %v9344_v41  ;;  %v9378_v3 = vmul.f32 0.35355338, %v9209_v28 }
 0x784   :  { %v9396_v28 = vmul.f32 0.35355338, %v9207_v51 }
 0x785   :  { %1926 = vrot.lane.b32.xlu1 %v1893_v63, %s7967_s12  ;;  %1938 = vrot.lane.b32.xlu0 %v1899_v13, %s7967_s12  ;;  %v9353_v9 = vsub.f32 %v8371_v32, %v1863_v48  ;;  %v9385_v13 = vmul.f32 0.35355338, %v9205_v44  ;;  %v9388_v48 = vmul.f32 0.35355338, %v9203_v10  ;;  %v3592_v7 = vrot.slane %v9378_v3, %v9221_v19 }
 0x786   :  { %v1826_v22 = vpop.xlane.xlu0 %1825  ;;  %v9403_v44 = vmul.f32 0.35355338, %v9218_v26  ;;  %v9406_v10 = vmul.f32 0.35355338, %v9246_v5  ;;  %v3632_v26 = vrot.slane %v9396_v28, %v9221_v19  ;;  %v9421_v5 = vmul.f32 0.35355338, %v9248_v61 }
 0x787   :  { %11472 = vst [vmem:[#allocation52_spill] sm:$0xff] %v9353_v9  ;;  %v1864_v49 = vmul.f32 0.0625, %v1826_v22  ;;  %v1895_v24 = vmul.f32 %v9353_v9, %v9353_v9  ;;  %v9399_v22 = vmul.f32 0.35355338, %v9211_v30  ;;  %v3628_v51 = vrot.slane %v9388_v48, %v9221_v19 }
 0x789   :  { %1928 = vrot.lane.b32.xlu1 %v1894_v31, %s7967_s12  ;;  %v9359_v50 = vsub.f32 %v8377_v27, %v1864_v49  ;;  %v9375_v27 = vmul.f32 0.35355338, %v9294_v1  ;;  %v9393_v1 = vmul.f32 0.35355338, %v9227_v0  ;;  %v3624_v0 = vrot.slane %v9385_v13, %v9221_v19 }
 0x78a   :  { %v1832_v57 = vpop.xlane.xlu0 %1831 }
 0x78b   :  { %11473 = vst [vmem:[#allocation53_spill] sm:$0xff] %v9359_v50  ;;  %v1866_v2 = vmul.f32 0.0625, %v1832_v57  ;;  %v1896_v4 = vmul.f32 %v9359_v50, %v9359_v50  ;;  %v3600_v63 = vrot.slane %v9375_v27, %v9221_v19  ;;  %v3604_v30 = vrot.slane %v9393_v1, %v9221_v19 }
 0x78c   :  { %v9416_v57 = vmul.f32 0.35355338, %v9229_v20  ;;  %v3640_v20 = vrot.slane %v9403_v44, %v9221_v19  ;;  %v3660_v61 = vsel %vm2813_vm5, %v3628_v51, %v3624_v0  ;;  %v9452_v51 = vmul.f32 0.35355338, %v9309_v42 }
 0x78d   :  { %1930 = vrot.lane.b32.xlu1 %v1895_v24, %s7967_s12  ;;  %v9365_v46 = vsub.f32 %v8299_v14, %v1866_v2  ;;  %v3596_v14 = vrot.slane %v9372_v23, %v9221_v19  ;;  %v3636_v24 = vrot.slane %v9399_v22, %v9221_v19  ;;  %v9426_v2 = vmul.f32 0.35355338, %v9271_v52 }
 0x78e   :  { %v3648_v52 = vrot.slane %v9421_v5, %v9221_v19 }
 0x78f   :  { %11474 = vst [vmem:[#allocation54_spill] sm:$0xff] %v9365_v46  ;;  %v1898_v32 = vmul.f32 %v9365_v46, %v9365_v46  ;;  %v3653_v31 = vsel %vm2813_vm5, %v3596_v14, %v3592_v7  ;;  %v3608_v14 = vrot.slane %v9406_v10, %v9221_v19  ;;  %v3661_v7 = vsel %vm2815_vm6, %v3632_v26, %v3660_v61 }
 0x790   :  { %v3654_v49 = vsel %vm2815_vm6, %v3600_v63, %v3653_v31  ;;  %v3644_v63 = vrot.slane %v9416_v57, %v9221_v19  ;;  %v9502_v46 = vsub.s32 6, %v11465_v62 }
 0x791   :  { %1932 = vrot.lane.b32.xlu1 %v1896_v4, %s7967_s12  ;;  %v9429_v4 = vmul.f32 0.35355338, %v9273_v8  ;;  %v9443_v8 = vmul.f32 0.35355338, %v9292_v36 }
 0x793   :  { %v3652_v0 = vrot.slane %v9429_v4, %v9221_v19 }
 0x795   :  { %1936 = vrot.lane.b32.xlu1 %v1898_v32, %s7967_s12  ;;  %v3655_v32 = vsel %vm2817_vm7, %v3604_v30, %v3654_v49  ;;  %v3662_v49 = vsel %vm2817_vm7, %v3636_v24, %v3661_v7  ;;  %v3612_v30 = vrot.slane %v9426_v2, %v9221_v19 }
 0x796   :  { %v3656_v31 = vsel %vm2819_vm8, %v3608_v14, %v3655_v32  ;;  %v3663_v26 = vsel %vm2819_vm8, %v3640_v20, %v3662_v49  ;;  %v3616_v32 = vrot.slane %v9443_v8, %v9221_v19  ;;  %v3620_v14 = vrot.slane %v9452_v51, %v9221_v19 }
 0x797   :  { %v3664_v61 = vsel %vm2821_vm9, %v3644_v63, %v3663_v26  ;;  %v3657_v36 = vsel %vm2821_vm9, %v3612_v30, %v3656_v31  ;;  %v9467_v31 = vpop.xlane.xlu0 %1837  ;;  %v9479_v26 = vsub.s32 2, %v11465_v62 }
 0x798   :  { %v3665_v24 = vsel %vm2823_vm10, %v3648_v52, %v3664_v61  ;;  %v3658_v37 = vsel %vm2823_vm10, %v3616_v32, %v3657_v36  ;;  %v9482_v61 = vsub.s32 3, %v11465_v62  ;;  %v9488_v32 = vsub.s32 5, %v11465_v62 }
 0x799   :  { %v3666_v7 = vsel %vm2825_vm11, %v3652_v0, %v3665_v24  ;;  %v3659_v20 = vsel %vm2825_vm11, %v3620_v14, %v3658_v37  ;;  %v9476_v0 = vsub.s32 1, %v11465_v62  ;;  %v9485_v37 = vsub.s32 4, %v11465_v62 }
 0x79a   :  { %v3672_v42 = vsel %vm2367_vm4, %v3666_v7, -inf  ;;  %v3669_v63 = vsel %vm2367_vm4, %v3659_v20, -inf }
 0x79b   :  { %v9469_v49 = vpop.xlane.xlu0 %1843 }
 0x79f   :  { %v9471_v52 = vpop.xlane.xlu0 %1852 }
 0x7b9   :  { %3673 = vmax.xlane.f32.xlu1 %v3672_v42  ;;  %v9494_v42 = vsub.s32 7, %v11465_v62 }
 0x7bd   :  { %3670 = vmax.xlane.f32.xlu1 %v3669_v63 }
 0x7d4   :  { %v9473_v30 = vpop.xlane.xlu0 %1858 }
 0x7d8   :  { %v2841_v36 = vpop.xlane.xlu0 %2840 }
 0x7d9   :  { %v2879_v24 = vrot.slane %v2841_v36, %v11447_v17  ;;  %v2883_v14 = vrot.slane %v2841_v36, %v9476_v0  ;;  %v2887_v7 = vrot.slane %v2841_v36, %v9479_v26  ;;  %v2891_v20 = vrot.slane %v2841_v36, %v9482_v61 }
 0x7da   :  { %v2895_v63 = vrot.slane %v2841_v36, %v9485_v37  ;;  %v2899_v58 = vrot.slane %v2841_v36, %v9488_v32  ;;  %v2907_v16 = vrot.slane %v2841_v36, %v9494_v42 }
 0x7db   :  { %v2932_v15 = vsub.f32 %v9235_v35, %v2879_v24  ;;  %v2933_v21 = vsub.f32 %v9239_v53, %v2883_v14  ;;  %v2934_v12 = vsub.f32 %v9237_v25, %v2887_v7  ;;  %v2935_v50 = vsub.f32 %v9243_v38, %v2891_v20 }
 0x7dc   :  { %v2936_v34 = vsub.f32 %v9252_v47, %v2895_v63  ;;  %v2838_v35 = vpop.xlane.xlu0 %2837  ;;  %v2903_v53 = vrot.slane %v2841_v36, %v9502_v46  ;;  %v2937_v25 = vsub.f32 %v9256_v45, %v2899_v58  ;;  %v2939_v24 = vsub.f32 %v9289_v56, %v2907_v16 }
 0x7dd   :  { %v2956_v9 = vmul.f32 1.442695, %v2932_v15  ;;  %v2960_v41 = vmul.f32 1.442695, %v2934_v12  ;;  %v2958_v19 = vmul.f32 1.442695, %v2933_v21  ;;  %v2851_v15 = vrot.slane %v2838_v35, %v9476_v0 }
 0x7de   :  { %v2962_v62 = vmul.f32 1.442695, %v2935_v50  ;;  %v2964_v14 = vmul.f32 1.442695, %v2936_v34  ;;  %v2938_v38 = vsub.f32 %v9262_v40, %v2903_v53  ;;  %v2966_v12 = vmul.f32 1.442695, %v2937_v25 }
 0x7df   :  { %7614 = vpow2.f32 %v2956_v9  ;;  %v2847_v47 = vrot.slane %v2838_v35, %v11447_v17  ;;  %v2970_v21 = vmul.f32 1.442695, %v2939_v24  ;;  %v2855_v9 = vrot.slane %v2838_v35, %v9479_v26 }
 0x7e0   :  { %7616 = vpow2.f32 %v2960_v41  ;;  %v2925_v45 = vsub.f32 %v9214_v33, %v2851_v15  ;;  %v2968_v56 = vmul.f32 1.442695, %v2938_v38  ;;  %v2863_v16 = vrot.slane %v2838_v35, %v9485_v37 }
 0x7e1   :  { %7618 = vpow2.f32 %v2958_v19  ;;  %v2859_v19 = vrot.slane %v2838_v35, %v9482_v61  ;;  %v2924_v34 = vsub.f32 %v9223_v11, %v2847_v47  ;;  %v2926_v41 = vsub.f32 %v9231_v43, %v2855_v9 }
 0x7e2   :  { %7620 = vpow2.f32 %v2962_v62  ;;  %v2942_v50 = vmul.f32 1.442695, %v2925_v45  ;;  %v2875_v36 = vrot.slane %v2838_v35, %v9494_v42  ;;  %v2867_v63 = vrot.slane %v2838_v35, %v9488_v32 }
 0x7e3   :  { %7622 = vpow2.f32 %v2964_v14  ;;  %v2927_v7 = vsub.f32 %v9241_v39, %v2859_v19  ;;  %v2940_v11 = vmul.f32 1.442695, %v2924_v34  ;;  %v2928_v53 = vsub.f32 %v9260_v60, %v2863_v16 }
 0x7e4   :  { %7624 = vpow2.f32 %v2966_v12  ;;  %v2944_v43 = vmul.f32 1.442695, %v2926_v41  ;;  %v2931_v62 = vsub.f32 %v9307_v59, %v2875_v36  ;;  %v2871_v14 = vrot.slane %v2838_v35, %v9502_v46  ;;  %v9576_v41 = vpop.xlane.xlu1 %1840 }
 0x7e5   :  { %7626 = vpow2.f32 %v2970_v21  ;;  %v2946_v24 = vmul.f32 1.442695, %v2927_v7  ;;  %v2929_v15 = vsub.f32 %v9278_v29, %v2867_v63  ;;  %v2948_v60 = vmul.f32 1.442695, %v2928_v53 }
 0x7e6   :  { %7628 = vpow2.f32 %v2968_v56  ;;  %v2954_v12 = vmul.f32 1.442695, %v2931_v62  ;;  %v2930_v47 = vsub.f32 %v9297_v6, %v2871_v14 }
 0x7e7   :  { %7630 = vpow2.f32 %v2942_v50  ;;  %v2950_v21 = vmul.f32 1.442695, %v2929_v15 }
 0x7e8   :  { %7632 = vpow2.f32 %v2940_v11  ;;  %v2952_v9 = vmul.f32 1.442695, %v2930_v47  ;;  %v9578_v50 = vpop.xlane.xlu1 %1846 }
 0x7e9   :  { %v9516_v58 = vpop.eup %7614  ;;  %7634 = vpow2.f32 %v2944_v43 }
 0x7ea   :  { %3013 = vperm.xlu1 %7514, %v9516_v58   ;;  %v9521_v40 = vpop.eup %7616  ;;  %7636 = vpow2.f32 %v2946_v24 }
 0x7eb   :  { %3019 = vperm.xlu0 %7515, %v9521_v40   ;;  %v9526_v33 = vpop.eup %7618  ;;  %7638 = vpow2.f32 %v2948_v60 }
 0x7ec   :  { %v9531_v20 = vpop.eup %7620  ;;  %7640 = vpow2.f32 %v2954_v12  ;;  %v9580_v36 = vpop.xlane.xlu1 %1849 }
 0x7ed   :  { %v9536_v25 = vpop.eup %7622  ;;  %7642 = vpow2.f32 %v2950_v21 }
 0x7ee   :  { %3016 = vperm.xlu1 %7514, %v9526_v33   ;;  %11475 = vst [vmem:[#allocation55_spill] sm:$0xff] %v9536_v25  ;;  %v9540_v39 = vpop.eup %7624  ;;  %7644 = vpow2.f32 %v2952_v9 }
 0x7ef   :  { %3022 = vperm.xlu0 %7515, %v9531_v20   ;;  %11476 = vst [vmem:[#allocation56_spill] sm:$0xff] %v9540_v39  ;;  %v9545_v38 = vpop.eup %7626 }
 0x7f0   :  { %11477 = vst [vmem:[#allocation57_spill] sm:$0xff] %v9545_v38  ;;  %v9548_v59 = vpop.eup %7628  ;;  %v9582_v7 = vpop.xlane.xlu1 %1855 }
 0x7f1   :  { %11478 = vst [vmem:[#allocation58_spill] sm:$0xff] %v9548_v59  ;;  %v9552_v35 = vpop.eup %7630 }
 0x7f2   :  { %3025 = vperm.xlu1 %7514, %v9536_v25   ;;  %v9555_v29 = vpop.eup %7632 }
 0x7f3   :  { %3028 = vperm.xlu0 %7515, %v9540_v39   ;;  %11479 = vst [vmem:[#allocation59_spill] sm:$0xff] %v9555_v29  ;;  %v9558_v45 = vpop.eup %7634 }
 0x7f4   :  { %v9561_v6 = vpop.eup %7636  ;;  %v9584_v11 = vpop.permute.xlu1 %1924 }
 0x7f5   :  { %11480 = vst [vmem:[#allocation60_spill] sm:$0xff] %v9561_v6  ;;  %v9564_v56 = vpop.eup %7638 }
 0x7f6   :  { %3034 = vperm.xlu1 %7514, %v9545_v38   ;;  %11481 = vst [vmem:[#allocation61_spill] sm:$0xff] %v9564_v56  ;;  %v9567_v19 = vpop.eup %7640 }
 0x7f7   :  { %3031 = vperm.xlu0 %7515, %v9548_v59   ;;  %11482 = vst [vmem:[#allocation62_spill] sm:$0xff] %v9567_v19  ;;  %v9570_v34 = vpop.eup %7642 }
 0x7f8   :  { %11483 = vst [vmem:[#allocation63_spill] sm:$0xff] %v9570_v34  ;;  %v9573_v16 = vpop.eup %7644  ;;  %v9586_v63 = vpop.permute.xlu1 %1926 }
 0x7f9   :  { %11484 = vst [vmem:[#allocation64_spill] sm:$0xff] %v9573_v16 }
 0x7fa   :  { %2992 = vperm.xlu1 %7514, %v9552_v35  }
 0x7fb   :  { %2989 = vperm.xlu0 %7515, %v9555_v29  }
 0x7fc   :  { %v9588_v53 = vpop.permute.xlu1 %1928 }
 0x7fe   :  { %2995 = vperm.xlu1 %7514, %v9558_v45  }
 0x7ff   :  { %2998 = vperm.xlu0 %7515, %v9561_v6  }
 0x800   :  { %v9590_v43 = vpop.permute.xlu1 %1930 }
 0x802   :  { %3001 = vperm.xlu1 %7514, %v9564_v56  }
 0x803   :  { %3010 = vperm.xlu0 %7515, %v9567_v19  }
 0x804   :  { %v9592_v62 = vpop.permute.xlu1 %1932 }
 0x806   :  { %3004 = vperm.xlu1 %7514, %v9570_v34  }
 0x808   :  { %v9594_v24 = vpop.permute.xlu1 %1936 }
 0x80a   :  { %3007 = vperm.xlu1 %7514, %v9573_v16  }
 0x846   :  { %v3674_v14 = vpop.xlane.xlu1 %3673 }
 0x847   :  { %v3712_v15 = vrot.slane %v3674_v14, %v11447_v17  ;;  %v3716_v60 = vrot.slane %v3674_v14, %v9476_v0  ;;  %v3720_v12 = vrot.slane %v3674_v14, %v9479_v26  ;;  %v3724_v47 = vrot.slane %v3674_v14, %v9482_v61 }
 0x848   :  { %v3728_v19 = vrot.slane %v3674_v14, %v9485_v37  ;;  %v3732_v6 = vrot.slane %v3674_v14, %v9488_v32 }
 0x849   :  { %v3765_v21 = vsub.f32 %v9385_v13, %v3712_v15  ;;  %v3766_v9 = vsub.f32 %v9388_v48, %v3716_v60  ;;  %v3768_v38 = vsub.f32 %v9399_v22, %v3724_v47  ;;  %v3767_v29 = vsub.f32 %v9396_v28, %v3720_v12 }
 0x84a   :  { %v3671_v16 = vpop.xlane.xlu1 %3670  ;;  %v3769_v13 = vsub.f32 %v9403_v44, %v3728_v19  ;;  %v3736_v15 = vrot.slane %v3674_v14, %v9502_v46 }
 0x84b   :  { %v3789_v59 = vmul.f32 1.442695, %v3765_v21  ;;  %v3791_v34 = vmul.f32 1.442695, %v3766_v9  ;;  %v3680_v39 = vrot.slane %v3671_v16, %v11447_v17  ;;  %v3795_v56 = vmul.f32 1.442695, %v3768_v38 }
 0x84c   :  { %v3684_v25 = vrot.slane %v3671_v16, %v9476_v0  ;;  %v3793_v48 = vmul.f32 1.442695, %v3767_v29  ;;  %v3688_v28 = vrot.slane %v3671_v16, %v9479_v26  ;;  %v3797_v38 = vmul.f32 1.442695, %v3769_v13 }
 0x84d   :  { %7646 = vpow2.f32 %v3789_v59  ;;  %v3757_v22 = vsub.f32 %v9378_v3, %v3680_v39  ;;  %v3770_v59 = vsub.f32 %v9416_v57, %v3732_v6  ;;  %v3696_v47 = vrot.slane %v3671_v16, %v9485_v37 }
 0x84e   :  { %7648 = vpow2.f32 %v3791_v34  ;;  %v3758_v60 = vsub.f32 %v9372_v23, %v3684_v25  ;;  %v3759_v44 = vsub.f32 %v9375_v27, %v3688_v28  ;;  %v3740_v3 = vrot.slane %v3674_v14, %v9494_v42 }
 0x84f   :  { %7650 = vpow2.f32 %v3795_v56  ;;  %v3773_v12 = vmul.f32 1.442695, %v3757_v22  ;;  %v3771_v39 = vsub.f32 %v9421_v5, %v3736_v15  ;;  %v3799_v56 = vmul.f32 1.442695, %v3770_v59 }
 0x850   :  { %7652 = vpow2.f32 %v3793_v48  ;;  %v3775_v29 = vmul.f32 1.442695, %v3758_v60  ;;  %v3700_v57 = vrot.slane %v3671_v16, %v9488_v32  ;;  %v3761_v25 = vsub.f32 %v9406_v10, %v3696_v47 }
 0x851   :  { %7654 = vpow2.f32 %v3773_v12  ;;  %v3777_v27 = vmul.f32 1.442695, %v3759_v44  ;;  %v3772_v6 = vsub.f32 %v9429_v4, %v3740_v3  ;;  %v3801_v5 = vmul.f32 1.442695, %v3771_v39 }
 0x852   :  { %7656 = vpow2.f32 %v3797_v38  ;;  %v3692_v34 = vrot.slane %v3671_v16, %v9482_v61  ;;  %v3704_v9 = vrot.slane %v3671_v16, %v9502_v46  ;;  %v3762_v10 = vsub.f32 %v9426_v2, %v3700_v57 }
 0x853   :  { %7658 = vpow2.f32 %v3775_v29  ;;  %v3781_v13 = vmul.f32 1.442695, %v3761_v25  ;;  %v3803_v4 = vmul.f32 1.442695, %v3772_v6  ;;  %v3708_v48 = vrot.slane %v3671_v16, %v9494_v42 }
 0x854   :  { %7660 = vpow2.f32 %v3799_v56  ;;  %v3760_v22 = vsub.f32 %v9393_v1, %v3692_v34  ;;  %v3763_v60 = vsub.f32 %v9443_v8, %v3704_v9  ;;  %v3783_v2 = vmul.f32 1.442695, %v3762_v10 }
 0x855   :  { %7662 = vpow2.f32 %v3777_v27  ;;  %v3764_v59 = vsub.f32 %v9452_v51, %v3708_v48  ;;  %v1868_v3 = vmul.f32 0.0625, %v9467_v31  ;;  %v1869_v56 = vmul.f32 0.0625, %v9576_v41  ;;  %v11498_v41 = vld [vmem:[#allocation12_spill] sm:$0xff] }
 0x856   :  { %7664 = vpow2.f32 %v3801_v5  ;;  %v3779_v38 = vmul.f32 1.442695, %v3760_v22  ;;  %v3785_v1 = vmul.f32 1.442695, %v3763_v60  ;;  %v1871_v25 = vmul.f32 0.0625, %v9578_v50  ;;  %v11495_v5 = vld [vmem:[#allocation11_spill] sm:$0xff] }
 0x857   :  { %v9618_v19 = vpop.eup %7646  ;;  %7666 = vpow2.f32 %v3781_v13  ;;  %v3787_v8 = vmul.f32 1.442695, %v3764_v59  ;;  %v9674_v27 = vsub.f32 %v8320_v18, %v1868_v3  ;;  %v9679_v34 = vsub.f32 %v11495_v5, %v1869_v56 }
 0x858   :  { %v9620_v23 = vpop.eup %7648  ;;  %3846 = vperm.xlu1 %7514, %v9618_v19   ;;  %7668 = vpow2.f32 %v3803_v4  ;;  %v1870_v31 = vmul.f32 0.0625, %v9469_v49  ;;  %v9687_v10 = vsub.f32 %v11498_v41, %v1871_v25  ;;  %v1874_v50 = vmul.f32 0.0625, %v9582_v7  ;;  %v11500_v49 = vld [vmem:[#allocation13_spill] sm:$0xff] }
 0x859   :  { %3849 = vperm.xlu0 %7515, %v9620_v23   ;;  %v9628_v14 = vpop.eup %7650  ;;  %7670 = vpow2.f32 %v3783_v2  ;;  %11493 = vst [vmem:[#allocation73_spill] sm:$0xff] %v9674_v27  ;;  %11496 = vst [vmem:[#allocation11_spill] sm:$0xff] %v9679_v34  ;;  %v1900_v18 = vmul.f32 %v9674_v27, %v9674_v27  ;;  %v1901_v13 = vmul.f32 %v9679_v34, %v9679_v34  ;;  %v1872_v4 = vmul.f32 0.0625, %v9580_v36  ;;  %v11503_v2 = vld [vmem:[#allocation15_spill] sm:$0xff] }
 0x85a   :  { %v9630_v21 = vpop.eup %7652  ;;  %7672 = vpow2.f32 %v3779_v38  ;;  %11499 = vst [vmem:[#allocation12_spill] sm:$0xff] %v9687_v10  ;;  %v9696_v48 = vsub.f32 %v11500_v49, %v1870_v31  ;;  %v1903_v22 = vmul.f32 %v9687_v10, %v9687_v10  ;;  %v9703_v60 = vsub.f32 %v8356_v55, %v1874_v50  ;;  %v11505_v55 = vld [vmem:[#allocation14_spill] sm:$0xff]  ;;  %v1935_v31 = vpop.permute.xlu0 %1934 }
 0x85b   :  { %v9638_v15 = vpop.eup %7654  ;;  %7674 = vpow2.f32 %v3785_v1  ;;  %v9706_v7 = vsub.f32 %v11503_v2, %v1872_v4  ;;  %v1873_v36 = vmul.f32 0.0625, %v9471_v52  ;;  %v1875_v3 = vmul.f32 0.0625, %v9473_v30 }
 0x85c   :  { %3855 = vperm.xlu1 %7514, %v9628_v14   ;;  %v9640_v28 = vpop.eup %7656  ;;  %7676 = vpow2.f32 %v3787_v8  ;;  %11501 = vst [vmem:[#allocation13_spill] sm:$0xff] %v9696_v48  ;;  %11502 = vst [vmem:[#allocation76_spill] sm:$0xff] %v9703_v60  ;;  %v1902_v59 = vmul.f32 %v9696_v48, %v9696_v48  ;;  %v1906_v38 = vmul.f32 %v9703_v60, %v9703_v60  ;;  %v1972_v30 = vsel %vm682_vm15, %v9584_v11, 0.0 }
 0x85d   :  { %3852 = vperm.xlu0 %7515, %v9630_v21   ;;  %11485 = vst [vmem:[#allocation65_spill] sm:$0xff] %v9640_v28  ;;  %v9646_v12 = vpop.eup %7658  ;;  %11504 = vst [vmem:[#allocation15_spill] sm:$0xff] %v9706_v7  ;;  %v1904_v1 = vmul.f32 %v9706_v7, %v9706_v7  ;;  %v9718_v8 = vsub.f32 %v11505_v55, %v1873_v36  ;;  %v9726_v56 = vsub.f32 %v8352_v54, %v1875_v3  ;;  %v11508_v7 = vld [vmem:[#allocation8_spill] sm:$0xff] }
 0x85e   :  { %11486 = vst [vmem:[#allocation66_spill] sm:$0xff] %v9646_v12  ;;  %v9648_v16 = vpop.eup %7660  ;;  %v1975_v41 = vsel %vm682_vm15, %v9586_v63, 0.0  ;;  %v1981_v54 = vsel %vm682_vm15, %v9590_v43, 0.0  ;;  %v1978_v50 = vsel %vm682_vm15, %v9588_v53, 0.0  ;;  %v1939_v4 = vpop.permute.xlu0 %1938  ;;  %v1984_v49 = vsel %vm682_vm15, %v9592_v62, 0.0 }
 0x85f   :  { %11487 = vst [vmem:[#allocation67_spill] sm:$0xff] %v9648_v16  ;;  %v9652_v47 = vpop.eup %7662  ;;  %11506 = vst [vmem:[#allocation14_spill] sm:$0xff] %v9718_v8  ;;  %v1905_v52 = vmul.f32 %v9718_v8, %v9718_v8  ;;  %v1907_v25 = vmul.f32 %v9726_v56, %v9726_v56  ;;  %v1993_v63 = vsel %vm682_vm15, %v1939_v4, 0.0  ;;  %v1990_v43 = vsel %vm682_vm15, %v9594_v24, 0.0 }
 0x860   :  { %3822 = vperm.xlu1 %7514, %v9638_v15   ;;  %11488 = vst [vmem:[#allocation68_spill] sm:$0xff] %v9652_v47  ;;  %v9654_v44 = vpop.eup %7664  ;;  %11507 = vst [vmem:[#allocation77_spill] sm:$0xff] %v9726_v56 }
 0x861   :  { %3858 = vperm.xlu0 %7515, %v9640_v28   ;;  %11489 = vst [vmem:[#allocation69_spill] sm:$0xff] %v9654_v44  ;;  %v9658_v51 = vpop.eup %7666 }
 0x862   :  { %11490 = vst [vmem:[#allocation70_spill] sm:$0xff] %v9658_v51  ;;  %v9660_v29 = vpop.eup %7668 }
 0x863   :  { %11491 = vst [vmem:[#allocation71_spill] sm:$0xff] %v9660_v29  ;;  %v9665_v39 = vpop.eup %7670 }
 0x864   :  { %3825 = vperm.xlu1 %7514, %v9646_v12   ;;  %11492 = vst [vmem:[#allocation72_spill] sm:$0xff] %v9665_v39  ;;  %v9668_v57 = vpop.eup %7672 }
 0x865   :  { %3861 = vperm.xlu0 %7515, %v9648_v16   ;;  %v9676_v6 = vpop.eup %7674 }
 0x866   :  { %11494 = vst [vmem:[#allocation74_spill] sm:$0xff] %v9676_v6  ;;  %v9682_v9 = vpop.eup %7676 }
 0x867   :  { %11497 = vst [vmem:[#allocation75_spill] sm:$0xff] %v9682_v9 }
 0x868   :  { %3828 = vperm.xlu1 %7514, %v9652_v47  }
 0x869   :  { %3864 = vperm.xlu0 %7515, %v9654_v44   ;;  %v3014_v5 = vpop.permute.xlu1 %3013 }
 0x86c   :  { %3834 = vperm.xlu1 %7514, %v9658_v51  }
 0x86d   :  { %3867 = vperm.xlu0 %7515, %v9660_v29   ;;  %v3071_v29 = vrot.slane %v3014_v5, %v11508_v7 }
 0x870   :  { %3837 = vperm.xlu1 %7514, %v9665_v39  }
 0x871   :  { %3831 = vperm.xlu0 %7515, %v9668_v57  }
 0x874   :  { %3840 = vperm.xlu1 %7514, %v9676_v6  }
 0x875   :  { %3843 = vperm.xlu0 %7515, %v9682_v9  }
 0x878   :  { %1940 = vrot.lane.b32.xlu1 %v1900_v18, %s7967_s12  ;;  %v3017_v18 = vpop.permute.xlu1 %3016 }
 0x879   :  { %1942 = vrot.lane.b32.xlu0 %v1901_v13, %s7967_s12  ;;  %v1987_v13 = vsel %vm682_vm15, %v1935_v31, 0.0  ;;  %v3075_v10 = vrot.slane %v3017_v18, %v11508_v7 }
 0x87b   :  { %v3107_v6 = vsel %vm2813_vm5, %v3075_v10, %v3071_v29 }
 0x87c   :  { %1946 = vrot.lane.b32.xlu1 %v1903_v22, %s7967_s12  ;;  %v9741_v11 = vpop.permute.xlu1 %3025  ;;  %v3020_v22 = vpop.permute.xlu0 %3019 }
 0x87d   :  { %1944 = vrot.lane.b32.xlu0 %v1902_v59, %s7967_s12  ;;  %v3079_v16 = vrot.slane %v3020_v22, %v11508_v7 }
 0x880   :  { %1952 = vrot.lane.b32.xlu1 %v1906_v38, %s7967_s12  ;;  %v9748_v53 = vpop.permute.xlu1 %3034  ;;  %v3023_v2 = vpop.permute.xlu0 %3022 }
 0x881   :  { %1948 = vrot.lane.b32.xlu0 %v1904_v1, %s7967_s12 }
 0x884   :  { %v9750_v59 = vpop.permute.xlu1 %2992  ;;  %v9752_v36 = vpop.permute.xlu0 %3028 }
 0x885   :  { %1950 = vrot.lane.b32.xlu0 %v1905_v52, %s7967_s12 }
 0x888   :  { %v9754_v38 = vpop.permute.xlu1 %2995  ;;  %v9756_v1 = vpop.permute.xlu0 %3031 }
 0x889   :  { %1954 = vrot.lane.b32.xlu0 %v1907_v25, %s7967_s12  ;;  %v3095_v22 = vrot.slane %v9756_v1, %v11508_v7 }
 0x88c   :  { %v9758_v62 = vpop.permute.xlu1 %3001  ;;  %v9760_v55 = vpop.permute.xlu0 %2989 }
 0x890   :  { %v9762_v3 = vpop.permute.xlu1 %3004  ;;  %v9764_v52 = vpop.permute.xlu0 %2998 }
 0x894   :  { %v9766_v24 = vpop.permute.xlu1 %3007  ;;  %v9768_v25 = vpop.permute.xlu0 %3010 }
 0x8a4   :  { %1973 = vadd.xlane.f32.xlu1 %v1972_v30 }
 0x8a8   :  { %1976 = vadd.xlane.f32.xlu0 %v1975_v41  ;;  %1982 = vadd.xlane.f32.xlu1 %v1981_v54 }
 0x8ac   :  { %1979 = vadd.xlane.f32.xlu0 %v1978_v50  ;;  %1988 = vadd.xlane.f32.xlu1 %v1987_v13 }
 0x8b0   :  { %1985 = vadd.xlane.f32.xlu0 %v1984_v49  ;;  %1994 = vadd.xlane.f32.xlu1 %v1993_v63 }
 0x8b4   :  { %1991 = vadd.xlane.f32.xlu0 %v1990_v43 }
 0x8d7   :  { %v9770_v30 = vpop.permute.xlu1 %3846 }
 0x8d8   :  { %v9772_v31 = vpop.permute.xlu0 %3849 }
 0x8db   :  { %v9774_v41 = vpop.permute.xlu1 %3855 }
 0x8dc   :  { %v9776_v54 = vpop.permute.xlu0 %3852 }
 0x8df   :  { %v3823_v50 = vpop.permute.xlu1 %3822 }
 0x8e0   :  { %v9778_v13 = vpop.permute.xlu0 %3858  ;;  %v3872_v44 = vrot.slane %v3823_v50, %v11508_v7  ;;  %v3083_v50 = vrot.slane %v3023_v2, %v11508_v7 }
 0x8e3   :  { %v3826_v4 = vpop.permute.xlu1 %3825 }
 0x8e4   :  { %v9780_v49 = vpop.permute.xlu0 %3861  ;;  %v3876_v48 = vrot.slane %v3826_v4, %v11508_v7 }
 0x8e6   :  { %v3933_v12 = vsel %vm2813_vm5, %v3876_v48, %v3872_v44  ;;  %v3087_v44 = vrot.slane %v9741_v11, %v11508_v7  ;;  %v3043_v48 = vrot.slane %v9750_v59, %v11508_v7 }
 0x8e7   :  { %v3829_v63 = vpop.permute.xlu1 %3828 }
 0x8e8   :  { %v9782_v43 = vpop.permute.xlu0 %3864  ;;  %v3880_v27 = vrot.slane %v3829_v63, %v11508_v7  ;;  %v3108_v63 = vsel %vm2815_vm6, %v3079_v16, %v3107_v6 }
 0x8ea   :  { %v3934_v18 = vsel %vm2815_vm6, %v3880_v27, %v3933_v12  ;;  %v3109_v12 = vsel %vm2817_vm7, %v3083_v50, %v3108_v63  ;;  %v3091_v27 = vrot.slane %v9752_v36, %v11508_v7 }
 0x8eb   :  { %v3835_v56 = vpop.permute.xlu1 %3834 }
 0x8ec   :  { %v9784_v60 = vpop.permute.xlu0 %3867  ;;  %v3888_v5 = vrot.slane %v3835_v56, %v11508_v7 }
 0x8ef   :  { %v3838_v8 = vpop.permute.xlu1 %3837 }
 0x8f0   :  { %v3832_v34 = vpop.permute.xlu0 %3831  ;;  %v3892_v16 = vrot.slane %v3838_v8, %v11508_v7  ;;  %v3110_v8 = vsel %vm2819_vm8, %v3087_v44, %v3109_v12 }
 0x8f1   :  { %v3884_v9 = vrot.slane %v3832_v34, %v11508_v7  ;;  %v3111_v63 = vsel %vm2821_vm9, %v3091_v27, %v3110_v8 }
 0x8f2   :  { %v3112_v50 = vsel %vm2823_vm10, %v3095_v22, %v3111_v63 }
 0x8f3   :  { %v3841_v47 = vpop.permute.xlu1 %3840  ;;  %v3935_v4 = vsel %vm2817_vm7, %v3884_v9, %v3934_v18 }
 0x8f4   :  { %v3844_v39 = vpop.permute.xlu0 %3843  ;;  %v3936_v29 = vsel %vm2819_vm8, %v3888_v5, %v3935_v4  ;;  %v3896_v6 = vrot.slane %v3841_v47, %v11508_v7  ;;  %v3047_v47 = vrot.slane %v9754_v38, %v11508_v7  ;;  %v3051_v4 = vrot.slane %v9764_v52, %v11508_v7 }
 0x8f5   :  { %v3937_v56 = vsel %vm2821_vm9, %v3892_v16, %v3936_v29  ;;  %v3900_v36 = vrot.slane %v3844_v39, %v11508_v7  ;;  %v3055_v39 = vrot.slane %v9758_v62, %v11508_v7  ;;  %v3904_v52 = vrot.slane %v9770_v30, %v11508_v7 }
 0x8f6   :  { %v3938_v59 = vsel %vm2823_vm10, %v3896_v6, %v3937_v56  ;;  %v3063_v29 = vrot.slane %v9766_v24, %v11508_v7  ;;  %v3912_v62 = vrot.slane %v9776_v54, %v11508_v7  ;;  %v3916_v24 = vrot.slane %v9774_v41, %v11508_v7 }
 0x8f7   :  { %v1941_v51 = vpop.permute.xlu1 %1940  ;;  %v3939_v44 = vsel %vm2825_vm11, %v3900_v36, %v3938_v59  ;;  %v3067_v56 = vrot.slane %v9768_v25, %v11508_v7 }
 0x8f8   :  { %v1943_v34 = vpop.permute.xlu0 %1942  ;;  %v1996_v28 = vsel %vm682_vm15, %v1941_v51, 0.0  ;;  %v3039_v51 = vrot.slane %v9760_v55, %v11508_v7  ;;  %v3099_v55 = vrot.slane %v9748_v53, %v11508_v7  ;;  %v3059_v53 = vrot.slane %v9762_v3, %v11508_v7 }
 0x8f9   :  { %v1999_v10 = vsel %vm682_vm15, %v1943_v34, 0.0  ;;  %1997 = vadd.xlane.f32.xlu0 %v1996_v28  ;;  %v3908_v34 = vrot.slane %v9772_v31, %v11508_v7  ;;  %v3949_v16 = vsel %vm2367_vm4, %v3939_v44, 0.0 }
 0x8fa   :  { %2000 = vadd.xlane.f32.xlu1 %v1999_v10  ;;  %v3100_v18 = vsel %vm2813_vm5, %v3043_v48, %v3039_v51  ;;  %v3113_v30 = vsel %vm2825_vm11, %v3099_v55, %v3112_v50  ;;  %v3920_v51 = vrot.slane %v9778_v13, %v11508_v7  ;;  %v3932_v13 = vrot.slane %v9784_v60, %v11508_v7 }
 0x8fb   :  { %v1947_v9 = vpop.permute.xlu1 %1946  ;;  %v3101_v38 = vsel %vm2815_vm6, %v3047_v47, %v3100_v18  ;;  %v3940_v6 = vsel %vm2813_vm5, %v3908_v34, %v3904_v52  ;;  %v3119_v41 = vsel %vm2367_vm4, %v3113_v30, 0.0 }
 0x8fc   :  { %v1945_v28 = vpop.permute.xlu0 %1944  ;;  %v2005_v11 = vsel %vm682_vm15, %v1947_v9, 0.0  ;;  %v3102_v10 = vsel %vm2817_vm7, %v3051_v4, %v3101_v38  ;;  %v3941_v54 = vsel %vm2815_vm6, %v3912_v62, %v3940_v6 }
 0x8fd   :  { %v2002_v2 = vsel %vm682_vm15, %v1945_v28, 0.0  ;;  %v3103_v3 = vsel %vm2819_vm8, %v3055_v39, %v3102_v10  ;;  %v3924_v28 = vrot.slane %v9780_v49, %v11508_v7  ;;  %v3942_v22 = vsel %vm2817_vm7, %v3916_v24, %v3941_v54 }
 0x8fe   :  { %2003 = vadd.xlane.f32.xlu0 %v2002_v2  ;;  %2006 = vadd.xlane.f32.xlu1 %v2005_v11  ;;  %v3104_v27 = vsel %vm2821_vm9, %v3059_v53, %v3103_v3  ;;  %v3928_v11 = vrot.slane %v9782_v43, %v11508_v7  ;;  %v3943_v25 = vsel %vm2819_vm8, %v3920_v51, %v3942_v22 }
 0x8ff   :  { %v1953_v9 = vpop.permute.xlu1 %1952  ;;  %v3105_v48 = vsel %vm2823_vm10, %v3063_v29, %v3104_v27  ;;  %v3944_v49 = vsel %vm2821_vm9, %v3924_v28, %v3943_v25 }
 0x900   :  { %v1949_v1 = vpop.permute.xlu0 %1948  ;;  %v2014_v8 = vsel %vm682_vm15, %v1953_v9, 0.0  ;;  %v3106_v47 = vsel %vm2825_vm11, %v3067_v56, %v3105_v48  ;;  %v3945_v43 = vsel %vm2823_vm10, %v3928_v11, %v3944_v49 }
 0x901   :  { %v2008_v5 = vsel %vm682_vm15, %v1949_v1, 0.0  ;;  %v3116_v2 = vsel %vm2367_vm4, %v3106_v47, 0.0  ;;  %v3946_v36 = vsel %vm2825_vm11, %v3932_v13, %v3945_v43 }
 0x902   :  { %2009 = vadd.xlane.f32.xlu0 %v2008_v5  ;;  %v3952_v59 = vsel %vm2367_vm4, %v3946_v36, 0.0 }
 0x904   :  { %v1951_v12 = vpop.permute.xlu0 %1950 }
 0x905   :  { %v2011_v31 = vsel %vm682_vm15, %v1951_v12, 0.0 }
 0x906   :  { %3950 = vadd.xlane.f32.xlu0 %v3949_v16  ;;  %2012 = vadd.xlane.f32.xlu1 %v2011_v31 }
 0x908   :  { %v1955_v55 = vpop.permute.xlu0 %1954 }
 0x909   :  { %v2017_v60 = vsel %vm682_vm15, %v1955_v55, 0.0 }
 0x90a   :  { %3120 = vadd.xlane.f32.xlu1 %v3119_v41  ;;  %2015 = vadd.xlane.f32.xlu0 %v2014_v8 }
 0x90e   :  { %3117 = vadd.xlane.f32.xlu1 %v3116_v2 }
 0x912   :  { %3953 = vadd.xlane.f32.xlu1 %v3952_v59 }
 0x916   :  { %2018 = vadd.xlane.f32.xlu1 %v2017_v60  ;;  %v11509_v60 = vld [vmem:[#allocation60_spill] sm:$0xff] }
 0x931   :  { %v9878_v18 = vpop.xlane.xlu1 %1973 }
 0x935   :  { %v9880_v4 = vpop.xlane.xlu1 %1982  ;;  %v9888_v39 = vpop.xlane.xlu0 %1976 }
 0x939   :  { %v9882_v1 = vpop.xlane.xlu1 %1988  ;;  %v9892_v50 = vpop.xlane.xlu0 %1979 }
 0x93d   :  { %v9884_v63 = vpop.xlane.xlu1 %1994  ;;  %v9902_v29 = vpop.xlane.xlu0 %1985 }
 0x941   :  { %v9910_v31 = vpop.xlane.xlu0 %1991 }
 0x986   :  { %v9915_v6 = vpop.xlane.xlu0 %1997 }
 0x987   :  { %v9886_v38 = vpop.xlane.xlu1 %2000 }
 0x98b   :  { %v9890_v5 = vpop.xlane.xlu1 %2006  ;;  %v9923_v8 = vpop.xlane.xlu0 %2003 }
 0x98f   :  { %v9935_v55 = vpop.xlane.xlu0 %2009 }
 0x993   :  { %v9894_v53 = vpop.xlane.xlu1 %2012 }
 0x997   :  { %v9896_v34 = vpop.xlane.xlu1 %3120 }
 0x998   :  { %v3163_v52 = vrot.slane %v9896_v34, %v9476_v0  ;;  %v3159_v44 = vrot.slane %v9896_v34, %v11447_v17  ;;  %v3167_v62 = vrot.slane %v9896_v34, %v9479_v26  ;;  %v3171_v16 = vrot.slane %v9896_v34, %v9482_v61 }
 0x999   :  { %v3175_v27 = vrot.slane %v9896_v34, %v9485_v37  ;;  %v3179_v48 = vrot.slane %v9896_v34, %v9488_v32 }
 0x99a   :  { %7678 = vrcp.f32 %v3163_v52 }
 0x99b   :  { %v3118_v10 = vpop.xlane.xlu1 %3117  ;;  %7680 = vrcp.f32 %v3159_v44 }
 0x99c   :  { %v3131_v12 = vrot.slane %v3118_v10, %v9476_v0  ;;  %v3135_v3 = vrot.slane %v3118_v10, %v9479_v26  ;;  %7682 = vrcp.f32 %v3167_v62  ;;  %v3139_v30 = vrot.slane %v3118_v10, %v9482_v61  ;;  %v11510_v62 = vld [vmem:[#allocation55_spill] sm:$0xff] }
 0x99d   :  { %v3143_v9 = vrot.slane %v3118_v10, %v9485_v37  ;;  %v3147_v41 = vrot.slane %v3118_v10, %v9488_v32  ;;  %v3127_v2 = vrot.slane %v3118_v10, %v11447_v17 }
 0x99e   :  { %7684 = vrcp.f32 %v3131_v12 }
 0x99f   :  { %7686 = vrcp.f32 %v3135_v3 }
 0x9a0   :  { %7688 = vrcp.f32 %v3171_v16  ;;  %v9944_v16 = vpop.xlane.xlu0 %3950 }
 0x9a1   :  { %7690 = vrcp.f32 %v3139_v30  ;;  %v11511_v30 = vld [vmem:[#allocation61_spill] sm:$0xff] }
 0x9a2   :  { %7692 = vrcp.f32 %v3175_v27 }
 0x9a3   :  { %7694 = vrcp.f32 %v3143_v9  ;;  %v11512_v9 = vld [vmem:[#allocation56_spill] sm:$0xff] }
 0x9a4   :  { %v7679_v24 = vpop.eup %7678  ;;  %7696 = vrcp.f32 %v3179_v48  ;;  %v3960_v48 = vrot.slane %v9944_v16, %v11447_v17 }
 0x9a5   :  { %v7681_v54 = vpop.eup %7680  ;;  %v3223_v51 = vmul.f32 %v7679_v24, %v9526_v33  ;;  %v3183_v33 = vrot.slane %v9896_v34, %v9502_v46  ;;  %7698 = vrcp.f32 %v3147_v41 }
 0x9a6   :  { %v3221_v56 = vmul.f32 %v7681_v54, %v9516_v58  ;;  %v7683_v28 = vpop.eup %7682  ;;  %v3151_v58 = vrot.slane %v3118_v10, %v9502_v46 }
 0x9a7   :  { %3283 = vperm.xlu1 %7514, %v3223_v51   ;;  %v3225_v47 = vmul.f32 %v7683_v28, %v9521_v40  ;;  %7700 = vrcp.f32 %v3183_v33  ;;  %v3155_v40 = vrot.slane %v3118_v10, %v9494_v42 }
 0x9a8   :  { %v7685_v11 = vpop.eup %7684  ;;  %3278 = vperm.xlu0 %7515, %v3221_v56   ;;  %7702 = vrcp.f32 %v3151_v58  ;;  %v11513_v56 = vld [vmem:[#allocation63_spill] sm:$0xff] }
 0x9a9   :  { %v3207_v22 = vmul.f32 %v7685_v11, %v9552_v35  ;;  %v7687_v13 = vpop.eup %7686  ;;  %v9932_v35 = vpop.xlane.xlu1 %3953  ;;  %7704 = vrcp.f32 %v3127_v2 }
 0x9aa   :  { %v7689_v25 = vpop.eup %7688  ;;  %v3209_v49 = vmul.f32 %v7687_v13, %v9558_v45  ;;  %v3996_v45 = vrot.slane %v9932_v35, %v9476_v0  ;;  %7706 = vrcp.f32 %v3155_v40  ;;  %v4000_v27 = vrot.slane %v9932_v35, %v9479_v26 }
 0x9ab   :  { %3243 = vperm.xlu1 %7514, %v3207_v22   ;;  %v7691_v43 = vpop.eup %7690  ;;  %v3227_v36 = vmul.f32 %v7689_v25, %v9531_v20  ;;  %v3992_v20 = vrot.slane %v9932_v35, %v11447_v17  ;;  %v4004_v11 = vrot.slane %v9932_v35, %v9482_v61  ;;  %v11514_v22 = vld [vmem:[#allocation58_spill] sm:$0xff]  ;;  %v11515_v25 = vld [vmem:[#allocation64_spill] sm:$0xff]  ;;  %v3976_v40 = vrot.slane %v9944_v16, %v9485_v37 }
 0x9ac   :  { %3288 = vperm.xlu0 %7515, %v3225_v47   ;;  %v7693_v59 = vpop.eup %7692  ;;  %v3211_v52 = vmul.f32 %v7691_v43, %v11509_v60  ;;  %7708 = vrcp.f32 %v3996_v45  ;;  %v3972_v47 = vrot.slane %v9944_v16, %v9482_v61  ;;  %v11516_v43 = vld [vmem:[#allocation59_spill] sm:$0xff]  ;;  %v11517_v60 = vld [vmem:[#allocation62_spill] sm:$0xff]  ;;  %v4012_v45 = vrot.slane %v9932_v35, %v9488_v32 }
 0x9ad   :  { %v7695_v44 = vpop.eup %7694  ;;  %v3229_v12 = vmul.f32 %v7693_v59, %v11510_v62  ;;  %7710 = vrcp.f32 %v3992_v20  ;;  %v2020_v62 = vmul.f32 0.0625, %v9878_v18  ;;  %v2021_v20 = vmul.f32 0.0625, %v9888_v39 }
 0x9ae   :  { %v7697_v3 = vpop.eup %7696  ;;  %v3213_v10 = vmul.f32 %v7695_v44, %v11511_v30  ;;  %7712 = vrcp.f32 %v4000_v27  ;;  %v3980_v30 = vrot.slane %v9944_v16, %v9488_v32  ;;  %v3964_v27 = vrot.slane %v9944_v16, %v9476_v0 }
 0x9af   :  { %3248 = vperm.xlu1 %7514, %v3209_v49   ;;  %v7699_v24 = vpop.eup %7698  ;;  %v3231_v54 = vmul.f32 %v7697_v3, %v11512_v9  ;;  %7714 = vrcp.f32 %v3960_v48  ;;  %v4008_v49 = vrot.slane %v9932_v35, %v9485_v37  ;;  %v2036_v9 = vadd.f32 1e-05, %v2020_v62 }
 0x9b0   :  { %3293 = vperm.xlu0 %7515, %v3227_v36   ;;  %v3215_v28 = vmul.f32 %v7699_v24, %v11513_v56  ;;  %7716 = vrcp.f32 %v4004_v11  ;;  %v2022_v18 = vmul.f32 0.0625, %v9892_v50  ;;  %v2037_v39 = vadd.f32 1e-05, %v2021_v20  ;;  %v11522_v20 = vld [vmem:[#allocation66_spill] sm:$0xff] }
 0x9b1   :  { %v7701_v51 = vpop.eup %7700  ;;  %7718 = vrcp.f32 %v3972_v47  ;;  %v3968_v56 = vrot.slane %v9944_v16, %v9479_v26  ;;  %v11518_v47 = vld [vmem:[#allocation65_spill] sm:$0xff]  ;;  %v2029_v62 = vmul.f32 0.0625, %v9886_v38  ;;  %v2031_v38 = vmul.f32 0.0625, %v9890_v5 }
 0x9b2   :  { %v7703_v41 = vpop.eup %7702  ;;  %v3233_v33 = vmul.f32 %v7701_v51, %v11514_v22  ;;  %7720 = vrcp.f32 %v4008_v49  ;;  %v2023_v51 = vmul.f32 0.0625, %v9880_v4  ;;  %v2038_v50 = vadd.f32 1e-05, %v2022_v18 }
 0x9b3   :  { %3253 = vperm.xlu1 %7514, %v3211_v52   ;;  %v7705_v13 = vpop.eup %7704  ;;  %v3217_v58 = vmul.f32 %v7703_v41, %v11515_v25  ;;  %7722 = vrcp.f32 %v3976_v40  ;;  %v2024_v22 = vmul.f32 0.0625, %v9902_v29  ;;  %v2026_v49 = vmul.f32 0.0625, %v9910_v31  ;;  %v11520_v40 = vld [vmem:[#allocation67_spill] sm:$0xff] }
 0x9b4   :  { %3298 = vperm.xlu0 %7515, %v3229_v12   ;;  %v7707_v2 = vpop.eup %7706  ;;  %v3205_v36 = vmul.f32 %v7705_v13, %v11516_v43  ;;  %7724 = vrcp.f32 %v4012_v45  ;;  %v2039_v41 = vadd.f32 1e-05, %v2023_v51  ;;  %v4016_v13 = vrot.slane %v9932_v35, %v9502_v46 }
 0x9b5   :  { %v3219_v52 = vmul.f32 %v7707_v2, %v11517_v60  ;;  %7726 = vrcp.f32 %v3980_v30  ;;  %v2040_v29 = vadd.f32 1e-05, %v2024_v22  ;;  %v11519_v2 = vld [vmem:[#allocation70_spill] sm:$0xff]  ;;  %v2042_v45 = vadd.f32 1e-05, %v2026_v49  ;;  %v11529_v49 = vld [vmem:[#allocation69_spill] sm:$0xff] }
 0x9b6   :  { %v7709_v59 = vpop.eup %7708  ;;  %7728 = vrcp.f32 %v3964_v27  ;;  %v11523_v27 = vld [vmem:[#allocation47_spill] sm:$0xff]  ;;  %v2032_v5 = vmul.f32 0.0625, %v9935_v55  ;;  %v10020_v55 = vld [vmem:[#allocation2 + $0x20] ss:$0 sm:$0xff] }
 0x9b7   :  { %3258 = vperm.xlu1 %7514, %v3213_v10   ;;  %v7711_v44 = vpop.eup %7710  ;;  %v4056_v12 = vmul.f32 %v7709_v59, %v9620_v23  ;;  %7730 = vrsqrt.f32 %v2036_v9 }
 0x9b8   :  { %3303 = vperm.xlu0 %7515, %v3231_v54   ;;  %v7713_v3 = vpop.eup %7712  ;;  %v4054_v10 = vmul.f32 %v7711_v44, %v9618_v19  ;;  %v3984_v19 = vrot.slane %v9944_v16, %v9502_v46  ;;  %7732 = vrsqrt.f32 %v2037_v39  ;;  %v2028_v44 = vmul.f32 0.0625, %v9915_v6  ;;  %v11524_v39 = vld [vmem:[#allocation74_spill] sm:$0xff] }
 0x9b9   :  { %v7715_v24 = vpop.eup %7714  ;;  %v4058_v23 = vmul.f32 %v7713_v3, %v9630_v21  ;;  %v2025_v21 = vmul.f32 0.0625, %v9882_v1  ;;  %v2030_v6 = vmul.f32 0.0625, %v9923_v8  ;;  %v11527_v8 = vld [vmem:[#allocation51_spill] sm:$0xff] }
 0x9ba   :  { %v7717_v54 = vpop.eup %7716  ;;  %v4038_v48 = vmul.f32 %v7715_v24, %v9638_v15  ;;  %7734 = vrcp.f32 %v3984_v19  ;;  %v3988_v15 = vrot.slane %v9944_v16, %v9494_v42  ;;  %v2027_v16 = vmul.f32 0.0625, %v9884_v63 }
 0x9bb   :  { %3263 = vperm.xlu1 %7514, %v3215_v28   ;;  %v7719_v28 = vpop.eup %7718  ;;  %v4060_v11 = vmul.f32 %v7717_v54, %v9628_v14  ;;  %7736 = vrcp.f32 %v3968_v56  ;;  %v2041_v14 = vadd.f32 1e-05, %v2025_v21  ;;  %v2044_v18 = vadd.f32 1e-05, %v2028_v44 }
 0x9bc   :  { %3308 = vperm.xlu0 %7515, %v3233_v33   ;;  %v7721_v4 = vpop.eup %7720  ;;  %v4044_v33 = vmul.f32 %v7719_v28, %v9668_v57  ;;  %7738 = vrsqrt.f32 %v2038_v50  ;;  %v3187_v57 = vrot.slane %v9896_v34, %v9494_v42  ;;  %v2043_v34 = vadd.f32 1e-05, %v2027_v16  ;;  %v11526_v28 = vld [vmem:[#allocation49_spill] sm:$0xff] }
 0x9bd   :  { %v7723_v1 = vpop.eup %7722  ;;  %v4062_v25 = vmul.f32 %v7721_v4, %v11518_v47  ;;  %7740 = vrsqrt.f32 %v2039_v41  ;;  %v2045_v54 = vadd.f32 1e-05, %v2029_v62  ;;  %v11528_v47 = vld [vmem:[#allocation75_spill] sm:$0xff] }
 0x9be   :  { %7742 = vrcp.f32 %v3988_v15  ;;  %v4046_v43 = vmul.f32 %v7723_v1, %v11519_v2  ;;  %v2046_v15 = vadd.f32 1e-05, %v2030_v6  ;;  %v2033_v1 = vmul.f32 0.0625, %v9894_v53  ;;  %v11530_v2 = vld [vmem:[#allocation52_spill] sm:$0xff] }
 0x9bf   :  { %3268 = vperm.xlu1 %7514, %v3217_v58   ;;  %v7725_v58 = vpop.eup %7724  ;;  %7744 = vrcp.f32 %v4016_v13  ;;  %v2047_v13 = vadd.f32 1e-05, %v2031_v38  ;;  %v2048_v53 = vadd.f32 1e-05, %v2032_v5 }
 0x9c0   :  { %3238 = vperm.xlu0 %7515, %v3205_v36   ;;  %v4020_v36 = vrot.slane %v9932_v35, %v9494_v42  ;;  %v7727_v59 = vpop.eup %7726  ;;  %7746 = vrsqrt.f32 %v2041_v14  ;;  %v4064_v60 = vmul.f32 %v7725_v58, %v11520_v40  ;;  %v2016_v14 = vpop.xlane.xlu0 %2015 }
 0x9c1   :  { %7748 = vrsqrt.f32 %v2040_v29  ;;  %v2019_v29 = vpop.xlane.xlu1 %2018 }
 0x9c2   :  { %7750 = vrcp.f32 %v3187_v57  ;;  %v2035_v44 = vmul.f32 0.0625, %v2019_v29 }
 0x9c3   :  { %3273 = vperm.xlu1 %7514, %v3219_v52   ;;  %v7729_v52 = vpop.eup %7728  ;;  %7752 = vrcp.f32 %v4020_v36 }
 0x9c4   :  { %4116 = vperm.xlu0 %7515, %v4056_v12   ;;  %v7731_v31 = vpop.eup %7730  ;;  %v11521_v12 = vld [vmem:[#allocation72_spill] sm:$0xff]  ;;  %v4040_v30 = vmul.f32 %v7729_v52, %v11522_v20  ;;  %7754 = vrsqrt.f32 %v2042_v45  ;;  %v11531_v52 = vld [vmem:[#allocation53_spill] sm:$0xff]  ;;  %v2049_v45 = vadd.f32 1e-05, %v2033_v1  ;;  %v2051_v6 = vadd.f32 1e-05, %v2035_v44 }
 0x9c5   :  { %v7733_v63 = vpop.eup %7732  ;;  %v4048_v3 = vmul.f32 %v7727_v59, %v11521_v12  ;;  %v2068_v24 = vmul.f32 %v7731_v31, %v11523_v27  ;;  %7756 = vrsqrt.f32 %v2043_v34  ;;  %v11533_v12 = vld [vmem:[#allocation71_spill] sm:$0xff] }
 0x9c6   :  { %v7735_v35 = vpop.eup %7734  ;;  %v2069_v50 = vmul.f32 %v7733_v63, %v11526_v28  ;;  %7758 = vrsqrt.f32 %v2044_v18  ;;  %v11532_v63 = vld [vmem:[#allocation57_spill] sm:$0xff]  ;;  %v11538_v1 = vld [vmem:[#allocation11_spill] sm:$0xff] }
 0x9c7   :  { %4111 = vperm.xlu1 %7514, %v4054_v10   ;;  %v7737_v10 = vpop.eup %7736  ;;  %v4050_v51 = vmul.f32 %v7735_v35, %v11524_v39  ;;  %7760 = vrsqrt.f32 %v2045_v54  ;;  %v11535_v54 = vld [vmem:[#allocation54_spill] sm:$0xff] }
 0x9c8   :  { %4121 = vperm.xlu0 %7515, %v4058_v23   ;;  %v7739_v9 = vpop.eup %7738  ;;  %7762 = vrsqrt.f32 %v2046_v15 }
 0x9c9   :  { %v7741_v23 = vpop.eup %7740  ;;  %v2070_v41 = vmul.f32 %v7739_v9, %v11527_v8  ;;  %7764 = vrsqrt.f32 %v2047_v13 }
 0x9ca   :  { %v7743_v19 = vpop.eup %7742  ;;  %7766 = vrsqrt.f32 %v2048_v53 }
 0x9cb   :  { %4071 = vperm.xlu1 %7514, %v4038_v48   ;;  %v11525_v48 = vld [vmem:[#allocation68_spill] sm:$0xff]  ;;  %v7745_v21 = vpop.eup %7744  ;;  %7768 = vrsqrt.f32 %v2049_v45  ;;  %v11541_v45 = vld [vmem:[#allocation15_spill] sm:$0xff] }
 0x9cc   :  { %4126 = vperm.xlu0 %7515, %v4060_v11   ;;  %v4042_v56 = vmul.f32 %v7737_v10, %v11525_v48  ;;  %v10010_v11 = vld [vmem:[#allocation2 + $0x18] ss:$0 sm:$0xff]  ;;  %v7747_v22 = vpop.eup %7746  ;;  %v4066_v57 = vmul.f32 %v7745_v21, %v11529_v49  ;;  %v11539_v49 = vld [vmem:[#allocation13_spill] sm:$0xff] }
 0x9cd   :  { %v2084_v4 = vmul.f32 %v10010_v11, %v2068_v24  ;;  %v2085_v16 = vmul.f32 %v10010_v11, %v2069_v50  ;;  %v2086_v40 = vmul.f32 %v10010_v11, %v2070_v41  ;;  %v11537_v41 = vld [vmem:[#allocation73_spill] sm:$0xff] }
 0x9cf   :  { %4086 = vperm.xlu1 %7514, %v4044_v33   ;;  %v7749_v33 = vpop.eup %7748  ;;  %v2100_v59 = vadd.f32 %v10020_v55, %v2084_v4  ;;  %v2101_v35 = vadd.f32 %v10020_v55, %v2085_v16  ;;  %v2102_v18 = vadd.f32 %v10020_v55, %v2086_v40 }
 0x9d0   :  { %4131 = vperm.xlu0 %7515, %v4062_v25   ;;  %v4052_v25 = vmul.f32 %v7743_v19, %v11528_v47  ;;  %v7751_v58 = vpop.eup %7750  ;;  %v2072_v31 = vmul.f32 %v7749_v33, %v11531_v52 }
 0x9d1   :  { %v7753_v36 = vpop.eup %7752  ;;  %v3235_v34 = vmul.f32 %v7751_v58, %v11532_v63  ;;  %v2116_v9 = vmax.f32 %v2100_v59, 0.0  ;;  %v2118_v21 = vmax.f32 %v2102_v18, 0.0  ;;  %v11540_v59 = vld [vmem:[#allocation12_spill] sm:$0xff] }
 0x9d2   :  { %v7755_v62 = vpop.eup %7754 }
 0x9d3   :  { %4091 = vperm.xlu1 %7514, %v4046_v43   ;;  %v2071_v43 = vmul.f32 %v7741_v23, %v11530_v2  ;;  %v7757_v27 = vpop.eup %7756  ;;  %v2088_v23 = vmul.f32 %v10010_v11, %v2072_v31  ;;  %v2074_v38 = vmul.f32 %v7755_v62, %v11535_v54 }
 0x9d4   :  { %4136 = vperm.xlu0 %7515, %v4064_v60   ;;  %v2034_v60 = vmul.f32 0.0625, %v2016_v14  ;;  %v7759_v39 = vpop.eup %7758 }
 0x9d5   :  { %v2087_v20 = vmul.f32 %v10010_v11, %v2071_v43  ;;  %v7761_v50 = vpop.eup %7760  ;;  %v2104_v4 = vadd.f32 %v10020_v55, %v2088_v23  ;;  %v2090_v8 = vmul.f32 %v10010_v11, %v2074_v38 }
 0x9d6   :  { %v2050_v24 = vadd.f32 1e-05, %v2034_v60  ;;  %v7763_v15 = vpop.eup %7762  ;;  %v2077_v14 = vmul.f32 %v7761_v50, %v11538_v1 }
 0x9d7   :  { %4096 = vperm.xlu1 %7514, %v4048_v3   ;;  %v4068_v3 = vmul.f32 %v7753_v36, %v11533_v12  ;;  %v2103_v19 = vadd.f32 %v10020_v55, %v2087_v20  ;;  %v7765_v47 = vpop.eup %7764  ;;  %v2106_v58 = vadd.f32 %v10020_v55, %v2090_v8  ;;  %v2132_v20 = vld [vmem:[#allocation2 + $0x58] sm:$0xff] }
 0x9d8   :  { %4076 = vperm.xlu0 %7515, %v4040_v30   ;;  %v11534_v30 = vld [vmem:[#allocation48_spill] sm:$0xff]  ;;  %7770 = vrsqrt.f32 %v2050_v24  ;;  %v7767_v16 = vpop.eup %7766  ;;  %v2093_v36 = vmul.f32 %v10010_v11, %v2077_v14  ;;  %v2079_v40 = vmul.f32 %v7765_v47, %v11540_v59  ;;  %v11545_v14 = vld [vmem:[#allocation10_spill] sm:$0xff] }
 0x9d9   :  { %v2073_v10 = vmul.f32 %v7747_v22, %v11534_v30  ;;  %7772 = vrsqrt.f32 %v2051_v6  ;;  %v2076_v22 = vmul.f32 %v7759_v39, %v11537_v41  ;;  %v2119_v5 = vmax.f32 %v2103_v19, 0.0  ;;  %v7769_v53 = vpop.eup %7768  ;;  %v2133_v30 = vld [vmem:[#allocation2 + $0x60] sm:$0xff] }
 0x9da   :  { %v2122_v60 = vmax.f32 %v2106_v58, 0.0  ;;  %v2080_v44 = vmul.f32 %v7767_v16, %v11541_v45  ;;  %v2109_v62 = vadd.f32 %v10020_v55, %v2093_v36  ;;  %v2095_v12 = vmul.f32 %v10010_v11, %v2079_v40  ;;  %v11543_v6 = vld [vmem:[#allocation76_spill] sm:$0xff]  ;;  %v11548_v40 = vld [vmem:[#allocation33_spill] sm:$0xff] }
 0x9db   :  { %4101 = vperm.xlu1 %7514, %v4050_v51   ;;  %v2117_v51 = vmax.f32 %v2101_v35, 0.0  ;;  %v2089_v48 = vmul.f32 %v10010_v11, %v2073_v10  ;;  %v2092_v29 = vmul.f32 %v10010_v11, %v2076_v22 }
 0x9dc   :  { %4081 = vperm.xlu0 %7515, %v4042_v56   ;;  %v11536_v56 = vld [vmem:[#allocation50_spill] sm:$0xff]  ;;  %v2096_v18 = vmul.f32 %v10010_v11, %v2080_v44  ;;  %v2125_v54 = vmax.f32 %v2109_v62, 0.0  ;;  %v2111_v38 = vadd.f32 %v10020_v55, %v2095_v12 }
 0x9dd   :  { %v2075_v28 = vmul.f32 %v7757_v27, %v11536_v56  ;;  %v2105_v33 = vadd.f32 %v10020_v55, %v2089_v48  ;;  %v2108_v52 = vadd.f32 %v10020_v55, %v2092_v29  ;;  %v7472_v27 = vpack.c.bf16 %v2133_v30, %v2132_v20 }
 0x9de   :  { %v2112_v56 = vadd.f32 %v10020_v55, %v2096_v18  ;;  %v2127_v50 = vmax.f32 %v2111_v38, 0.0 }
 0x9df   :  { %4106 = vperm.xlu1 %7514, %v4052_v25   ;;  %v2091_v13 = vmul.f32 %v10010_v11, %v2075_v28  ;;  %v2120_v25 = vmax.f32 %v2104_v4, 0.0  ;;  %v2121_v2 = vmax.f32 %v2105_v33, 0.0  ;;  %v2124_v24 = vmax.f32 %v2108_v52, 0.0  ;;  %7473 = vmatprep.subr.bf16.mxu1 %v7472_v27 }
 0x9e0   :  { %4141 = vperm.xlu0 %7515, %v4066_v57   ;;  %v2078_v57 = vmul.f32 %v7763_v15, %v11539_v49  ;;  %7475 = vmatpush3.bf16.msra.mxu1 %v7472_v27  ;;  %v2128_v8 = vmax.f32 %v2112_v56, 0.0  ;;  %v11551_v56 = vld [vmem:[#allocation40_spill] sm:$0xff] }
 0x9e1   :  { %v2107_v43 = vadd.f32 %v10020_v55, %v2091_v13 }
 0x9e2   :  { %v2094_v31 = vmul.f32 %v10010_v11, %v2078_v57  ;;  %v7771_v63 = vpop.eup %7770 }
 0x9e3   :  { %3313 = vperm.xlu1 %7514, %v3235_v34   ;;  %v2123_v34 = vmax.f32 %v2107_v43, 0.0  ;;  %v7773_v10 = vpop.eup %7772  ;;  %v2082_v23 = vmul.f32 %v7771_v63, %v11543_v6  ;;  %v11547_v43 = vld [vmem:[#allocation38_spill] sm:$0xff] }
 0x9e4   :  { %4146 = vperm.xlu0 %7515, %v4068_v3   ;;  %v11542_v3 = vld [vmem:[#allocation14_spill] sm:$0xff] }
 0x9e5   :  { %v2081_v35 = vmul.f32 %v7769_v53, %v11542_v3  ;;  %v2098_v28 = vmul.f32 %v10010_v11, %v2082_v23  ;;  %v11549_v3 = vld [vmem:[#allocation43_spill] sm:$0xff] }
 0x9e7   :  { %2155 = vrot.lane.b32.xlu1 %v2116_v9, %s7967_s12  ;;  %v2110_v9 = vadd.f32 %v10020_v55, %v2094_v31  ;;  %v2097_v39 = vmul.f32 %v10010_v11, %v2081_v35  ;;  %v2114_v41 = vadd.f32 %v10020_v55, %v2098_v28 }
 0x9e8   :  { %2157 = vrot.lane.b32.xlu0 %v2117_v51, %s7967_s12  ;;  %v11544_v51 = vld [vmem:[#allocation77_spill] sm:$0xff] }
 0x9e9   :  { %v2083_v19 = vmul.f32 %v7773_v10, %v11544_v51  ;;  %v2126_v48 = vmax.f32 %v2110_v9, 0.0  ;;  %v11550_v10 = vld [vmem:[#allocation35_spill] sm:$0xff] }
 0x9eb   :  { %2159 = vrot.lane.b32.xlu1 %v2118_v21, %s7967_s12  ;;  %v2113_v21 = vadd.f32 %v10020_v55, %v2097_v39  ;;  %v2099_v4 = vmul.f32 %v10010_v11, %v2083_v19  ;;  %v10082_v11 = vld [vmem:[#allocation2 + $0x88] sm:$0xff] }
 0x9ec   :  { %2161 = vrot.lane.b32.xlu0 %v2119_v5, %s7967_s12  ;;  %v2130_v5 = vmax.f32 %v2114_v41, 0.0  ;;  %7417 = vmatprep.subr.mxu1 %v10082_v11 }
 0x9ed   :  { %v2129_v22 = vmax.f32 %v2113_v21, 0.0  ;;  %v2115_v15 = vadd.f32 %v10020_v55, %v2099_v4  ;;  %v11546_v55 = vld [vmem:[#allocation32_spill] sm:$0xff]  ;;  %v11552_v4 = vld [vmem:[#allocation37_spill] sm:$0xff] }
 0x9ef   :  { %2163 = vrot.lane.b32.xlu1 %v2120_v25, %s7967_s12  ;;  %v2131_v33 = vmax.f32 %v2115_v15, 0.0 }
 0x9f0   :  { %2165 = vrot.lane.b32.xlu0 %v2121_v2, %s7967_s12 }
 0x9f3   :  { %2167 = vrot.lane.b32.xlu1 %v2122_v60, %s7967_s12 }
 0x9f4   :  { %2169 = vrot.lane.b32.xlu0 %v2123_v34, %s7967_s12 }
 0x9f7   :  { %2171 = vrot.lane.b32.xlu1 %v2124_v24, %s7967_s12 }
 0x9f8   :  { %2173 = vrot.lane.b32.xlu0 %v2125_v54, %s7967_s12 }
 0x9fb   :  { %2175 = vrot.lane.b32.xlu1 %v2126_v48, %s7967_s12 }
 0x9fc   :  { %2177 = vrot.lane.b32.xlu0 %v2127_v50, %s7967_s12 }
 0x9ff   :  { %2179 = vrot.lane.b32.xlu1 %v2128_v8, %s7967_s12 }
 0xa00   :  { %2181 = vrot.lane.b32.xlu0 %v2129_v22, %s7967_s12 }
 0xa03   :  { %2183 = vrot.lane.b32.xlu1 %v2130_v5, %s7967_s12 }
 0xa04   :  { %2185 = vrot.lane.b32.xlu0 %v2131_v33, %s7967_s12 }
 0xa26   :  { %v3284_v13 = vpop.permute.xlu1 %3283 }
 0xa27   :  { %v3279_v1 = vpop.permute.xlu0 %3278  ;;  %v3325_v47 = vmul.f32 %v3284_v13, %v11545_v14 }
 0xa28   :  { %v3324_v25 = vmul.f32 %v3279_v1, %v11546_v55 }
 0xa29   :  { %v3396_v58 = vsel %vm3332_vm12, %v3325_v47, 0.0 }
 0xa2a   :  { %v3389_v29 = vsel %vm3332_vm12, %v3324_v25, 0.0  ;;  %v3397_v49 = vrot.slane %v3396_v58, 4  ;;  %v3244_v57 = vpop.permute.xlu1 %3243 }
 0xa2b   :  { %v3390_v16 = vrot.slane %v3389_v29, 4  ;;  %v3289_v2 = vpop.permute.xlu0 %3288  ;;  %v3317_v36 = vmul.f32 %v3244_v57, %v11547_v43 }
 0xa2c   :  { %v3398_v59 = vadd.f32 %v3397_v49, %v3396_v58  ;;  %v3326_v53 = vmul.f32 %v3289_v2, %v11548_v40  ;;  %v11553_v2 = vld [vmem:[#allocation39_spill] sm:$0xff] }
 0xa2d   :  { %v3391_v60 = vadd.f32 %v3390_v16, %v3389_v29  ;;  %v3340_v52 = vsel %vm3332_vm12, %v3317_v36, 0.0 }
 0xa2e   :  { %v3399_v31 = vrot.slane %v3398_v59, 2  ;;  %v3403_v45 = vsel %vm3332_vm12, %v3326_v53, 0.0  ;;  %v3341_v44 = vrot.slane %v3340_v52, 4  ;;  %v3249_v63 = vpop.permute.xlu1 %3248 }
 0xa2f   :  { %v3392_v34 = vrot.slane %v3391_v60, 2  ;;  %v3404_v62 = vrot.slane %v3403_v45, 4  ;;  %v3294_v12 = vpop.permute.xlu0 %3293  ;;  %v3318_v35 = vmul.f32 %v3249_v63, %v11549_v3 }
 0xa30   :  { %v3400_v20 = vadd.f32 %v3399_v31, %v3398_v59  ;;  %v3342_v30 = vadd.f32 %v3341_v44, %v3340_v52  ;;  %v3327_v27 = vmul.f32 %v3294_v12, %v11550_v10 }
 0xa31   :  { %v3393_v24 = vadd.f32 %v3392_v34, %v3391_v60  ;;  %v3405_v9 = vadd.f32 %v3404_v62, %v3403_v45  ;;  %v3347_v18 = vsel %vm3332_vm12, %v3318_v35, 0.0  ;;  %v11554_v60 = vld [vmem:[#allocation42_spill] sm:$0xff] }
 0xa32   :  { %v3343_v6 = vrot.slane %v3342_v30, 2  ;;  %v3410_v23 = vsel %vm3332_vm12, %v3327_v27, 0.0  ;;  %v3348_v54 = vrot.slane %v3347_v18, 4  ;;  %v3254_v38 = vpop.permute.xlu1 %3253  ;;  %v3401_v39 = vrot.slane %v3400_v20, 1  ;;  %v11555_v27 = vld [vmem:[#allocation41_spill] sm:$0xff] }
 0xa33   :  { %v3406_v51 = vrot.slane %v3405_v9, 2  ;;  %v3411_v19 = vrot.slane %v3410_v23, 4  ;;  %v3299_v48 = vpop.permute.xlu0 %3298  ;;  %v3319_v28 = vmul.f32 %v3254_v38, %v11551_v56  ;;  %v3394_v50 = vrot.slane %v3393_v24, 1 }
 0xa34   :  { %v3349_v21 = vadd.f32 %v3348_v54, %v3347_v18  ;;  %v3328_v8 = vmul.f32 %v3299_v48, %v11552_v4  ;;  %v3344_v5 = vadd.f32 %v3343_v6, %v3342_v30  ;;  %v3402_v47 = vadd.f32 %v3401_v39, %v3400_v20 }
 0xa35   :  { %v3407_v41 = vadd.f32 %v3406_v51, %v3405_v9  ;;  %v3412_v22 = vadd.f32 %v3411_v19, %v3410_v23  ;;  %v3354_v15 = vsel %vm3332_vm12, %v3319_v28, 0.0  ;;  %v3395_v49 = vadd.f32 %v3394_v50, %v3393_v24  ;;  %v11556_v51 = vld [vmem:[#allocation44_spill] sm:$0xff] }
 0xa36   :  { %v3417_v33 = vsel %vm3332_vm12, %v3328_v8, 0.0  ;;  %v3355_v13 = vrot.slane %v3354_v15, 4  ;;  %v3259_v1 = vpop.permute.xlu1 %3258  ;;  %v3350_v25 = vrot.slane %v3349_v21, 2  ;;  %v3345_v31 = vrot.slane %v3344_v5, 1 }
 0xa37   :  { %v3418_v58 = vrot.slane %v3417_v33, 4  ;;  %v3304_v29 = vpop.permute.xlu0 %3303  ;;  %v3408_v57 = vrot.slane %v3407_v41, 1  ;;  %v3413_v59 = vrot.slane %v3412_v22, 2  ;;  %v3320_v52 = vmul.f32 %v3259_v1, %v11554_v60  ;;  %v11558_v1 = vld [vmem:[#allocation45_spill] sm:$0xff] }
 0xa38   :  { %v3356_v16 = vadd.f32 %v3355_v13, %v3354_v15  ;;  %v3329_v36 = vmul.f32 %v3304_v29, %v11553_v2  ;;  %v3351_v34 = vadd.f32 %v3350_v25, %v3349_v21  ;;  %v4301_v35 = vsel %vm2813_vm5, %v3402_v47, %v3395_v49 }
 0xa39   :  { %v3419_v53 = vadd.f32 %v3418_v58, %v3417_v33  ;;  %v3409_v20 = vadd.f32 %v3408_v57, %v3407_v41  ;;  %v3361_v30 = vsel %vm3332_vm12, %v3320_v52, 0.0  ;;  %v3414_v9 = vadd.f32 %v3413_v59, %v3412_v22  ;;  %v11557_v33 = vld [vmem:[#allocation36_spill] sm:$0xff] }
 0xa3a   :  { %v3357_v45 = vrot.slane %v3356_v16, 2  ;;  %v3424_v44 = vsel %vm3332_vm12, %v3329_v36, 0.0  ;;  %v3264_v63 = vpop.permute.xlu1 %3263  ;;  %v3362_v23 = vrot.slane %v3361_v30, 4  ;;  %v10107_v54 = vadd.f32 %v3345_v31, %v3344_v5 }
 0xa3b   :  { %v3425_v62 = vrot.slane %v3424_v44, 4  ;;  %v3309_v12 = vpop.permute.xlu0 %3308  ;;  %v3420_v18 = vrot.slane %v3419_v53, 2  ;;  %v3321_v19 = vmul.f32 %v3264_v63, %v11556_v51  ;;  %v3352_v28 = vrot.slane %v3351_v34, 1 }
 0xa3c   :  { %v3330_v24 = vmul.f32 %v3309_v12, %v11555_v27  ;;  %v3358_v38 = vadd.f32 %v3357_v45, %v3356_v16  ;;  %v3363_v21 = vadd.f32 %v3362_v23, %v3361_v30  ;;  %v4302_v15 = vsel %vm2815_vm6, %v3409_v20, %v4301_v35  ;;  %v11559_v20 = vld [vmem:[#allocation46_spill] sm:$0xff] }
 0xa3d   :  { %v3426_v6 = vadd.f32 %v3425_v62, %v3424_v44  ;;  %v3368_v22 = vsel %vm3332_vm12, %v3321_v19, 0.0  ;;  %v3415_v47 = vrot.slane %v3414_v9, 1  ;;  %v3421_v25 = vadd.f32 %v3420_v18, %v3419_v53 }
 0xa3e   :  { %v3431_v39 = vsel %vm3332_vm12, %v3330_v24, 0.0  ;;  %v3269_v48 = vpop.permute.xlu1 %3268  ;;  %v3364_v58 = vrot.slane %v3363_v21, 2  ;;  %v3359_v49 = vrot.slane %v3358_v38, 1  ;;  %v3369_v57 = vrot.slane %v3368_v22, 4 }
 0xa3f   :  { %v3427_v50 = vrot.slane %v3426_v6, 2  ;;  %v3432_v8 = vrot.slane %v3431_v39, 4  ;;  %v3239_v41 = vpop.permute.xlu0 %3238  ;;  %v3322_v5 = vmul.f32 %v3269_v48, %v11558_v1  ;;  %v3416_v30 = vadd.f32 %v3415_v47, %v3414_v9 }
 0xa40   :  { %v3316_v13 = vmul.f32 %v3239_v41, %v11557_v33  ;;  %v3365_v31 = vadd.f32 %v3364_v58, %v3363_v21  ;;  %v3370_v62 = vadd.f32 %v3369_v57, %v3368_v22  ;;  %v10119_v24 = vadd.f32 %v3352_v28, %v3351_v34 }
 0xa41   :  { %v3433_v29 = vadd.f32 %v3432_v8, %v3431_v39  ;;  %v3375_v36 = vsel %vm3332_vm12, %v3322_v5, 0.0  ;;  %v3428_v52 = vadd.f32 %v3427_v50, %v3426_v6  ;;  %v3422_v21 = vrot.slane %v3421_v25, 1 }
 0xa42   :  { %v3333_v16 = vsel %vm3332_vm12, %v3316_v13, 0.0  ;;  %v3274_v59 = vpop.permute.xlu1 %3273  ;;  %v3376_v12 = vrot.slane %v3375_v36, 4  ;;  %v3371_v39 = vrot.slane %v3370_v62, 2  ;;  %v10123_v8 = vadd.f32 %v3359_v49, %v3358_v38 }
 0xa43   :  { %v3434_v45 = vrot.slane %v3433_v29, 2  ;;  %v3334_v44 = vrot.slane %v3333_v16, 4  ;;  %v4117_v63 = vpop.permute.xlu0 %4116  ;;  %v3323_v53 = vmul.f32 %v3274_v59, %v11559_v20  ;;  %v3429_v13 = vrot.slane %v3428_v52, 1 }
 0xa44   :  { %v4158_v35 = vmul.f32 %v4117_v63, %v11545_v14  ;;  %v3377_v19 = vadd.f32 %v3376_v12, %v3375_v36  ;;  %v3366_v5 = vrot.slane %v3365_v31, 1 }
 0xa45   :  { %v3435_v18 = vadd.f32 %v3434_v45, %v3433_v29  ;;  %v3335_v23 = vadd.f32 %v3334_v44, %v3333_v16  ;;  %v3382_v6 = vsel %vm3332_vm12, %v3323_v53, 0.0  ;;  %v10127_v16 = vadd.f32 %v3371_v39, %v3370_v62 }
 0xa46   :  { %v4229_v48 = vsel %vm4165_vm13, %v4158_v35, 0.0  ;;  %v4112_v50 = vpop.permute.xlu1 %4111  ;;  %v3383_v9 = vrot.slane %v3382_v6, 4  ;;  %v3378_v47 = vrot.slane %v3377_v19, 2  ;;  %v10131_v35 = vadd.f32 %v3422_v21, %v3421_v25 }
 0xa47   :  { %v3336_v41 = vrot.slane %v3335_v23, 2  ;;  %v4230_v22 = vrot.slane %v4229_v48, 4  ;;  %v4122_v14 = vpop.permute.xlu0 %4121  ;;  %v4157_v29 = vmul.f32 %v4112_v50, %v11546_v55  ;;  %v3436_v57 = vrot.slane %v3435_v18, 1 }
 0xa48   :  { %v4159_v34 = vmul.f32 %v4122_v14, %v11548_v40  ;;  %v3384_v36 = vadd.f32 %v3383_v9, %v3382_v6  ;;  %v10133_v40 = vadd.f32 %v3429_v13, %v3428_v52  ;;  %v10136_v55 = vsel %vm2817_vm7, %v3416_v30, %v4302_v15 }
 0xa49   :  { %v3337_v28 = vadd.f32 %v3336_v41, %v3335_v23  ;;  %v4231_v58 = vadd.f32 %v4230_v22, %v4229_v48  ;;  %v4222_v63 = vsel %vm4165_vm13, %v4157_v29, 0.0  ;;  %v3379_v62 = vadd.f32 %v3378_v47, %v3377_v19 }
 0xa4a   :  { %v4236_v38 = vsel %vm4165_vm13, %v4159_v34, 0.0  ;;  %v4072_v49 = vpop.permute.xlu1 %4071  ;;  %v4223_v53 = vrot.slane %v4222_v63, 4  ;;  %v3385_v23 = vrot.slane %v3384_v36, 2  ;;  %v10139_v6 = vadd.f32 %v3366_v5, %v3365_v31 }
 0xa4b   :  { %v3338_v59 = vrot.slane %v3337_v28, 1  ;;  %v4232_v45 = vrot.slane %v4231_v58, 2  ;;  %v4237_v44 = vrot.slane %v4236_v38, 4  ;;  %v4127_v12 = vpop.permute.xlu0 %4126  ;;  %v4149_v22 = vmul.f32 %v4072_v49, %v11557_v33 }
 0xa4c   :  { %v4160_v48 = vmul.f32 %v4127_v12, %v11550_v10  ;;  %v4224_v41 = vadd.f32 %v4223_v53, %v4222_v63  ;;  %v10142_v25 = vadd.f32 %v3436_v57, %v3435_v18  ;;  %v3373_v52 = vrot.slane %v10127_v16, 1 }
 0xa4d   :  { %v4238_v39 = vadd.f32 %v4237_v44, %v4236_v38  ;;  %v3339_v50 = vadd.f32 %v3338_v59, %v3337_v28  ;;  %v4233_v21 = vadd.f32 %v4232_v45, %v4231_v58  ;;  %v4166_v10 = vsel %vm4165_vm13, %v4149_v22, 0.0 }
 0xa4e   :  { %v4087_v14 = vpop.permute.xlu1 %4086  ;;  %v4243_v15 = vsel %vm4165_vm13, %v4160_v48, 0.0  ;;  %v4225_v13 = vrot.slane %v4224_v41, 2  ;;  %v3380_v31 = vrot.slane %v3379_v62, 1  ;;  %v3386_v5 = vadd.f32 %v3385_v23, %v3384_v36 }
 0xa4f   :  { %v4132_v30 = vpop.permute.xlu0 %4131  ;;  %v4239_v19 = vrot.slane %v4238_v39, 2  ;;  %v4244_v9 = vrot.slane %v4243_v15, 4  ;;  %v4167_v34 = vrot.slane %v4166_v10, 4  ;;  %v4294_v33 = vsel %vm2813_vm5, %v10107_v54, %v3339_v50 }
 0xa50   :  { %v4161_v28 = vmul.f32 %v4132_v30, %v11552_v4  ;;  %v4226_v18 = vadd.f32 %v4225_v13, %v4224_v41  ;;  %v4152_v58 = vmul.f32 %v4087_v14, %v11551_v56  ;;  %v4234_v57 = vrot.slane %v4233_v21, 1 }
 0xa51   :  { %v4245_v47 = vadd.f32 %v4244_v9, %v4243_v15  ;;  %v4168_v38 = vadd.f32 %v4167_v34, %v4166_v10  ;;  %v4240_v44 = vadd.f32 %v4239_v19, %v4238_v39  ;;  %v3387_v48 = vrot.slane %v3386_v5, 1 }
 0xa52   :  { %v4092_v29 = vpop.permute.xlu1 %4091  ;;  %v4250_v49 = vsel %vm4165_vm13, %v4161_v28, 0.0  ;;  %v4187_v4 = vsel %vm4165_vm13, %v4152_v58, 0.0  ;;  %v4227_v12 = vrot.slane %v4226_v18, 1  ;;  %v3374_v19 = vadd.f32 %v3373_v52, %v10127_v16 }
 0xa53   :  { %v4137_v59 = vpop.permute.xlu0 %4136  ;;  %v4153_v45 = vmul.f32 %v4092_v29, %v11554_v60  ;;  %v4246_v36 = vrot.slane %v4245_v47, 2  ;;  %v4251_v63 = vrot.slane %v4250_v49, 4  ;;  %v4169_v53 = vrot.slane %v4168_v38, 2 }
 0xa54   :  { %v4188_v54 = vrot.slane %v4187_v4, 4  ;;  %v4162_v23 = vmul.f32 %v4137_v59, %v11553_v2  ;;  %v4241_v13 = vrot.slane %v4240_v44, 1  ;;  %v3381_v34 = vadd.f32 %v3380_v31, %v3379_v62 }
 0xa55   :  { %v4247_v56 = vadd.f32 %v4246_v36, %v4245_v47  ;;  %v4252_v50 = vadd.f32 %v4251_v63, %v4250_v49  ;;  %v4194_v41 = vsel %vm4165_vm13, %v4153_v45, 0.0  ;;  %v4170_v14 = vadd.f32 %v4169_v53, %v4168_v38 }
 0xa56   :  { %v4097_v22 = vpop.permute.xlu1 %4096  ;;  %v4189_v15 = vadd.f32 %v4188_v54, %v4187_v4  ;;  %v4257_v60 = vsel %vm4165_vm13, %v4162_v23, 0.0  ;;  %v4195_v39 = vrot.slane %v4194_v41, 4  ;;  %v4228_v28 = vadd.f32 %v4227_v12, %v4226_v18 }
 0xa57   :  { %v4077_v30 = vpop.permute.xlu0 %4076  ;;  %v4253_v9 = vrot.slane %v4252_v50, 2  ;;  %v4258_v10 = vrot.slane %v4257_v60, 4  ;;  %v4295_v47 = vsel %vm2815_vm6, %v10119_v24, %v4294_v33  ;;  %v4235_v58 = vadd.f32 %v4234_v57, %v4233_v21 }
 0xa58   :  { %v4196_v2 = vadd.f32 %v4195_v39, %v4194_v41  ;;  %v4248_v29 = vrot.slane %v4247_v56, 1  ;;  %v4296_v38 = vsel %vm2817_vm7, %v10123_v8, %v4295_v47  ;;  %v4171_v45 = vrot.slane %v4170_v14, 1 }
 0xa59   :  { %v4259_v49 = vadd.f32 %v4258_v10, %v4257_v60  ;;  %v4190_v36 = vrot.slane %v4189_v15, 2  ;;  %v3388_v63 = vadd.f32 %v3387_v48, %v3386_v5  ;;  %v4297_v16 = vsel %vm2819_vm8, %v10139_v6, %v4296_v38 }
 0xa5a   :  { %v4102_v59 = vpop.permute.xlu1 %4101  ;;  %v10164_v62 = vadd.f32 %v4241_v13, %v4240_v44  ;;  %v10166_v31 = vadd.f32 %v4253_v9, %v4252_v50  ;;  %v4298_v24 = vsel %vm2821_vm9, %v3374_v19, %v4297_v16  ;;  %v4150_v21 = vmul.f32 %v4077_v30, %v11547_v43 }
 0xa5b   :  { %v4082_v52 = vpop.permute.xlu0 %4081  ;;  %v10171_v33 = vsel %vm2813_vm5, %v4235_v58, %v4228_v28  ;;  %v4197_v8 = vrot.slane %v4196_v2, 2  ;;  %v4299_v18 = vsel %vm2823_vm10, %v3381_v34, %v4298_v24  ;;  %v4154_v5 = vmul.f32 %v4097_v22, %v11556_v51  ;;  %v11560_v58 = vld [vmem:[#allocation34_spill] sm:$0xff] }
 0xa5c   :  { %v10175_v57 = vadd.f32 %v4248_v29, %v4247_v56  ;;  %v4260_v6 = vrot.slane %v4259_v49, 2  ;;  %v4300_v44 = vsel %vm2825_vm11, %v3388_v63, %v4299_v18  ;;  %v4173_v4 = vsel %vm4165_vm13, %v4150_v21, 0.0 }
 0xa5d   :  { %v10179_v53 = vadd.f32 %v4171_v45, %v4170_v14  ;;  %v10181_v54 = vadd.f32 %v4190_v36, %v4189_v15  ;;  %4308 = vrot.lane.b32.xlu1 %v4300_v44, %s7966_s1  ;;  %v4174_v43 = vrot.slane %v4173_v4, 4  ;;  %v4201_v23 = vsel %vm4165_vm13, %v4154_v5, 0.0 }
 0xa5e   :  { %v4107_v12 = vpop.permute.xlu1 %4106  ;;  %v4255_v51 = vrot.slane %v10166_v31, 1  ;;  %v4202_v56 = vrot.slane %v4201_v23, 4  ;;  %v4151_v50 = vmul.f32 %v4082_v52, %v11549_v3  ;;  %v4155_v41 = vmul.f32 %v4102_v59, %v11558_v1 }
 0xa5f   :  { %v4142_v48 = vpop.permute.xlu0 %4141  ;;  %v10188_v22 = vadd.f32 %v4197_v8, %v4196_v2  ;;  %v4175_v60 = vadd.f32 %v4174_v43, %v4173_v4  ;;  %v4156_v15 = vmul.f32 %v4107_v12, %v11559_v20  ;;  %v10192_v39 = vadd.f32 %v4260_v6, %v4259_v49 }
 0xa60   :  { %v4163_v14 = vmul.f32 %v4142_v48, %v11555_v27  ;;  %v4203_v30 = vadd.f32 %v4202_v56, %v4201_v23  ;;  %v4180_v19 = vsel %vm4165_vm13, %v4151_v50, 0.0  ;;  %v4208_v13 = vsel %vm4165_vm13, %v4155_v41, 0.0 }
 0xa61   :  { %v4176_v10 = vrot.slane %v4175_v60, 2  ;;  %v4181_v34 = vrot.slane %v4180_v19, 4  ;;  %v4209_v3 = vrot.slane %v4208_v13, 4  ;;  %v4215_v27 = vsel %vm4165_vm13, %v4156_v15, 0.0 }
 0xa62   :  { %v3314_v9 = vpop.permute.xlu1 %3313  ;;  %v4264_v1 = vsel %vm4165_vm13, %v4163_v14, 0.0  ;;  %v4204_v2 = vrot.slane %v4203_v30, 2  ;;  %v4216_v59 = vrot.slane %v4215_v27, 4  ;;  %v4192_v6 = vrot.slane %v10181_v54, 1 }
 0xa63   :  { %v4147_v28 = vpop.permute.xlu0 %4146  ;;  %v4265_v47 = vrot.slane %v4264_v1, 4  ;;  %v4177_v29 = vadd.f32 %v4176_v10, %v4175_v60  ;;  %v4182_v49 = vadd.f32 %v4181_v34, %v4180_v19  ;;  %v4210_v38 = vadd.f32 %v4209_v3, %v4208_v13 }
 0xa64   :  { %v4164_v20 = vmul.f32 %v4147_v28, %v11560_v58  ;;  %v4205_v45 = vadd.f32 %v4204_v2, %v4203_v30  ;;  %v3331_v16 = vmul.f32 %v3314_v9, %v11560_v58  ;;  %v4217_v18 = vadd.f32 %v4216_v59, %v4215_v27  ;;  %v4353_v2 = vld [vmem:[#allocation2 + $0x80] sm:$0xff] }
 0xa65   :  { %v4266_v36 = vadd.f32 %v4265_v47, %v4264_v1  ;;  %v4178_v24 = vrot.slane %v4177_v29, 1  ;;  %v4183_v21 = vrot.slane %v4182_v49, 2  ;;  %v4211_v8 = vrot.slane %v4210_v38, 2 }
 0xa66   :  { %v4271_v63 = vsel %vm4165_vm13, %v4164_v20, 0.0  ;;  %v2156_v52 = vpop.permute.xlu1 %2155  ;;  %v3438_v12 = vsel %vm3332_vm12, %v3331_v16, 0.0  ;;  %v4199_v43 = vrot.slane %v10188_v22, 1  ;;  %v4218_v56 = vrot.slane %v4217_v18, 2 }
 0xa67   :  { %v2158_v5 = vpop.permute.xlu0 %2157  ;;  %7388 = vmatprep.mubr.msk.f32.mxu1 %vm682_vm15, %v2156_v52  ;;  %v4267_v44 = vrot.slane %v4266_v36, 2  ;;  %v4272_v4 = vrot.slane %v4271_v63, 4  ;;  %v4184_v23 = vadd.f32 %v4183_v21, %v4182_v49  ;;  %v4212_v48 = vadd.f32 %v4211_v8, %v4210_v38 }
 0xa68   :  { %7389 = vmatmul.mubr.msk.f32.vlgmr.msra.gmra.mrb[16].mxu1 %vm682_vm15, %v2158_v5  ;;  %v4179_v50 = vadd.f32 %v4178_v24, %v4177_v29  ;;  %v3439_v14 = vrot.slane %v3438_v12, 4  ;;  %v4262_v30 = vrot.slane %v10192_v39, 1  ;;  %v4206_v19 = vrot.slane %v4205_v45, 1 }
 0xa69   :  { %7418 = vmatpush3.msra.mxu1 %v10082_v11  ;;  %v4268_v41 = vadd.f32 %v4267_v44, %v4266_v36  ;;  %v4273_v60 = vadd.f32 %v4272_v4, %v4271_v63  ;;  %v4185_v13 = vrot.slane %v4184_v23, 1  ;;  %v4219_v9 = vadd.f32 %v4218_v56, %v4217_v18  ;;  %v4352_v11 = vld [vmem:[#allocation2 + $0x78] sm:$0xff] }
 0xa6a   :  { %v2160_v15 = vpop.permute.xlu1 %2159  ;;  %v4256_v34 = vadd.f32 %v4255_v51, %v10166_v31  ;;  %v4193_v3 = vadd.f32 %v4192_v6, %v10181_v54  ;;  %v3440_v28 = vadd.f32 %v3439_v14, %v3438_v12  ;;  %v4213_v27 = vrot.slane %v4212_v48, 1 }
 0xa6b   :  { %v2162_v10 = vpop.permute.xlu0 %2161  ;;  %7391 = vmatprep.mubr.msk.f32.mxu1 %vm682_vm15, %v2160_v15  ;;  %v4274_v1 = vrot.slane %v4273_v60, 2  ;;  %v4186_v47 = vadd.f32 %v4185_v13, %v4184_v23  ;;  %v4269_v58 = vrot.slane %v4268_v41, 1  ;;  %v4220_v20 = vrot.slane %v4219_v9, 1 }
 0xa6c   :  { %7392 = vmatmul.mubr.msk.f32.gmra.mrb[18].mxu1 %vm682_vm15, %v2162_v10  ;;  %v4200_v29 = vadd.f32 %v4199_v43, %v10188_v22  ;;  %v4330_v49 = vsel %vm2813_vm5, %v4179_v50, %v10179_v53  ;;  %v3441_v59 = vrot.slane %v3440_v28, 2  ;;  %v4263_v54 = vadd.f32 %v4262_v30, %v10192_v39  ;;  %v7913_v10 = vld [vmem:[%s11296_s0 + $0x8] sm:$0xff] }
 0xa6d   :  { %v4275_v38 = vadd.f32 %v4274_v1, %v4273_v60  ;;  %v4207_v51 = vadd.f32 %v4206_v19, %v4205_v45  ;;  %v4331_v36 = vsel %vm2815_vm6, %v4186_v47, %v4330_v49  ;;  %v7476_v16 = vpack.c.bf16 %v4353_v2, %v4352_v11 }
 0xa6e   :  { %v2164_v31 = vpop.permute.xlu1 %2163  ;;  %v3442_v24 = vadd.f32 %v3441_v59, %v3440_v28  ;;  %v4221_v21 = vadd.f32 %v4220_v20, %v4219_v9  ;;  %v4332_v22 = vsel %vm2817_vm7, %v4193_v3, %v4331_v36  ;;  %v4214_v53 = vadd.f32 %v4213_v27, %v4212_v48  ;;  %v7912_v9 = vld [vmem:[%s11296_s0] sm:$0xff]  ;;  %s7971_s0 = smov [#allocation5]  }
 0xa6f   :  { %v2166_v63 = vpop.permute.xlu0 %2165  ;;  %7394 = vmatprep.mubr.msk.f32.mxu1 %vm682_vm15, %v2164_v31  ;;  %v4276_v52 = vrot.slane %v4275_v38, 1  ;;  %v4270_v8 = vadd.f32 %v4269_v58, %v4268_v41  ;;  %v4333_v18 = vsel %vm2819_vm8, %v4200_v29, %v4332_v22  ;;  %v4338_v39 = vsel %vm2815_vm6, %v10164_v62, %v10171_v33  ;;  %7477 = vmatprep.subr.bf16.mxu1 %v7476_v16  ;;  %s7095_s21 = sshll.u32 %s7971_s0, 4  ;;  %s7096_s21 = int_to_ptr.vmem [resolvable:$true] %s7095_s21 }
 0xa70   :  { %7395 = vmatmul.mubr.msk.f32.gmra.mrb[20].mxu1 %vm682_vm15, %v2166_v63  ;;  %v3443_v45 = vrot.slane %v3442_v24, 1  ;;  %v4334_v5 = vsel %vm2821_vm9, %v4207_v51, %v4333_v18  ;;  %v4339_v4 = vsel %vm2817_vm7, %v10175_v57, %v4338_v39  ;;  %v4304_v23 = vsel %vm2819_vm8, %v10131_v35, %v10136_v55  ;;  %s7936_s22 = scalar_lea.vmem %s7096_s21, 256  ;;  %p7941_p9 = scmp.lt.s32.totalorder %s7096_s21, %s7096_s21 }
 0xa71   :  { %v4277_v44 = vadd.f32 %v4276_v52, %v4275_v38  ;;  %v4335_v12 = vsel %vm2823_vm10, %v4214_v53, %v4334_v5  ;;  %v4340_v62 = vsel %vm2819_vm8, %v4256_v34, %v4339_v4  ;;  %v4305_v56 = vsel %vm2821_vm9, %v10133_v40, %v4304_v23  ;;  %p7937_p8 = scmp.ne.s32.totalorder %s7096_s21, %s7936_s22  ;;  %p7942_p10 = scmp.lt.s32.totalorder %s7936_s22, %s7936_s22 }
 0xa72   :  { %v2168_v6 = vpop.permute.xlu1 %2167  ;;  %v4336_v33 = vsel %vm2825_vm11, %v4221_v21, %v4335_v12  ;;  %v3444_v48 = vadd.f32 %v3443_v45, %v3442_v24  ;;  %v4341_v50 = vsel %vm2821_vm9, %v4263_v54, %v4340_v62  ;;  %v4306_v57 = vsel %vm2823_vm10, %v10142_v25, %v4305_v56  ;;  %v7185_v21 = vld [vmem:[#allocation2 + $0x90] ss:$0 sm:$0xff] }
 0xa73   :  { %v2170_v43 = vpop.permute.xlu0 %2169  ;;  %7397 = vmatprep.mubr.msk.f32.mxu1 %vm682_vm15, %v2168_v6  ;;  %4344 = vrot.lane.b32.xlu0 %v4336_v33, %s7966_s1  ;;  %v4342_v35 = vsel %vm2823_vm10, %v4270_v8, %v4341_v50  ;;  %p7943_p11 = por %p7942_p10, %p7941_p9 }
 0xa74   :  { %7398 = vmatmul.mubr.msk.f32.gmra.mrb[22].mxu1 %vm682_vm15, %v2170_v43  ;;  %v4307_v55 = vsel %vm2825_vm11, %v3444_v48, %v4306_v57  ;;  %v4343_v41 = vsel %vm2825_vm11, %v4277_v44, %v4342_v35  ;;  %v4572_v57 = vld [vmem:[#allocation2 + $0xa8] sm:$0xff]  ;;  %v4573_v35 = vld [vmem:[#allocation2 + $0xb0] sm:$0xff] }
 0xa75   :  { %4310 = vrot.lane.b32.xlu1 %v4307_v55, %s7966_s1  ;;  %v7480_v55 = vpack.c.bf16 %v4573_v35, %v4572_v57  ;;  %p7944_p12 = pnand %p7943_p11, %p7937_p8 }
 0xa76   :  { %v2172_v60 = vpop.permute.xlu1 %2171 }
 0xa77   :  { %v2174_v14 = vpop.permute.xlu0 %2173  ;;  %7400 = vmatprep.mubr.msk.f32.mxu1 %vm682_vm15, %v2172_v60  ;;  %4346 = vrot.lane.b32.xlu0 %v4343_v41, %s7966_s1  ;;  %v6549_v41 = vld [vmem:[#allocation2 + $0xc8] sm:$0xff]  ;;  %v6550_v60 = vld [vmem:[#allocation2 + $0xd0] sm:$0xff] }
 0xa78   :  { %7401 = vmatmul.mubr.msk.f32.gmra.mrb[24].mxu1 %vm682_vm15, %v2174_v14  ;;  %7481 = vmatprep.subr.bf16.mxu0 %v7480_v55  ;;  %v7484_v14 = vpack.c.bf16 %v6550_v60, %v6549_v41  ;;  %v10320_v60 = vld [vmem:[#allocation2 + $0x50] ss:$0 sm:$0xff] }
 0xa79   :  { %7483 = vmatpush3.bf16.msra.mxu0 %v7480_v55 }
 0xa7a   :  { %v2176_v40 = vpop.permute.xlu1 %2175  ;;  %7485 = vmatprep.subr.bf16.mxu0 %v7484_v14 }
 0xa7b   :  { %v2178_v15 = vpop.permute.xlu0 %2177  ;;  %7403 = vmatprep.mubr.msk.f32.mxu1 %vm682_vm15, %v2176_v40 }
 0xa7c   :  { %7404 = vmatmul.mubr.msk.f32.gmra.mrb[26].mxu1 %vm682_vm15, %v2178_v15 }
 0xa7e   :  { %v2180_v25 = vpop.permute.xlu1 %2179 }
 0xa7f   :  { %v2182_v30 = vpop.permute.xlu0 %2181  ;;  %7406 = vmatprep.mubr.msk.f32.mxu1 %vm682_vm15, %v2180_v25 }
 0xa80   :  { %7407 = vmatmul.mubr.msk.f32.gmra.mrb[28].mxu1 %vm682_vm15, %v2182_v30 }
 0xa82   :  { %v2184_v19 = vpop.permute.xlu1 %2183 }
 0xa83   :  { %v2186_v13 = vpop.permute.xlu0 %2185  ;;  %7409 = vmatprep.mubr.msk.f32.mxu1 %vm682_vm15, %v2184_v19 }
 0xa84   :  { %7410 = vmatmul.mubr.msk.f32.gmra.mrb[30].mxu1 %vm682_vm15, %v2186_v13 }
 0xa85   :  { %7419 = vmatprep.mubr.msk.f32.mxu1 %vm2367_vm4, %v7912_v9 }
 0xa88   :  { %7420 = vmatmul.mubr.msk.f32.vlgmr.msra.gmra.mrb[32].mxu1 %vm2367_vm4, %v7913_v10  ;;  %v7186_v10 = vld [vmem:[#allocation2 + $0x98] ss:$0 sm:$0xff] }
 0xa89   :  { %7479 = vmatpush3.bf16.msra.mxu1 %v7476_v16 }
 0xacf   :  { %v4309_v34 = vpop.permute.xlu1 %4308 }
 0xae5   :  { %v4345_v3 = vpop.permute.xlu0 %4344 }
 0xae6   :  { %v4350_v1 = vsel %vm2367_vm4, %v4309_v34, %v4345_v3 }
 0xae7   :  { %7426 = vmatprep.mubr.msk.f32.mxu1 %vm682_vm15, %v4350_v1  ;;  %v4311_v28 = vpop.permute.xlu1 %4310 }
 0xae9   :  { %v4347_v11 = vpop.permute.xlu0 %4346 }
 0xaea   :  { %v4351_v2 = vsel %vm2367_vm4, %v4311_v28, %v4347_v11  ;;  %v7187_v28 = vld [vmem:[#allocation2 + $0xa0] ss:$0 sm:$0xff] }
 0xaeb   :  { %7427 = vmatmul.mubr.msk.f32.vlgmr.msra.gmra.mrb[32].mxu1 %vm682_vm15, %v4351_v2 }
 0xb3b   :  { %v10266_v47 = vpop.f32.mrb[16].mxu1 }
 0xb3c   :  { %11561 = vst [vmem:[#allocation8_spill] sm:$0xff] %v10266_v47  ;;  %v10268_v27 = vpop.f32.mrb[17].mxu1 }
 0xb3d   :  { %11562 = vst [vmem:[#allocation60_spill] sm:$0xff] %v10268_v27 }
 0xb3f   :  { %v10270_v58 = vpop.f32.mrb[18].mxu1 }
 0xb40   :  { %11563 = vst [vmem:[#allocation55_spill] sm:$0xff] %v10270_v58  ;;  %v10272_v20 = vpop.f32.mrb[19].mxu1 }
 0xb41   :  { %11564 = vst [vmem:[#allocation61_spill] sm:$0xff] %v10272_v20 }
 0xb43   :  { %v10274_v29 = vpop.f32.mrb[20].mxu1 }
 0xb44   :  { %11565 = vst [vmem:[#allocation56_spill] sm:$0xff] %v10274_v29  ;;  %v10276_v49 = vpop.f32.mrb[21].mxu1 }
 0xb45   :  { %11566 = vst [vmem:[#allocation63_spill] sm:$0xff] %v10276_v49 }
 0xb47   :  { %v10278_v38 = vpop.f32.mrb[22].mxu1 }
 0xb48   :  { %11567 = vst [vmem:[#allocation58_spill] sm:$0xff] %v10278_v38  ;;  %v10280_v59 = vpop.f32.mrb[23].mxu1 }
 0xb49   :  { %11568 = vst [vmem:[#allocation64_spill] sm:$0xff] %v10280_v59 }
 0xb4b   :  { %v10282_v31 = vpop.f32.mrb[24].mxu1 }
 0xb4c   :  { %11569 = vst [vmem:[#allocation59_spill] sm:$0xff] %v10282_v31  ;;  %v10284_v54 = vpop.f32.mrb[25].mxu1 }
 0xb4d   :  { %11570 = vst [vmem:[#allocation62_spill] sm:$0xff] %v10284_v54 }
 0xb4f   :  { %v10286_v51 = vpop.f32.mrb[26].mxu1 }
 0xb50   :  { %11571 = vst [vmem:[#allocation65_spill] sm:$0xff] %v10286_v51  ;;  %v10288_v36 = vpop.f32.mrb[27].mxu1 }
 0xb51   :  { %11572 = vst [vmem:[#allocation70_spill] sm:$0xff] %v10288_v36 }
 0xb53   :  { %v10290_v63 = vpop.f32.mrb[28].mxu1 }
 0xb54   :  { %11573 = vst [vmem:[#allocation67_spill] sm:$0xff] %v10290_v63  ;;  %v10292_v16 = vpop.f32.mrb[29].mxu1 }
 0xb55   :  { %11574 = vst [vmem:[#allocation72_spill] sm:$0xff] %v10292_v16 }
 0xb57   :  { %v10294_v52 = vpop.f32.mrb[30].mxu1 }
 0xb58   :  { %11575 = vst [vmem:[#allocation66_spill] sm:$0xff] %v10294_v52  ;;  %v10296_v24 = vpop.f32.mrb[31].mxu1 }
 0xb59   :  { %11576 = vst [vmem:[#allocation47_spill] sm:$0xff] %v10296_v24 }
 0xbbe   :  { %v7428_v22 = vpop.f32.mrb[32].mxu1 }
 0xbbf   :  { %v4517_v53 = vadd.f32 %v7428_v22, %v7185_v21  ;;  %v4502_v8 = vpop.f32.mrb[33].mxu1  ;;  %v11383_v22 = vmov 0.0  }
 0xbc0   :  { %v4516_v18 = vadd.f32 %v7185_v21, %v4502_v8 }
 0xbc1   :  { %v4519_v39 = vand.u32 2147483647, %v4517_v53  ;;  %vm4565_vm0 = vcmp.lt.f32.partialorder %v4517_v53, 0.0  ;;  %vm4563_vm2 = vcmp.gt.f32.partialorder %v4517_v53, 0.0 }
 0xbc2   :  { %v4518_v45 = vand.u32 2147483647, %v4516_v18  ;;  %vm4564_vm14 = vcmp.lt.f32.partialorder %v4516_v18, 0.0  ;;  %vm4562_vm1 = vcmp.gt.f32.partialorder %v4516_v18, 0.0 }
 0xbc3   :  { %v4523_v5 = vsel %vm682_vm15, %v4519_v39, 0.0  ;;  %v4566_v8 = vsel %vm4564_vm14, -1.0, %v11383_v22 }
 0xbc4   :  { %4524 = vadd.xlane.f32.xlu0 %v4523_v5  ;;  %v4520_v6 = vsel %vm682_vm15, %v4518_v45, 0.0 }
 0xbc5   :  { %4521 = vadd.xlane.f32.xlu1 %v4520_v6 }
 0xc51   :  { %v4525_v44 = vpop.xlane.xlu0 %4524 }
 0xc52   :  { %v4527_v4 = vmul.f32 0.0625, %v4525_v44  ;;  %v4522_v12 = vpop.xlane.xlu1 %4521  ;;  %v4568_v44 = vsel %vm4562_vm1, 1.0, %v4566_v8 }
 0xc53   :  { %v4526_v43 = vmul.f32 0.0625, %v4522_v12 }
 0xc54   :  { %v4529_v23 = vsub.f32 %v4519_v39, %v4527_v4 }
 0xc55   :  { %v4528_v62 = vsub.f32 %v4518_v45, %v4526_v43  ;;  %v4567_v45 = vsel %vm4565_vm0, -1.0, %v11383_v22 }
 0xc56   :  { %v4531_v33 = vmul.f32 %v4529_v23, %v4529_v23  ;;  %v4569_v4 = vsel %vm4563_vm2, 1.0, %v4567_v45 }
 0xc57   :  { %v4530_v48 = vmul.f32 %v4528_v62, %v4528_v62 }
 0xc58   :  { %v4535_v56 = vsel %vm682_vm15, %v4531_v33, 0.0 }
 0xc59   :  { %4536 = vadd.xlane.f32.xlu1 %v4535_v56  ;;  %v4532_v50 = vsel %vm682_vm15, %v4530_v48, 0.0 }
 0xc5a   :  { %4533 = vadd.xlane.f32.xlu0 %v4532_v50 }
 0xce6   :  { %v4537_v40 = vpop.xlane.xlu1 %4536 }
 0xce7   :  { %v4539_v15 = vmul.f32 0.0625, %v4537_v40  ;;  %v4534_v25 = vpop.xlane.xlu0 %4533 }
 0xce8   :  { %v4538_v30 = vmul.f32 0.0625, %v4534_v25 }
 0xce9   :  { %v4541_v19 = vadd.f32 1e-05, %v4539_v15  ;;  %v11579_v15 = vld [vmem:[#allocation25_spill] sm:$0xff] }
 0xcea   :  { %v4540_v13 = vadd.f32 1e-05, %v4538_v30  ;;  %v1726_v25 = vadd.f32 %v10320_v60, %v11579_v15  ;;  %v11580_v30 = vld [vmem:[#allocation27_spill] sm:$0xff] }
 0xceb   :  { %7774 = vrsqrt.f32 %v4541_v19  ;;  %v1736_v19 = vadd.f32 %v10320_v60, %v11580_v30 }
 0xcec   :  { %7776 = vrsqrt.f32 %v4540_v13  ;;  %v11581_v13 = vld [vmem:[#allocation30_spill] sm:$0xff] }
 0xcf5   :  { %v7775_v9 = vpop.eup %7774 }
 0xcf6   :  { %v7777_v34 = vpop.eup %7776  ;;  %v4545_v3 = vmul.f32 %v7775_v9, %v4529_v23  ;;  %v1761_v9 = vadd.f32 %v11581_v13, %v10320_v60 }
 0xcf7   :  { %v4544_v1 = vmul.f32 %v7777_v34, %v4528_v62  ;;  %v11577_v62 = vld [vmem:[#allocation9_spill] sm:$0xff] }
 0xcf8   :  { %v4552_v11 = vmul.f32 %v7186_v10, %v4545_v3 }
 0xcf9   :  { %v4551_v2 = vmul.f32 %v7186_v10, %v4544_v1 }
 0xcfa   :  { %v4559_v21 = vadd.f32 %v7187_v28, %v4552_v11 }
 0xcfb   :  { %v4558_v39 = vadd.f32 %v7187_v28, %v4551_v2 }
 0xcfc   :  { %v4561_v5 = vmax.f32 %v4559_v21, 0.0 }
 0xcfd   :  { %v4560_v6 = vmax.f32 %v4558_v39, 0.0 }
 0xcfe   :  { %v4571_v43 = vmul.f32 %v4569_v4, %v4561_v5  ;;  %v11587_v4 = vld [vmem:[#allocation26_spill] sm:$0xff] }
 0xcff   :  { %v4570_v12 = vmul.f32 %v4568_v44, %v4560_v6  ;;  %v11586_v6 = vld [vmem:[#allocation16_spill] sm:$0xff] }
 0xd00   :  { %v1691_v44 = vadd.f32 %v11586_v6, %v10320_v60  ;;  %v11594_v6 = vld [vmem:[#allocation21_spill] sm:$0xff] }
 0xd01   :  { %7433 = vmatprep.mubr.msk.f32.mxu0 %vm682_vm15, %v4570_v12 }
 0xd02   :  { %7434 = vmatmul.mubr.msk.f32.vlgmr.msra.gmra.mrb[34].mxu0 %vm682_vm15, %v4571_v43 }
 0xd03   :  { %7487 = vmatpush3.bf16.msra.mxu0 %v7484_v14  ;;  %7440 = vmatprep.mubr.msk.f32.mxu0 %vm682_vm15, %v4570_v12  ;;  %v11578_v14 = vld [vmem:[#allocation24_spill] sm:$0xff]  ;;  %v1741_v12 = vadd.f32 %v11587_v4, %v10320_v60 }
 0xd04   :  { %v1731_v40 = vadd.f32 %v11578_v14, %v10320_v60  ;;  %v11595_v4 = vld [vmem:[#allocation28_spill] sm:$0xff] }
 0xd06   :  { %7441 = vmatmul.mubr.msk.f32.vlgmr.msra.gmra.mrb[36].mxu0 %vm682_vm15, %v4571_v43 }
 0xdd5   :  { %v7435_v18 = vpop.f32.mrb[34].mxu0 }
 0xdd6   :  { %4659 = vrot.lane.b32.xlu1 %v7435_v18, %s7966_s1  ;;  %v4646_v53 = vpop.f32.mrb[35].mxu0  ;;  %v4728_v23 = vcombine.high %v7435_v18, %v7435_v18  ;;  %v4735_v33 = vrot.slane %v7435_v18, %v11577_v62 }
 0xdd7   :  { %4657 = vrot.lane.b32.xlu0 %v4646_v53, %s7966_s1  ;;  %v10314_v35 = vrot.slane %v4646_v53, %v11577_v62  ;;  %v4679_v43 = vcombine.high %v4646_v53, %v4646_v53 }
 0xdd8   :  { %v4742_v48 = vrot.slane %v4728_v23, %v11577_v62  ;;  %v4743_v56 = vcombine.high %v4735_v33, %v4735_v33  ;;  %v4751_v57 = vrot.slane %v4735_v33, %v11577_v62 }
 0xdd9   :  { %v4694_v3 = vcombine.high %v10314_v35, %v10314_v35  ;;  %v4693_v13 = vrot.slane %v4679_v43, %v11577_v62 }
 0xdda   :  { %v4744_v50 = vcombine.high %v4742_v48, %v4742_v48  ;;  %v4765_v55 = vrot.slane %v4743_v56, %v11577_v62  ;;  %v4773_v10 = vcombine.high %v4751_v57, %v4751_v57  ;;  %v4812_v34 = vrot.slane %v4751_v57, %v11447_v17 }
 0xddb   :  { %v4716_v18 = vrot.slane %v4694_v3, %v11577_v62  ;;  %v4695_v43 = vcombine.high %v4693_v13, %v4693_v13 }
 0xddc   :  { %v10318_v41 = vrot.slane %v4744_v50, %v11577_v62  ;;  %v4816_v11 = vrot.slane %v4765_v55, %v11447_v17  ;;  %v4775_v33 = vcombine.high %v4765_v55, %v4765_v55  ;;  %v4820_v56 = vrot.slane %v4773_v10, %v11447_v17 }
 0xdde   :  { %v4776_v21 = vcombine.high %v10318_v41, %v10318_v41  ;;  %v4824_v10 = vrot.slane %v4775_v33, %v11447_v17  ;;  %v4709_v33 = vrot.slane %v4693_v13, %v11577_v62 }
 0xde0   :  { %v4840_v50 = vrot.slane %v4776_v21, %v11447_v17  ;;  %v4725_v24 = vcombine.high %v4709_v33, %v4709_v33 }
 0xe48   :  { %v4660_v1 = vpop.permute.xlu1 %4659 }
 0xe49   :  { %v10333_v28 = vmul.f32 %v4660_v1, %v1731_v40  ;;  %v10336_v2 = vmul.f32 %v4660_v1, %v1726_v25  ;;  %v10346_v45 = vmul.f32 %v4660_v1, %v1736_v19  ;;  %v10348_v5 = vmul.f32 %v4660_v1, %v1761_v9  ;;  %v10355_v23 = vpop.permute.xlu0 %4657  ;;  %v11590_v40 = vld [vmem:[#allocation18_spill] sm:$0xff]  ;;  %v11591_v25 = vld [vmem:[#allocation29_spill] sm:$0xff] }
 0xe4a   :  { %v10369_v14 = vmul.f32 %v4660_v1, %v1741_v12  ;;  %v10372_v55 = vmul.f32 %v10355_v23, %v1691_v44  ;;  %v1701_v15 = vadd.f32 %v11590_v40, %v10320_v60  ;;  %v1746_v30 = vadd.f32 %v10320_v60, %v11591_v25 }
 0xe4b   :  { %11582 = vst [vmem:[#allocation74_spill] sm:$0xff] %v10333_v28  ;;  %11583 = vst [vmem:[#allocation68_spill] sm:$0xff] %v10336_v2  ;;  %v10341_v8 = vmul.f32 %v4816_v11, %v10333_v28  ;;  %v10344_v39 = vmul.f32 %v4812_v34, %v10336_v2  ;;  %v10364_v57 = vmul.f32 %v4820_v56, %v10346_v45 }
 0xe4c   :  { %11584 = vst [vmem:[#allocation49_spill] sm:$0xff] %v10346_v45  ;;  %11585 = vst [vmem:[#allocation51_spill] sm:$0xff] %v10348_v5  ;;  %v10367_v53 = vmul.f32 %v4840_v50, %v10348_v5  ;;  %v4758_v19 = vrot.slane %v4742_v48, %v11577_v62  ;;  %v4726_v9 = vcombine.high %v4716_v18, %v4716_v18 }
 0xe4d   :  { %5675 = vrot.lane.b32.xlu1 %v10341_v8, %s7968_s16  ;;  %5673 = vrot.lane.b32.xlu0 %v10344_v39, %s7968_s16  ;;  %11588 = vst [vmem:[#allocation75_spill] sm:$0xff] %v10369_v14  ;;  %11589 = vst [vmem:[#allocation69_spill] sm:$0xff] %v10372_v55  ;;  %v4784_v34 = vrot.slane %v4716_v18, %v11447_v17  ;;  %v10387_v3 = vmul.f32 %v4824_v10, %v10369_v14  ;;  %v11599_v10 = vld [vmem:[#allocation31_spill] sm:$0xff] }
 0xe4e   :  { %v10390_v21 = vmul.f32 %v4660_v1, %v1746_v30  ;;  %v10393_v48 = vmul.f32 %v10355_v23, %v1701_v15  ;;  %v1706_v44 = vadd.f32 %v10320_v60, %v11594_v6  ;;  %v1751_v12 = vadd.f32 %v11595_v4, %v10320_v60  ;;  %v11598_v30 = vld [vmem:[#allocation20_spill] sm:$0xff] }
 0xe4f   :  { %v4858_v11 = vmul.f32 %v4784_v34, %v10372_v55  ;;  %v4828_v18 = vrot.slane %v4758_v19, %v11447_v17  ;;  %v4792_v56 = vrot.slane %v4726_v9, %v11447_v17  ;;  %v1711_v13 = vadd.f32 %v11598_v30, %v10320_v60 }
 0xe50   :  { %11592 = vst [vmem:[#allocation52_spill] sm:$0xff] %v10390_v21  ;;  %11593 = vst [vmem:[#allocation53_spill] sm:$0xff] %v10393_v48  ;;  %v10409_v15 = vmul.f32 %v4660_v1, %v1751_v12  ;;  %v10412_v25 = vmul.f32 %v10355_v23, %v1706_v44  ;;  %v1756_v34 = vadd.f32 %v10320_v60, %v11599_v10  ;;  %v11603_v10 = vld [vmem:[#allocation23_spill] sm:$0xff] }
 0xe51   :  { %5677 = vrot.lane.b32.xlu1 %v10364_v57, %s7968_s16  ;;  %5687 = vrot.lane.b32.xlu0 %v10367_v53, %s7968_s16  ;;  %v10406_v50 = vmul.f32 %v4828_v18, %v10390_v21  ;;  %v4860_v40 = vmul.f32 %v4792_v56, %v10393_v48  ;;  %v4774_v6 = vcombine.high %v4758_v19, %v4758_v19 }
 0xe52   :  { %11596 = vst [vmem:[#allocation57_spill] sm:$0xff] %v10409_v15  ;;  %11597 = vst [vmem:[#allocation71_spill] sm:$0xff] %v10412_v25  ;;  %v4723_v4 = vrot.slane %v4695_v43, %v11577_v62  ;;  %v4832_v9 = vrot.slane %v10318_v41, %v11447_v17  ;;  %v4796_v44 = vrot.slane %v4709_v33, %v11447_v17  ;;  %v11602_v43 = vld [vmem:[#allocation17_spill] sm:$0xff]  ;;  %v11607_v33 = vld [vmem:[#allocation22_spill] sm:$0xff] }
 0xe53   :  { %v10427_v56 = vmul.f32 %v4660_v1, %v1756_v34  ;;  %v10430_v19 = vmul.f32 %v10355_v23, %v1711_v13  ;;  %v1686_v30 = vadd.f32 %v10320_v60, %v11602_v43  ;;  %v1716_v22 = vadd.f32 %v10320_v60, %v11603_v10 }
 0xe54   :  { %v4870_v12 = vmul.f32 %v4832_v9, %v10409_v15  ;;  %v4861_v18 = vmul.f32 %v4796_v44, %v10412_v25  ;;  %v4702_v41 = vrot.slane %v10314_v35, %v11577_v62  ;;  %v4836_v1 = vrot.slane %v4774_v6, %v11447_v17  ;;  %v11606_v62 = vld [vmem:[#allocation19_spill] sm:$0xff] }
 0xe55   :  { %5679 = vrot.lane.b32.xlu1 %v10387_v3, %s7968_s16  ;;  %5659 = vrot.lane.b32.xlu0 %v4858_v11, %s7968_s16  ;;  %11600 = vst [vmem:[#allocation48_spill] sm:$0xff] %v10427_v56  ;;  %11601 = vst [vmem:[#allocation54_spill] sm:$0xff] %v10430_v19  ;;  %v4800_v34 = vrot.slane %v4723_v4, %v11447_v17  ;;  %v10445_v44 = vmul.f32 %v10355_v23, %v1686_v30 }
 0xe56   :  { %v4871_v13 = vmul.f32 %v4836_v1, %v10427_v56  ;;  %v10448_v43 = vmul.f32 %v10355_v23, %v1716_v22  ;;  %v1696_v35 = vadd.f32 %v10320_v60, %v11606_v62  ;;  %v1721_v10 = vadd.f32 %v11607_v33, %v10320_v60 }
 0xe57   :  { %v4862_v9 = vmul.f32 %v4800_v34, %v10430_v19  ;;  %11604 = vst [vmem:[#allocation50_spill] sm:$0xff] %v10445_v44  ;;  %v4724_v52 = vcombine.high %v4702_v41, %v4702_v41  ;;  %v4780_v6 = vrot.slane %v4702_v41, %v11447_v17  ;;  %v4804_v1 = vrot.slane %v4725_v24, %v11447_v17 }
 0xe58   :  { %11605 = vst [vmem:[#allocation73_spill] sm:$0xff] %v10448_v43  ;;  %v4727_v30 = vcombine.high %v4723_v4, %v4723_v4  ;;  %v10461_v16 = vmul.f32 %v10355_v23, %v1696_v35  ;;  %v10464_v62 = vmul.f32 %v10355_v23, %v1721_v10  ;;  %v4900_v23 = vsel %vm2367_vm4, %v10341_v8, 0.0 }
 0xe59   :  { %5681 = vrot.lane.b32.xlu1 %v10406_v50, %s7968_s16  ;;  %5663 = vrot.lane.b32.xlu0 %v4860_v40, %s7968_s16  ;;  %v4857_v34 = vmul.f32 %v4780_v6, %v10445_v44  ;;  %v4863_v22 = vmul.f32 %v4804_v1, %v10448_v43  ;;  %v4788_v60 = vrot.slane %v4724_v52, %v11447_v17  ;;  %v4876_v35 = vsel %vm2367_vm4, %v4858_v11, 0.0 }
 0xe5a   :  { %11608 = vst [vmem:[#allocation11_spill] sm:$0xff] %v10461_v16  ;;  %11609 = vst [vmem:[#allocation13_spill] sm:$0xff] %v10464_v62  ;;  %v4808_v41 = vrot.slane %v4727_v30, %v11447_v17  ;;  %v4897_v52 = vsel %vm2367_vm4, %v10344_v39, 0.0  ;;  %v4903_v10 = vsel %vm2367_vm4, %v10364_v57, 0.0  ;;  %v4882_v6 = vsel %vm2367_vm4, %v4860_v40, 0.0 }
 0xe5b   :  { %v4859_v24 = vmul.f32 %v4788_v60, %v10461_v16  ;;  %v4906_v8 = vsel %vm2367_vm4, %v10387_v3, 0.0  ;;  %v4885_v11 = vsel %vm2367_vm4, %v4861_v18, 0.0  ;;  %v4909_v39 = vsel %vm2367_vm4, %v10406_v50, 0.0 }
 0xe5c   :  { %v4864_v4 = vmul.f32 %v4808_v41, %v10464_v62  ;;  %v4888_v1 = vsel %vm2367_vm4, %v4862_v9, 0.0  ;;  %v4912_v57 = vsel %vm2367_vm4, %v4870_v12, 0.0  ;;  %v4891_v40 = vsel %vm2367_vm4, %v4863_v22, 0.0 }
 0xe5d   :  { %5683 = vrot.lane.b32.xlu1 %v4870_v12, %s7968_s16  ;;  %5665 = vrot.lane.b32.xlu0 %v4861_v18, %s7968_s16  ;;  %v4879_v33 = vsel %vm2367_vm4, %v4859_v24, 0.0  ;;  %v4915_v30 = vsel %vm2367_vm4, %v4871_v13, 0.0  ;;  %v4873_v18 = vsel %vm2367_vm4, %v4857_v34, 0.0 }
 0xe5e   :  { %v4894_v3 = vsel %vm2367_vm4, %v4864_v4, 0.0 }
 0xe61   :  { %5685 = vrot.lane.b32.xlu1 %v4871_v13, %s7968_s16  ;;  %5667 = vrot.lane.b32.xlu0 %v4862_v9, %s7968_s16 }
 0xe65   :  { %5657 = vrot.lane.b32.xlu1 %v4857_v34, %s7968_s16  ;;  %5669 = vrot.lane.b32.xlu0 %v4863_v22, %s7968_s16 }
 0xe69   :  { %5661 = vrot.lane.b32.xlu1 %v4859_v24, %s7968_s16  ;;  %5671 = vrot.lane.b32.xlu0 %v4864_v4, %s7968_s16 }
 0xe88   :  { %4901 = vadd.xlane.f32.xlu0 %v4900_v23 }
 0xe8c   :  { %4877 = vadd.xlane.f32.xlu0 %v4876_v35 }
 0xe8d   :  { %4898 = vadd.xlane.f32.xlu1 %v4897_v52 }
 0xe90   :  { %4880 = vadd.xlane.f32.xlu0 %v4879_v33 }
 0xe91   :  { %4904 = vadd.xlane.f32.xlu1 %v4903_v10 }
 0xe94   :  { %4883 = vadd.xlane.f32.xlu0 %v4882_v6 }
 0xe95   :  { %4907 = vadd.xlane.f32.xlu1 %v4906_v8 }
 0xe98   :  { %4886 = vadd.xlane.f32.xlu0 %v4885_v11 }
 0xe99   :  { %4910 = vadd.xlane.f32.xlu1 %v4909_v39 }
 0xe9c   :  { %4889 = vadd.xlane.f32.xlu0 %v4888_v1 }
 0xe9d   :  { %4913 = vadd.xlane.f32.xlu1 %v4912_v57 }
 0xea0   :  { %4892 = vadd.xlane.f32.xlu0 %v4891_v40 }
 0xea1   :  { %4916 = vadd.xlane.f32.xlu1 %v4915_v30 }
 0xea4   :  { %4895 = vadd.xlane.f32.xlu0 %v4894_v3 }
 0xea5   :  { %4874 = vadd.xlane.f32.xlu1 %v4873_v18 }
 0xebf   :  { %v5676_v50 = vpop.permute.xlu1 %5675  ;;  %v5674_v60 = vpop.permute.xlu0 %5673 }
 0xec0   :  { %v5732_v9 = vsel %vm2367_vm4, %v5676_v50, 0.0  ;;  %v5729_v41 = vsel %vm2367_vm4, %v5674_v60, 0.0 }
 0xec1   :  { %5733 = vadd.xlane.f32.xlu1 %v5732_v9  ;;  %5730 = vadd.xlane.f32.xlu0 %v5729_v41 }
 0xec3   :  { %v5678_v12 = vpop.permute.xlu1 %5677  ;;  %v5688_v24 = vpop.permute.xlu0 %5687 }
 0xec4   :  { %v5735_v22 = vsel %vm2367_vm4, %v5678_v12, 0.0  ;;  %v5750_v9 = vsel %vm2367_vm4, %v5688_v24, 0.0 }
 0xec5   :  { %5736 = vadd.xlane.f32.xlu1 %v5735_v22 }
 0xec7   :  { %v5680_v13 = vpop.permute.xlu1 %5679  ;;  %v5660_v23 = vpop.permute.xlu0 %5659 }
 0xec8   :  { %v5738_v4 = vsel %vm2367_vm4, %v5680_v13, 0.0  ;;  %v5708_v8 = vsel %vm2367_vm4, %v5660_v23, 0.0 }
 0xec9   :  { %5739 = vadd.xlane.f32.xlu1 %v5738_v4  ;;  %v4918_v4 = vsel %vm2367_vm4, %v10367_v53, 0.0 }
 0xecb   :  { %v5682_v34 = vpop.permute.xlu1 %5681  ;;  %v5664_v10 = vpop.permute.xlu0 %5663 }
 0xecc   :  { %v5741_v35 = vsel %vm2367_vm4, %v5682_v34, 0.0  ;;  %v5714_v30 = vsel %vm2367_vm4, %v5664_v10, 0.0 }
 0xecd   :  { %5742 = vadd.xlane.f32.xlu1 %v5741_v35 }
 0xecf   :  { %v5684_v52 = vpop.permute.xlu1 %5683  ;;  %v5666_v11 = vpop.permute.xlu0 %5665 }
 0xed0   :  { %v5744_v33 = vsel %vm2367_vm4, %v5684_v52, 0.0  ;;  %v5717_v50 = vsel %vm2367_vm4, %v5666_v11, 0.0 }
 0xed1   :  { %5745 = vadd.xlane.f32.xlu1 %v5744_v33 }
 0xed3   :  { %v5686_v6 = vpop.permute.xlu1 %5685  ;;  %v5668_v3 = vpop.permute.xlu0 %5667 }
 0xed4   :  { %v5747_v18 = vsel %vm2367_vm4, %v5686_v6, 0.0  ;;  %v5720_v41 = vsel %vm2367_vm4, %v5668_v3, 0.0 }
 0xed5   :  { %5709 = vadd.xlane.f32.xlu1 %v5708_v8 }
 0xed7   :  { %v5658_v39 = vpop.permute.xlu1 %5657  ;;  %v5670_v60 = vpop.permute.xlu0 %5669 }
 0xed8   :  { %v5705_v1 = vsel %vm2367_vm4, %v5658_v39, 0.0  ;;  %v5723_v12 = vsel %vm2367_vm4, %v5670_v60, 0.0 }
 0xed9   :  { %5706 = vadd.xlane.f32.xlu0 %v5705_v1 }
 0xedb   :  { %v5662_v57 = vpop.permute.xlu1 %5661  ;;  %v5672_v22 = vpop.permute.xlu0 %5671 }
 0xedc   :  { %v5711_v40 = vsel %vm2367_vm4, %v5662_v57, 0.0  ;;  %v5726_v13 = vsel %vm2367_vm4, %v5672_v22, 0.0 }
 0xedd   :  { %5712 = vadd.xlane.f32.xlu1 %v5711_v40  ;;  %5715 = vadd.xlane.f32.xlu0 %v5714_v30 }
 0xee1   :  { %5748 = vadd.xlane.f32.xlu1 %v5747_v18  ;;  %5718 = vadd.xlane.f32.xlu0 %v5717_v50 }
 0xee5   :  { %5751 = vadd.xlane.f32.xlu1 %v5750_v9  ;;  %5721 = vadd.xlane.f32.xlu0 %v5720_v41 }
 0xee9   :  { %5724 = vadd.xlane.f32.xlu0 %v5723_v12 }
 0xeed   :  { %5727 = vadd.xlane.f32.xlu0 %v5726_v13 }
 0xef1   :  { %4919 = vadd.xlane.f32.xlu0 %v4918_v4 }
 0xf15   :  { %v10512_v23 = vpop.xlane.xlu0 %4901 }
 0xf19   :  { %v4878_v34 = vpop.xlane.xlu0 %4877 }
 0xf1a   :  { %v10514_v35 = vpop.xlane.xlu1 %4898  ;;  %v10526_v57 = vmul.f32 0.35355338, %v4878_v34 }
 0xf1c   :  { %v4960_v9 = vrot.slane %v10526_v57, %v11508_v7 }
 0xf1d   :  { %v4881_v24 = vpop.xlane.xlu0 %4880 }
 0xf1e   :  { %v10516_v52 = vpop.xlane.xlu1 %4904  ;;  %v10528_v40 = vmul.f32 0.35355338, %v4881_v24 }
 0xf20   :  { %v4964_v22 = vrot.slane %v10528_v40, %v11508_v7 }
 0xf21   :  { %v4884_v33 = vpop.xlane.xlu0 %4883 }
 0xf22   :  { %v10518_v10 = vpop.xlane.xlu1 %4907  ;;  %v10530_v3 = vmul.f32 0.35355338, %v4884_v33 }
 0xf24   :  { %v4968_v4 = vrot.slane %v10530_v3, %v11508_v7 }
 0xf25   :  { %v4887_v6 = vpop.xlane.xlu0 %4886 }
 0xf26   :  { %v10520_v8 = vpop.xlane.xlu1 %4910  ;;  %v10534_v50 = vmul.f32 0.35355338, %v4887_v6 }
 0xf28   :  { %v4972_v33 = vrot.slane %v10534_v50, %v11508_v7 }
 0xf29   :  { %v4890_v11 = vpop.xlane.xlu0 %4889 }
 0xf2a   :  { %v10522_v39 = vpop.xlane.xlu1 %4913  ;;  %v10538_v41 = vmul.f32 0.35355338, %v4890_v11 }
 0xf2c   :  { %v4976_v11 = vrot.slane %v10538_v41, %v11508_v7 }
 0xf2d   :  { %v4893_v1 = vpop.xlane.xlu0 %4892 }
 0xf2e   :  { %v10524_v53 = vpop.xlane.xlu1 %4916  ;;  %v10544_v13 = vmul.f32 0.35355338, %v4893_v1 }
 0xf30   :  { %v4980_v1 = vrot.slane %v10544_v13, %v11508_v7 }
 0xf31   :  { %v4896_v60 = vpop.xlane.xlu0 %4895 }
 0xf32   :  { %v4875_v30 = vpop.xlane.xlu1 %4874  ;;  %v10548_v34 = vmul.f32 0.35355338, %v4896_v60 }
 0xf33   :  { %v10532_v18 = vmul.f32 0.35355338, %v4875_v30 }
 0xf34   :  { %v4984_v60 = vrot.slane %v10548_v34, %v11508_v7 }
 0xf35   :  { %v4956_v12 = vrot.slane %v10532_v18, %v11508_v7 }
 0xf37   :  { %v5017_v24 = vsel %vm2813_vm5, %v4960_v9, %v4956_v12 }
 0xf38   :  { %v5018_v6 = vsel %vm2815_vm6, %v4964_v22, %v5017_v24 }
 0xf39   :  { %v5019_v30 = vsel %vm2817_vm7, %v4968_v4, %v5018_v6 }
 0xf3a   :  { %v5020_v63 = vsel %vm2819_vm8, %v4972_v33, %v5019_v30 }
 0xf3b   :  { %v5021_v9 = vsel %vm2821_vm9, %v4976_v11, %v5020_v63 }
 0xf3c   :  { %v5022_v12 = vsel %vm2823_vm10, %v4980_v1, %v5021_v9 }
 0xf3d   :  { %v5023_v36 = vsel %vm2825_vm11, %v4984_v60, %v5022_v12 }
 0xf3e   :  { %v5033_v22 = vsel %vm2367_vm4, %v5023_v36, -inf }
 0xf3f   :  { %5034 = vmax.xlane.f32.xlu0 %v5033_v22 }
 0xf4e   :  { %v5734_v24 = vpop.xlane.xlu1 %5733  ;;  %v5731_v31 = vpop.xlane.xlu0 %5730 }
 0xf4f   :  { %v10566_v30 = vmul.f32 0.35355338, %v5734_v24  ;;  %v10568_v38 = vmul.f32 0.35355338, %v5731_v31 }
 0xf51   :  { %v5824_v9 = vrot.slane %v10566_v30, %v11508_v7  ;;  %v5820_v12 = vrot.slane %v10568_v38, %v11508_v7 }
 0xf52   :  { %v5737_v51 = vpop.xlane.xlu1 %5736 }
 0xf53   :  { %v10570_v63 = vmul.f32 0.35355338, %v5737_v51 }
 0xf55   :  { %v5828_v31 = vrot.slane %v10570_v63, %v11508_v7 }
 0xf56   :  { %v5740_v4 = vpop.xlane.xlu1 %5739 }
 0xf57   :  { %v10572_v60 = vmul.f32 0.35355338, %v5740_v4 }
 0xf59   :  { %v5832_v49 = vrot.slane %v10572_v60, %v11508_v7 }
 0xf5a   :  { %v5743_v6 = vpop.xlane.xlu1 %5742 }
 0xf5b   :  { %v10574_v36 = vmul.f32 0.35355338, %v5743_v6 }
 0xf5d   :  { %v5836_v29 = vrot.slane %v10574_v36, %v11508_v7 }
 0xf5e   :  { %v5746_v54 = vpop.xlane.xlu1 %5745 }
 0xf5f   :  { %v10580_v22 = vmul.f32 0.35355338, %v5746_v54  ;;  %v5856_v54 = vsel %vm2813_vm5, %v5824_v9, %v5820_v12  ;;  %v4929_v12 = vmul.f32 0.35355338, %v10514_v35  ;;  %v4931_v35 = vmul.f32 0.35355338, %v10516_v52 }
 0xf60   :  { %v5857_v47 = vsel %vm2815_vm6, %v5828_v31, %v5856_v54 }
 0xf61   :  { %v5840_v58 = vrot.slane %v10580_v22, %v11508_v7  ;;  %v5858_v62 = vsel %vm2817_vm7, %v5832_v49, %v5857_v47 }
 0xf62   :  { %v5710_v59 = vpop.xlane.xlu1 %5709 }
 0xf63   :  { %v10597_v27 = vmul.f32 0.35355338, %v5710_v59  ;;  %v5859_v59 = vsel %vm2819_vm8, %v5836_v29, %v5858_v62  ;;  %v4932_v29 = vmul.f32 0.35355338, %v10518_v10 }
 0xf64   :  { %v5860_v43 = vsel %vm2821_vm9, %v5840_v58, %v5859_v59 }
 0xf65   :  { %v5792_v47 = vrot.slane %v10597_v27, %v11508_v7 }
 0xf66   :  { %v5707_v33 = vpop.xlane.xlu0 %5706 }
 0xf67   :  { %v10586_v4 = vmul.f32 0.35355338, %v5707_v33 }
 0xf6a   :  { %v5713_v11 = vpop.xlane.xlu1 %5712  ;;  %v5716_v1 = vpop.xlane.xlu0 %5715 }
 0xf6b   :  { %v10592_v20 = vmul.f32 0.35355338, %v5713_v11  ;;  %v5788_v11 = vrot.slane %v10586_v4, %v11508_v7  ;;  %v10605_v44 = vmul.f32 0.35355338, %v5716_v1 }
 0xf6d   :  { %v5796_v31 = vrot.slane %v10592_v20, %v11508_v7  ;;  %v5849_v56 = vsel %vm2813_vm5, %v5792_v47, %v5788_v11  ;;  %v5800_v58 = vrot.slane %v10605_v44, %v11508_v7  ;;  %v4996_v47 = vrot.slane %v4931_v35, %v11508_v7 }
 0xf6e   :  { %v5749_v24 = vpop.xlane.xlu1 %5748  ;;  %v5719_v51 = vpop.xlane.xlu0 %5718 }
 0xf6f   :  { %v10588_v6 = vmul.f32 0.35355338, %v5749_v24  ;;  %v10613_v54 = vmul.f32 0.35355338, %v5719_v51 }
 0xf71   :  { %v5844_v33 = vrot.slane %v10588_v6, %v11508_v7  ;;  %v5804_v52 = vrot.slane %v10613_v54, %v11508_v7 }
 0xf72   :  { %v5752_v5 = vpop.xlane.xlu1 %5751  ;;  %v5722_v24 = vpop.xlane.xlu0 %5721 }
 0xf73   :  { %v10607_v9 = vmul.f32 0.35355338, %v5752_v5  ;;  %v10620_v1 = vmul.f32 0.35355338, %v5722_v24  ;;  %v4930_v5 = vmul.f32 0.35355338, %v10512_v23  ;;  %v5861_v51 = vsel %vm2823_vm10, %v5844_v33, %v5860_v43 }
 0xf74   :  { %v4933_v24 = vmul.f32 0.35355338, %v10520_v8  ;;  %v5850_v23 = vsel %vm2815_vm6, %v5796_v31, %v5849_v56  ;;  %v4988_v43 = vrot.slane %v4929_v12, %v11508_v7  ;;  %v10639_v33 = vmul.f32 0.35355338, %v10522_v39 }
 0xf75   :  { %v5848_v49 = vrot.slane %v10607_v9, %v11508_v7  ;;  %v5808_v11 = vrot.slane %v10620_v1, %v11508_v7  ;;  %v10645_v8 = vmul.f32 0.35355338, %v10524_v53  ;;  %v5851_v39 = vsel %vm2817_vm7, %v5800_v58, %v5850_v23 }
 0xf76   :  { %v5725_v62 = vpop.xlane.xlu0 %5724  ;;  %v5008_v53 = vrot.slane %v10639_v33, %v11508_v7 }
 0xf77   :  { %v10629_v59 = vmul.f32 0.35355338, %v5725_v62  ;;  %v5862_v19 = vsel %vm2825_vm11, %v5848_v49, %v5861_v51  ;;  %v5000_v49 = vrot.slane %v4932_v29, %v11508_v7  ;;  %v5004_v51 = vrot.slane %v4933_v24, %v11508_v7 }
 0xf78   :  { %v5868_v10 = vsel %vm2367_vm4, %v5862_v19, -inf  ;;  %v4992_v19 = vrot.slane %v4930_v5, %v11508_v7  ;;  %v5012_v58 = vrot.slane %v10645_v8, %v11508_v7 }
 0xf79   :  { %5869 = vmax.xlane.f32.xlu1 %v5868_v10  ;;  %v5812_v56 = vrot.slane %v10629_v59, %v11508_v7  ;;  %v5852_v10 = vsel %vm2819_vm8, %v5804_v52, %v5851_v39 }
 0xf7a   :  { %v5728_v31 = vpop.xlane.xlu0 %5727  ;;  %v5024_v15 = vsel %vm2813_vm5, %v4992_v19, %v4988_v43  ;;  %v5853_v25 = vsel %vm2821_vm9, %v5808_v11, %v5852_v10 }
 0xf7b   :  { %v10652_v62 = vmul.f32 0.35355338, %v5728_v31  ;;  %v5025_v48 = vsel %vm2815_vm6, %v4996_v47, %v5024_v15  ;;  %v5854_v31 = vsel %vm2823_vm10, %v5812_v56, %v5853_v25 }
 0xf7c   :  { %v5026_v52 = vsel %vm2817_vm7, %v5000_v49, %v5025_v48 }
 0xf7d   :  { %v5816_v21 = vrot.slane %v10652_v62, %v11508_v7  ;;  %v5027_v19 = vsel %vm2819_vm8, %v5004_v51, %v5026_v52 }
 0xf7e   :  { %v4920_v23 = vpop.xlane.xlu0 %4919  ;;  %v5028_v15 = vsel %vm2821_vm9, %v5008_v53, %v5027_v19 }
 0xf7f   :  { %v10667_v39 = vmul.f32 0.35355338, %v4920_v23  ;;  %v5855_v43 = vsel %vm2825_vm11, %v5816_v21, %v5854_v31  ;;  %v5029_v47 = vsel %vm2823_vm10, %v5012_v58, %v5028_v15 }
 0xf80   :  { %v5865_v11 = vsel %vm2367_vm4, %v5855_v43, -inf }
 0xf81   :  { %v5016_v10 = vrot.slane %v10667_v39, %v11508_v7  ;;  %5866 = vmax.xlane.f32.xlu1 %v5865_v11 }
 0xf83   :  { %v5030_v25 = vsel %vm2825_vm11, %v5016_v10, %v5029_v47 }
 0xf84   :  { %v5036_v48 = vsel %vm2367_vm4, %v5030_v25, -inf }
 0xf85   :  { %5037 = vmax.xlane.f32.xlu0 %v5036_v48 }
 0xfcc   :  { %v10678_v56 = vpop.xlane.xlu0 %5034 }
 0xfcd   :  { %v5048_v51 = vrot.slane %v10678_v56, %v9476_v0  ;;  %v5052_v19 = vrot.slane %v10678_v56, %v9479_v26 }
 0xfcf   :  { %v5122_v11 = vsub.f32 %v10526_v57, %v5048_v51  ;;  %v5060_v51 = vrot.slane %v10678_v56, %v9485_v37 }
0x1012   :  { %v10680_v21 = vpop.xlane.xlu0 %5037 }
0x1013   :  { %v5076_v49 = vrot.slane %v10680_v21, %v11447_v17  ;;  %v5080_v53 = vrot.slane %v10680_v21, %v9476_v0  ;;  %v5084_v58 = vrot.slane %v10680_v21, %v9479_v26  ;;  %v5088_v52 = vrot.slane %v10680_v21, %v9482_v61 }
0x1014   :  { %v5092_v47 = vrot.slane %v10680_v21, %v9485_v37 }
0x1015   :  { %v5129_v23 = vsub.f32 %v4929_v12, %v5076_v49  ;;  %v5130_v31 = vsub.f32 %v4930_v5, %v5080_v53  ;;  %v5131_v43 = vsub.f32 %v4931_v35, %v5084_v58  ;;  %v5132_v25 = vsub.f32 %v4932_v29, %v5088_v52 }
0x1016   :  { %v5056_v12 = vrot.slane %v10678_v56, %v9482_v61  ;;  %v5123_v5 = vsub.f32 %v10528_v40, %v5052_v19  ;;  %v5139_v49 = vmul.f32 1.442695, %v5122_v11  ;;  %v5096_v35 = vrot.slane %v10680_v21, %v9488_v32 }
0x1017   :  { %v5153_v10 = vmul.f32 1.442695, %v5129_v23  ;;  %v5155_v15 = vmul.f32 1.442695, %v5130_v31  ;;  %v5157_v48 = vmul.f32 1.442695, %v5131_v43  ;;  %v5133_v53 = vsub.f32 %v4933_v24, %v5092_v47 }
0x1018   :  { %v5159_v57 = vmul.f32 1.442695, %v5132_v25  ;;  %v5124_v29 = vsub.f32 %v10530_v3, %v5056_v12  ;;  %v5141_v58 = vmul.f32 1.442695, %v5123_v5  ;;  %v5100_v23 = vrot.slane %v10680_v21, %v9502_v46  ;;  %v10723_v25 = vpop.xlane.xlu1 %5869 }
0x1019   :  { %7778 = vpow2.f32 %v5153_v10  ;;  %v5134_v40 = vsub.f32 %v10639_v33, %v5096_v35  ;;  %v5161_v31 = vmul.f32 1.442695, %v5133_v53  ;;  %v5064_v52 = vrot.slane %v10678_v56, %v9488_v32 }
0x101a   :  { %7780 = vpow2.f32 %v5155_v15  ;;  %v5125_v24 = vsub.f32 %v10534_v50, %v5060_v51  ;;  %v5143_v43 = vmul.f32 1.442695, %v5124_v29  ;;  %v5044_v3 = vrot.slane %v10678_v56, %v11447_v17 }
0x101b   :  { %7782 = vpow2.f32 %v5157_v48  ;;  %v5135_v33 = vsub.f32 %v10645_v8, %v5100_v23  ;;  %v5163_v10 = vmul.f32 1.442695, %v5134_v40  ;;  %v5068_v50 = vrot.slane %v10678_v56, %v9502_v46 }
0x101c   :  { %7784 = vpow2.f32 %v5139_v49  ;;  %v5126_v15 = vsub.f32 %v10538_v41, %v5064_v52  ;;  %v5145_v47 = vmul.f32 1.442695, %v5125_v24  ;;  %v5121_v8 = vsub.f32 %v10532_v18, %v5044_v3 }
0x101d   :  { %7786 = vpow2.f32 %v5159_v57  ;;  %v5912_v5 = vrot.slane %v10723_v25, %v9476_v0  ;;  %v5165_v49 = vmul.f32 1.442695, %v5135_v33  ;;  %v5072_v41 = vrot.slane %v10678_v56, %v9494_v42 }
0x101e   :  { %7788 = vpow2.f32 %v5141_v58  ;;  %v5127_v35 = vsub.f32 %v10544_v13, %v5068_v50  ;;  %v5147_v53 = vmul.f32 1.442695, %v5126_v15  ;;  %v5137_v18 = vmul.f32 1.442695, %v5121_v8 }
0x101f   :  { %7790 = vpow2.f32 %v5161_v31  ;;  %v5916_v29 = vrot.slane %v10723_v25, %v9479_v26  ;;  %v5962_v58 = vsub.f32 %v10566_v30, %v5912_v5  ;;  %v5128_v56 = vsub.f32 %v10548_v34, %v5072_v41  ;;  %v10751_v31 = vpop.xlane.xlu1 %5866 }
0x1020   :  { %7792 = vpow2.f32 %v5143_v43  ;;  %v5149_v13 = vmul.f32 1.442695, %v5127_v35  ;;  %v5908_v23 = vrot.slane %v10723_v25, %v11447_v17  ;;  %v5920_v30 = vrot.slane %v10723_v25, %v9482_v61 }
0x1021   :  { %7794 = vpow2.f32 %v5163_v10  ;;  %v5963_v24 = vsub.f32 %v10570_v63, %v5916_v29  ;;  %v5987_v34 = vmul.f32 1.442695, %v5962_v58  ;;  %v5151_v43 = vmul.f32 1.442695, %v5128_v56 }
0x1022   :  { %7796 = vpow2.f32 %v5145_v47  ;;  %v5961_v3 = vsub.f32 %v10568_v38, %v5908_v23  ;;  %v5876_v33 = vrot.slane %v10751_v31, %v11447_v17  ;;  %v5924_v15 = vrot.slane %v10723_v25, %v9485_v37 }
0x1023   :  { %v10711_v19 = vpop.eup %7778  ;;  %7798 = vpow2.f32 %v5165_v49  ;;  %v5964_v63 = vsub.f32 %v10572_v60, %v5920_v30  ;;  %v5989_v47 = vmul.f32 1.442695, %v5963_v24  ;;  %v5888_v8 = vrot.slane %v10751_v31, %v9482_v61 }
0x1024   :  { %v10713_v11 = vpop.eup %7780  ;;  %5210 = vperm.xlu0 %7515, %v10711_v19   ;;  %7800 = vpow2.f32 %v5147_v53  ;;  %v5985_v38 = vmul.f32 1.442695, %v5961_v3  ;;  %v5953_v5 = vsub.f32 %v10586_v4, %v5876_v33  ;;  %v5928_v60 = vrot.slane %v10723_v25, %v9488_v32 }
0x1025   :  { %5213 = vperm.xlu1 %7514, %v10713_v11   ;;  %v10725_v48 = vpop.eup %7782  ;;  %7802 = vpow2.f32 %v5137_v18  ;;  %v5965_v35 = vsub.f32 %v10574_v36, %v5924_v15  ;;  %v5991_v53 = vmul.f32 1.442695, %v5964_v63  ;;  %v5892_v18 = vrot.slane %v10751_v31, %v9485_v37 }
0x1026   :  { %v10727_v12 = vpop.eup %7784  ;;  %7804 = vpow2.f32 %v5149_v13  ;;  %v5956_v4 = vsub.f32 %v10605_v44, %v5888_v8  ;;  %v5969_v29 = vmul.f32 1.442695, %v5953_v5  ;;  %v5966_v13 = vsub.f32 %v10580_v22, %v5928_v60 }
0x1027   :  { %v10737_v57 = vpop.eup %7786  ;;  %7806 = vpow2.f32 %v5987_v34  ;;  %v5993_v36 = vmul.f32 1.442695, %v5965_v35  ;;  %v5880_v23 = vrot.slane %v10751_v31, %v9476_v0  ;;  %v5896_v30 = vrot.slane %v10751_v31, %v9488_v32 }
0x1028   :  { %5216 = vperm.xlu0 %7515, %v10725_v48   ;;  %v10739_v51 = vpop.eup %7788  ;;  %7808 = vpow2.f32 %v5151_v43  ;;  %v5957_v44 = vsub.f32 %v10613_v54, %v5892_v18  ;;  %v5975_v24 = vmul.f32 1.442695, %v5956_v4  ;;  %v5995_v22 = vmul.f32 1.442695, %v5966_v13 }
0x1029   :  { %5189 = vperm.xlu1 %7514, %v10727_v12   ;;  %v10749_v40 = vpop.eup %7790  ;;  %7810 = vpow2.f32 %v5989_v47  ;;  %v5884_v3 = vrot.slane %v10751_v31, %v9479_v26  ;;  %v5954_v33 = vsub.f32 %v10597_v27, %v5880_v23  ;;  %v5900_v54 = vrot.slane %v10751_v31, %v9502_v46 }
0x102a   :  { %v10753_v52 = vpop.eup %7792  ;;  %7812 = vpow2.f32 %v5985_v38  ;;  %v5958_v15 = vsub.f32 %v10620_v1, %v5896_v30  ;;  %v5977_v63 = vmul.f32 1.442695, %v5957_v44  ;;  %v5932_v8 = vrot.slane %v10723_v25, %v9502_v46 }
0x102b   :  { %v10763_v10 = vpop.eup %7794  ;;  %7814 = vpow2.f32 %v5991_v53  ;;  %v5955_v27 = vsub.f32 %v10592_v20, %v5884_v3  ;;  %v5971_v5 = vmul.f32 1.442695, %v5954_v33  ;;  %v5904_v1 = vrot.slane %v10751_v31, %v9494_v42 }
0x102c   :  { %5219 = vperm.xlu0 %7515, %v10737_v57   ;;  %v10765_v50 = vpop.eup %7796  ;;  %7816 = vpow2.f32 %v5969_v29  ;;  %v5959_v60 = vsub.f32 %v10629_v59, %v5900_v54  ;;  %v5979_v35 = vmul.f32 1.442695, %v5958_v15  ;;  %v5936_v4 = vrot.slane %v10723_v25, %v9494_v42 }
0x102d   :  { %5192 = vperm.xlu1 %7514, %v10739_v51   ;;  %v10775_v49 = vpop.eup %7798  ;;  %7818 = vpow2.f32 %v5993_v36  ;;  %v5967_v20 = vsub.f32 %v10588_v6, %v5932_v8  ;;  %v5973_v29 = vmul.f32 1.442695, %v5955_v27  ;;  %v5960_v31 = vsub.f32 %v10652_v62, %v5904_v1 }
0x102e   :  { %v10777_v41 = vpop.eup %7800  ;;  %7820 = vpow2.f32 %v5975_v24  ;;  %v5981_v59 = vmul.f32 1.442695, %v5959_v60  ;;  %v5104_v13 = vrot.slane %v10680_v21, %v9494_v42  ;;  %v5968_v25 = vsub.f32 %v10607_v9, %v5936_v4 }
0x102f   :  { %v10787_v58 = vpop.eup %7802  ;;  %7822 = vpow2.f32 %v5995_v22  ;;  %v5997_v6 = vmul.f32 1.442695, %v5967_v20  ;;  %v5983_v30 = vmul.f32 1.442695, %v5960_v31 }
0x1030   :  { %5222 = vperm.xlu0 %7515, %v10749_v40   ;;  %v10789_v56 = vpop.eup %7804  ;;  %7824 = vpow2.f32 %v5977_v63  ;;  %v5136_v62 = vsub.f32 %v10667_v39, %v5104_v13  ;;  %v5999_v21 = vmul.f32 1.442695, %v5968_v25 }
0x1031   :  { %5195 = vperm.xlu1 %7514, %v10753_v52   ;;  %v10799_v34 = vpop.eup %7806  ;;  %7826 = vpow2.f32 %v5971_v5 }
0x1032   :  { %v10801_v43 = vpop.eup %7808  ;;  %7828 = vpow2.f32 %v5979_v35  ;;  %v5167_v9 = vmul.f32 1.442695, %v5136_v62 }
0x1033   :  { %v10811_v47 = vpop.eup %7810  ;;  %7830 = vpow2.f32 %v5973_v29 }
0x1034   :  { %5225 = vperm.xlu0 %7515, %v10763_v10   ;;  %v10813_v38 = vpop.eup %7812  ;;  %7832 = vpow2.f32 %v5981_v59 }
0x1035   :  { %5198 = vperm.xlu1 %7514, %v10765_v50   ;;  %v10823_v53 = vpop.eup %7814  ;;  %7834 = vpow2.f32 %v5997_v6 }
0x1036   :  { %v10825_v18 = vpop.eup %7816  ;;  %7836 = vpow2.f32 %v5983_v30 }
0x1037   :  { %v10835_v36 = vpop.eup %7818  ;;  %7838 = vpow2.f32 %v5999_v21 }
0x1038   :  { %5228 = vperm.xlu0 %7515, %v10775_v49   ;;  %v10837_v23 = vpop.eup %7820  ;;  %7840 = vpow2.f32 %v5167_v9 }
0x1039   :  { %5201 = vperm.xlu1 %7514, %v10777_v41   ;;  %v10843_v44 = vpop.eup %7822 }
0x103a   :  { %v10845_v24 = vpop.eup %7824 }
0x103b   :  { %v10849_v22 = vpop.eup %7826 }
0x103c   :  { %5186 = vperm.xlu0 %7515, %v10787_v58   ;;  %v10851_v3 = vpop.eup %7828 }
0x103d   :  { %5204 = vperm.xlu1 %7514, %v10789_v56   ;;  %v10855_v39 = vpop.eup %7830 }
0x103e   :  { %11610 = vst [vmem:[#allocation12_spill] sm:$0xff] %v10855_v39  ;;  %v10857_v33 = vpop.eup %7832 }
0x103f   :  { %11611 = vst [vmem:[#allocation15_spill] sm:$0xff] %v10857_v33  ;;  %v10861_v54 = vpop.eup %7834 }
0x1040   :  { %6045 = vperm.xlu0 %7515, %v10799_v34   ;;  %11612 = vst [vmem:[#allocation14_spill] sm:$0xff] %v10861_v54  ;;  %v10863_v15 = vpop.eup %7836 }
0x1041   :  { %5207 = vperm.xlu1 %7514, %v10801_v43   ;;  %11613 = vst [vmem:[#allocation76_spill] sm:$0xff] %v10863_v15  ;;  %v10867_v63 = vpop.eup %7838 }
0x1042   :  { %11614 = vst [vmem:[#allocation77_spill] sm:$0xff] %v10867_v63  ;;  %v10869_v8 = vpop.eup %7840 }
0x1043   :  { %11615 = vst [vmem:[#allocation10_spill] sm:$0xff] %v10869_v8 }
0x1044   :  { %6048 = vperm.xlu0 %7515, %v10811_v47  }
0x1045   :  { %6042 = vperm.xlu1 %7514, %v10813_v38  }
0x1048   :  { %6051 = vperm.xlu0 %7515, %v10823_v53  }
0x1049   :  { %6018 = vperm.xlu1 %7514, %v10825_v18  }
0x104c   :  { %6054 = vperm.xlu0 %7515, %v10835_v36  }
0x104d   :  { %6027 = vperm.xlu1 %7514, %v10837_v23  }
0x1050   :  { %6057 = vperm.xlu0 %7515, %v10843_v44  }
0x1051   :  { %6030 = vperm.xlu1 %7514, %v10845_v24  }
0x1054   :  { %6021 = vperm.xlu0 %7515, %v10849_v22  }
0x1055   :  { %6033 = vperm.xlu1 %7514, %v10851_v3  }
0x1058   :  { %6024 = vperm.xlu0 %7515, %v10855_v39  }
0x1059   :  { %6036 = vperm.xlu1 %7514, %v10857_v33  }
0x105c   :  { %6060 = vperm.xlu0 %7515, %v10861_v54  }
0x105d   :  { %6039 = vperm.xlu1 %7514, %v10863_v15  }
0x1060   :  { %6063 = vperm.xlu0 %7515, %v10867_v63  }
0x1061   :  { %5231 = vperm.xlu1 %7514, %v10869_v8  }
0x10a3   :  { %v5211_v27 = vpop.permute.xlu0 %5210 }
0x10a4   :  { %v5214_v5 = vpop.permute.xlu1 %5213 }
0x10a7   :  { %v10873_v1 = vpop.permute.xlu0 %5216 }
0x10a8   :  { %v5190_v60 = vpop.permute.xlu1 %5189 }
0x10a9   :  { %v5240_v30 = vrot.slane %v5190_v60, %v11508_v7 }
0x10ab   :  { %v10875_v35 = vpop.permute.xlu0 %5219 }
0x10ac   :  { %v5193_v4 = vpop.permute.xlu1 %5192 }
0x10ad   :  { %v5244_v9 = vrot.slane %v5193_v4, %v11508_v7 }
0x10af   :  { %v10877_v20 = vpop.permute.xlu0 %5222 }
0x10b0   :  { %v5196_v29 = vpop.permute.xlu1 %5195 }
0x10b1   :  { %v5248_v14 = vrot.slane %v5196_v29, %v11508_v7 }
0x10b3   :  { %v10879_v31 = vpop.permute.xlu0 %5225 }
0x10b4   :  { %v5199_v59 = vpop.permute.xlu1 %5198 }
0x10b5   :  { %v5252_v45 = vrot.slane %v5199_v59, %v11508_v7 }
0x10b7   :  { %v10881_v13 = vpop.permute.xlu0 %5228 }
0x10b8   :  { %v5202_v25 = vpop.permute.xlu1 %5201 }
0x10b9   :  { %v5256_v28 = vrot.slane %v5202_v25, %v11508_v7 }
0x10bb   :  { %v5187_v6 = vpop.permute.xlu0 %5186 }
0x10bc   :  { %v5205_v62 = vpop.permute.xlu1 %5204  ;;  %v5236_v21 = vrot.slane %v5187_v6, %v11508_v7 }
0x10bd   :  { %v5260_v60 = vrot.slane %v5205_v62, %v11508_v7 }
0x10be   :  { %v5297_v16 = vsel %vm2813_vm5, %v5240_v30, %v5236_v21 }
0x10bf   :  { %v5298_v55 = vsel %vm2815_vm6, %v5244_v9, %v5297_v16  ;;  %v6046_v2 = vpop.permute.xlu0 %6045 }
0x10c0   :  { %v5299_v63 = vsel %vm2817_vm7, %v5248_v14, %v5298_v55  ;;  %v5208_v8 = vpop.permute.xlu1 %5207 }
0x10c1   :  { %v5300_v6 = vsel %vm2819_vm8, %v5252_v45, %v5299_v63  ;;  %v5264_v4 = vrot.slane %v5208_v8, %v11508_v7  ;;  %v5272_v63 = vrot.slane %v5214_v5, %v11508_v7 }
0x10c2   :  { %v5301_v29 = vsel %vm2821_vm9, %v5256_v28, %v5300_v6  ;;  %v5268_v28 = vrot.slane %v5211_v27, %v11508_v7  ;;  %v5280_v27 = vrot.slane %v10875_v35, %v11508_v7 }
0x10c3   :  { %v6049_v54 = vpop.permute.xlu0 %6048  ;;  %v5302_v30 = vsel %vm2823_vm10, %v5260_v60, %v5301_v29 }
0x10c4   :  { %v6043_v59 = vpop.permute.xlu1 %6042  ;;  %v5303_v16 = vsel %vm2825_vm11, %v5264_v4, %v5302_v30  ;;  %v5304_v30 = vsel %vm2813_vm5, %v5272_v63, %v5268_v28  ;;  %v5284_v28 = vrot.slane %v10877_v20, %v11508_v7 }
0x10c5   :  { %v5313_v21 = vsel %vm2367_vm4, %v5303_v16, 0.0  ;;  %v6100_v6 = vrot.slane %v6043_v59, %v11508_v7  ;;  %v5276_v16 = vrot.slane %v10873_v1, %v11508_v7 }
0x10c6   :  { %5314 = vadd.xlane.f32.xlu1 %v5313_v21  ;;  %v6104_v21 = vrot.slane %v6046_v2, %v11508_v7 }
0x10c7   :  { %v6052_v25 = vpop.permute.xlu0 %6051 }
0x10c8   :  { %v6019_v14 = vpop.permute.xlu1 %6018  ;;  %v6136_v33 = vsel %vm2813_vm5, %v6104_v21, %v6100_v6  ;;  %v6112_v63 = vrot.slane %v6052_v25, %v11508_v7 }
0x10c9   :  { %v6068_v4 = vrot.slane %v6019_v14, %v11508_v7 }
0x10cb   :  { %v6055_v55 = vpop.permute.xlu0 %6054 }
0x10cc   :  { %v6028_v9 = vpop.permute.xlu1 %6027 }
0x10cd   :  { %v6080_v59 = vrot.slane %v6028_v9, %v11508_v7 }
0x10cf   :  { %v6058_v62 = vpop.permute.xlu0 %6057 }
0x10d0   :  { %v6031_v15 = vpop.permute.xlu1 %6030  ;;  %v6120_v6 = vrot.slane %v6058_v62, %v11508_v7 }
0x10d1   :  { %v6084_v1 = vrot.slane %v6031_v15, %v11508_v7 }
0x10d3   :  { %v6022_v45 = vpop.permute.xlu0 %6021 }
0x10d4   :  { %v6034_v8 = vpop.permute.xlu1 %6033  ;;  %v6072_v60 = vrot.slane %v6022_v45, %v11508_v7  ;;  %v6108_v45 = vrot.slane %v6049_v54, %v11508_v7 }
0x10d5   :  { %v6088_v35 = vrot.slane %v6034_v8, %v11508_v7 }
0x10d6   :  { %v6129_v14 = vsel %vm2813_vm5, %v6072_v60, %v6068_v4  ;;  %v5288_v60 = vrot.slane %v10879_v31, %v11508_v7  ;;  %v6137_v21 = vsel %vm2815_vm6, %v6108_v45, %v6136_v33  ;;  %v5292_v31 = vrot.slane %v10881_v13, %v11508_v7 }
0x10d7   :  { %v6025_v29 = vpop.permute.xlu0 %6024  ;;  %v6138_v62 = vsel %vm2817_vm7, %v6112_v63, %v6137_v21 }
0x10d8   :  { %v6037_v39 = vpop.permute.xlu1 %6036  ;;  %v6076_v5 = vrot.slane %v6025_v29, %v11508_v7  ;;  %v6116_v29 = vrot.slane %v6055_v55, %v11508_v7 }
0x10d9   :  { %v6092_v25 = vrot.slane %v6037_v39, %v11508_v7 }
0x10da   :  { %v6130_v2 = vsel %vm2815_vm6, %v6076_v5, %v6129_v14  ;;  %v5305_v5 = vsel %vm2815_vm6, %v5276_v16, %v5304_v30  ;;  %v6139_v14 = vsel %vm2819_vm8, %v6116_v29, %v6138_v62 }
0x10db   :  { %v6131_v54 = vsel %vm2817_vm7, %v6080_v59, %v6130_v2  ;;  %v6061_v9 = vpop.permute.xlu0 %6060  ;;  %v5306_v59 = vsel %vm2817_vm7, %v5280_v27, %v5305_v5  ;;  %v6140_v2 = vsel %vm2821_vm9, %v6120_v6, %v6139_v14 }
0x10dc   :  { %v6040_v15 = vpop.permute.xlu1 %6039  ;;  %v6132_v4 = vsel %vm2819_vm8, %v6084_v1, %v6131_v54  ;;  %v6124_v55 = vrot.slane %v6061_v9, %v11508_v7  ;;  %v5307_v1 = vsel %vm2819_vm8, %v5284_v28, %v5306_v59 }
0x10dd   :  { %v6096_v20 = vrot.slane %v6040_v15, %v11508_v7  ;;  %v6133_v8 = vsel %vm2821_vm9, %v6088_v35, %v6132_v4  ;;  %v5308_v16 = vsel %vm2821_vm9, %v5288_v60, %v5307_v1 }
0x10de   :  { %v6134_v39 = vsel %vm2823_vm10, %v6092_v25, %v6133_v8  ;;  %v6141_v27 = vsel %vm2823_vm10, %v6124_v55, %v6140_v2  ;;  %v5309_v54 = vsel %vm2823_vm10, %v5292_v31, %v5308_v16 }
0x10df   :  { %v6064_v33 = vpop.permute.xlu0 %6063  ;;  %v6135_v45 = vsel %vm2825_vm11, %v6096_v20, %v6134_v39 }
0x10e0   :  { %v5232_v35 = vpop.permute.xlu1 %5231  ;;  %v6128_v30 = vrot.slane %v6064_v33, %v11508_v7  ;;  %v6145_v13 = vsel %vm2367_vm4, %v6135_v45, 0.0 }
0x10e1   :  { %v5296_v63 = vrot.slane %v5232_v35, %v11508_v7  ;;  %6146 = vadd.xlane.f32.xlu0 %v6145_v13 }
0x10e2   :  { %v6142_v29 = vsel %vm2825_vm11, %v6128_v30, %v6141_v27 }
0x10e3   :  { %v6148_v28 = vsel %vm2367_vm4, %v6142_v29, 0.0  ;;  %v5310_v9 = vsel %vm2825_vm11, %v5296_v63, %v5309_v54 }
0x10e4   :  { %6149 = vadd.xlane.f32.xlu1 %v6148_v28  ;;  %v5316_v6 = vsel %vm2367_vm4, %v5310_v9, 0.0 }
0x10e5   :  { %5317 = vadd.xlane.f32.xlu0 %v5316_v6 }
0x1153   :  { %v5315_v60 = vpop.xlane.xlu1 %5314 }
0x1154   :  { %v5328_v21 = vrot.slane %v5315_v60, %v9476_v0  ;;  %v5332_v55 = vrot.slane %v5315_v60, %v9479_v26  ;;  %v5336_v5 = vrot.slane %v5315_v60, %v9482_v61  ;;  %v5340_v39 = vrot.slane %v5315_v60, %v9485_v37 }
0x1155   :  { %v5344_v35 = vrot.slane %v5315_v60, %v9488_v32  ;;  %v5324_v29 = vrot.slane %v5315_v60, %v11447_v17 }
0x116e   :  { %v10952_v25 = vpop.xlane.xlu0 %6146 }
0x1172   :  { %v10954_v15 = vpop.xlane.xlu0 %5317 }
0x1173   :  { %v5360_v7 = vrot.slane %v10954_v15, %v9476_v0  ;;  %v5356_v4 = vrot.slane %v10954_v15, %v11447_v17  ;;  %v5364_v20 = vrot.slane %v10954_v15, %v9479_v26  ;;  %v5368_v8 = vrot.slane %v10954_v15, %v9482_v61 }
0x1174   :  { %v5372_v31 = vrot.slane %v10954_v15, %v9485_v37  ;;  %v5376_v33 = vrot.slane %v10954_v15, %v9488_v32  ;;  %v5380_v13 = vrot.slane %v10954_v15, %v9502_v46 }
0x1175   :  { %7842 = vrcp.f32 %v5360_v7 }
0x1176   :  { %7844 = vrcp.f32 %v5356_v4 }
0x1177   :  { %7846 = vrcp.f32 %v5328_v21 }
0x1178   :  { %7848 = vrcp.f32 %v5364_v20 }
0x1179   :  { %7850 = vrcp.f32 %v5332_v55 }
0x117a   :  { %7852 = vrcp.f32 %v5368_v8 }
0x117b   :  { %7854 = vrcp.f32 %v5336_v5 }
0x117c   :  { %7856 = vrcp.f32 %v5372_v31 }
0x117d   :  { %7858 = vrcp.f32 %v5340_v39 }
0x117e   :  { %7860 = vrcp.f32 %v5376_v33 }
0x117f   :  { %v7843_v62 = vpop.eup %7842  ;;  %7862 = vrcp.f32 %v5344_v35 }
0x1180   :  { %v7845_v59 = vpop.eup %7844  ;;  %v5420_v14 = vmul.f32 %v7843_v62, %v10713_v11  ;;  %7864 = vrcp.f32 %v5380_v13 }
0x1181   :  { %v7847_v45 = vpop.eup %7846  ;;  %v5418_v1 = vmul.f32 %v7845_v59, %v10711_v19  ;;  %v5348_v19 = vrot.slane %v5315_v60, %v9502_v46 }
0x1182   :  { %v7849_v2 = vpop.eup %7848  ;;  %5480 = vperm.xlu1 %7514, %v5420_v14   ;;  %v5404_v30 = vmul.f32 %v7847_v45, %v10727_v12  ;;  %v10982_v12 = vpop.xlane.xlu1 %6149 }
0x1183   :  { %5475 = vperm.xlu0 %7515, %v5418_v1   ;;  %v7851_v11 = vpop.eup %7850  ;;  %v5422_v16 = vmul.f32 %v7849_v2, %v10725_v48  ;;  %7866 = vrcp.f32 %v5348_v19  ;;  %v5352_v48 = vrot.slane %v5315_v60, %v9494_v42 }
0x1184   :  { %v7853_v63 = vpop.eup %7852  ;;  %v5406_v27 = vmul.f32 %v7851_v11, %v10739_v51  ;;  %7868 = vrcp.f32 %v5324_v29  ;;  %v6192_v51 = vrot.slane %v10982_v12, %v9476_v0 }
0x1185   :  { %v7855_v54 = vpop.eup %7854  ;;  %v5424_v28 = vmul.f32 %v7853_v63, %v10737_v57  ;;  %7870 = vrcp.f32 %v5352_v48  ;;  %v6188_v57 = vrot.slane %v10982_v12, %v11447_v17 }
0x1186   :  { %5440 = vperm.xlu1 %7514, %v5404_v30   ;;  %v7857_v9 = vpop.eup %7856  ;;  %v5408_v6 = vmul.f32 %v7855_v54, %v10753_v52  ;;  %7872 = vrcp.f32 %v6192_v51  ;;  %v6196_v52 = vrot.slane %v10982_v12, %v9479_v26 }
0x1187   :  { %5485 = vperm.xlu0 %7515, %v5422_v16   ;;  %v7859_v7 = vpop.eup %7858  ;;  %v5426_v4 = vmul.f32 %v7857_v9, %v10749_v40  ;;  %7874 = vrcp.f32 %v6188_v57  ;;  %v6156_v40 = vrot.slane %v10952_v25, %v11447_v17  ;;  %v6204_v17 = vrot.slane %v10982_v12, %v9485_v37 }
0x1188   :  { %v7861_v21 = vpop.eup %7860  ;;  %v5410_v20 = vmul.f32 %v7859_v7, %v10765_v50  ;;  %7876 = vrcp.f32 %v6196_v52  ;;  %v6200_v50 = vrot.slane %v10982_v12, %v9482_v61  ;;  %v11621_v52 = vld [vmem:[#allocation77_spill] sm:$0xff] }
0x1189   :  { %v7863_v60 = vpop.eup %7862  ;;  %v5428_v55 = vmul.f32 %v7861_v21, %v10763_v10  ;;  %7878 = vrcp.f32 %v6156_v40  ;;  %v6168_v10 = vrot.slane %v10952_v25, %v9482_v61  ;;  %v6208_v61 = vrot.slane %v10982_v12, %v9488_v32  ;;  %v11619_v21 = vld [vmem:[#allocation14_spill] sm:$0xff] }
0x118a   :  { %5445 = vperm.xlu1 %7514, %v5406_v27   ;;  %v7865_v8 = vpop.eup %7864  ;;  %v5412_v5 = vmul.f32 %v7863_v60, %v10777_v41  ;;  %7880 = vrcp.f32 %v6200_v50  ;;  %v11623_v50 = vld [vmem:[#allocation68_spill] sm:$0xff] }
0x118b   :  { %5490 = vperm.xlu0 %7515, %v5424_v28   ;;  %v5430_v62 = vmul.f32 %v7865_v8, %v10775_v49  ;;  %7882 = vrcp.f32 %v6168_v10  ;;  %v6172_v49 = vrot.slane %v10952_v25, %v9485_v37  ;;  %v6160_v37 = vrot.slane %v10952_v25, %v9476_v0  ;;  %v11622_v8 = vld [vmem:[#allocation74_spill] sm:$0xff] }
0x118c   :  { %7884 = vrcp.f32 %v6204_v17 }
0x118d   :  { %v7867_v31 = vpop.eup %7866  ;;  %7886 = vrcp.f32 %v6172_v49 }
0x118e   :  { %5450 = vperm.xlu1 %7514, %v5408_v6   ;;  %v7869_v39 = vpop.eup %7868  ;;  %v5414_v59 = vmul.f32 %v7867_v31, %v10789_v56  ;;  %7888 = vrcp.f32 %v6208_v61 }
0x118f   :  { %5495 = vperm.xlu0 %7515, %v5426_v4   ;;  %v7871_v41 = vpop.eup %7870  ;;  %v5402_v14 = vmul.f32 %v7869_v39, %v10787_v58  ;;  %v6176_v58 = vrot.slane %v10952_v25, %v9488_v32  ;;  %v6164_v32 = vrot.slane %v10952_v25, %v9479_v26 }
0x1190   :  { %v7873_v33 = vpop.eup %7872  ;;  %v5416_v45 = vmul.f32 %v7871_v41, %v10801_v43  ;;  %v11624_v41 = vld [vmem:[#allocation69_spill] sm:$0xff] }
0x1191   :  { %v7875_v56 = vpop.eup %7874  ;;  %v6252_v1 = vmul.f32 %v7873_v33, %v10799_v34  ;;  %7890 = vrcp.f32 %v6176_v58  ;;  %v6180_v34 = vrot.slane %v10952_v25, %v9502_v46 }
0x1192   :  { %5455 = vperm.xlu1 %7514, %v5410_v20   ;;  %v7877_v2 = vpop.eup %7876  ;;  %v6250_v35 = vmul.f32 %v7875_v56, %v10813_v38  ;;  %7892 = vrcp.f32 %v6160_v37 }
0x1193   :  { %5500 = vperm.xlu0 %7515, %v5428_v55   ;;  %v7879_v43 = vpop.eup %7878  ;;  %v6254_v30 = vmul.f32 %v7877_v2, %v10811_v47  ;;  %7894 = vrcp.f32 %v6180_v34  ;;  %v6184_v47 = vrot.slane %v10952_v25, %v9494_v42 }
0x1194   :  { %v7881_v13 = vpop.eup %7880  ;;  %v6234_v11 = vmul.f32 %v7879_v43, %v10825_v18  ;;  %7896 = vrcp.f32 %v6164_v32  ;;  %v6212_v18 = vrot.slane %v10982_v12, %v9502_v46 }
0x1195   :  { %v7883_v38 = vpop.eup %7882  ;;  %v6256_v16 = vmul.f32 %v7881_v13, %v10823_v53  ;;  %7898 = vrcp.f32 %v6184_v47  ;;  %v5384_v53 = vrot.slane %v10954_v15, %v9494_v42  ;;  %v11626_v13 = vld [vmem:[#allocation11_spill] sm:$0xff] }
0x1196   :  { %5460 = vperm.xlu1 %7514, %v5412_v5   ;;  %v7885_v0 = vpop.eup %7884  ;;  %v6240_v63 = vmul.f32 %v7883_v38, %v10837_v23  ;;  %7900 = vrcp.f32 %v6212_v18  ;;  %v6216_v23 = vrot.slane %v10982_v12, %v9494_v42  ;;  %v11617_v42 = vld [vmem:[#allocation12_spill] sm:$0xff] }
0x1197   :  { %5505 = vperm.xlu0 %7515, %v5430_v62   ;;  %v7887_v19 = vpop.eup %7886  ;;  %v6258_v27 = vmul.f32 %v7885_v0, %v10835_v36  ;;  %7902 = vrcp.f32 %v5384_v53 }
0x1198   :  { %v7889_v26 = vpop.eup %7888  ;;  %v6242_v29 = vmul.f32 %v7887_v19, %v10845_v24  ;;  %7904 = vrcp.f32 %v6216_v23  ;;  %v11616_v24 = vld [vmem:[#allocation15_spill] sm:$0xff] }
0x1199   :  { %v6260_v54 = vmul.f32 %v7889_v26, %v10843_v44  ;;  %v11618_v44 = vld [vmem:[#allocation76_spill] sm:$0xff] }
0x119a   :  { %5465 = vperm.xlu1 %7514, %v5414_v59  }
0x119b   :  { %5435 = vperm.xlu0 %7515, %v5402_v14   ;;  %v7891_v25 = vpop.eup %7890 }
0x119c   :  { %v7893_v46 = vpop.eup %7892  ;;  %v6244_v36 = vmul.f32 %v7891_v25, %v10851_v3  ;;  %v11628_v25 = vld [vmem:[#allocation53_spill] sm:$0xff] }
0x119d   :  { %v7895_v28 = vpop.eup %7894  ;;  %v6236_v9 = vmul.f32 %v7893_v46, %v10849_v22  ;;  %v11620_v22 = vld [vmem:[#allocation10_spill] sm:$0xff] }
0x119e   :  { %5470 = vperm.xlu1 %7514, %v5416_v45   ;;  %v7897_v15 = vpop.eup %7896  ;;  %v6246_v48 = vmul.f32 %v7895_v28, %v11616_v24  ;;  %v11625_v45 = vld [vmem:[#allocation49_spill] sm:$0xff] }
0x119f   :  { %6312 = vperm.xlu0 %7515, %v6252_v1   ;;  %v7899_v6 = vpop.eup %7898  ;;  %v6238_v12 = vmul.f32 %v7897_v15, %v11617_v42 }
0x11a0   :  { %v7901_v51 = vpop.eup %7900  ;;  %v6248_v7 = vmul.f32 %v7899_v6, %v11618_v44 }
0x11a1   :  { %v7903_v4 = vpop.eup %7902  ;;  %v6262_v3 = vmul.f32 %v7901_v51, %v11619_v21 }
0x11a2   :  { %6307 = vperm.xlu1 %7514, %v6250_v35   ;;  %v7905_v57 = vpop.eup %7904  ;;  %v5432_v20 = vmul.f32 %v7903_v4, %v11620_v22 }
0x11a3   :  { %6317 = vperm.xlu0 %7515, %v6254_v30   ;;  %v6264_v60 = vmul.f32 %v7905_v57, %v11621_v52 }
0x11a6   :  { %6267 = vperm.xlu1 %7514, %v6234_v11  }
0x11a7   :  { %6322 = vperm.xlu0 %7515, %v6256_v16   ;;  %v11627_v16 = vld [vmem:[#allocation75_spill] sm:$0xff] }
0x11aa   :  { %6282 = vperm.xlu1 %7514, %v6240_v63  }
0x11ab   :  { %6327 = vperm.xlu0 %7515, %v6258_v27  }
0x11ae   :  { %6287 = vperm.xlu1 %7514, %v6242_v29  }
0x11af   :  { %6332 = vperm.xlu0 %7515, %v6260_v54  }
0x11b2   :  { %6292 = vperm.xlu1 %7514, %v6244_v36  }
0x11b3   :  { %6272 = vperm.xlu0 %7515, %v6236_v9   ;;  %v11629_v9 = vld [vmem:[#allocation52_spill] sm:$0xff] }
0x11b6   :  { %6297 = vperm.xlu1 %7514, %v6246_v48  }
0x11b7   :  { %6277 = vperm.xlu0 %7515, %v6238_v12  }
0x11ba   :  { %6302 = vperm.xlu1 %7514, %v6248_v7  }
0x11bb   :  { %6337 = vperm.xlu0 %7515, %v6262_v3  }
0x11be   :  { %5510 = vperm.xlu1 %7514, %v5432_v20  }
0x11bf   :  { %6342 = vperm.xlu0 %7515, %v6264_v60  }
0x1201   :  { %v5481_v55 = vpop.permute.xlu1 %5480 }
0x1202   :  { %v5522_v40 = vmul.f32 %v5481_v55, %v11622_v8  ;;  %v5476_v5 = vpop.permute.xlu0 %5475  ;;  %v11630_v55 = vld [vmem:[#allocation71_spill] sm:$0xff] }
0x1203   :  { %v5521_v31 = vmul.f32 %v5476_v5, %v11623_v50 }
0x1204   :  { %v5592_v62 = vsel %vm3332_vm12, %v5522_v40, 0.0 }
0x1205   :  { %v5593_v39 = vrot.slane %v5592_v62, 4  ;;  %v5585_v10 = vsel %vm3332_vm12, %v5521_v31, 0.0  ;;  %v5441_v59 = vpop.permute.xlu1 %5440 }
0x1206   :  { %v5586_v17 = vrot.slane %v5585_v10, 4  ;;  %v5514_v14 = vmul.f32 %v5441_v59, %v11624_v41  ;;  %v5486_v33 = vpop.permute.xlu0 %5485 }
0x1207   :  { %v5594_v49 = vadd.f32 %v5593_v39, %v5592_v62  ;;  %v5523_v61 = vmul.f32 %v5486_v33, %v11625_v45  ;;  %v11631_v39 = vld [vmem:[#allocation57_spill] sm:$0xff] }
0x1208   :  { %v5587_v56 = vadd.f32 %v5586_v17, %v5585_v10  ;;  %v5536_v1 = vsel %vm3332_vm12, %v5514_v14, 0.0 }
0x1209   :  { %v5595_v2 = vrot.slane %v5594_v49, 2  ;;  %v5537_v58 = vrot.slane %v5536_v1, 4  ;;  %v5599_v35 = vsel %vm3332_vm12, %v5523_v61, 0.0  ;;  %v5446_v37 = vpop.permute.xlu1 %5445 }
0x120a   :  { %v5588_v43 = vrot.slane %v5587_v56, 2  ;;  %v5600_v30 = vrot.slane %v5599_v35, 4  ;;  %v5515_v34 = vmul.f32 %v5446_v37, %v11626_v13  ;;  %v5491_v11 = vpop.permute.xlu0 %5490 }
0x120b   :  { %v5596_v32 = vadd.f32 %v5595_v2, %v5594_v49  ;;  %v5538_v38 = vadd.f32 %v5537_v58, %v5536_v1  ;;  %v5524_v0 = vmul.f32 %v5491_v11, %v11627_v16 }
0x120c   :  { %v5589_v47 = vadd.f32 %v5588_v43, %v5587_v56  ;;  %v5601_v63 = vadd.f32 %v5600_v30, %v5599_v35  ;;  %v5543_v18 = vsel %vm3332_vm12, %v5515_v34, 0.0  ;;  %v11632_v35 = vld [vmem:[#allocation54_spill] sm:$0xff] }
0x120d   :  { %v5539_v19 = vrot.slane %v5538_v38, 2  ;;  %v5544_v27 = vrot.slane %v5543_v18, 4  ;;  %v5606_v26 = vsel %vm3332_vm12, %v5524_v0, 0.0  ;;  %v5451_v53 = vpop.permute.xlu1 %5450  ;;  %v5597_v36 = vrot.slane %v5596_v32, 1 }
0x120e   :  { %v5602_v29 = vrot.slane %v5601_v63, 2  ;;  %v5607_v23 = vrot.slane %v5606_v26, 4  ;;  %v5516_v54 = vmul.f32 %v5451_v53, %v11628_v25  ;;  %v5496_v46 = vpop.permute.xlu0 %5495  ;;  %v5590_v24 = vrot.slane %v5589_v47, 1 }
0x120f   :  { %v5545_v28 = vadd.f32 %v5544_v27, %v5543_v18  ;;  %v5525_v15 = vmul.f32 %v5496_v46, %v11629_v9  ;;  %v5540_v12 = vadd.f32 %v5539_v19, %v5538_v38  ;;  %v5598_v20 = vadd.f32 %v5597_v36, %v5596_v32  ;;  %v11634_v36 = vld [vmem:[#allocation73_spill] sm:$0xff] }
0x1210   :  { %v5603_v48 = vadd.f32 %v5602_v29, %v5601_v63  ;;  %v5608_v6 = vadd.f32 %v5607_v23, %v5606_v26  ;;  %v5550_v42 = vsel %vm3332_vm12, %v5516_v54, 0.0  ;;  %v5591_v5 = vadd.f32 %v5590_v24, %v5589_v47  ;;  %v11633_v47 = vld [vmem:[#allocation48_spill] sm:$0xff] }
0x1211   :  { %v5546_v51 = vrot.slane %v5545_v28, 2  ;;  %v5551_v44 = vrot.slane %v5550_v42, 4  ;;  %v5613_v7 = vsel %vm3332_vm12, %v5525_v15, 0.0  ;;  %v5456_v4 = vpop.permute.xlu1 %5455  ;;  %v5541_v59 = vrot.slane %v5540_v12, 1 }
0x1212   :  { %v5604_v21 = vrot.slane %v5603_v48, 1  ;;  %v5609_v3 = vrot.slane %v5608_v6, 2  ;;  %v5614_v57 = vrot.slane %v5613_v7, 4  ;;  %v5501_v22 = vpop.permute.xlu0 %5500  ;;  %v5517_v40 = vmul.f32 %v5456_v4, %v11630_v55 }
0x1213   :  { %v5547_v52 = vadd.f32 %v5546_v51, %v5545_v28  ;;  %v5552_v60 = vadd.f32 %v5551_v44, %v5550_v42  ;;  %v5526_v10 = vmul.f32 %v5501_v22, %v11631_v39  ;;  %v6496_v43 = vsel %vm2813_vm5, %v5598_v20, %v5591_v5  ;;  %v11635_v44 = vld [vmem:[#allocation50_spill] sm:$0xff] }
0x1214   :  { %v5610_v31 = vadd.f32 %v5609_v3, %v5608_v6  ;;  %v5615_v62 = vadd.f32 %v5614_v57, %v5613_v7  ;;  %v5557_v14 = vsel %vm3332_vm12, %v5517_v40, 0.0  ;;  %v5605_v49 = vadd.f32 %v5604_v21, %v5603_v48  ;;  %v11636_v40 = vld [vmem:[#allocation13_spill] sm:$0xff] }
0x1215   :  { %v5553_v17 = vrot.slane %v5552_v60, 2  ;;  %v5461_v33 = vpop.permute.xlu1 %5460  ;;  %v5558_v56 = vrot.slane %v5557_v14, 4  ;;  %v5548_v2 = vrot.slane %v5547_v52, 1  ;;  %v5620_v58 = vsel %vm3332_vm12, %v5526_v10, 0.0 }
0x1216   :  { %v5611_v61 = vrot.slane %v5610_v31, 1  ;;  %v5506_v1 = vpop.permute.xlu0 %5505  ;;  %v5518_v37 = vmul.f32 %v5461_v33, %v11632_v35  ;;  %v5616_v30 = vrot.slane %v5615_v62, 2  ;;  %v5621_v11 = vrot.slane %v5620_v58, 4 }
0x1217   :  { %v5559_v34 = vadd.f32 %v5558_v56, %v5557_v14  ;;  %v11068_v32 = vadd.f32 %v5541_v59, %v5540_v12  ;;  %v5554_v38 = vadd.f32 %v5553_v17, %v5552_v60  ;;  %v5527_v63 = vmul.f32 %v5506_v1, %v11633_v47 }
0x1218   :  { %v5564_v0 = vsel %vm3332_vm12, %v5518_v37, 0.0  ;;  %v6497_v19 = vsel %vm2815_vm6, %v5605_v49, %v6496_v43  ;;  %v5612_v27 = vadd.f32 %v5611_v61, %v5610_v31  ;;  %v5622_v53 = vadd.f32 %v5621_v11, %v5620_v58 }
0x1219   :  { %v5466_v18 = vpop.permute.xlu1 %5465  ;;  %v5560_v26 = vrot.slane %v5559_v34, 2  ;;  %v11073_v23 = vadd.f32 %v5548_v2, %v5547_v52  ;;  %v5565_v54 = vrot.slane %v5564_v0, 4  ;;  %v5627_v46 = vsel %vm3332_vm12, %v5527_v63, 0.0 }
0x121a   :  { %v5436_v29 = vpop.permute.xlu0 %5435  ;;  %v5519_v28 = vmul.f32 %v5466_v18, %v11634_v36  ;;  %v5617_v15 = vadd.f32 %v5616_v30, %v5615_v62  ;;  %v5623_v48 = vrot.slane %v5622_v53, 2  ;;  %v5628_v6 = vrot.slane %v5627_v46, 4 }
0x121b   :  { %v5561_v24 = vadd.f32 %v5560_v26, %v5559_v34  ;;  %v5555_v42 = vrot.slane %v5554_v38, 1  ;;  %v5566_v12 = vadd.f32 %v5565_v54, %v5564_v0  ;;  %v5513_v7 = vmul.f32 %v5436_v29, %v11635_v44 }
0x121c   :  { %v5571_v51 = vsel %vm3332_vm12, %v5519_v28, 0.0  ;;  %v11080_v21 = vsel %vm2817_vm7, %v5612_v27, %v6497_v19  ;;  %v5624_v3 = vadd.f32 %v5623_v48, %v5622_v53  ;;  %v5629_v57 = vadd.f32 %v5628_v6, %v5627_v46 }
0x121d   :  { %v5471_v4 = vpop.permute.xlu1 %5470  ;;  %v5572_v22 = vrot.slane %v5571_v51, 4  ;;  %v5567_v52 = vrot.slane %v5566_v12, 2  ;;  %v5529_v60 = vsel %vm3332_vm12, %v5513_v7, 0.0  ;;  %v5618_v62 = vrot.slane %v5617_v15, 1 }
0x121e   :  { %v6313_v20 = vpop.permute.xlu0 %6312  ;;  %v5520_v5 = vmul.f32 %v5471_v4, %v11636_v40  ;;  %v5562_v10 = vrot.slane %v5561_v24, 1  ;;  %v5630_v59 = vrot.slane %v5629_v57, 2  ;;  %v5625_v14 = vrot.slane %v5624_v3, 1 }
0x121f   :  { %v6354_v31 = vmul.f32 %v6313_v20, %v11622_v8  ;;  %v5573_v17 = vadd.f32 %v5572_v22, %v5571_v51  ;;  %v5530_v33 = vrot.slane %v5529_v60, 4  ;;  %v5568_v1 = vadd.f32 %v5567_v52, %v5566_v12 }
0x1220   :  { %v5578_v49 = vsel %vm3332_vm12, %v5520_v5, 0.0  ;;  %v11087_v2 = vadd.f32 %v5630_v59, %v5629_v57  ;;  %v11089_v30 = vadd.f32 %v5555_v42, %v5554_v38  ;;  %v11092_v0 = vadd.f32 %v5618_v62, %v5617_v15 }
0x1221   :  { %v6424_v61 = vsel %vm4165_vm13, %v6354_v31, 0.0  ;;  %v6308_v56 = vpop.permute.xlu1 %6307  ;;  %v5574_v58 = vrot.slane %v5573_v17, 2  ;;  %v5579_v37 = vrot.slane %v5578_v49, 4  ;;  %v5531_v8 = vadd.f32 %v5530_v33, %v5529_v60 }
0x1222   :  { %v6318_v43 = vpop.permute.xlu0 %6317  ;;  %v6425_v34 = vrot.slane %v6424_v61, 4  ;;  %v6353_v11 = vmul.f32 %v6308_v56, %v11623_v50  ;;  %v11095_v27 = vadd.f32 %v5562_v10, %v5561_v24  ;;  %v11098_v46 = vadd.f32 %v5625_v14, %v5624_v3 }
0x1223   :  { %v5575_v63 = vadd.f32 %v5574_v58, %v5573_v17  ;;  %v5580_v18 = vadd.f32 %v5579_v37, %v5578_v49  ;;  %v6355_v19 = vmul.f32 %v6318_v43, %v11625_v45  ;;  %v5532_v26 = vrot.slane %v5531_v8, 2 }
0x1224   :  { %v6426_v53 = vadd.f32 %v6425_v34, %v6424_v61  ;;  %v6417_v29 = vsel %vm4165_vm13, %v6353_v11, 0.0  ;;  %v5569_v38 = vrot.slane %v5568_v1, 1  ;;  %v5632_v28 = vrot.slane %v11087_v2, 1 }
0x1225   :  { %v6268_v54 = vpop.permute.xlu1 %6267  ;;  %v6418_v48 = vrot.slane %v6417_v29, 4  ;;  %v5533_v15 = vadd.f32 %v5532_v26, %v5531_v8  ;;  %v6431_v42 = vsel %vm4165_vm13, %v6355_v19, 0.0  ;;  %v5576_v24 = vrot.slane %v5575_v63, 1 }
0x1226   :  { %v6323_v50 = vpop.permute.xlu0 %6322  ;;  %v6427_v6 = vrot.slane %v6426_v53, 2  ;;  %v6345_v45 = vmul.f32 %v6268_v54, %v11635_v44  ;;  %v5581_v12 = vrot.slane %v5580_v18, 2  ;;  %v6432_v7 = vrot.slane %v6431_v42, 4 }
0x1227   :  { %v6419_v51 = vadd.f32 %v6418_v48, %v6417_v29  ;;  %v5534_v4 = vrot.slane %v5533_v15, 1  ;;  %v6356_v22 = vmul.f32 %v6323_v50, %v11627_v16  ;;  %v11105_v52 = vadd.f32 %v5569_v38, %v5568_v1 }
0x1228   :  { %v6428_v57 = vadd.f32 %v6427_v6, %v6426_v53  ;;  %v6361_v3 = vsel %vm4165_vm13, %v6345_v45, 0.0  ;;  %v6433_v5 = vadd.f32 %v6432_v7, %v6431_v42  ;;  %v5577_v14 = vadd.f32 %v5576_v24, %v5575_v63 }
0x1229   :  { %v6283_v20 = vpop.permute.xlu1 %6282  ;;  %v6420_v60 = vrot.slane %v6419_v51, 2  ;;  %v6362_v31 = vrot.slane %v6361_v3, 4  ;;  %v5535_v10 = vadd.f32 %v5534_v4, %v5533_v15  ;;  %v6438_v44 = vsel %vm4165_vm13, %v6356_v22, 0.0 }
0x122a   :  { %v6328_v62 = vpop.permute.xlu0 %6327  ;;  %v6429_v59 = vrot.slane %v6428_v57, 1  ;;  %v6348_v17 = vmul.f32 %v6283_v20, %v11628_v25  ;;  %v6434_v49 = vrot.slane %v6433_v5, 2  ;;  %v5582_v56 = vadd.f32 %v5581_v12, %v5580_v18 }
0x122b   :  { %v6421_v33 = vadd.f32 %v6420_v60, %v6419_v51  ;;  %v6363_v61 = vadd.f32 %v6362_v31, %v6361_v3  ;;  %v6489_v16 = vsel %vm2813_vm5, %v11068_v32, %v5535_v10  ;;  %v6439_v1 = vrot.slane %v6438_v44, 4 }
0x122c   :  { %v6382_v58 = vsel %vm4165_vm13, %v6348_v17, 0.0  ;;  %v6430_v43 = vadd.f32 %v6429_v59, %v6428_v57  ;;  %v6435_v34 = vadd.f32 %v6434_v49, %v6433_v5  ;;  %v6357_v25 = vmul.f32 %v6328_v62, %v11629_v9 }
0x122d   :  { %v6288_v37 = vpop.permute.xlu1 %6287  ;;  %v6422_v8 = vrot.slane %v6421_v33, 1  ;;  %v6364_v11 = vrot.slane %v6363_v61, 2  ;;  %v6440_v26 = vadd.f32 %v6439_v1, %v6438_v44  ;;  %v6383_v53 = vrot.slane %v6382_v58, 4 }
0x122e   :  { %v6333_v19 = vpop.permute.xlu0 %6332  ;;  %v6349_v63 = vmul.f32 %v6288_v37, %v11630_v55  ;;  %v6436_v54 = vrot.slane %v6435_v34, 1  ;;  %v6445_v50 = vsel %vm4165_vm13, %v6357_v25, 0.0  ;;  %v6490_v42 = vsel %vm2815_vm6, %v11073_v23, %v6489_v16 }
0x122f   :  { %v6423_v29 = vadd.f32 %v6422_v8, %v6421_v33  ;;  %v6365_v38 = vadd.f32 %v6364_v11, %v6363_v61  ;;  %v6358_v32 = vmul.f32 %v6333_v19, %v11631_v39  ;;  %v6441_v18 = vrot.slane %v6440_v26, 2 }
0x1230   :  { %v6384_v48 = vadd.f32 %v6383_v53, %v6382_v58  ;;  %v6389_v15 = vsel %vm4165_vm13, %v6349_v63, 0.0  ;;  %v5583_v45 = vrot.slane %v5582_v56, 1  ;;  %v6446_v24 = vrot.slane %v6445_v50, 4 }
0x1231   :  { %v6293_v6 = vpop.permute.xlu1 %6292  ;;  %v6532_v9 = vsel %vm2813_vm5, %v6430_v43, %v6423_v29  ;;  %v6442_v12 = vadd.f32 %v6441_v18, %v6440_v26  ;;  %v6390_v7 = vrot.slane %v6389_v15, 4  ;;  %v6452_v39 = vsel %vm4165_vm13, %v6358_v32, 0.0 }
0x1232   :  { %v6273_v55 = vpop.permute.xlu0 %6272  ;;  %v6385_v51 = vrot.slane %v6384_v48, 2  ;;  %v6437_v4 = vadd.f32 %v6436_v54, %v6435_v34  ;;  %v6366_v57 = vrot.slane %v6365_v38, 1  ;;  %v6447_v3 = vadd.f32 %v6446_v24, %v6445_v50 }
0x1233   :  { %v6453_v22 = vrot.slane %v6452_v39, 4  ;;  %v6443_v20 = vrot.slane %v6442_v12, 1  ;;  %v6391_v5 = vadd.f32 %v6390_v7, %v6389_v15  ;;  %v6491_v23 = vsel %vm2817_vm7, %v11089_v30, %v6490_v42 }
0x1234   :  { %v6386_v60 = vadd.f32 %v6385_v51, %v6384_v48  ;;  %v6448_v62 = vrot.slane %v6447_v3, 2  ;;  %v6492_v59 = vsel %vm2819_vm8, %v11095_v27, %v6491_v23  ;;  %v6350_v44 = vmul.f32 %v6293_v6, %v11632_v35 }
0x1235   :  { %v6298_v31 = vpop.permute.xlu1 %6297  ;;  %v6454_v10 = vadd.f32 %v6453_v22, %v6452_v39  ;;  %v5584_v33 = vadd.f32 %v5583_v45, %v5582_v56  ;;  %v6444_v49 = vadd.f32 %v6443_v20, %v6442_v12  ;;  %v6392_v61 = vrot.slane %v6391_v5, 2 }
0x1236   :  { %v6278_v17 = vpop.permute.xlu0 %6277  ;;  %v6493_v16 = vsel %vm2821_vm9, %v11105_v52, %v6492_v59  ;;  %v6387_v1 = vrot.slane %v6386_v60, 1  ;;  %v6449_v58 = vadd.f32 %v6448_v62, %v6447_v3  ;;  %v6396_v30 = vsel %vm4165_vm13, %v6350_v44, 0.0 }
0x1237   :  { %v6494_v37 = vsel %vm2823_vm10, %v5577_v14, %v6493_v16  ;;  %v11133_v43 = vadd.f32 %v5632_v28, %v11087_v2  ;;  %v6533_v35 = vsel %vm2815_vm6, %v6437_v4, %v6532_v9  ;;  %v6455_v27 = vrot.slane %v6454_v10, 2  ;;  %v11637_v9 = vld [vmem:[#allocation51_spill] sm:$0xff] }
0x1238   :  { %v6495_v56 = vsel %vm2825_vm11, %v5584_v33, %v6494_v37  ;;  %v11137_v34 = vadd.f32 %v6366_v57, %v6365_v38  ;;  %v6393_v52 = vadd.f32 %v6392_v61, %v6391_v5  ;;  %v6397_v11 = vrot.slane %v6396_v30, 4 }
0x1239   :  { %v6303_v8 = vpop.permute.xlu1 %6302  ;;  %6503 = vrot.lane.b32.xlu1 %v6495_v56, %s7966_s1  ;;  %v6346_v14 = vmul.f32 %v6273_v55, %v11624_v41  ;;  %v11142_v26 = vsel %vm2817_vm7, %v6444_v49, %v6533_v35  ;;  %v6351_v2 = vmul.f32 %v6298_v31, %v11634_v36  ;;  %v6347_v28 = vmul.f32 %v6278_v17, %v11626_v13 }
0x123a   :  { %v6338_v19 = vpop.permute.xlu0 %6337  ;;  %v6352_v53 = vmul.f32 %v6303_v8, %v11636_v40  ;;  %v11147_v25 = vadd.f32 %v6387_v1, %v6386_v60  ;;  %v6450_v63 = vrot.slane %v6449_v58, 1  ;;  %v6398_v29 = vadd.f32 %v6397_v11, %v6396_v30 }
0x123b   :  { %v6368_v54 = vsel %vm4165_vm13, %v6346_v14, 0.0  ;;  %v6456_v38 = vadd.f32 %v6455_v27, %v6454_v10  ;;  %v6403_v41 = vsel %vm4165_vm13, %v6351_v2, 0.0  ;;  %v6375_v18 = vsel %vm4165_vm13, %v6347_v28, 0.0 }
0x123c   :  { %v6369_v32 = vrot.slane %v6368_v54, 4  ;;  %v6394_v50 = vrot.slane %v6393_v52, 1  ;;  %v6399_v15 = vrot.slane %v6398_v29, 2  ;;  %v6404_v36 = vrot.slane %v6403_v41, 4 }
0x123d   :  { %v5511_v48 = vpop.permute.xlu1 %5510  ;;  %v6376_v6 = vrot.slane %v6375_v18, 4  ;;  %v6410_v40 = vsel %vm4165_vm13, %v6352_v53, 0.0  ;;  %v6359_v45 = vmul.f32 %v6338_v19, %v11633_v47  ;;  %v6451_v55 = vadd.f32 %v6450_v63, %v6449_v58 }
0x123e   :  { %v6343_v13 = vpop.permute.xlu0 %6342  ;;  %v6370_v42 = vadd.f32 %v6369_v32, %v6368_v54  ;;  %v5528_v24 = vmul.f32 %v5511_v48, %v11637_v9  ;;  %v6405_v12 = vadd.f32 %v6404_v36, %v6403_v41  ;;  %v6411_v7 = vrot.slane %v6410_v40, 4  ;;  %v6547_v54 = vld [vmem:[#allocation2 + $0xb8] sm:$0xff]  ;;  %v6548_v32 = vld [vmem:[#allocation2 + $0xc0] sm:$0xff] }
0x123f   :  { %v6377_v51 = vadd.f32 %v6376_v6, %v6375_v18  ;;  %v6459_v4 = vsel %vm4165_vm13, %v6359_v45, 0.0  ;;  %v6360_v3 = vmul.f32 %v6343_v13, %v11637_v9  ;;  %v6400_v22 = vadd.f32 %v6399_v15, %v6398_v29 }
0x1240   :  { %v6371_v39 = vrot.slane %v6370_v42, 2  ;;  %v5634_v57 = vsel %vm3332_vm12, %v5528_v24, 0.0  ;;  %v6406_v20 = vrot.slane %v6405_v12, 2  ;;  %v6412_v5 = vadd.f32 %v6411_v7, %v6410_v40 }
0x1241   :  { %v6378_v60 = vrot.slane %v6377_v51, 2  ;;  %v6460_v31 = vrot.slane %v6459_v4, 4  ;;  %v5635_v47 = vrot.slane %v5634_v57, 4  ;;  %v6466_v62 = vsel %vm4165_vm13, %v6360_v3, 0.0 }
0x1242   :  { %v6372_v23 = vadd.f32 %v6371_v39, %v6370_v42  ;;  %v6457_v10 = vrot.slane %v6456_v38, 1  ;;  %v6407_v59 = vadd.f32 %v6406_v20, %v6405_v12  ;;  %v6413_v17 = vrot.slane %v6412_v5, 2  ;;  %v7194_v20 = vld [vmem:[#allocation2 + $0xd8] ss:$0 sm:$0xff] }
0x1243   :  { %v6379_v44 = vadd.f32 %v6378_v60, %v6377_v51  ;;  %v6461_v49 = vadd.f32 %v6460_v31, %v6459_v4  ;;  %v5636_v61 = vadd.f32 %v5635_v47, %v5634_v57  ;;  %v6467_v16 = vrot.slane %v6466_v62, 4 }
0x1244   :  { %v6373_v33 = vrot.slane %v6372_v23, 1  ;;  %v6395_v1 = vadd.f32 %v6394_v50, %v6393_v52  ;;  %v6401_v58 = vrot.slane %v6400_v22, 1  ;;  %v6414_v30 = vadd.f32 %v6413_v17, %v6412_v5 }
0x1245   :  { %v6380_v37 = vrot.slane %v6379_v44, 1  ;;  %v6462_v27 = vrot.slane %v6461_v49, 2  ;;  %v5637_v56 = vrot.slane %v5636_v61, 2  ;;  %v6468_v8 = vadd.f32 %v6467_v16, %v6466_v62 }
0x1246   :  { %v6374_v35 = vadd.f32 %v6373_v33, %v6372_v23  ;;  %v6458_v11 = vadd.f32 %v6457_v10, %v6456_v38  ;;  %v6408_v14 = vrot.slane %v6407_v59, 1  ;;  %v6415_v2 = vrot.slane %v6414_v30, 1 }
0x1247   :  { %v6381_v19 = vadd.f32 %v6380_v37, %v6379_v44  ;;  %v6463_v53 = vadd.f32 %v6462_v27, %v6461_v49  ;;  %v5638_v63 = vadd.f32 %v5637_v56, %v5636_v61  ;;  %v6469_v29 = vrot.slane %v6468_v8, 2  ;;  %v6769_v27 = vld [vmem:[#allocation2 + $0x108] sm:$0xff] }
0x1248   :  { %v6525_v28 = vsel %vm2813_vm5, %v6374_v35, %v11137_v34  ;;  %v6402_v52 = vadd.f32 %v6401_v58, %v6400_v22  ;;  %v6416_v18 = vadd.f32 %v6415_v2, %v6414_v30  ;;  %v6499_v48 = vsel %vm2819_vm8, %v11092_v0, %v11080_v21  ;;  %v6768_v35 = vld [vmem:[#allocation2 + $0x100] sm:$0xff] }
0x1249   :  { %v6526_v41 = vsel %vm2815_vm6, %v6381_v19, %v6525_v28  ;;  %v6464_v38 = vrot.slane %v6463_v53, 1  ;;  %v5639_v50 = vrot.slane %v5638_v63, 1  ;;  %v6470_v15 = vadd.f32 %v6469_v29, %v6468_v8  ;;  %v6979_v8 = vld [vmem:[#allocation2 + $0xf0] sm:$0xff] }
0x124a   :  { %v6527_v36 = vsel %vm2817_vm7, %v11147_v25, %v6526_v41  ;;  %v6409_v34 = vadd.f32 %v6408_v14, %v6407_v59  ;;  %v6500_v13 = vsel %vm2821_vm9, %v11098_v46, %v6499_v48  ;;  %v7488_v42 = vpack.c.bf16 %v6548_v32, %v6547_v54  ;;  %v7195_v32 = vld [vmem:[#allocation2 + $0xe0] ss:$0 sm:$0xff]  ;;  %v7196_v48 = vld [vmem:[#allocation2 + $0xe8] ss:$0 sm:$0xff] }
0x124b   :  { %v6528_v6 = vsel %vm2819_vm8, %v6395_v1, %v6527_v36  ;;  %v6465_v40 = vadd.f32 %v6464_v38, %v6463_v53  ;;  %v5640_v45 = vadd.f32 %v5639_v50, %v5638_v63  ;;  %v6471_v9 = vrot.slane %v6470_v15, 1 }
0x124c   :  { %v6529_v24 = vsel %vm2821_vm9, %v6402_v52, %v6528_v6  ;;  %v6501_v0 = vsel %vm2823_vm10, %v11133_v43, %v6500_v13  ;;  %v6535_v25 = vsel %vm2819_vm8, %v6451_v55, %v11142_v26  ;;  %7489 = vmatprep.subr.bf16.mxu0 %v7488_v42  ;;  %v7492_v56 = vpack.c.bf16 %v6769_v27, %v6768_v35 }
0x124d   :  { %v6530_v21 = vsel %vm2823_vm10, %v6409_v34, %v6529_v24  ;;  %v6472_v12 = vadd.f32 %v6471_v9, %v6470_v15  ;;  %v6502_v46 = vsel %vm2825_vm11, %v5640_v45, %v6501_v0  ;;  %v6536_v7 = vsel %vm2821_vm9, %v6458_v11, %v6535_v25  ;;  %7491 = vmatpush3.bf16.msra.mxu0 %v7488_v42  ;;  %v6980_v11 = vld [vmem:[#allocation2 + $0xf8] sm:$0xff]  ;;  %v7162_v0 = vld [vmem:[#allocation2 + $0x68] ss:$0 sm:$0xff]  ;;  %v11639_v25 = vld [vmem:[#allocation8_spill] sm:$0xff] }
0x124e   :  { %v6531_v51 = vsel %vm2825_vm11, %v6416_v18, %v6530_v21  ;;  %6505 = vrot.lane.b32.xlu1 %v6502_v46, %s7966_s1  ;;  %v6537_v39 = vsel %vm2823_vm10, %v6465_v40, %v6536_v7  ;;  %7493 = vmatprep.subr.bf16.mxu1 %v7492_v56  ;;  %v7496_v14 = vpack.c.bf16 %v6980_v11, %v6979_v8  ;;  %v11638_v36 = vmov 0.0   ;;  %v11641_v7 = vld [vmem:[#allocation55_spill] sm:$0xff] }
0x124f   :  { %6539 = vrot.lane.b32.xlu0 %v6531_v51, %s7966_s1  ;;  %v6538_v43 = vsel %vm2825_vm11, %v6472_v12, %v6537_v39  ;;  %7495 = vmatpush3.bf16.msra.mxu1 %v7492_v56  ;;  %v2291_v12 = vadd.f32 %v11639_v25, %v7162_v0  ;;  %v11640_v51 = vld [vmem:[#allocation60_spill] sm:$0xff]  ;;  %v2301_v39 = vadd.f32 %v11641_v7, %v7162_v0 }
0x1250   :  { %7497 = vmatprep.subr.bf16.mxu1 %v7496_v14  ;;  %v2286_v46 = vadd.f32 %v7162_v0, %v11640_v51 }
0x1253   :  { %6541 = vrot.lane.b32.xlu0 %v6538_v43, %s7966_s1  ;;  %v11642_v43 = vld [vmem:[#allocation61_spill] sm:$0xff] }
0x12ab   :  { %v6504_v26 = vpop.permute.xlu1 %6503 }
0x12c0   :  { %v6506_v57 = vpop.permute.xlu1 %6505 }
0x12c1   :  { %v6540_v55 = vpop.permute.xlu0 %6539 }
0x12c2   :  { %v6545_v4 = vsel %vm2367_vm4, %v6504_v26, %v6540_v55  ;;  %v2296_v26 = vadd.f32 %v7162_v0, %v11642_v43  ;;  %v11643_v55 = vld [vmem:[#allocation56_spill] sm:$0xff] }
0x12c3   :  { %7447 = vmatprep.mubr.msk.f32.mxu0 %vm682_vm15, %v6545_v4  ;;  %v11203_v4 = vadd.f32 %v11643_v55, %v7162_v0 }
0x12c5   :  { %v6542_v3 = vpop.permute.xlu0 %6541 }
0x12c6   :  { %v6546_v22 = vsel %vm2367_vm4, %v6506_v57, %v6542_v3  ;;  %v11644_v57 = vld [vmem:[#allocation63_spill] sm:$0xff] }
0x12c7   :  { %7448 = vmatmul.mubr.msk.f32.vlgmr.msra.gmra.mrb[36].mxu0 %vm682_vm15, %v6546_v22  ;;  %v11206_v3 = vadd.f32 %v7162_v0, %v11644_v57  ;;  %v11645_v22 = vld [vmem:[#allocation58_spill] sm:$0xff] }
0x139a   :  { %v7449_v60 = vpop.f32.mrb[36].mxu0 }
0x139b   :  { %v6713_v5 = vadd.f32 %v7449_v60, %v7194_v20  ;;  %v6698_v23 = vpop.f32.mrb[37].mxu0  ;;  %v11646_v60 = vld [vmem:[#allocation64_spill] sm:$0xff] }
0x139c   :  { %v6712_v31 = vadd.f32 %v7194_v20, %v6698_v23  ;;  %v11209_v20 = vadd.f32 %v11645_v22, %v7162_v0  ;;  %v11647_v23 = vld [vmem:[#allocation59_spill] sm:$0xff] }
0x139d   :  { %v6715_v47 = vand.u32 2147483647, %v6713_v5  ;;  %vm6761_vm12 = vcmp.lt.f32.partialorder %v6713_v5, 0.0  ;;  %vm6759_vm14 = vcmp.gt.f32.partialorder %v6713_v5, 0.0  ;;  %v11212_v5 = vadd.f32 %v7162_v0, %v11646_v60 }
0x139e   :  { %v6714_v62 = vand.u32 2147483647, %v6712_v31  ;;  %vm6760_vm3 = vcmp.lt.f32.partialorder %v6712_v31, 0.0  ;;  %vm6758_vm13 = vcmp.gt.f32.partialorder %v6712_v31, 0.0  ;;  %v6763_v13 = vsel %vm6761_vm12, -1.0, %v11638_v36 }
0x139f   :  { %v6719_v10 = vsel %vm682_vm15, %v6715_v47, 0.0  ;;  %v6762_v34 = vsel %vm6760_vm3, -1.0, %v11638_v36  ;;  %v6765_v9 = vsel %vm6759_vm14, 1.0, %v6763_v13  ;;  %v2331_v31 = vadd.f32 %v11647_v23, %v7162_v0 }
0x13a0   :  { %6720 = vadd.xlane.f32.xlu0 %v6719_v10  ;;  %v6716_v59 = vsel %vm682_vm15, %v6714_v62, 0.0  ;;  %v6764_v45 = vsel %vm6758_vm13, 1.0, %v6762_v34  ;;  %v11649_v10 = vld [vmem:[#allocation65_spill] sm:$0xff] }
0x13a1   :  { %6717 = vadd.xlane.f32.xlu1 %v6716_v59  ;;  %v2341_v59 = vadd.f32 %v11649_v10, %v7162_v0 }
0x142d   :  { %v6721_v44 = vpop.xlane.xlu0 %6720 }
0x142e   :  { %v6723_v17 = vmul.f32 0.0625, %v6721_v44  ;;  %v6718_v33 = vpop.xlane.xlu1 %6717  ;;  %v11650_v44 = vld [vmem:[#allocation70_spill] sm:$0xff] }
0x142f   :  { %v6722_v49 = vmul.f32 0.0625, %v6718_v33  ;;  %v11651_v33 = vld [vmem:[#allocation67_spill] sm:$0xff] }
0x1430   :  { %v6725_v61 = vsub.f32 %v6715_v47, %v6723_v17  ;;  %v11648_v47 = vld [vmem:[#allocation62_spill] sm:$0xff]  ;;  %v2336_v17 = vadd.f32 %v7162_v0, %v11650_v44 }
0x1431   :  { %v6724_v16 = vsub.f32 %v6714_v62, %v6722_v49  ;;  %v2326_v62 = vadd.f32 %v7162_v0, %v11648_v47  ;;  %v2351_v49 = vadd.f32 %v11651_v33, %v7162_v0 }
0x1432   :  { %v6727_v1 = vmul.f32 %v6725_v61, %v6725_v61 }
0x1433   :  { %v6726_v58 = vmul.f32 %v6724_v16, %v6724_v16 }
0x1434   :  { %v6731_v37 = vsel %vm682_vm15, %v6727_v1, 0.0  ;;  %v11653_v1 = vld [vmem:[#allocation66_spill] sm:$0xff] }
0x1435   :  { %6732 = vadd.xlane.f32.xlu1 %v6731_v37  ;;  %v6728_v30 = vsel %vm682_vm15, %v6726_v58, 0.0  ;;  %v2361_v58 = vadd.f32 %v11653_v1, %v7162_v0  ;;  %v11654_v37 = vld [vmem:[#allocation47_spill] sm:$0xff] }
0x1436   :  { %6729 = vadd.xlane.f32.xlu0 %v6728_v30  ;;  %v2356_v30 = vadd.f32 %v7162_v0, %v11654_v37 }
0x14c2   :  { %v6733_v19 = vpop.xlane.xlu1 %6732 }
0x14c3   :  { %v6735_v2 = vmul.f32 0.0625, %v6733_v19  ;;  %v6730_v28 = vpop.xlane.xlu0 %6729 }
0x14c4   :  { %v6734_v53 = vmul.f32 0.0625, %v6730_v28 }
0x14c5   :  { %v6737_v63 = vadd.f32 1e-05, %v6735_v2 }
0x14c6   :  { %v6736_v29 = vadd.f32 1e-05, %v6734_v53 }
0x14c7   :  { %7906 = vrsqrt.f32 %v6737_v63 }
0x14c8   :  { %7908 = vrsqrt.f32 %v6736_v29 }
0x14d1   :  { %v7907_v54 = vpop.eup %7906 }
0x14d2   :  { %v7909_v52 = vpop.eup %7908  ;;  %v6741_v41 = vmul.f32 %v7907_v54, %v6725_v61  ;;  %v11652_v61 = vld [vmem:[#allocation72_spill] sm:$0xff] }
0x14d3   :  { %v6740_v18 = vmul.f32 %v7909_v52, %v6724_v16  ;;  %v2346_v16 = vadd.f32 %v7162_v0, %v11652_v61 }
0x14d4   :  { %v6748_v38 = vmul.f32 %v7195_v32, %v6741_v41 }
0x14d5   :  { %v6747_v50 = vmul.f32 %v7195_v32, %v6740_v18 }
0x14d6   :  { %v6755_v15 = vadd.f32 %v7196_v48, %v6748_v38 }
0x14d7   :  { %v6754_v6 = vadd.f32 %v7196_v48, %v6747_v50 }
0x14d8   :  { %v6757_v42 = vmax.f32 %v6755_v15, 0.0 }
0x14d9   :  { %v6756_v40 = vmax.f32 %v6754_v6, 0.0 }
0x14da   :  { %v6767_v21 = vmul.f32 %v6765_v9, %v6757_v42 }
0x14db   :  { %v6766_v24 = vmul.f32 %v6764_v45, %v6756_v40 }
0x14dd   :  { %7454 = vmatprep.mubr.msk.f32.mxu1 %vm682_vm15, %v6766_v24 }
0x14de   :  { %7455 = vmatmul.mubr.msk.f32.vlgmr.msra.gmra.mrb[34].mxu1 %vm682_vm15, %v6767_v21 }
0x14df   :  { %7499 = vmatpush3.bf16.msra.mxu1 %v7496_v14  ;;  %7461 = vmatprep.mubr.msk.f32.mxu1 %vm682_vm15, %v6766_v24 }
0x14e2   :  { %7462 = vmatmul.mubr.msk.f32.vlgmr.msra.gmra.mrb[36].mxu1 %vm682_vm15, %v6767_v21 }
0x15b1   :  { %v7456_v35 = vpop.f32.mrb[34].mxu1 }
0x15b2   :  { %v6859_v27 = vmul.f32 %v7456_v35, %v2326_v62  ;;  %v6860_v56 = vmul.f32 %v7456_v35, %v2331_v31  ;;  %v6861_v8 = vmul.f32 %v7456_v35, %v2336_v17  ;;  %v6862_v11 = vmul.f32 %v7456_v35, %v2341_v59  ;;  %v11222_v14 = vpop.f32.mrb[35].mxu1 }
0x15b3   :  { %v6851_v19 = vmul.f32 %v11222_v14, %v2286_v46  ;;  %v6852_v2 = vmul.f32 %v11222_v14, %v2291_v12  ;;  %v6853_v28 = vmul.f32 %v11222_v14, %v2296_v26  ;;  %v11228_v53 = vmul.f32 %v11222_v14, %v2301_v39 }
0x15b4   :  { %v6923_v63 = vsel %vm2367_vm4, %v6859_v27, 0.0  ;;  %v6930_v29 = vsel %vm2367_vm4, %v6860_v56, 0.0  ;;  %v6937_v54 = vsel %vm2367_vm4, %v6861_v8, 0.0  ;;  %v6863_v32 = vmul.f32 %v7456_v35, %v2346_v16 }
0x15b5   :  { %v6924_v52 = vrot.slane %v6923_v63, 4  ;;  %v6931_v41 = vrot.slane %v6930_v29, 4  ;;  %v6938_v18 = vrot.slane %v6937_v54, 4  ;;  %v6867_v48 = vsel %vm2367_vm4, %v6851_v19, 0.0  ;;  %v11234_v38 = vpop.f32.mrb[36].mxu1 }
0x15b6   :  { %v6868_v50 = vrot.slane %v6867_v48, 4  ;;  %v6874_v15 = vsel %vm2367_vm4, %v6852_v2, 0.0  ;;  %v11238_v36 = vsel %vm2367_vm4, %v6853_v28, 0.0  ;;  %v6864_v34 = vmul.f32 %v7456_v35, %v2351_v49  ;;  %v11240_v6 = vpop.f32.mrb[37].mxu1 }
0x15b7   :  { %v6925_v13 = vadd.f32 %v6924_v52, %v6923_v63  ;;  %v6932_v42 = vadd.f32 %v6931_v41, %v6930_v29  ;;  %v6875_v40 = vrot.slane %v6874_v15, 4  ;;  %v6882_v45 = vrot.slane %v11238_v36, 4 }
0x15b8   :  { %v6869_v9 = vadd.f32 %v6868_v50, %v6867_v48  ;;  %v6865_v24 = vmul.f32 %v7456_v35, %v2356_v30  ;;  %v6866_v21 = vmul.f32 %v7456_v35, %v2361_v58  ;;  %v6939_v0 = vadd.f32 %v6938_v18, %v6937_v54 }
0x15b9   :  { %v6876_v25 = vadd.f32 %v6875_v40, %v6874_v15  ;;  %v6926_v12 = vrot.slane %v6925_v13, 2  ;;  %v6933_v51 = vrot.slane %v6932_v42, 2  ;;  %v6944_v46 = vsel %vm2367_vm4, %v6862_v11, 0.0 }
0x15ba   :  { %v6940_v7 = vrot.slane %v6939_v0, 2  ;;  %v6945_v39 = vrot.slane %v6944_v46, 4  ;;  %v6951_v43 = vsel %vm2367_vm4, %v6863_v32, 0.0  ;;  %v6958_v26 = vsel %vm2367_vm4, %v6864_v34, 0.0 }
0x15bb   :  { %v6927_v55 = vadd.f32 %v6926_v12, %v6925_v13  ;;  %v6934_v57 = vadd.f32 %v6933_v51, %v6932_v42  ;;  %v6952_v22 = vrot.slane %v6951_v43, 4  ;;  %v6959_v60 = vrot.slane %v6958_v26, 4 }
0x15bc   :  { %v6941_v23 = vadd.f32 %v6940_v7, %v6939_v0  ;;  %v6946_v31 = vadd.f32 %v6945_v39, %v6944_v46  ;;  %v6965_v47 = vsel %vm2367_vm4, %v6865_v24, 0.0  ;;  %v6972_v62 = vsel %vm2367_vm4, %v6866_v21, 0.0 }
0x15bd   :  { %v6928_v10 = vrot.slane %v6927_v55, 1  ;;  %v6935_v59 = vrot.slane %v6934_v57, 1  ;;  %v6953_v44 = vadd.f32 %v6952_v22, %v6951_v43  ;;  %v6960_v17 = vadd.f32 %v6959_v60, %v6958_v26 }
0x15be   :  { %v6942_v33 = vrot.slane %v6941_v23, 1  ;;  %v6947_v49 = vrot.slane %v6946_v31, 2  ;;  %v6966_v61 = vrot.slane %v6965_v47, 4  ;;  %v6973_v16 = vrot.slane %v6972_v62, 4 }
0x15bf   :  { %v6929_v1 = vadd.f32 %v6928_v10, %v6927_v55  ;;  %v6936_v58 = vadd.f32 %v6935_v59, %v6934_v57  ;;  %v6954_v37 = vrot.slane %v6953_v44, 2  ;;  %v6961_v30 = vrot.slane %v6960_v17, 2 }
0x15c0   :  { %v6943_v35 = vadd.f32 %v6942_v33, %v6941_v23  ;;  %v6948_v27 = vadd.f32 %v6947_v49, %v6946_v31  ;;  %v6967_v56 = vadd.f32 %v6966_v61, %v6965_v47  ;;  %v6974_v8 = vadd.f32 %v6973_v16, %v6972_v62 }
0x15c1   :  { %v6955_v11 = vadd.f32 %v6954_v37, %v6953_v44  ;;  %v6962_v19 = vadd.f32 %v6961_v30, %v6960_v17  ;;  %v7004_v2 = vsel %vm2813_vm5, %v6936_v58, %v6929_v1  ;;  %v6855_v28 = vmul.f32 %v11222_v14, %v11206_v3 }
0x15c2   :  { %v6949_v63 = vrot.slane %v6948_v27, 1  ;;  %v6968_v29 = vrot.slane %v6967_v56, 2  ;;  %v6975_v54 = vrot.slane %v6974_v8, 2  ;;  %v7005_v32 = vsel %vm2815_vm6, %v6943_v35, %v7004_v2 }
0x15c3   :  { %v6956_v52 = vrot.slane %v6955_v11, 1  ;;  %v6963_v41 = vrot.slane %v6962_v19, 1  ;;  %v6856_v18 = vmul.f32 %v11222_v14, %v11203_v4  ;;  %v6857_v48 = vmul.f32 %v11222_v14, %v11212_v5 }
0x15c4   :  { %v6950_v50 = vadd.f32 %v6949_v63, %v6948_v27  ;;  %v6969_v15 = vadd.f32 %v6968_v29, %v6967_v56  ;;  %v6976_v34 = vadd.f32 %v6975_v54, %v6974_v8  ;;  %v6858_v13 = vmul.f32 %v11222_v14, %v11209_v20 }
0x15c5   :  { %v6957_v3 = vadd.f32 %v6956_v52, %v6955_v11  ;;  %v6964_v42 = vadd.f32 %v6963_v41, %v6962_v19  ;;  %v6870_v40 = vrot.slane %v6869_v9, 2  ;;  %v6877_v24 = vrot.slane %v6876_v25, 2 }
0x15c6   :  { %v6970_v21 = vrot.slane %v6969_v15, 1  ;;  %v6977_v0 = vrot.slane %v6976_v34, 1  ;;  %v7006_v12 = vsel %vm2817_vm7, %v6950_v50, %v7005_v32  ;;  %v6883_v51 = vadd.f32 %v6882_v45, %v11238_v36 }
0x15c7   :  { %v7007_v4 = vsel %vm2819_vm8, %v6957_v3, %v7006_v12  ;;  %v6871_v46 = vadd.f32 %v6870_v40, %v6869_v9  ;;  %v6878_v5 = vadd.f32 %v6877_v24, %v6876_v25  ;;  %v6888_v7 = vsel %vm2367_vm4, %v11228_v53, 0.0 }
0x15c8   :  { %v6971_v39 = vadd.f32 %v6970_v21, %v6969_v15  ;;  %v6978_v43 = vadd.f32 %v6977_v0, %v6976_v34  ;;  %v7008_v20 = vsel %vm2821_vm9, %v6964_v42, %v7007_v4  ;;  %v6884_v14 = vrot.slane %v6883_v51, 2 }
0x15c9   :  { %v6872_v26 = vrot.slane %v6871_v46, 1  ;;  %v6879_v55 = vrot.slane %v6878_v5, 1  ;;  %v6889_v57 = vrot.slane %v6888_v7, 4  ;;  %v6895_v22 = vsel %vm2367_vm4, %v6855_v28, 0.0 }
0x15ca   :  { %v7009_v60 = vsel %vm2823_vm10, %v6971_v39, %v7008_v20  ;;  %v6885_v36 = vadd.f32 %v6884_v14, %v6883_v51  ;;  %v6896_v45 = vrot.slane %v6895_v22, 4  ;;  %v6902_v9 = vsel %vm2367_vm4, %v6856_v18, 0.0 }
0x15cb   :  { %v7010_v25 = vsel %vm2825_vm11, %v6978_v43, %v7009_v60  ;;  %v6873_v23 = vadd.f32 %v6872_v26, %v6871_v46  ;;  %v6880_v53 = vadd.f32 %v6879_v55, %v6878_v5  ;;  %v6890_v31 = vadd.f32 %v6889_v57, %v6888_v7 }
0x15cc   :  { %v7085_v47 = vadd.f32 %v11234_v38, %v7010_v25  ;;  %v6886_v62 = vrot.slane %v6885_v36, 1  ;;  %v6897_v10 = vadd.f32 %v6896_v45, %v6895_v22  ;;  %v6903_v59 = vrot.slane %v6902_v9, 4 }
0x15cd   :  { %v6891_v44 = vrot.slane %v6890_v31, 2  ;;  %v6909_v17 = vsel %vm2367_vm4, %v6857_v48, 0.0  ;;  %v6916_v33 = vsel %vm2367_vm4, %v6858_v13, 0.0  ;;  %v6997_v49 = vsel %vm2813_vm5, %v6880_v53, %v6873_v23 }
0x15ce   :  { %7089 = vst.msk [vmem:[#allocation5 + $0x8] sm:$0xff] %vm2367_vm4, %v7085_v47  ;;  %v6887_v61 = vadd.f32 %v6886_v62, %v6885_v36  ;;  %v6898_v16 = vrot.slane %v6897_v10, 2  ;;  %v6904_v1 = vadd.f32 %v6903_v59, %v6902_v9  ;;  %v6910_v58 = vrot.slane %v6909_v17, 4 }
0x15cf   :  { %v6892_v37 = vadd.f32 %v6891_v44, %v6890_v31  ;;  %v6917_v30 = vrot.slane %v6916_v33, 4 }
0x15d0   :  { %v6899_v35 = vadd.f32 %v6898_v16, %v6897_v10  ;;  %v6905_v38 = vrot.slane %v6904_v1, 2  ;;  %v6911_v27 = vadd.f32 %v6910_v58, %v6909_v17  ;;  %v6998_v56 = vsel %vm2815_vm6, %v6887_v61, %v6997_v49 }
0x15d1   :  { %v6893_v8 = vrot.slane %v6892_v37, 1  ;;  %v6918_v11 = vadd.f32 %v6917_v30, %v6916_v33 }
0x15d2   :  { %v6900_v19 = vrot.slane %v6899_v35, 1  ;;  %v6906_v2 = vadd.f32 %v6905_v38, %v6904_v1  ;;  %v6912_v28 = vrot.slane %v6911_v27, 2 }
0x15d3   :  { %v6894_v63 = vadd.f32 %v6893_v8, %v6892_v37  ;;  %v6919_v29 = vrot.slane %v6918_v11, 2 }
0x15d4   :  { %v6901_v54 = vadd.f32 %v6900_v19, %v6899_v35  ;;  %v6907_v32 = vrot.slane %v6906_v2, 1  ;;  %v6913_v52 = vadd.f32 %v6912_v28, %v6911_v27 }
0x15d5   :  { %v6920_v41 = vadd.f32 %v6919_v29, %v6918_v11  ;;  %v6999_v18 = vsel %vm2817_vm7, %v6894_v63, %v6998_v56 }
0x15d6   :  { %v6908_v48 = vadd.f32 %v6907_v32, %v6906_v2  ;;  %v6914_v50 = vrot.slane %v6913_v52, 1  ;;  %v7000_v15 = vsel %vm2819_vm8, %v6901_v54, %v6999_v18 }
0x15d7   :  { %v6921_v34 = vrot.slane %v6920_v41, 1 }
0x15d8   :  { %v6915_v13 = vadd.f32 %v6914_v50, %v6913_v52  ;;  %v7001_v3 = vsel %vm2821_vm9, %v6908_v48, %v7000_v15 }
0x15d9   :  { %v6922_v42 = vadd.f32 %v6921_v34, %v6920_v41 }
0x15da   :  { %v7002_v40 = vsel %vm2823_vm10, %v6915_v13, %v7001_v3 }
0x15db   :  { %v7003_v24 = vsel %vm2825_vm11, %v6922_v42, %v7002_v40 }
0x15dc   :  { %v7080_v21 = vadd.f32 %v11240_v6, %v7003_v24 }
0x15de   :  { %7088 = vst.msk [vmem:[#allocation5] sm:$0xff] %vm2367_vm4, %v7080_v21 }
0x15df   :  { %7947 = shalt.err (!%p7944_p12)
}
0x15e0   :  { %s7948_s27 = scalar_lea.hbm %s11300_s4, 256 }
0x15e1   :  { %p7949_p13 = scmp.ne.s32.totalorder %s11300_s4, %s7948_s27  ;;  %p7952_p0 = scmp.lt.u32.totalorder %s7948_s27, %s11300_s4 }
0x15e3   :  { %p7954_p1 = pnand %p7952_p0, %p7949_p13 }
0x15e5   :  { %7957 = shalt.err (!%p7954_p1)
}
0x15e6   :  { %7101 = dma.vmem_to_hbm [thread:$0]  %s7096_s21, 256, %s11300_s4, [#allocation4], %s7963_s25, %s7963_s25, %s7964_s26  }
0x15e7   :  { %7960 = dma.done.wait [#allocation4], 256  }
0x15e8   :  { %7961 = vsyncadd [#allocation4], 4294967040 }
0x15e9   :  { %7105 = vsyncpa [#allocation3], 1 }
0x15ea   :  { %7106 = vsyncpa [#allocation4], 1 }

</bundles_post_ra>
